<compile_context>
chip_gen: v6e
topology: v6e:2x2x1
jax: 0.10.0
libtpu: 0.0.40
codegen_flags: <defaults>
</compile_context>

<pallas_src>
import functools

import jax
import jax.numpy as jnp
from jax import lax
from jax.experimental import pallas as pl
from jax.experimental.pallas import tpu as pltpu

_LANE = 128


def _round_up(n, m=_LANE):
    return ((n + m - 1) // m) * m


@functools.lru_cache(maxsize=None)
def _probe_roll():
    """Probe pltpu.roll on the second-minor (sublane) axis.

    Returns +1 if roll follows the jnp.roll convention (result[i] = x[i-shift]),
    -1 if it is reversed, 0 if the lowering is unsupported (concat fallback).
    """
    def k(x_ref, o_ref):
        o_ref[...] = pltpu.roll(x_ref[...], shift=1, axis=1)

    try:
        x = jnp.arange(4 * 16 * _LANE, dtype=jnp.float32).reshape(4, 16, _LANE)
        y = pl.pallas_call(k, out_shape=jax.ShapeDtypeStruct(x.shape, x.dtype))(x)
        y = jax.block_until_ready(y)
        if bool(jnp.array_equal(y, jnp.roll(x, 1, axis=1))):
            return 1
        if bool(jnp.array_equal(y, jnp.roll(x, -1, axis=1))):
            return -1
        return 0
    except Exception:
        return 0


def _bottleneck_kernel(x_ref, w1_ref, w2_ref, w3_ref, o_ref, cat_ref, *,
                       H, W, nb, roll_mode):
    # x_ref:   (nb, H*W, Cp)       bf16  VMEM   (Cp = padded in/out channels)
    # w1_ref:  (Cp, Wp)            bf16  VMEM   (Wp = padded bottleneck width)
    # w2_ref:  (3, 3*Wp, Wp)       bf16  VMEM   (kw folded into the contraction)
    # w3_ref:  (Wp, Cp)            bf16  VMEM
    # o_ref:   (nb, H*W, Cp)       bf16  VMEM
    # cat_ref: (nb, H+2, W, 3*Wp)  bf16  VMEM scratch (row-padded im2col buffer)
    Cp = x_ref.shape[-1]
    Wp = w1_ref.shape[-1]
    HW = H * W
    M = nb * HW
    K2 = 3 * Wp

    # ---- conv1 (1x1) + relu: bf16 MXU operands, f32 accumulate -------------
    h1 = jnp.dot(x_ref[...].reshape(M, Cp), w1_ref[...],
                 preferred_element_type=jnp.float32)
    h1 = jnp.maximum(h1, 0.0)                                  # (M, Wp) f32

    # ---- build the row-padded im2col scratch (kx folded into lanes) --------
    # Halo rows are re-zeroed every step: only 2 of H+2 rows, and safe when
    # the batch grid axis is split across TensorCores (a program_id==0
    # one-shot init would only ever run on one core).
    zero_halo = jnp.zeros((nb, 1, W, K2), jnp.bfloat16)
    cat_ref[:, pl.ds(0, 1), :, :] = zero_halo
    cat_ref[:, pl.ds(H + 1, 1), :, :] = zero_halo

    h1r = h1.reshape(nb * H, W, Wp)            # image rows; W on the sublane axis
    if roll_mode != 0:
        # kx shift via XLU rotate + one-column boundary mask (no sublane-
        # misaligned concats on the VPU load/store path).
        s_left = 1 if roll_mode > 0 else W - 1        # value at x comes from x-1
        s_right = W - 1 if roll_mode > 0 else 1       # value at x comes from x+1
        col = lax.broadcasted_iota(jnp.int32, (nb * H, W, 1), 1)
        left = jnp.where(col == 0, 0.0,
                         pltpu.roll(h1r, shift=s_left, axis=1))
        right = jnp.where(col == W - 1, 0.0,
                          pltpu.roll(h1r, shift=s_right, axis=1))
    else:
        # Portability fallback: the concat construction from the previous version.
        zcol = jnp.zeros((nb * H, 1, Wp), jnp.float32)
        left = jnp.concatenate([zcol, h1r[:, :W - 1, :]], axis=1)
        right = jnp.concatenate([h1r[:, 1:, :], zcol], axis=1)

    body = pl.ds(1, H)  # scratch rows 1..H hold image rows 0..H-1
    cat_ref[:, body, :, pl.ds(0 * Wp, Wp)] = (
        left.astype(jnp.bfloat16).reshape(nb, H, W, Wp))        # kx = 0 tap
    cat_ref[:, body, :, pl.ds(1 * Wp, Wp)] = (
        h1.astype(jnp.bfloat16).reshape(nb, H, W, Wp))          # kx = 1 tap
    cat_ref[:, body, :, pl.ds(2 * Wp, Wp)] = (
        right.astype(jnp.bfloat16).reshape(nb, H, W, Wp))       # kx = 2 tap

    # ---- conv2 (3x3, stride=1, pad=1) as 3 matmuls with K = 3*Wp -----------
    # ky taps are free leading-axis slices of the row-padded scratch.  Keep a
    # straight dot-add chain so v7x's MRB can accumulate in place.
    acc = jnp.dot(cat_ref[:, pl.ds(0, H), :, :].reshape(M, K2), w2_ref[0],
                  preferred_element_type=jnp.float32)
    for ky in (1, 2):
        acc = acc + jnp.dot(cat_ref[:, pl.ds(ky, H), :, :].reshape(M, K2),
                            w2_ref[ky], preferred_element_type=jnp.float32)
    h2 = jnp.maximum(acc, 0.0).astype(jnp.bfloat16)

    # ---- conv3 (1x1) + residual add (f32) + relu ----------------------------
    h3 = jnp.dot(h2, w3_ref[...], preferred_element_type=jnp.float32)
    res = h3 + x_ref[...].reshape(M, Cp).astype(jnp.float32)    # re-read x ref
    o_ref[...] = jnp.maximum(res, 0.0).astype(o_ref.dtype).reshape(nb, HW, Cp)


def _pick_batch_block(n, hw, target_m=1024):
    """Merge images per grid step so the matmul M dim is reasonably large."""
    nb = 1
    for cand in range(1, n + 1):
        if n % cand == 0 and cand * hw <= target_m:
            nb = cand
    return nb


def bottleneck_pallas(x_flat, w1, w2, w3, *, H, W, roll_mode=None):
    """x_flat: (N, H*W, Cp) bf16; w1: (Cp, Wp) bf16; w2: (3, 3*Wp, Wp) bf16;
    w3: (Wp, Cp) bf16. Returns (N, H*W, Cp) bf16."""
    N, HW, Cp = x_flat.shape
    Wp = w1.shape[1]
    assert HW == H * W and W % 8 == 0 and Cp % _LANE == 0 and Wp % _LANE == 0
    assert x_flat.dtype == jnp.bfloat16

    if roll_mode is None:
        roll_mode = _probe_roll()
    nb = _pick_batch_block(N, HW)
    kernel = functools.partial(_bottleneck_kernel, H=H, W=W, nb=nb,
                               roll_mode=roll_mode)

    # VMEM budget: double-buffered bf16 x/o blocks + resident weights +
    # im2col scratch + in-kernel temporaries (rough upper bound), clamped so
    # it stays within v7x's 64 MiB physical VMEM.
    blk = nb * HW
    w_bytes = 2 * (Cp * Wp + 9 * Wp * Wp + Wp * Cp)
    est = (2 * 2 * blk * Cp * 2                     # x + o blocks, double-buffered
           + 2 * w_bytes                            # weights
           + nb * (H + 2) * W * 3 * Wp * 2          # im2col scratch
           + blk * (2 * Wp * 4 + 3 * Wp * 2 + 2 * Cp * 4))   # temporaries
    vmem_limit = int(min(48 * 2**20, max(2 * est, 16 * 2**20)))

    flops = 2 * N * HW * (Cp * Wp + 9 * Wp * Wp + Wp * Cp)
    bytes_accessed = (x_flat.size + N * HW * Cp) * 2 + w_bytes

    grid_spec = pltpu.PrefetchScalarGridSpec(
        num_scalar_prefetch=0,
        grid=(N // nb,),
        in_specs=[
            pl.BlockSpec((nb, HW, Cp), lambda n: (n, 0, 0)),
            pl.BlockSpec((Cp, Wp), lambda n: (0, 0)),
            pl.BlockSpec((3, 3 * Wp, Wp), lambda n: (0, 0, 0)),
            pl.BlockSpec((Wp, Cp), lambda n: (0, 0)),
        ],
        out_specs=pl.BlockSpec((nb, HW, Cp), lambda n: (n, 0, 0)),
        scratch_shapes=[pltpu.VMEM((nb, H + 2, W, 3 * Wp), jnp.bfloat16)],
    )

    return pl.pallas_call(
        kernel,
        out_shape=jax.ShapeDtypeStruct((N, HW, Cp), jnp.bfloat16),
        grid_spec=grid_spec,
        compiler_params=pltpu.CompilerParams(
            dimension_semantics=("parallel",),
            vmem_limit_bytes=vmem_limit),
        cost_estimate=pl.CostEstimate(flops=flops, transcendentals=0,
                                      bytes_accessed=bytes_accessed),
    )(x_flat, w1, w2, w3)


def bottleneck_forward_nchw(x_nchw, w1_pt, w2_pt, w3_pt):
    """PyTorch-layout entry point. x: NCHW f32, weights in PyTorch conv layout
    (Cout, Cin, kh, kw). Wrapper does lane-dense channel padding, bf16 casts,
    and the conv2 im2col weight folding (layout plumbing only)."""
    N, Cin, H, W = x_nchw.shape
    width = w1_pt.shape[0]
    Cout = w3_pt.shape[0]
    assert Cout == Cin, "downsample=None requires Cout == Cin"
    Cp = _round_up(Cin)
    Wp = _round_up(width)

    # NCHW -> (N, H*W, Cp) bf16, zero-padded channels (lane-dense last dim).
    x_nhwc = jnp.transpose(x_nchw, (0, 2, 3, 1)).reshape(N, H * W, Cin)
    x_flat = jnp.pad(x_nhwc, ((0, 0), (0, 0), (0, Cp - Cin))).astype(jnp.bfloat16)

    # conv1 1x1: (Cout=width, Cin, 1, 1) -> (Cp, Wp) bf16
    w1 = jnp.transpose(w1_pt[:, :, 0, 0], (1, 0))
    w1 = jnp.pad(w1, ((0, Cp - Cin), (0, Wp - width))).astype(jnp.bfloat16)

    # conv2 3x3: OIHW -> (kh, kw, Cin, Cout), pad channels, fold kw into K.
    w2 = jnp.transpose(w2_pt, (2, 3, 1, 0))
    w2 = jnp.pad(w2, ((0, 0), (0, 0), (0, Wp - width), (0, Wp - width)))
    w2 = w2.reshape(3, 3 * Wp, Wp).astype(jnp.bfloat16)

    # conv3 1x1: (Cout, width, 1, 1) -> (Wp, Cp) bf16
    w3 = jnp.transpose(w3_pt[:, :, 0, 0], (1, 0))
    w3 = jnp.pad(w3, ((0, Wp - width), (0, Cp - Cout))).astype(jnp.bfloat16)

    roll_mode = _probe_roll()
    try:
        y_flat = bottleneck_pallas(x_flat, w1, w2, w3, H=H, W=W,
                                   roll_mode=roll_mode)
        y_flat = jax.block_until_ready(y_flat)
    except Exception:
        if roll_mode == 0:
            raise
        # Defensive fallback: rebuild with the concat-based tap construction.
        y_flat = bottleneck_pallas(x_flat, w1, w2, w3, H=H, W=W, roll_mode=0)

    y = y_flat[:, :, :Cout].astype(jnp.float32).reshape(N, H, W, Cout)
    return jnp.transpose(y, (0, 3, 1, 2))                       # back to NCHW f32


def _reference_nchw(x, w1_pt, w2_pt, w3_pt):
    """Plain-JAX f32 reference matching the PyTorch forward (NCHW)."""
    dn = lax.conv_dimension_numbers(x.shape, w1_pt.shape, ("NCHW", "OIHW", "NCHW"))
    h = lax.conv_general_dilated(x, w1_pt, (1, 1), "VALID", dimension_numbers=dn)
    h = jnp.maximum(h, 0.0)
    dn2 = lax.conv_dimension_numbers(h.shape, w2_pt.shape, ("NCHW", "OIHW", "NCHW"))
    h = lax.conv_general_dilated(h, w2_pt, (1, 1), ((1, 1), (1, 1)),
                                 dimension_numbers=dn2)
    h = jnp.maximum(h, 0.0)
    dn3 = lax.conv_dimension_numbers(h.shape, w3_pt.shape, ("NCHW", "OIHW", "NCHW"))
    h = lax.conv_general_dilated(h, w3_pt, (1, 1), "VALID", dimension_numbers=dn3)
    return jnp.maximum(h + x, 0.0)


if __name__ == "__main__":
    # Small Bottleneck: inplanes=16, planes=4 -> width=4, expansion*planes=16
    inplanes, planes = 16, 4
    width = planes          # base_width=64, groups=1
    out_ch = planes * 4     # expansion = 4
    N, H, W = 4, 16, 16     # N=4 exercises both batch merging and a multi-step grid

    key = jax.random.PRNGKey(0)
    kx, k1, k2, k3 = jax.random.split(key, 4)
    x = jax.random.normal(kx, (N, inplanes, H, W), dtype=jnp.float32)
    # PyTorch conv weight layout: (Cout, Cin, kh, kw)
    w1_pt = 0.1 * jax.random.normal(k1, (width, inplanes, 1, 1), dtype=jnp.float32)
    w2_pt = 0.1 * jax.random.normal(k2, (width, width, 3, 3), dtype=jnp.float32)
    w3_pt = 0.1 * jax.random.normal(k3, (out_ch, width, 1, 1), dtype=jnp.float32)

    y = jax.block_until_ready(bottleneck_forward_nchw(x, w1_pt, w2_pt, w3_pt))
    y_ref = jax.block_until_ready(_reference_nchw(x, w1_pt, w2_pt, w3_pt))

    assert y.shape == (N, out_ch, H, W)
    # bf16 end-to-end streaming (x, y) + bf16 MXU operands with f32 accumulate
    # -> slightly looser tolerance vs the f32 reference.
    assert jnp.allclose(y, y_ref, atol=7e-2, rtol=5e-2), "mismatch vs reference"

    print("KERNEL_OK")
</pallas_src>

<mosaic_0001>
module attributes {stable_mosaic.version = 11 : i64} {
  func.func @k(%arg0: memref<4x16x128xf32, #tpu.memory_space<vmem>>, %arg1: memref<4x16x128xf32, #tpu.memory_space<vmem>>) attributes {dimension_semantics = [], scalar_prefetch = 0 : i64, scratch_operands = 0 : i64, tpu.core_type = #tpu.core_type<tc>} {
    %c0 = arith.constant 0 : index
    %c0_0 = arith.constant 0 : index
    %c0_1 = arith.constant 0 : index
    %0 = vector.load %arg0[%c0, %c0_0, %c0_1] : memref<4x16x128xf32, #tpu.memory_space<vmem>>, vector<4x16x128xf32>
    %c1_i32 = arith.constant 1 : i32
    %1 = tpu.dynamic_rotate %0 by %c1_i32 dim 1 : vector<4x16x128xf32>, i32 -> vector<4x16x128xf32>
    %c0_2 = arith.constant 0 : index
    %c0_3 = arith.constant 0 : index
    %c0_4 = arith.constant 0 : index
    %2 = vector.load %arg1[%c0_2, %c0_3, %c0_4] : memref<4x16x128xf32, #tpu.memory_space<vmem>>, vector<4x16x128xf32>
    tpu.vector_store %arg1[%c0_2, %c0_3, %c0_4], %1 {strides = array<i32>} : memref<4x16x128xf32, #tpu.memory_space<vmem>>, vector<4x16x128xf32>,
    return
  }
}

module attributes {stable_mosaic.version = 11 : i64} {
  func.func @_bottleneck_kernel(%arg0: i32, %arg1: memref<4x256x128xbf16, #tpu.memory_space<vmem>>, %arg2: memref<128x128xbf16, #tpu.memory_space<vmem>>, %arg3: memref<3x384x128xbf16, #tpu.memory_space<vmem>>, %arg4: memref<128x128xbf16, #tpu.memory_space<vmem>>, %arg5: memref<4x256x128xbf16, #tpu.memory_space<vmem>>, %arg6: memref<4x18x16x384xbf16, #tpu.memory_space<vmem>>) attributes {dimension_semantics = [#tpu.dimension_semantics<parallel>], iteration_bounds = array<i64: 1>, scalar_prefetch = 0 : i64, scratch_operands = 1 : i64, tpu.core_type = #tpu.core_type<tc>, window_params = [{transform_indices = @transform_0, window_bounds = array<i64: 4, 256, 128>}, {pipeline_mode = #tpu.pipeline_mode<synchronous>, transform_indices = @transform_1, window_bounds = array<i64: 128, 128>}, {pipeline_mode = #tpu.pipeline_mode<synchronous>, transform_indices = @transform_2, window_bounds = array<i64: 3, 384, 128>}, {pipeline_mode = #tpu.pipeline_mode<synchronous>, transform_indices = @transform_3, window_bounds = array<i64: 128, 128>}, {transform_indices = @transform_4, window_bounds = array<i64: 4, 256, 128>}]} {
    %c0 = arith.constant 0 : index
    %c0_0 = arith.constant 0 : index
    %c0_1 = arith.constant 0 : index
    %0 = vector.load %arg1[%c0, %c0_0, %c0_1] : memref<4x256x128xbf16, #tpu.memory_space<vmem>>, vector<4x256x128xbf16>
    %1 = vector.shape_cast %0 : vector<4x256x128xbf16> to vector<1024x128xbf16>
    %c0_2 = arith.constant 0 : index
    %c0_3 = arith.constant 0 : index
    %2 = vector.load %arg2[%c0_2, %c0_3] : memref<128x128xbf16, #tpu.memory_space<vmem>>, vector<128x128xbf16>
    %cst = arith.constant dense<0.000000e+00> : vector<1024x128xf32>
    %3 = tpu.matmul %1, %2, %cst {dimension_numbers = #tpu.dot_dimension_numbers<[1], [0], [0], [1], [0, 0, 1, 1], [], []>} : vector<1024x128xbf16>, vector<128x128xbf16>, vector<1024x128xf32> -> vector<1024x128xf32>
    %cst_4 = arith.constant 0.000000e+00 : f32
    %4 = vector.broadcast %cst_4 : f32 to vector<1024x128xf32>
    %5 = arith.maximumf %3, %4 : vector<1024x128xf32>
    %cst_5 = arith.constant 0.000000e+00 : bf16
    %6 = vector.broadcast %cst_5 : bf16 to vector<4x1x16x384xbf16>
    %c0_6 = arith.constant 0 : index
    %c0_7 = arith.constant 0 : index
    %c0_8 = arith.constant 0 : index
    %c0_9 = arith.constant 0 : index
    %7 = vector.load %arg6[%c0_6, %c0_7, %c0_8, %c0_9] : memref<4x18x16x384xbf16, #tpu.memory_space<vmem>>, vector<4x1x16x384xbf16>
    tpu.vector_store %arg6[%c0_6, %c0_7, %c0_8, %c0_9], %6 {strides = array<i32>} : memref<4x18x16x384xbf16, #tpu.memory_space<vmem>>, vector<4x1x16x384xbf16>,
    %c0_10 = arith.constant 0 : index
    %c17 = arith.constant 17 : index
    %c0_11 = arith.constant 0 : index
    %c0_12 = arith.constant 0 : index
    %8 = vector.load %arg6[%c0_10, %c17, %c0_11, %c0_12] : memref<4x18x16x384xbf16, #tpu.memory_space<vmem>>, vector<4x1x16x384xbf16>
    tpu.vector_store %arg6[%c0_10, %c17, %c0_11, %c0_12], %6 {strides = array<i32>} : memref<4x18x16x384xbf16, #tpu.memory_space<vmem>>, vector<4x1x16x384xbf16>,
    %9 = vector.shape_cast %5 : vector<1024x128xf32> to vector<64x16x128xf32>
    %cst_13 = arith.constant 0.000000e+00 : f32
    %10 = vector.broadcast %cst_13 : f32 to vector<64x1x128xf32>
    %11 = vector.extract_strided_slice %9 {offsets = [0, 0, 0], sizes = [64, 15, 128], strides = [1, 1, 1]} : vector<64x16x128xf32> to vector<64x15x128xf32>
    %12 = tpu.concatenate %10, %11 in 1 : vector<64x1x128xf32>, vector<64x15x128xf32> -> vector<64x16x128xf32>
    %13 = vector.extract_strided_slice %9 {offsets = [0, 1, 0], sizes = [64, 15, 128], strides = [1, 1, 1]} : vector<64x16x128xf32> to vector<64x15x128xf32>
    %14 = tpu.concatenate %13, %10 in 1 : vector<64x15x128xf32>, vector<64x1x128xf32> -> vector<64x16x128xf32>
    %15 = arith.truncf %12 : vector<64x16x128xf32> to vector<64x16x128xbf16>
    %16 = vector.shape_cast %15 : vector<64x16x128xbf16> to vector<4x16x16x128xbf16>
    %c0_14 = arith.constant 0 : index
    %c1 = arith.constant 1 : index
    %c0_15 = arith.constant 0 : index
    %c0_16 = arith.constant 0 : index
    %17 = vector.load %arg6[%c0_14, %c1, %c0_15, %c0_16] : memref<4x18x16x384xbf16, #tpu.memory_space<vmem>>, vector<4x16x16x128xbf16>
    tpu.vector_store %arg6[%c0_14, %c1, %c0_15, %c0_16], %16 {strides = array<i32>} : memref<4x18x16x384xbf16, #tpu.memory_space<vmem>>, vector<4x16x16x128xbf16>,
    %18 = arith.truncf %5 : vector<1024x128xf32> to vector<1024x128xbf16>
    %19 = vector.shape_cast %18 : vector<1024x128xbf16> to vector<4x16x16x128xbf16>
    %c0_17 = arith.constant 0 : index
    %c1_18 = arith.constant 1 : index
    %c0_19 = arith.constant 0 : index
    %c128 = arith.constant 128 : index
    %20 = vector.load %arg6[%c0_17, %c1_18, %c0_19, %c128] : memref<4x18x16x384xbf16, #tpu.memory_space<vmem>>, vector<4x16x16x128xbf16>
    tpu.vector_store %arg6[%c0_17, %c1_18, %c0_19, %c128], %19 {strides = array<i32>} : memref<4x18x16x384xbf16, #tpu.memory_space<vmem>>, vector<4x16x16x128xbf16>,
    %21 = arith.truncf %14 : vector<64x16x128xf32> to vector<64x16x128xbf16>
    %22 = vector.shape_cast %21 : vector<64x16x128xbf16> to vector<4x16x16x128xbf16>
    %c0_20 = arith.constant 0 : index
    %c1_21 = arith.constant 1 : index
    %c0_22 = arith.constant 0 : index
    %c256 = arith.constant 256 : index
    %23 = vector.load %arg6[%c0_20, %c1_21, %c0_22, %c256] : memref<4x18x16x384xbf16, #tpu.memory_space<vmem>>, vector<4x16x16x128xbf16>
    tpu.vector_store %arg6[%c0_20, %c1_21, %c0_22, %c256], %22 {strides = array<i32>} : memref<4x18x16x384xbf16, #tpu.memory_space<vmem>>, vector<4x16x16x128xbf16>,
    %c0_23 = arith.constant 0 : index
    %c0_24 = arith.constant 0 : index
    %c0_25 = arith.constant 0 : index
    %c0_26 = arith.constant 0 : index
    %24 = vector.load %arg6[%c0_23, %c0_24, %c0_25, %c0_26] : memref<4x18x16x384xbf16, #tpu.memory_space<vmem>>, vector<4x16x16x384xbf16>
    %25 = vector.shape_cast %24 : vector<4x16x16x384xbf16> to vector<1024x384xbf16>
    %c0_27 = arith.constant 0 : index
    %c0_28 = arith.constant 0 : index
    %c0_29 = arith.constant 0 : index
    %26 = vector.load %arg3[%c0_27, %c0_28, %c0_29] : memref<3x384x128xbf16, #tpu.memory_space<vmem>>, vector<1x384x128xbf16>
    %27 = vector.shape_cast %26 : vector<1x384x128xbf16> to vector<384x128xbf16>
    %cst_30 = arith.constant dense<0.000000e+00> : vector<1024x128xf32>
    %28 = tpu.matmul %25, %27, %cst_30 {dimension_numbers = #tpu.dot_dimension_numbers<[1], [0], [0], [1], [0, 0, 1, 1], [], []>} : vector<1024x384xbf16>, vector<384x128xbf16>, vector<1024x128xf32> -> vector<1024x128xf32>
    %c0_31 = arith.constant 0 : index
    %c1_32 = arith.constant 1 : index
    %c0_33 = arith.constant 0 : index
    %c0_34 = arith.constant 0 : index
    %29 = vector.load %arg6[%c0_31, %c1_32, %c0_33, %c0_34] : memref<4x18x16x384xbf16, #tpu.memory_space<vmem>>, vector<4x16x16x384xbf16>
    %30 = vector.shape_cast %29 : vector<4x16x16x384xbf16> to vector<1024x384xbf16>
    %c1_35 = arith.constant 1 : index
    %c0_36 = arith.constant 0 : index
    %c0_37 = arith.constant 0 : index
    %31 = vector.load %arg3[%c1_35, %c0_36, %c0_37] : memref<3x384x128xbf16, #tpu.memory_space<vmem>>, vector<1x384x128xbf16>
    %32 = vector.shape_cast %31 : vector<1x384x128xbf16> to vector<384x128xbf16>
    %cst_38 = arith.constant dense<0.000000e+00> : vector<1024x128xf32>
    %33 = tpu.matmul %30, %32, %cst_38 {dimension_numbers = #tpu.dot_dimension_numbers<[1], [0], [0], [1], [0, 0, 1, 1], [], []>} : vector<1024x384xbf16>, vector<384x128xbf16>, vector<1024x128xf32> -> vector<1024x128xf32>
    %34 = arith.addf %28, %33 : vector<1024x128xf32>
    %c0_39 = arith.constant 0 : index
    %c2 = arith.constant 2 : index
    %c0_40 = arith.constant 0 : index
    %c0_41 = arith.constant 0 : index
    %35 = vector.load %arg6[%c0_39, %c2, %c0_40, %c0_41] : memref<4x18x16x384xbf16, #tpu.memory_space<vmem>>, vector<4x16x16x384xbf16>
    %36 = vector.shape_cast %35 : vector<4x16x16x384xbf16> to vector<1024x384xbf16>
    %c2_42 = arith.constant 2 : index
    %c0_43 = arith.constant 0 : index
    %c0_44 = arith.constant 0 : index
    %37 = vector.load %arg3[%c2_42, %c0_43, %c0_44] : memref<3x384x128xbf16, #tpu.memory_space<vmem>>, vector<1x384x128xbf16>
    %38 = vector.shape_cast %37 : vector<1x384x128xbf16> to vector<384x128xbf16>
    %cst_45 = arith.constant dense<0.000000e+00> : vector<1024x128xf32>
    %39 = tpu.matmul %36, %38, %cst_45 {dimension_numbers = #tpu.dot_dimension_numbers<[1], [0], [0], [1], [0, 0, 1, 1], [], []>} : vector<1024x384xbf16>, vector<384x128xbf16>, vector<1024x128xf32> -> vector<1024x128xf32>
    %40 = arith.addf %34, %39 : vector<1024x128xf32>
    %cst_46 = arith.constant 0.000000e+00 : f32
    %41 = vector.broadcast %cst_46 : f32 to vector<1024x128xf32>
    %42 = arith.maximumf %40, %41 : vector<1024x128xf32>
    %43 = arith.truncf %42 : vector<1024x128xf32> to vector<1024x128xbf16>
    %c0_47 = arith.constant 0 : index
    %c0_48 = arith.constant 0 : index
    %44 = vector.load %arg4[%c0_47, %c0_48] : memref<128x128xbf16, #tpu.memory_space<vmem>>, vector<128x128xbf16>
    %cst_49 = arith.constant dense<0.000000e+00> : vector<1024x128xf32>
    %45 = tpu.matmul %43, %44, %cst_49 {dimension_numbers = #tpu.dot_dimension_numbers<[1], [0], [0], [1], [0, 0, 1, 1], [], []>} : vector<1024x128xbf16>, vector<128x128xbf16>, vector<1024x128xf32> -> vector<1024x128xf32>
    %c0_50 = arith.constant 0 : index
    %c0_51 = arith.constant 0 : index
    %c0_52 = arith.constant 0 : index
    %46 = vector.load %arg1[%c0_50, %c0_51, %c0_52] : memref<4x256x128xbf16, #tpu.memory_space<vmem>>, vector<4x256x128xbf16>
    %47 = vector.shape_cast %46 : vector<4x256x128xbf16> to vector<1024x128xbf16>
    %48 = arith.extf %47 : vector<1024x128xbf16> to vector<1024x128xf32>
    %49 = arith.addf %45, %48 : vector<1024x128xf32>
    %cst_53 = arith.constant 0.000000e+00 : f32
    %50 = vector.broadcast %cst_53 : f32 to vector<1024x128xf32>
    %51 = arith.maximumf %49, %50 : vector<1024x128xf32>
    %52 = arith.truncf %51 : vector<1024x128xf32> to vector<1024x128xbf16>
    %53 = vector.shape_cast %52 : vector<1024x128xbf16> to vector<4x256x128xbf16>
    %c0_54 = arith.constant 0 : index
    %c0_55 = arith.constant 0 : index
    %c0_56 = arith.constant 0 : index
    %54 = vector.load %arg5[%c0_54, %c0_55, %c0_56] : memref<4x256x128xbf16, #tpu.memory_space<vmem>>, vector<4x256x128xbf16>
    tpu.vector_store %arg5[%c0_54, %c0_55, %c0_56], %53 {strides = array<i32>} : memref<4x256x128xbf16, #tpu.memory_space<vmem>>, vector<4x256x128xbf16>,
    return
  }
  func.func @transform_0(%arg0: i32) -> (i32, i32, i32) {
    %c0_i32 = arith.constant 0 : i32
    %c0_i32_0 = arith.constant 0 : i32
    %c0_i32_1 = arith.constant 0 : i32
    return %arg0, %c0_i32, %c0_i32_0 : i32, i32, i32
  }
  func.func @transform_1(%arg0: i32) -> (i32, i32) {
    %c0_i32 = arith.constant 0 : i32
    %c0_i32_0 = arith.constant 0 : i32
    %c0_i32_1 = arith.constant 0 : i32
    return %c0_i32, %c0_i32_0 : i32, i32
  }
  func.func @transform_2(%arg0: i32) -> (i32, i32, i32) {
    %c0_i32 = arith.constant 0 : i32
    %c0_i32_0 = arith.constant 0 : i32
    %c0_i32_1 = arith.constant 0 : i32
    %c0_i32_2 = arith.constant 0 : i32
    return %c0_i32, %c0_i32_0, %c0_i32_1 : i32, i32, i32
  }
  func.func @transform_3(%arg0: i32) -> (i32, i32) {
    %c0_i32 = arith.constant 0 : i32
    %c0_i32_0 = arith.constant 0 : i32
    %c0_i32_1 = arith.constant 0 : i32
    return %c0_i32, %c0_i32_0 : i32, i32
  }
  func.func @transform_4(%arg0: i32) -> (i32, i32, i32) {
    %c0_i32 = arith.constant 0 : i32
    %c0_i32_0 = arith.constant 0 : i32
    %c0_i32_1 = arith.constant 0 : i32
    return %arg0, %c0_i32, %c0_i32_0 : i32, i32, i32
  }
}

</mosaic_0001>

<bundles_post_ra>
// kernel: tpu_custom_call.1
= control target key start
LH: loop header
LB: loop body
LE: loop exit
PB: predicated region body
PF: predicated region fallthrough
CT: control target
= control target key end

     0   :  { %6 = vsyncpa [#allocation3], 0  ;;  %s157_s0 = inlined_call_operand.hbm [shape: f32[4,16,128], index: 0, kind: input, shape index: {}]   ;;  %s158_s1 = inlined_call_operand.hbm [shape: f32[4,16,128], index: 1, kind: output, shape index: {}]  }
   0x1   :  { %7 = vsyncpa [#allocation4], 0  ;;  %s123_s6 = smov [#allocation2]  }
   0x2   :  { %s13_s7 = sshll.u32 %s123_s6, 4  ;;  %s14_s7 = int_to_ptr.vmem [resolvable:$true] %s13_s7 }
   0x3   :  { %s87_s8 = scalar_lea.vmem %s14_s7, 1024  ;;  %p92_p1 = scmp.lt.s32.totalorder %s14_s7, %s14_s7 }
   0x4   :  { %p88_p0 = scmp.ne.s32.totalorder %s14_s7, %s87_s8  ;;  %p93_p2 = scmp.lt.s32.totalorder %s87_s8, %s87_s8 }
   0x6   :  { %p94_p3 = por %p93_p2, %p92_p1 }
   0x8   :  { %p95_p4 = pnand %p94_p3, %p88_p0 }
   0xa   :  { %98 = shalt.err (!%p95_p4)
}
   0xb   :  { %s124_s9 = smov 128   ;;  %s125_s10 = smov 8  }
   0xc   :  { %19 = dma.hbm_to_vmem [thread:$0]  %s157_s0, 1024, %s14_s7, [#allocation3], %s124_s9, %s124_s9, %s125_s10  }
   0xd   :  { %119 = dma.done.wait [#allocation3], 1024  }
   0xe   :  { %120 = vsyncadd [#allocation3], 4294966272  ;;  %v39_v0 = vlaneseq  ;;  %v23_v2 = vld [vmem:[#allocation2] sm:$0xff]  ;;  %v24_v3 = vld [vmem:[#allocation2 + $0x8] sm:$0xff]  ;;  %s126_s13 = smov [#allocation5]  }
   0xf   :  { %v25_v4 = vld [vmem:[#allocation2 + $0x10] sm:$0xff]  ;;  %s63_s14 = sshll.u32 %s126_s13, 4  ;;  %v31_v5 = vrot.slane %v23_v2, 7  ;;  %v35_v6 = vrot.slane %v24_v3, 7  ;;  %v26_v7 = vld [vmem:[#allocation2 + $0x18] sm:$0xff]  ;;  %v27_v9 = vld [vmem:[#allocation2 + $0x20] sm:$0xff]  ;;  %s64_s14 = int_to_ptr.vmem [resolvable:$true] %s63_s14 }
  0x10   :  { %v40_v1 = vshrl.u32 %v39_v0, 7  ;;  %v32_v8 = vrot.slane %v25_v4, 7  ;;  %v28_v10 = vld [vmem:[#allocation2 + $0x28] sm:$0xff]  ;;  %v36_v11 = vrot.slane %v26_v7, 7  ;;  %v33_v12 = vrot.slane %v27_v9, 7  ;;  %v29_v14 = vld [vmem:[#allocation2 + $0x30] sm:$0xff]  ;;  %p104_p6 = scmp.lt.s32.totalorder %s64_s14, %s64_s14 }
  0x11   :  { %v37_v13 = vrot.slane %v28_v10, 7  ;;  %v30_v15 = vld [vmem:[#allocation2 + $0x38] sm:$0xff]  ;;  %v34_v18 = vrot.slane %v29_v14, 7  ;;  %s99_s0 = scalar_lea.vmem %s64_s14, 1024 }
  0x12   :  { %vm41_vm0 = vcmp.lt.s32.totalorder %v40_v1, 1  ;;  %v38_v19 = vrot.slane %v30_v15, 7  ;;  %p100_p5 = scmp.ne.s32.totalorder %s64_s14, %s99_s0  ;;  %p105_p7 = scmp.lt.s32.totalorder %s99_s0, %s99_s0 }
  0x13   :  { %v46_v16 = vsel %vm41_vm0, %v35_v6, %v31_v5  ;;  %v42_v17 = vsel %vm41_vm0, %v31_v5, %v35_v6  ;;  %v47_v20 = vsel %vm41_vm0, %v36_v11, %v32_v8  ;;  %v43_v21 = vsel %vm41_vm0, %v32_v8, %v36_v11 }
  0x14   :  { %50 = vst [vmem:[#allocation5] sm:$0xff] %v46_v16  ;;  %51 = vst [vmem:[#allocation5 + $0x8] sm:$0xff] %v42_v17  ;;  %v48_v22 = vsel %vm41_vm0, %v37_v13, %v33_v12  ;;  %v44_v23 = vsel %vm41_vm0, %v33_v12, %v37_v13  ;;  %v49_v24 = vsel %vm41_vm0, %v38_v19, %v34_v18  ;;  %p106_p8 = por %p105_p7, %p104_p6 }
  0x15   :  { %52 = vst [vmem:[#allocation5 + $0x10] sm:$0xff] %v47_v20  ;;  %53 = vst [vmem:[#allocation5 + $0x18] sm:$0xff] %v43_v21  ;;  %v45_v25 = vsel %vm41_vm0, %v34_v18, %v38_v19 }
  0x16   :  { %54 = vst [vmem:[#allocation5 + $0x20] sm:$0xff] %v48_v22  ;;  %55 = vst [vmem:[#allocation5 + $0x28] sm:$0xff] %v44_v23  ;;  %p107_p9 = pnand %p106_p8, %p100_p5 }
  0x17   :  { %56 = vst [vmem:[#allocation5 + $0x30] sm:$0xff] %v49_v24  ;;  %57 = vst [vmem:[#allocation5 + $0x38] sm:$0xff] %v45_v25 }
  0x18   :  { %110 = shalt.err (!%p107_p9)
}
  0x19   :  { %69 = dma.vmem_to_hbm [thread:$0]  %s64_s14, 1024, %s158_s1, [#allocation4], %s124_s9, %s124_s9, %s125_s10  }
  0x1a   :  { %121 = dma.done.wait [#allocation4], 1024  }
  0x1b   :  { %122 = vsyncadd [#allocation4], 4294966272 }
  0x1c   :  { %73 = vsyncpa [#allocation3], 1 }
  0x1d   :  { %74 = vsyncpa [#allocation4], 1 }

// kernel: tpu_custom_call.1
= control target key start
LH: loop header
LB: loop body
LE: loop exit
PB: predicated region body
PF: predicated region fallthrough
CT: control target
= control target key end

     0   :  { %9 = vsyncpa [#allocation4], 0  ;;  %s21401_s0 = inlined_call_operand.hbm [shape: bf16[4,256,128], index: 0, kind: input, shape index: {}]   ;;  %s21402_s1 = inlined_call_operand.hbm [shape: bf16[128,128], index: 1, kind: input, shape index: {}]   ;;  %s21403_s2 = inlined_call_operand.hbm [shape: bf16[3,384,128], index: 2, kind: input, shape index: {}]   ;;  %s21404_s3 = inlined_call_operand.hbm [shape: bf16[128,128], index: 3, kind: input, shape index: {}]   ;;  %s21405_s4 = inlined_call_operand.hbm [shape: bf16[4,256,128], index: 4, kind: output, shape index: {}]  }
   0x1   :  { %10 = vsyncpa [#allocation7], 0 }
   0x2   :  { %11 = vsyncpa [#allocation10], 0 }
   0x3   :  { %12 = vsyncpa [#allocation5], 0  ;;  %s18404_s15 = smov [#allocation6]   ;;  %s18405_s17 = smov [#allocation3]  }
   0x4   :  { %s30_s16 = sshll.u32 %s18404_s15, 4  ;;  %s18_s18 = sshll.u32 %s18405_s17, 4  ;;  %s31_s16 = int_to_ptr.vmem [resolvable:$true] %s30_s16  ;;  %s19_s18 = int_to_ptr.vmem [resolvable:$true] %s18_s18 }
   0x5   :  { %s18304_s19 = scalar_lea.vmem %s31_s16, 1024  ;;  %p18309_p1 = scmp.lt.s32.totalorder %s31_s16, %s31_s16 }
   0x6   :  { %p18305_p0 = scmp.ne.s32.totalorder %s31_s16, %s18304_s19  ;;  %p18310_p2 = scmp.lt.s32.totalorder %s18304_s19, %s18304_s19 }
   0x8   :  { %p18311_p3 = por %p18310_p2, %p18309_p1 }
   0xa   :  { %p18312_p4 = pnand %p18311_p3, %p18305_p0 }
   0xc   :  { %18315 = shalt.err (!%p18312_p4)
}
   0xd   :  { %s18406_s20 = smov 64   ;;  %s18407_s21 = smov 4  }
   0xe   :  { %36 = dma.hbm_to_vmem [thread:$0]  %s21402_s1, 1024, %s31_s16, [#allocation7], %s18406_s20, %s18406_s20, %s18407_s21  }
   0xf   :  { %s18324_s24 = scalar_lea.vmem %s19_s18, 8192  ;;  %p18329_p6 = scmp.lt.s32.totalorder %s19_s18, %s19_s18 }
  0x10   :  { %p18325_p5 = scmp.ne.s32.totalorder %s19_s18, %s18324_s24  ;;  %p18330_p7 = scmp.lt.s32.totalorder %s18324_s24, %s18324_s24 }
  0x12   :  { %p18331_p8 = por %p18330_p7, %p18329_p6 }
  0x14   :  { %p18332_p9 = pnand %p18331_p8, %p18325_p5 }
  0x16   :  { %18335 = shalt.err (!%p18332_p9)
}
  0x17   :  { %24 = dma.hbm_to_vmem [thread:$0]  %s21401_s0, 8192, %s19_s18, [#allocation4], %s18406_s20, %s18406_s20, %s18407_s21  }
  0x18   :  { %s18408_s27 = smov [#allocation8]   ;;  %s18409_s29 = smov [#allocation9]  }
  0x19   :  { %s42_s28 = sshll.u32 %s18408_s27, 4  ;;  %s54_s30 = sshll.u32 %s18409_s29, 4  ;;  %s43_s28 = int_to_ptr.vmem [resolvable:$true] %s42_s28  ;;  %s55_s30 = int_to_ptr.vmem [resolvable:$true] %s54_s30 }
  0x1a   :  { %s18344_s1 = scalar_lea.vmem %s43_s28, 9216  ;;  %p18349_p11 = scmp.lt.s32.totalorder %s43_s28, %s43_s28 }
  0x1b   :  { %p18345_p10 = scmp.ne.s32.totalorder %s43_s28, %s18344_s1  ;;  %p18350_p12 = scmp.lt.s32.totalorder %s18344_s1, %s18344_s1 }
  0x1d   :  { %p18351_p13 = por %p18350_p12, %p18349_p11 }
  0x1f   :  { %p18352_p0 = pnand %p18351_p13, %p18345_p10 }
  0x21   :  { %18355 = shalt.err (!%p18352_p0)
}
  0x22   :  { %48 = dma.hbm_to_vmem [thread:$0]  %s21403_s2, 9216, %s43_s28, [#allocation7], %s18406_s20, %s18406_s20, %s18407_s21  }
  0x23   :  { %s18364_s0 = scalar_lea.vmem %s55_s30, 1024  ;;  %p18369_p2 = scmp.lt.s32.totalorder %s55_s30, %s55_s30 }
  0x24   :  { %p18365_p1 = scmp.ne.s32.totalorder %s55_s30, %s18364_s0  ;;  %p18370_p3 = scmp.lt.s32.totalorder %s18364_s0, %s18364_s0 }
  0x26   :  { %p18371_p4 = por %p18370_p3, %p18369_p2 }
  0x28   :  { %p18372_p5 = pnand %p18371_p4, %p18365_p1 }
  0x2a   :  { %18375 = shalt.err (!%p18372_p5)
}
  0x2b   :  { %60 = dma.hbm_to_vmem [thread:$0]  %s21404_s3, 1024, %s55_s30, [#allocation10], %s18406_s20, %s18406_s20, %s18407_s21  }
  0x2c   :  { %18396 = dma.done.wait [#allocation4], 8192  }
  0x2d   :  { %18397 = vsyncadd [#allocation4], 4294959104 }
  0x2e   :  { %18398 = dma.done.wait [#allocation7], 10240  }
  0x2f   :  { %18399 = vsyncadd [#allocation7], 4294957056 }
  0x30   :  { %18400 = dma.done.wait [#allocation10], 1024  }
  0x31   :  { %18401 = vsyncadd [#allocation10], 4294966272  ;;  %v18410_v0 = vmov 0   ;;  %v17394_v1 = vld [vmem:[#allocation6 + $0x38] sm:$0xff]   ;;  %v17395_v2 = vld [vmem:[#allocation6 + $0x30] sm:$0xff]   ;;  %vm1484_vm0 = vcmask 1040384  }
  0x32   :  { %1323 = vst [vmem:[#allocation2] sm:$0xff] %v18410_v0  ;;  %1324 = vst [vmem:[#allocation2 + $0x8] sm:$0xf] %v18410_v0  ;;  %16650 = vmatprep.subr.bf16.mxu0 %v17394_v1  ;;  %17370 = vmatprep.subr.bf16.mxu1 %v17394_v1  ;;  %v17396_v3 = vld [vmem:[#allocation6 + $0x28] sm:$0xff]   ;;  %v17397_v4 = vld [vmem:[#allocation6 + $0x20] sm:$0xff]   ;;  %vm1869_vm1 = vcmask 1046528  }
  0x33   :  { %1326 = vst [vmem:[#allocation2 + $0x14] sm:$0xf] %v18410_v0  ;;  %1328 = vst [vmem:[#allocation2 + $0x1b8] sm:$0xf] %v18410_v0  ;;  %16651 = vmatpush3.bf16.msra.mxu0 %v17394_v1  ;;  %17378 = vmatpush3.bf16.msra.mxu1 %v17394_v1  ;;  %v17402_v5 = vld [vmem:[#allocation3] sm:$0xff]   ;;  %v17398_v6 = vld [vmem:[#allocation6 + $0x18] sm:$0xff]  }
  0x34   :  { %1330 = vst [vmem:[#allocation2 + $0x1c4] sm:$0xf] %v18410_v0  ;;  %1332 = vst [vmem:[#allocation2 + $0x368] sm:$0xf] %v18410_v0  ;;  %16652 = vmatprep.subr.bf16.mxu0 %v17395_v2  ;;  %17371 = vmatprep.subr.bf16.mxu1 %v17395_v2  ;;  %v17399_v7 = vld [vmem:[#allocation6 + $0x10] sm:$0xff]   ;;  %v17400_v8 = vld [vmem:[#allocation6 + $0x8] sm:$0xff]  }
  0x35   :  { %1334 = vst [vmem:[#allocation2 + $0x374] sm:$0xf] %v18410_v0  ;;  %1336 = vst [vmem:[#allocation2 + $0x518] sm:$0xf] %v18410_v0  ;;  %16666 = vmatprep.mubr.bf16.mxu0 %v17402_v5  ;;  %v17401_v9 = vld [vmem:[#allocation6] sm:$0xff]   ;;  %v17403_v10 = vld [vmem:[#allocation3 + $0x8] sm:$0xff]  }
  0x36   :  { %1338 = vst [vmem:[#allocation2 + $0x524] sm:$0xf] %v18410_v0  ;;  %1341 = vst [vmem:[#allocation2 + $0x1a0] sm:$0xf] %v18410_v0  ;;  %v17423_v11 = vld [vmem:[#allocation3 + $0x100] sm:$0xff]   ;;  %v17404_v12 = vld [vmem:[#allocation3 + $0x10] sm:$0xff]  }
  0x37   :  { %1343 = vst [vmem:[#allocation2 + $0x1ac] sm:$0xf] %v18410_v0  ;;  %1345 = vst [vmem:[#allocation2 + $0x350] sm:$0xf] %v18410_v0  ;;  %16653 = vmatpush3.bf16.msra.mxu0 %v17395_v2  ;;  %17379 = vmatpush3.bf16.msra.mxu1 %v17395_v2  ;;  %v17425_v13 = vld [vmem:[#allocation3 + $0x108] sm:$0xff]   ;;  %v17427_v14 = vld [vmem:[#allocation3 + $0x110] sm:$0xff]  }
  0x38   :  { %1347 = vst [vmem:[#allocation2 + $0x35c] sm:$0xf] %v18410_v0  ;;  %1349 = vst [vmem:[#allocation2 + $0x500] sm:$0xf] %v18410_v0  ;;  %16654 = vmatprep.subr.bf16.mxu0 %v17396_v3  ;;  %17372 = vmatprep.subr.bf16.mxu1 %v17396_v3  ;;  %v17405_v15 = vld [vmem:[#allocation3 + $0x18] sm:$0xff]   ;;  %v17406_v17 = vld [vmem:[#allocation3 + $0x20] sm:$0xff]  }
  0x39   :  { %1351 = vst [vmem:[#allocation2 + $0x50c] sm:$0xf] %v18410_v0  ;;  %1353 = vst [vmem:[#allocation2 + $0x6b0] sm:$0xf] %v18410_v0  ;;  %16730 = vmatprep.mubr.bf16.mxu1 %v17423_v11  ;;  %v17430_v16 = vld [vmem:[#allocation8 + $0xf8] sm:$0xff]   ;;  %v17432_v19 = vld [vmem:[#allocation3 + $0x120] sm:$0xff]  }
  0x3a   :  { %1355 = vst [vmem:[#allocation2 + $0x6bc] sm:$0xf] %v18410_v0  ;;  %v17429_v18 = vld [vmem:[#allocation3 + $0x118] sm:$0xff]   ;;  %v17435_v20 = vld [vmem:[#allocation8 + $0xf0] sm:$0xff]   ;;  %v17407_v21 = vld [vmem:[#allocation3 + $0x28] sm:$0xff]   ;;  %s18411_s2 = smov [#allocation11]  }
  0x3b   :  { %16655 = vmatpush3.bf16.msra.mxu0 %v17396_v3  ;;  %17380 = vmatpush3.bf16.msra.mxu1 %v17396_v3  ;;  %v17408_v22 = vld [vmem:[#allocation3 + $0x30] sm:$0xff]   ;;  %v17434_v23 = vld [vmem:[#allocation3 + $0x128] sm:$0xff]   ;;  %v17445_v26 = vld [vmem:[#allocation8 + $0xe0] sm:$0xff]   ;;  %s13822_s3 = sshll.u32 %s18411_s2, 4  ;;  %s13823_s3 = int_to_ptr.vmem [resolvable:$true] %s13822_s3 }
  0x3c   :  { %16656 = vmatprep.subr.bf16.mxu0 %v17397_v4  ;;  %17373 = vmatprep.subr.bf16.mxu1 %v17397_v4  ;;  %v17440_v24 = vld [vmem:[#allocation8 + $0xe8] sm:$0xff]   ;;  %v17437_v25 = vld [vmem:[#allocation3 + $0x130] sm:$0xff]   ;;  %v17409_v27 = vld [vmem:[#allocation3 + $0x38] sm:$0xff]   ;;  %s18376_s9 = scalar_lea.vmem %s13823_s3, 8192  ;;  %p18381_p7 = scmp.lt.s32.totalorder %s13823_s3, %s13823_s3 }
  0x3d   :  { %v17410_v28 = vld [vmem:[#allocation3 + $0x40] sm:$0xff]   ;;  %v17439_v29 = vld [vmem:[#allocation3 + $0x138] sm:$0xff]   ;;  %v17411_v32 = vld [vmem:[#allocation3 + $0x48] sm:$0xff]   ;;  %p18377_p6 = scmp.ne.s32.totalorder %s13823_s3, %s18376_s9  ;;  %p18382_p8 = scmp.lt.s32.totalorder %s18376_s9, %s18376_s9 }
  0x3e   :  { %v17442_v30 = vld [vmem:[#allocation3 + $0x140] sm:$0xff]   ;;  %v17450_v31 = vld [vmem:[#allocation8 + $0xd8] sm:$0xff]   ;;  %v17453_v33 = vld [vmem:[#allocation8 + $0xd0] sm:$0xff]  }
  0x3f   :  { %16657 = vmatpush3.bf16.msra.mxu0 %v17397_v4  ;;  %17381 = vmatpush3.bf16.msra.mxu1 %v17397_v4  ;;  %v17412_v34 = vld [vmem:[#allocation3 + $0x50] sm:$0xff]   ;;  %v17444_v35 = vld [vmem:[#allocation3 + $0x148] sm:$0xff]   ;;  %v17413_v38 = vld [vmem:[#allocation3 + $0x58] sm:$0xff]   ;;  %p18383_p9 = por %p18382_p8, %p18381_p7 }
  0x40   :  { %16658 = vmatprep.subr.bf16.mxu0 %v17398_v6  ;;  %17374 = vmatprep.subr.bf16.mxu1 %v17398_v6  ;;  %v17447_v36 = vld [vmem:[#allocation3 + $0x150] sm:$0xff]   ;;  %v17456_v37 = vld [vmem:[#allocation8 + $0xc8] sm:$0xff]   ;;  %v17459_v39 = vld [vmem:[#allocation8 + $0xc0] sm:$0xff]  }
  0x41   :  { %v17414_v40 = vld [vmem:[#allocation3 + $0x60] sm:$0xff]   ;;  %v17449_v41 = vld [vmem:[#allocation3 + $0x158] sm:$0xff]   ;;  %v17415_v44 = vld [vmem:[#allocation3 + $0x68] sm:$0xff]   ;;  %p18384_p10 = pnand %p18383_p9, %p18377_p6 }
  0x42   :  { %v17451_v42 = vld [vmem:[#allocation3 + $0x160] sm:$0xff]   ;;  %v17462_v43 = vld [vmem:[#allocation8 + $0x138] sm:$0xff]   ;;  %v17465_v45 = vld [vmem:[#allocation8 + $0x130] sm:$0xff]  }
  0x43   :  { %16659 = vmatpush3.bf16.msra.mxu0 %v17398_v6  ;;  %17382 = vmatpush3.bf16.msra.mxu1 %v17398_v6  ;;  %v17416_v46 = vld [vmem:[#allocation3 + $0x70] sm:$0xff]   ;;  %v17452_v47 = vld [vmem:[#allocation3 + $0x168] sm:$0xff]   ;;  %v17475_v50 = vld [vmem:[#allocation8 + $0x178] sm:$0xff]  }
  0x44   :  { %16660 = vmatprep.subr.bf16.mxu0 %v17399_v7  ;;  %17375 = vmatprep.subr.bf16.mxu1 %v17399_v7  ;;  %v17454_v48 = vld [vmem:[#allocation3 + $0x170] sm:$0xff]   ;;  %v17468_v49 = vld [vmem:[#allocation8 + $0x128] sm:$0xff]   ;;  %v17471_v52 = vld [vmem:[#allocation8 + $0x120] sm:$0xff]  }
  0x45   :  { %v17476_v51 = vld [vmem:[#allocation8 + $0x170] sm:$0xff]   ;;  %v17417_v53 = vld [vmem:[#allocation3 + $0x78] sm:$0xff]   ;;  %v17418_v55 = vld [vmem:[#allocation3 + $0x80] sm:$0xff]  }
  0x46   :  { %v17455_v54 = vld [vmem:[#allocation3 + $0x178] sm:$0xff]   ;;  %v17457_v56 = vld [vmem:[#allocation3 + $0x180] sm:$0xff]   ;;  %v17419_v58 = vld [vmem:[#allocation3 + $0x88] sm:$0xff]  }
  0x47   :  { %16661 = vmatpush3.bf16.msra.mxu0 %v17399_v7  ;;  %17383 = vmatpush3.bf16.msra.mxu1 %v17399_v7  ;;  %v17474_v57 = vld [vmem:[#allocation8 + $0x118] sm:$0xff]   ;;  %v17458_v59 = vld [vmem:[#allocation3 + $0x188] sm:$0xff]   ;;  %v17420_v60 = vld [vmem:[#allocation3 + $0x90] sm:$0xff]  }
  0x48   :  { %16662 = vmatprep.subr.bf16.mxu0 %v17400_v8  ;;  %17376 = vmatprep.subr.bf16.mxu1 %v17400_v8  ;;  %v17460_v61 = vld [vmem:[#allocation3 + $0x190] sm:$0xff]   ;;  %v17480_v62 = vld [vmem:[#allocation8 + $0x168] sm:$0xff]   ;;  %v17421_v63 = vld [vmem:[#allocation3 + $0x98] sm:$0xff]  }
  0x49   :  { %v17461_v1 = vld [vmem:[#allocation3 + $0x198] sm:$0xff]   ;;  %v17422_v2 = vld [vmem:[#allocation3 + $0xa0] sm:$0xff]   ;;  %v17479_v6 = vld [vmem:[#allocation8 + $0x110] sm:$0xff]  }
  0x4a   :  { %v17481_v3 = vld [vmem:[#allocation8 + $0x160] sm:$0xff]   ;;  %v17485_v5 = vld [vmem:[#allocation8 + $0x158] sm:$0xff]   ;;  %v17424_v7 = vld [vmem:[#allocation3 + $0xa8] sm:$0xff]  }
  0x4b   :  { %16663 = vmatpush3.bf16.msra.mxu0 %v17400_v8  ;;  %17384 = vmatpush3.bf16.msra.mxu1 %v17400_v8  ;;  %v17463_v4 = vld [vmem:[#allocation3 + $0x1a0] sm:$0xff]   ;;  %v17464_v8 = vld [vmem:[#allocation3 + $0x1a8] sm:$0xff]   ;;  %v17486_v11 = vld [vmem:[#allocation8 + $0x150] sm:$0xff]  }
  0x4c   :  { %16664 = vmatprep.subr.bf16.mxu0 %v17401_v9  ;;  %17377 = vmatprep.subr.bf16.mxu1 %v17401_v9 }
  0x4f   :  { %16665 = vmatpush3.bf16.msra.mxu0 %v17401_v9  ;;  %17385 = vmatpush3.bf16.msra.mxu1 %v17401_v9  ;;  %v17426_v9 = vld [vmem:[#allocation3 + $0xb0] sm:$0xff]  }
  0x50   :  { %5952 = vmatprep.subr.bf16.mxu1 %v18410_v0  ;;  %16794 = vmatprep.subr.bf16.mxu0 %v17475_v50 }
  0x52   :  { %16667 = vmatmul.mubr.bf16.vlgmr.msra.gmra.mxu0 %v17403_v10  ;;  %16731 = vmatmul.mubr.bf16.vlgmr.msra.gmra.mxu1 %v17425_v13  ;;  %v17466_v10 = vld [vmem:[#allocation3 + $0x1b0] sm:$0xff]   ;;  %v17488_v13 = vld [vmem:[#allocation8 + $0x148] sm:$0xff]  }
  0x53   :  { %16670 = vmatprep.mubr.bf16.mxu0 %v17404_v12  ;;  %16734 = vmatprep.mubr.bf16.mxu1 %v17427_v14  ;;  %v17484_v12 = vld [vmem:[#allocation8 + $0x108] sm:$0xff]   ;;  %v17428_v14 = vld [vmem:[#allocation3 + $0xb8] sm:$0xff]  }
  0x54   :  { %5953 = vmatpush1.bf16.msra.mxu1 %v17430_v16  ;;  %16795 = vmatpush3.bf16.msra.mxu0 %v17475_v50  ;;  %v17431_v16 = vld [vmem:[#allocation3 + $0xc0] sm:$0xff]  }
  0x55   :  { %5954 = vmatprep.subr.bf16.mxu1 %v18410_v0  ;;  %16796 = vmatprep.subr.bf16.mxu0 %v17476_v51 }
  0x58   :  { %5955 = vmatpush1.bf16.msra.mxu1 %v17435_v20  ;;  %16797 = vmatpush3.bf16.msra.mxu0 %v17476_v51  ;;  %v17433_v20 = vld [vmem:[#allocation3 + $0xc8] sm:$0xff]  }
  0x59   :  { %5956 = vmatprep.subr.bf16.mxu1 %v18410_v0  ;;  %16798 = vmatprep.subr.bf16.mxu0 %v17480_v62 }
  0x5a   :  { %16671 = vmatmul.mubr.bf16.gmra.mxu0 %v17405_v15  ;;  %16735 = vmatmul.mubr.bf16.gmra.mxu1 %v17429_v18  ;;  %v17467_v15 = vld [vmem:[#allocation3 + $0x1b8] sm:$0xff]   ;;  %v17489_v18 = vld [vmem:[#allocation8 + $0x140] sm:$0xff]  }
  0x5b   :  { %16674 = vmatprep.mubr.bf16.mxu0 %v17406_v17  ;;  %16738 = vmatprep.mubr.bf16.mxu1 %v17432_v19  ;;  %v17469_v17 = vld [vmem:[#allocation3 + $0x1c0] sm:$0xff]  }
  0x5c   :  { %5957 = vmatpush1.bf16.msra.mxu1 %v17440_v24  ;;  %16799 = vmatpush3.bf16.msra.mxu0 %v17480_v62  ;;  %v17487_v19 = vld [vmem:[#allocation8 + $0x100] sm:$0xff]   ;;  %v17472_v24 = vld [vmem:[#allocation3 + $0x1d0] sm:$0xff]  }
  0x5d   :  { %5958 = vmatprep.subr.bf16.mxu1 %v18410_v0  ;;  %16800 = vmatprep.subr.bf16.mxu0 %v17481_v3 }
  0x60   :  { %5959 = vmatpush1.bf16.msra.mxu1 %v17445_v26  ;;  %16801 = vmatpush3.bf16.msra.mxu0 %v17481_v3  ;;  %v18494_v26 = vld [vmem:[#allocation8 + $0xb8] sm:$0xff]  }
  0x61   :  { %5960 = vmatprep.subr.bf16.mxu1 %v18410_v0  ;;  %16802 = vmatprep.subr.bf16.mxu0 %v17485_v5 }
  0x62   :  { %16675 = vmatmul.mubr.bf16.gmra.mxu0 %v17407_v21  ;;  %16739 = vmatmul.mubr.bf16.gmra.mxu1 %v17434_v23  ;;  %v17470_v21 = vld [vmem:[#allocation3 + $0x1c8] sm:$0xff]   ;;  %v17436_v23 = vld [vmem:[#allocation3 + $0xd0] sm:$0xff]  }
  0x63   :  { %16678 = vmatprep.mubr.bf16.mxu0 %v17408_v22  ;;  %16742 = vmatprep.mubr.bf16.mxu1 %v17437_v25  ;;  %v18290_v22 = vld [vmem:[#allocation2] sm:$0xff]  ;;  %v17473_v25 = vld [vmem:[#allocation3 + $0x1d8] sm:$0xff]  }
  0x64   :  { %5961 = vmatpush1.bf16.msra.mxu1 %v17450_v31  ;;  %16803 = vmatpush3.bf16.msra.mxu0 %v17485_v5  ;;  %v17446_v31 = vld [vmem:[#allocation3 + $0xf0] sm:$0xff]  }
  0x65   :  { %5962 = vmatprep.subr.bf16.mxu1 %v18410_v0  ;;  %16804 = vmatprep.subr.bf16.mxu0 %v17486_v11 }
  0x68   :  { %5963 = vmatpush1.bf16.msra.mxu1 %v17453_v33  ;;  %16805 = vmatpush3.bf16.msra.mxu0 %v17486_v11  ;;  %v17448_v33 = vld [vmem:[#allocation3 + $0xf8] sm:$0xff]  }
  0x69   :  { %5964 = vmatprep.subr.bf16.mxu1 %v18410_v0  ;;  %16806 = vmatprep.subr.bf16.mxu0 %v17488_v13 }
  0x6a   :  { %16679 = vmatmul.mubr.bf16.gmra.mxu0 %v17409_v27  ;;  %16743 = vmatmul.mubr.bf16.gmra.mxu1 %v17439_v29  ;;  %v17441_v27 = vld [vmem:[#allocation3 + $0xe0] sm:$0xff]   ;;  %v17443_v29 = vld [vmem:[#allocation3 + $0xe8] sm:$0xff]  }
  0x6b   :  { %16682 = vmatprep.mubr.bf16.mxu0 %v17410_v28  ;;  %16746 = vmatprep.mubr.bf16.mxu1 %v17442_v30  ;;  %v17477_v28 = vld [vmem:[#allocation3 + $0x1e0] sm:$0xff]   ;;  %v17478_v30 = vld [vmem:[#allocation3 + $0x1e8] sm:$0xff]  }
  0x6c   :  { %5965 = vmatpush1.bf16.msra.mxu1 %v17456_v37  ;;  %16807 = vmatpush3.bf16.msra.mxu0 %v17488_v13 }
  0x6d   :  { %5966 = vmatprep.subr.bf16.mxu1 %v18410_v0  ;;  %16808 = vmatprep.subr.bf16.mxu0 %v17489_v18 }
  0x70   :  { %5967 = vmatpush1.bf16.msra.mxu1 %v17459_v39  ;;  %16809 = vmatpush3.bf16.msra.mxu0 %v17489_v18 }
  0x71   :  { %5968 = vmatprep.subr.bf16.mxu1 %v18410_v0  ;;  %8210 = vmatprep.subr.bf16.mxu0 %v18290_v22 }
  0x72   :  { %16683 = vmatmul.mubr.bf16.gmra.mxu0 %v17411_v32  ;;  %16747 = vmatmul.mubr.bf16.gmra.mxu1 %v17444_v35  ;;  %v17482_v32 = vld [vmem:[#allocation3 + $0x1f0] sm:$0xff]  }
  0x73   :  { %16686 = vmatprep.mubr.bf16.mxu0 %v17412_v34  ;;  %16750 = vmatprep.mubr.bf16.mxu1 %v17447_v36  ;;  %v17483_v34 = vld [vmem:[#allocation3 + $0x1f8] sm:$0xff]  }
  0x74   :  { %5969 = vmatpush2.bf16.msra.mxu1 %v17462_v43 }
  0x75   :  { %5970 = vmatprep.subr.bf16.mxu1 %v18410_v0 }
  0x78   :  { %5971 = vmatpush2.bf16.msra.mxu1 %v17465_v45 }
  0x79   :  { %5972 = vmatprep.subr.bf16.mxu1 %v18410_v0 }
  0x7a   :  { %16687 = vmatmul.mubr.bf16.gmra.mxu0 %v17413_v38  ;;  %16751 = vmatmul.mubr.bf16.gmra.mxu1 %v17449_v41 }
  0x7b   :  { %16690 = vmatprep.mubr.bf16.mxu0 %v17414_v40  ;;  %16754 = vmatprep.mubr.bf16.mxu1 %v17451_v42 }
  0x7c   :  { %5973 = vmatpush2.bf16.msra.mxu1 %v17468_v49 }
  0x7d   :  { %5974 = vmatprep.subr.bf16.mxu1 %v18410_v0 }
  0x80   :  { %5975 = vmatpush2.bf16.msra.mxu1 %v17471_v52 }
  0x81   :  { %5976 = vmatprep.subr.bf16.mxu1 %v18410_v0 }
  0x82   :  { %16691 = vmatmul.mubr.bf16.gmra.mxu0 %v17415_v44  ;;  %16755 = vmatmul.mubr.bf16.gmra.mxu1 %v17452_v47 }
  0x83   :  { %16694 = vmatprep.mubr.bf16.mxu0 %v17416_v46  ;;  %16758 = vmatprep.mubr.bf16.mxu1 %v17454_v48 }
  0x84   :  { %5977 = vmatpush2.bf16.msra.mxu1 %v17474_v57 }
  0x85   :  { %5978 = vmatprep.subr.bf16.mxu1 %v18410_v0 }
  0x88   :  { %5979 = vmatpush2.bf16.msra.mxu1 %v17479_v6 }
  0x89   :  { %5980 = vmatprep.subr.bf16.mxu1 %v18410_v0 }
  0x8a   :  { %16695 = vmatmul.mubr.bf16.gmra.mxu0 %v17417_v53  ;;  %16759 = vmatmul.mubr.bf16.gmra.mxu1 %v17455_v54 }
  0x8b   :  { %16698 = vmatprep.mubr.bf16.mxu0 %v17418_v55  ;;  %16762 = vmatprep.mubr.bf16.mxu1 %v17457_v56 }
  0x8c   :  { %5981 = vmatpush2.bf16.msra.mxu1 %v17484_v12 }
  0x8d   :  { %5982 = vmatprep.subr.bf16.mxu1 %v18410_v0  ;;  %v17438_v0 = vld [vmem:[#allocation3 + $0xd8] sm:$0xff]  }
  0x90   :  { %5983 = vmatpush2.bf16.msra.mxu1 %v17487_v19 }
  0x91   :  { %16938 = vmatprep.subr.bf16.mxu1 %v18494_v26 }
  0x92   :  { %16699 = vmatmul.mubr.bf16.gmra.mxu0 %v17419_v58  ;;  %16763 = vmatmul.mubr.bf16.gmra.mxu1 %v17458_v59 }
  0x93   :  { %16702 = vmatprep.mubr.bf16.mxu0 %v17420_v60  ;;  %16766 = vmatprep.mubr.bf16.mxu1 %v17460_v61 }
  0x9a   :  { %16703 = vmatmul.mubr.bf16.gmra.mxu0 %v17421_v63  ;;  %16767 = vmatmul.mubr.bf16.gmra.mxu1 %v17461_v1 }
  0x9b   :  { %16706 = vmatprep.mubr.bf16.mxu0 %v17422_v2  ;;  %16770 = vmatprep.mubr.bf16.mxu1 %v17463_v4 }
  0xa2   :  { %16707 = vmatmul.mubr.bf16.gmra.mxu0 %v17424_v7  ;;  %16771 = vmatmul.mubr.bf16.gmra.mxu1 %v17464_v8 }
  0xa3   :  { %16710 = vmatprep.mubr.bf16.mxu0 %v17426_v9  ;;  %16774 = vmatprep.mubr.bf16.mxu1 %v17466_v10 }
  0xaa   :  { %16711 = vmatmul.mubr.bf16.gmra.mxu0 %v17428_v14  ;;  %16775 = vmatmul.mubr.bf16.gmra.mxu1 %v17467_v15 }
  0xab   :  { %16714 = vmatprep.mubr.bf16.mxu0 %v17431_v16  ;;  %16778 = vmatprep.mubr.bf16.mxu1 %v17469_v17 }
  0xb2   :  { %16715 = vmatmul.mubr.bf16.gmra.mxu0 %v17433_v20  ;;  %16779 = vmatmul.mubr.bf16.gmra.mxu1 %v17470_v21 }
  0xb3   :  { %16718 = vmatprep.mubr.bf16.mxu0 %v17436_v23  ;;  %16782 = vmatprep.mubr.bf16.mxu1 %v17472_v24 }
  0xba   :  { %16719 = vmatmul.mubr.bf16.gmra.mxu0 %v17438_v0  ;;  %16783 = vmatmul.mubr.bf16.gmra.mxu1 %v17473_v25 }
  0xbb   :  { %16722 = vmatprep.mubr.bf16.mxu0 %v17441_v27  ;;  %16786 = vmatprep.mubr.bf16.mxu1 %v17477_v28 }
  0xc2   :  { %16723 = vmatmul.mubr.bf16.gmra.mxu0 %v17443_v29  ;;  %16787 = vmatmul.mubr.bf16.gmra.mxu1 %v17478_v30 }
  0xc3   :  { %16726 = vmatprep.mubr.bf16.mxu0 %v17446_v31  ;;  %16790 = vmatprep.mubr.bf16.mxu1 %v17482_v32 }
  0xca   :  { %16727 = vmatmul.mubr.bf16.gmra.mxu0 %v17448_v33  ;;  %16791 = vmatmul.mubr.bf16.gmra.mxu1 %v17483_v34 }
 0x112   :  { %v16668_v35 = vpop.f32.mrf.mxu0  ;;  %v16732_v36 = vpop.f32.mrf.mxu1 }
 0x113   :  { %v1197_v37 = vmax.f32 %v16668_v35, 0.0  ;;  %v18497_v38 = vmax.f32 %v16732_v36, 0.0 }
 0x114   :  { %v684_v39 = vpop.f32.mrf.mxu0  ;;  %v940_v40 = vpop.f32.mrf.mxu1 }
 0x115   :  { %v1488_v41 = vrot.slane %v1197_v37, 7  ;;  %v15206_v42 = vpack.c.bf16 %v1197_v37, %v1197_v37  ;;  %v1195_v43 = vmax.f32 %v684_v39, 0.0  ;;  %v1873_v44 = vrot.slane %v1197_v37, 1 }
 0x116   :  { %v16669_v45 = vpop.f32.mrf.mxu0  ;;  %v1584_v46 = vrot.slane %v18497_v38, 7  ;;  %v15270_v47 = vpack.c.bf16 %v18497_v38, %v18497_v38  ;;  %v18502_v48 = vmax.f32 %v940_v40, 0.0  ;;  %v18504_v49 = vpop.f32.mrf.mxu1  ;;  %v1969_v53 = vrot.slane %v18497_v38, 1 }
 0x117   :  { %v1806_v50 = vsel %vm1484_vm0, 0.0, %v1488_v41  ;;  %3409 = vst [vmem:[#allocation2 + $0x34] sm:$0xf] %v15206_v42  ;;  %v1485_v51 = vrot.slane %v1195_v43, 7  ;;  %v15204_v52 = vpack.c.bf16 %v1195_v43, %v1195_v43  ;;  %v1198_v55 = vmax.f32 %v16669_v45, 0.0 }
 0x118   :  { %v15078_v54 = vpack.c.bf16 %v1806_v50, %v1806_v50  ;;  %v687_v56 = vpop.f32.mrf.mxu0  ;;  %v1838_v57 = vsel %vm1484_vm0, 0.0, %v1584_v46  ;;  %3473 = vst [vmem:[#allocation2 + $0x394] sm:$0xf] %v15270_v47  ;;  %v1581_v58 = vrot.slane %v18502_v48, 7  ;;  %v18512_v59 = vpop.f32.mrf.mxu1  ;;  %v1870_v61 = vrot.slane %v1195_v43, 1 }
 0x119   :  { %v1805_v60 = vsel %vm1484_vm0, 0.0, %v1485_v51  ;;  %3407 = vst [vmem:[#allocation2 + $0x1c] sm:$0xf] %v15204_v52  ;;  %v1196_v62 = vmax.f32 %v687_v56, 0.0  ;;  %v15142_v63 = vpack.c.bf16 %v1838_v57, %v1838_v57  ;;  %v1489_v2 = vrot.slane %v1198_v55, 7 }
 0x11a   :  { %2769 = vst [vmem:[#allocation2 + $0x30] sm:$0xf] %v15078_v54  ;;  %v15076_v1 = vpack.c.bf16 %v1805_v60, %v1805_v60  ;;  %v1874_v3 = vrot.slane %v1198_v55, 1  ;;  %v15207_v4 = vpack.c.bf16 %v1198_v55, %v1198_v55  ;;  %v16672_v5 = vpop.f32.mrf.mxu0  ;;  %v18515_v6 = vpop.f32.mrf.mxu1  ;;  %v1837_v15 = vsel %vm1484_vm0, 0.0, %v1581_v58 }
 0x11b   :  { %v1486_v7 = vrot.slane %v1196_v62, 7  ;;  %v1871_v8 = vrot.slane %v1196_v62, 1  ;;  %v15205_v9 = vpack.c.bf16 %v1196_v62, %v1196_v62  ;;  %v18517_v10 = vmax.f32 %v16672_v5, 0.0  ;;  %2833 = vst [vmem:[#allocation2 + $0x390] sm:$0xf] %v15142_v63 }
 0x11c   :  { %2767 = vst [vmem:[#allocation2 + $0x18] sm:$0xf] %v15076_v1  ;;  %v1490_v11 = vsel %vm1484_vm0, %v1488_v41, %v1489_v2  ;;  %v1875_v12 = vsel %vm1869_vm1, %v1873_v44, %v1874_v3  ;;  %v2191_v13 = vsel %vm1869_vm1, %v1874_v3, 0.0  ;;  %3410 = vst [vmem:[#allocation2 + $0x40] sm:$0xf] %v15207_v4  ;;  %v700_v14 = vpop.f32.mrf.mxu0  ;;  %v18525_v16 = vpop.f32.mrf.mxu1  ;;  %v15140_v35 = vpack.c.bf16 %v1837_v15, %v1837_v15 }
 0x11d   :  { %v15079_v17 = vpack.c.bf16 %v1490_v11, %v1490_v11  ;;  %v15334_v18 = vpack.c.bf16 %v1875_v12, %v1875_v12  ;;  %v15335_v19 = vpack.c.bf16 %v2191_v13, %v2191_v13  ;;  %v1487_v20 = vsel %vm1484_vm0, %v1485_v51, %v1486_v7  ;;  %3408 = vst [vmem:[#allocation2 + $0x28] sm:$0xf] %v15205_v9 }
 0x11e   :  { %v1872_v21 = vsel %vm1869_vm1, %v1870_v61, %v1871_v8  ;;  %v2190_v22 = vsel %vm1869_vm1, %v1871_v8, 0.0  ;;  %v15077_v23 = vpack.c.bf16 %v1487_v20, %v1487_v20  ;;  %v1494_v24 = vrot.slane %v18517_v10, 7  ;;  %v16673_v0 = vpop.f32.mrf.mxu0  ;;  %v18531_v25 = vpop.f32.mrf.mxu1  ;;  %2831 = vst [vmem:[#allocation2 + $0x378] sm:$0xf] %v15140_v35 }
 0x11f   :  { %2770 = vst [vmem:[#allocation2 + $0x3c] sm:$0xf] %v15079_v17  ;;  %4049 = vst [vmem:[#allocation2 + $0x38] sm:$0xf] %v15334_v18  ;;  %v15332_v27 = vpack.c.bf16 %v1872_v21, %v1872_v21  ;;  %v15333_v28 = vpack.c.bf16 %v2190_v22, %v2190_v22  ;;  %v1879_v29 = vrot.slane %v18517_v10, 1  ;;  %v15210_v30 = vpack.c.bf16 %v18517_v10, %v18517_v10 }
 0x120   :  { %4050 = vst [vmem:[#allocation2 + $0x44] sm:$0xf] %v15335_v19  ;;  %2768 = vst [vmem:[#allocation2 + $0x24] sm:$0xf] %v15077_v23  ;;  %v1808_v31 = vsel %vm1484_vm0, 0.0, %v1494_v24  ;;  %v1199_v32 = vmax.f32 %v700_v14, 0.0  ;;  %v703_v34 = vpop.f32.mrf.mxu0  ;;  %v18537_v36 = vpop.f32.mrf.mxu1  ;;  %v15268_v40 = vpack.c.bf16 %v18502_v48, %v18502_v48 }
 0x121   :  { %v1202_v33 = vmax.f32 %v16673_v0, 0.0  ;;  %4047 = vst [vmem:[#allocation2 + $0x20] sm:$0xf] %v15332_v27  ;;  %4048 = vst [vmem:[#allocation2 + $0x2c] sm:$0xf] %v15333_v28  ;;  %v15082_v37 = vpack.c.bf16 %v1808_v31, %v1808_v31  ;;  %v1200_v39 = vmax.f32 %v703_v34, 0.0 }
 0x122   :  { %3413 = vst [vmem:[#allocation2 + $0x64] sm:$0xf] %v15210_v30  ;;  %v18542_v41 = vmax.f32 %v18504_v49, 0.0  ;;  %v1491_v42 = vrot.slane %v1199_v32, 7  ;;  %v1876_v43 = vrot.slane %v1199_v32, 1  ;;  %v15208_v44 = vpack.c.bf16 %v1199_v32, %v1199_v32  ;;  %v16676_v47 = vpop.f32.mrf.mxu0  ;;  %v18544_v50 = vpop.f32.mrf.mxu1  ;;  %v18563_v23 = vld [vmem:[#allocation8 + $0xb0] sm:$0xff]  }
 0x123   :  { %v1495_v45 = vrot.slane %v1202_v33, 7  ;;  %2773 = vst [vmem:[#allocation2 + $0x60] sm:$0xf] %v15082_v37  ;;  %v1880_v51 = vrot.slane %v1202_v33, 1  ;;  %v15211_v52 = vpack.c.bf16 %v1202_v33, %v1202_v33  ;;  %v1492_v54 = vrot.slane %v1200_v39, 7 }
 0x124   :  { %v1877_v55 = vrot.slane %v1200_v39, 1  ;;  %3471 = vst [vmem:[#allocation2 + $0x37c] sm:$0xf] %v15268_v40  ;;  %v1807_v56 = vsel %vm1484_vm0, 0.0, %v1491_v42  ;;  %3411 = vst [vmem:[#allocation2 + $0x4c] sm:$0xf] %v15208_v44  ;;  %v15209_v57 = vpack.c.bf16 %v1200_v39, %v1200_v39  ;;  %v716_v61 = vpop.f32.mrf.mxu0  ;;  %v18550_v62 = vpop.f32.mrf.mxu1 }
 0x125   :  { %v1496_v49 = vsel %vm1484_vm0, %v1494_v24, %v1495_v45  ;;  %v18548_v60 = vmax.f32 %v16676_v47, 0.0  ;;  %v15080_v63 = vpack.c.bf16 %v1807_v56, %v1807_v56  ;;  %v1881_v1 = vsel %vm1869_vm1, %v1879_v29, %v1880_v51  ;;  %3414 = vst [vmem:[#allocation2 + $0x70] sm:$0xf] %v15211_v52  ;;  %v17492_v22 = vld [vmem:[#allocation2 + $0x1c] ss:$12 sps:$4 sm:$0xff]  }
 0x126   :  { %v2193_v2 = vsel %vm1869_vm1, %v1880_v51, 0.0  ;;  %v15083_v3 = vpack.c.bf16 %v1496_v49, %v1496_v49  ;;  %v15338_v4 = vpack.c.bf16 %v1881_v1, %v1881_v1  ;;  %v1493_v7 = vsel %vm1484_vm0, %v1491_v42, %v1492_v54  ;;  %3412 = vst [vmem:[#allocation2 + $0x58] sm:$0xf] %v15209_v57  ;;  %v16677_v9 = vpop.f32.mrf.mxu0  ;;  %v18556_v10 = vpop.f32.mrf.mxu1  ;;  %5984 = vmatprep.mubr.bf16.mxu1 %v17492_v22  ;;  %v17496_v45 = vld [vmem:[#allocation2 + $0x34] ss:$12 sps:$4 sm:$0xff]  }
 0x127   :  { %v15339_v5 = vpack.c.bf16 %v2193_v2, %v2193_v2  ;;  %v1878_v8 = vsel %vm1869_vm1, %v1876_v43, %v1877_v55  ;;  %2771 = vst [vmem:[#allocation2 + $0x48] sm:$0xf] %v15080_v63  ;;  %v2192_v11 = vsel %vm1869_vm1, %v1877_v55, 0.0  ;;  %v15081_v12 = vpack.c.bf16 %v1493_v7, %v1493_v7  ;;  %v17490_v15 = vld [vmem:[#allocation2 + $0x18] ss:$12 sps:$4 sm:$0xff]  }
 0x128   :  { %2774 = vst [vmem:[#allocation2 + $0x6c] sm:$0xf] %v15083_v3  ;;  %v15336_v13 = vpack.c.bf16 %v1878_v8, %v1878_v8  ;;  %v1500_v14 = vrot.slane %v18548_v60, 7  ;;  %4053 = vst [vmem:[#allocation2 + $0x68] sm:$0xf] %v15338_v4  ;;  %v15337_v17 = vpack.c.bf16 %v2192_v11, %v2192_v11  ;;  %v1885_v18 = vrot.slane %v18548_v60, 1  ;;  %v719_v21 = vpop.f32.mrf.mxu0  ;;  %v18565_v24 = vpop.f32.mrf.mxu1  ;;  %5985 = vmatmul.mubr.bf16.vlgmr.msra.gmra.mxu1 %v17490_v15 }
 0x129   :  { %4054 = vst [vmem:[#allocation2 + $0x74] sm:$0xf] %v15339_v5  ;;  %v15214_v19 = vpack.c.bf16 %v18548_v60, %v18548_v60  ;;  %v1203_v20 = vmax.f32 %v716_v61, 0.0  ;;  %2772 = vst [vmem:[#allocation2 + $0x54] sm:$0xf] %v15081_v12  ;;  %v1206_v27 = vmax.f32 %v16677_v9, 0.0  ;;  %16939 = vmatpush3.bf16.msra.mxu1 %v18494_v26  ;;  %5992 = vmatprep.mubr.bf16.mxu1 %v17496_v45 }
 0x12a   :  { %4051 = vst [vmem:[#allocation2 + $0x50] sm:$0xf] %v15336_v13  ;;  %v1810_v0 = vsel %vm1484_vm0, 0.0, %v1500_v14  ;;  %v1204_v28 = vmax.f32 %v719_v21, 0.0  ;;  %v1585_v29 = vrot.slane %v18542_v41, 7  ;;  %v16680_v34 = vpop.f32.mrf.mxu0  ;;  %v18569_v39 = vpop.f32.mrf.mxu1  ;;  %16940 = vmatprep.subr.bf16.mxu1 %v18563_v23 }
 0x12b   :  { %4052 = vst [vmem:[#allocation2 + $0x5c] sm:$0xf] %v15337_v17  ;;  %v15086_v30 = vpack.c.bf16 %v1810_v0, %v1810_v0  ;;  %3417 = vst [vmem:[#allocation2 + $0x94] sm:$0xf] %v15214_v19  ;;  %v1497_v31 = vrot.slane %v1203_v20, 7  ;;  %v1882_v32 = vrot.slane %v1203_v20, 1  ;;  %v15212_v33 = vpack.c.bf16 %v1203_v20, %v1203_v20 }
 0x12c   :  { %v17493_v35 = vld [vmem:[#allocation2 + $0x20] ss:$12 sps:$4 sm:$0xff]   ;;  %v17495_v37 = vld [vmem:[#allocation2 + $0x38] ss:$12 sps:$4 sm:$0xff]   ;;  %v1501_v40 = vrot.slane %v1206_v27, 7  ;;  %v1886_v42 = vrot.slane %v1206_v27, 1  ;;  %v15215_v43 = vpack.c.bf16 %v1206_v27, %v1206_v27  ;;  %v15213_v52 = vpack.c.bf16 %v1204_v28, %v1204_v28  ;;  %v732_v55 = vpop.f32.mrf.mxu0  ;;  %v18575_v56 = vpop.f32.mrf.mxu1 }
 0x12d   :  { %v1498_v44 = vrot.slane %v1204_v28, 7  ;;  %2777 = vst [vmem:[#allocation2 + $0x90] sm:$0xf] %v15086_v30  ;;  %v1809_v47 = vsel %vm1484_vm0, 0.0, %v1497_v31  ;;  %3415 = vst [vmem:[#allocation2 + $0x7c] sm:$0xf] %v15212_v33  ;;  %16810 = vmatprep.mubr.bf16.mxu0 %v17493_v35  ;;  %16941 = vmatpush3.bf16.msra.mxu1 %v18563_v23  ;;  %v18600_v23 = vsel %vm1484_vm0, %v1584_v46, %v1585_v29 }
 0x12e   :  { %v1883_v51 = vrot.slane %v1204_v28, 1  ;;  %v18572_v54 = vmax.f32 %v16680_v34, 0.0  ;;  %v15084_v49 = vpack.c.bf16 %v1809_v47, %v1809_v47  ;;  %v1502_v57 = vsel %vm1484_vm0, %v1500_v14, %v1501_v40  ;;  %3418 = vst [vmem:[#allocation2 + $0xa0] sm:$0xf] %v15215_v43  ;;  %16811 = vmatmul.mubr.bf16.vlgmr.msra.gmra.mxu0 %v17495_v37  ;;  %3416 = vst [vmem:[#allocation2 + $0x88] sm:$0xf] %v15213_v52  ;;  %v16681_v26 = vpop.f32.mrf.mxu0  ;;  %v18582_v4 = vpop.f32.mrf.mxu1 }
 0x12f   :  { %v1887_v60 = vsel %vm1869_vm1, %v1885_v18, %v1886_v42  ;;  %v2195_v61 = vsel %vm1869_vm1, %v1886_v42, 0.0  ;;  %v15087_v63 = vpack.c.bf16 %v1502_v57, %v1502_v57  ;;  %v1499_v3 = vsel %vm1484_vm0, %v1497_v31, %v1498_v44  ;;  %v17499_v11 = vld [vmem:[#allocation2 + $0x30] ss:$12 sps:$4 sm:$0xff]  }
 0x130   :  { %v15342_v1 = vpack.c.bf16 %v1887_v60, %v1887_v60  ;;  %v15343_v2 = vpack.c.bf16 %v2195_v61, %v2195_v61  ;;  %2775 = vst [vmem:[#allocation2 + $0x78] sm:$0xf] %v15084_v49  ;;  %v1884_v5 = vsel %vm1869_vm1, %v1882_v32, %v1883_v51  ;;  %v2194_v7 = vsel %vm1869_vm1, %v1883_v51, 0.0  ;;  %v735_v15 = vpop.f32.mrf.mxu0  ;;  %v17500_v17 = vld [vmem:[#allocation2 + $0x68] ss:$12 sps:$4 sm:$0xff]   ;;  %v18591_v19 = vpop.f32.mrf.mxu1  ;;  %5993 = vmatmul.mubr.bf16.gmra.mxu1 %v17499_v11 }
 0x131   :  { %v15085_v8 = vpack.c.bf16 %v1499_v3, %v1499_v3  ;;  %v1506_v9 = vrot.slane %v18572_v54, 7  ;;  %2778 = vst [vmem:[#allocation2 + $0x9c] sm:$0xf] %v15087_v63  ;;  %v15340_v12 = vpack.c.bf16 %v1884_v5, %v1884_v5  ;;  %v15341_v13 = vpack.c.bf16 %v2194_v7, %v2194_v7  ;;  %v17501_v32 = vld [vmem:[#allocation2 + $0x4c] ss:$12 sps:$4 sm:$0xff]  }
 0x132   :  { %4057 = vst [vmem:[#allocation2 + $0x98] sm:$0xf] %v15342_v1  ;;  %4058 = vst [vmem:[#allocation2 + $0xa4] sm:$0xf] %v15343_v2  ;;  %v15218_v14 = vpack.c.bf16 %v18572_v54, %v18572_v54  ;;  %v1966_v18 = vrot.slane %v18502_v48, 1  ;;  %v1207_v21 = vmax.f32 %v732_v55, 0.0  ;;  %v16684_v30 = vpop.f32.mrf.mxu0  ;;  %v15271_v33 = vpack.c.bf16 %v18542_v41, %v18542_v41  ;;  %v18604_v34 = vpop.f32.mrf.mxu1  ;;  %6000 = vmatprep.mubr.bf16.mxu1 %v17501_v32 }
 0x133   :  { %2776 = vst [vmem:[#allocation2 + $0x84] sm:$0xf] %v15085_v8  ;;  %v1812_v20 = vsel %vm1484_vm0, 0.0, %v1506_v9  ;;  %v1210_v22 = vmax.f32 %v16681_v26, 0.0  ;;  %v1208_v0 = vmax.f32 %v735_v15, 0.0  ;;  %v1891_v27 = vrot.slane %v18572_v54, 1 }
 0x134   :  { %4055 = vst [vmem:[#allocation2 + $0x80] sm:$0xf] %v15340_v12  ;;  %4056 = vst [vmem:[#allocation2 + $0x8c] sm:$0xf] %v15341_v13  ;;  %v15090_v28 = vpack.c.bf16 %v1812_v20, %v1812_v20  ;;  %v17498_v31 = vld [vmem:[#allocation2 + $0x50] ss:$12 sps:$4 sm:$0xff]   ;;  %v15216_v40 = vpack.c.bf16 %v1207_v21, %v1207_v21  ;;  %v748_v51 = vpop.f32.mrf.mxu0  ;;  %v18606_v46 = vpop.f32.mrf.mxu1 }
 0x135   :  { %3421 = vst [vmem:[#allocation2 + $0xc4] sm:$0xf] %v15218_v14  ;;  %v1503_v35 = vrot.slane %v1207_v21, 7  ;;  %v1888_v37 = vrot.slane %v1207_v21, 1  ;;  %v1507_v42 = vrot.slane %v1210_v22, 7  ;;  %v1892_v43 = vrot.slane %v1210_v22, 1  ;;  %16814 = vmatprep.mubr.bf16.mxu0 %v17498_v31 }
 0x136   :  { %2781 = vst [vmem:[#allocation2 + $0xc0] sm:$0xf] %v15090_v28  ;;  %v15219_v44 = vpack.c.bf16 %v1210_v22, %v1210_v22  ;;  %v1504_v45 = vrot.slane %v1208_v0, 7  ;;  %v1889_v47 = vrot.slane %v1208_v0, 1  ;;  %3474 = vst [vmem:[#allocation2 + $0x3a0] sm:$0xf] %v15271_v33  ;;  %v15217_v54 = vpack.c.bf16 %v1208_v0, %v1208_v0  ;;  %16815 = vmatmul.mubr.bf16.gmra.mxu0 %v17500_v17  ;;  %v16685_v63 = vpop.f32.mrf.mxu0  ;;  %v18614_v1 = vpop.f32.mrf.mxu1 }
 0x137   :  { %v1811_v29 = vsel %vm1484_vm0, 0.0, %v1503_v35  ;;  %3419 = vst [vmem:[#allocation2 + $0xac] sm:$0xf] %v15216_v40  ;;  %v1508_v52 = vsel %vm1484_vm0, %v1506_v9, %v1507_v42  ;;  %v18610_v55 = vmax.f32 %v16684_v30, 0.0  ;;  %v1893_v57 = vsel %vm1869_vm1, %v1891_v27, %v1892_v43  ;;  %v17504_v7 = vld [vmem:[#allocation2 + $0x48] ss:$12 sps:$4 sm:$0xff]  }
 0x138   :  { %v15088_v49 = vpack.c.bf16 %v1811_v29, %v1811_v29  ;;  %v2197_v60 = vsel %vm1869_vm1, %v1892_v43, 0.0  ;;  %v15091_v61 = vpack.c.bf16 %v1508_v52, %v1508_v52  ;;  %3422 = vst [vmem:[#allocation2 + $0xd0] sm:$0xf] %v15219_v44  ;;  %v15346_v2 = vpack.c.bf16 %v1893_v57, %v1893_v57  ;;  %3420 = vst [vmem:[#allocation2 + $0xb8] sm:$0xf] %v15217_v54  ;;  %v751_v13 = vpop.f32.mrf.mxu0  ;;  %v18623_v0 = vpop.f32.mrf.mxu1 }
 0x139   :  { %v15347_v3 = vpack.c.bf16 %v2197_v60, %v2197_v60  ;;  %v1505_v26 = vsel %vm1484_vm0, %v1503_v35, %v1504_v45  ;;  %v1890_v5 = vsel %vm1869_vm1, %v1888_v37, %v1889_v47  ;;  %v2196_v8 = vsel %vm1869_vm1, %v1889_v47, 0.0  ;;  %v17505_v14 = vld [vmem:[#allocation2 + $0x98] ss:$12 sps:$4 sm:$0xff]   ;;  %6001 = vmatmul.mubr.bf16.gmra.mxu1 %v17504_v7 }
 0x13a   :  { %2779 = vst [vmem:[#allocation2 + $0xa8] sm:$0xf] %v15088_v49  ;;  %2782 = vst [vmem:[#allocation2 + $0xcc] sm:$0xf] %v15091_v61  ;;  %v15089_v9 = vpack.c.bf16 %v1505_v26, %v1505_v26  ;;  %v15344_v11 = vpack.c.bf16 %v1890_v5, %v1890_v5  ;;  %v1512_v12 = vrot.slane %v18610_v55, 7  ;;  %v15345_v17 = vpack.c.bf16 %v2196_v8, %v2196_v8  ;;  %v16688_v31 = vpop.f32.mrf.mxu0  ;;  %v18630_v49 = vpop.f32.mrf.mxu1 }
 0x13b   :  { %v17506_v15 = vld [vmem:[#allocation2 + $0x64] ss:$12 sps:$4 sm:$0xff]   ;;  %4061 = vst [vmem:[#allocation2 + $0xc8] sm:$0xf] %v15346_v2  ;;  %4062 = vst [vmem:[#allocation2 + $0xd4] sm:$0xf] %v15347_v3  ;;  %v15222_v21 = vpack.c.bf16 %v18610_v55, %v18610_v55 }
 0x13c   :  { %v1897_v20 = vrot.slane %v18610_v55, 1  ;;  %v1211_v22 = vmax.f32 %v748_v51, 0.0  ;;  %2780 = vst [vmem:[#allocation2 + $0xb4] sm:$0xf] %v15089_v9  ;;  %4059 = vst [vmem:[#allocation2 + $0xb0] sm:$0xf] %v15344_v11  ;;  %v764_v51 = vpop.f32.mrf.mxu0  ;;  %6008 = vmatprep.mubr.bf16.mxu1 %v17506_v15 }
 0x13d   :  { %v1814_v27 = vsel %vm1484_vm0, 0.0, %v1512_v12  ;;  %v1214_v28 = vmax.f32 %v16685_v63, 0.0  ;;  %v1212_v30 = vmax.f32 %v751_v13, 0.0  ;;  %v17503_v32 = vld [vmem:[#allocation2 + $0x80] ss:$12 sps:$4 sm:$0xff]   ;;  %v1970_v33 = vrot.slane %v18542_v41, 1 }
 0x13e   :  { %4060 = vst [vmem:[#allocation2 + $0xbc] sm:$0xf] %v15345_v17  ;;  %v15094_v35 = vpack.c.bf16 %v1814_v27, %v1814_v27  ;;  %3425 = vst [vmem:[#allocation2 + $0xf4] sm:$0xf] %v15222_v21  ;;  %v1509_v37 = vrot.slane %v1211_v22, 7  ;;  %v1894_v40 = vrot.slane %v1211_v22, 1  ;;  %v15220_v42 = vpack.c.bf16 %v1211_v22, %v1211_v22  ;;  %16818 = vmatprep.mubr.bf16.mxu0 %v17503_v32  ;;  %v16689_v2 = vpop.f32.mrf.mxu0 }
 0x13f   :  { %v1513_v43 = vrot.slane %v1214_v28, 7  ;;  %v1898_v44 = vrot.slane %v1214_v28, 1  ;;  %v15223_v45 = vpack.c.bf16 %v1214_v28, %v1214_v28  ;;  %v1510_v47 = vrot.slane %v1212_v30, 7  ;;  %16819 = vmatmul.mubr.bf16.gmra.mxu0 %v17505_v14  ;;  %v17509_v8 = vld [vmem:[#allocation2 + $0x60] ss:$12 sps:$4 sm:$0xff]   ;;  %v18642_v28 = vpop.f32.mrf.mxu1 }
 0x140   :  { %2785 = vst [vmem:[#allocation2 + $0xf0] sm:$0xf] %v15094_v35  ;;  %v1813_v29 = vsel %vm1484_vm0, 0.0, %v1509_v37  ;;  %3423 = vst [vmem:[#allocation2 + $0xdc] sm:$0xf] %v15220_v42  ;;  %v1895_v52 = vrot.slane %v1212_v30, 1  ;;  %v15221_v54 = vpack.c.bf16 %v1212_v30, %v1212_v30  ;;  %v767_v14 = vpop.f32.mrf.mxu0 }
 0x141   :  { %v18628_v55 = vmax.f32 %v16688_v31, 0.0  ;;  %v15092_v57 = vpack.c.bf16 %v1813_v29, %v1813_v29  ;;  %v1514_v60 = vsel %vm1484_vm0, %v1512_v12, %v1513_v43  ;;  %v1899_v61 = vsel %vm1869_vm1, %v1897_v20, %v1898_v44  ;;  %3426 = vst [vmem:[#allocation2 + $0x100] sm:$0xf] %v15223_v45  ;;  %v17511_v15 = vld [vmem:[#allocation2 + $0x7c] ss:$12 sps:$4 sm:$0xff]   ;;  %6009 = vmatmul.mubr.bf16.gmra.mxu1 %v17509_v8  ;;  %v18659_v38 = vpop.f32.mrf.mxu1 }
 0x142   :  { %v2199_v63 = vsel %vm1869_vm1, %v1898_v44, 0.0  ;;  %v15095_v3 = vpack.c.bf16 %v1514_v60, %v1514_v60  ;;  %v15350_v26 = vpack.c.bf16 %v1899_v61, %v1899_v61  ;;  %v1511_v7 = vsel %vm1484_vm0, %v1509_v37, %v1510_v47  ;;  %3424 = vst [vmem:[#allocation2 + $0xe8] sm:$0xf] %v15221_v54  ;;  %v17510_v27 = vld [vmem:[#allocation2 + $0xc8] ss:$12 sps:$4 sm:$0xff]   ;;  %v16692_v37 = vpop.f32.mrf.mxu0  ;;  %6016 = vmatprep.mubr.bf16.mxu1 %v17511_v15 }
 0x143   :  { %v15351_v5 = vpack.c.bf16 %v2199_v63, %v2199_v63  ;;  %2783 = vst [vmem:[#allocation2 + $0xd8] sm:$0xf] %v15092_v57  ;;  %v1896_v9 = vsel %vm1869_vm1, %v1894_v40, %v1895_v52  ;;  %v2198_v11 = vsel %vm1869_vm1, %v1895_v52, 0.0  ;;  %v15093_v13 = vpack.c.bf16 %v1511_v7, %v1511_v7  ;;  %v17514_v8 = vld [vmem:[#allocation2 + $0x78] ss:$12 sps:$4 sm:$0xff]  }
 0x144   :  { %v1518_v12 = vrot.slane %v18628_v55, 7  ;;  %2786 = vst [vmem:[#allocation2 + $0xfc] sm:$0xf] %v15095_v3  ;;  %4065 = vst [vmem:[#allocation2 + $0xf8] sm:$0xf] %v15350_v26  ;;  %v15348_v17 = vpack.c.bf16 %v1896_v9, %v1896_v9  ;;  %v15349_v20 = vpack.c.bf16 %v2198_v11, %v2198_v11  ;;  %v1903_v21 = vrot.slane %v18628_v55, 1  ;;  %v780_v54 = vpop.f32.mrf.mxu0 }
 0x145   :  { %4066 = vst [vmem:[#allocation2 + $0x104] sm:$0xf] %v15351_v5  ;;  %v15226_v22 = vpack.c.bf16 %v18628_v55, %v18628_v55  ;;  %2784 = vst [vmem:[#allocation2 + $0xe4] sm:$0xf] %v15093_v13  ;;  %v1215_v31 = vmax.f32 %v764_v51, 0.0  ;;  %v1218_v32 = vmax.f32 %v16689_v2, 0.0  ;;  %v18652_v44 = vsel %vm1869_vm1, %v1969_v53, %v1970_v33 }
 0x146   :  { %v1816_v30 = vsel %vm1484_vm0, 0.0, %v1518_v12  ;;  %v1216_v35 = vmax.f32 %v767_v14, 0.0  ;;  %4063 = vst [vmem:[#allocation2 + $0xe0] sm:$0xf] %v15348_v17  ;;  %4064 = vst [vmem:[#allocation2 + $0xec] sm:$0xf] %v15349_v20  ;;  %v16693_v2 = vpop.f32.mrf.mxu0 }
 0x147   :  { %v15098_v40 = vpack.c.bf16 %v1816_v30, %v1816_v30  ;;  %3429 = vst [vmem:[#allocation2 + $0x124] sm:$0xf] %v15226_v22  ;;  %v18645_v42 = vmax.f32 %v16692_v37, 0.0  ;;  %v17508_v43 = vld [vmem:[#allocation2 + $0xb0] ss:$12 sps:$4 sm:$0xff]   ;;  %v18657_v45 = vsel %vm1869_vm1, %v1970_v33, 0.0  ;;  %v15224_v29 = vpack.c.bf16 %v1215_v31, %v1215_v31  ;;  %v18672_v30 = vpop.f32.mrf.mxu1 }
 0x148   :  { %v1515_v47 = vrot.slane %v1215_v31, 7  ;;  %v1900_v51 = vrot.slane %v1215_v31, 1  ;;  %v1519_v52 = vrot.slane %v1218_v32, 7  ;;  %v1904_v55 = vrot.slane %v1218_v32, 1  ;;  %16822 = vmatprep.mubr.bf16.mxu0 %v17508_v43  ;;  %v17516_v15 = vld [vmem:[#allocation2 + $0x94] ss:$12 sps:$4 sm:$0xff]  }
 0x149   :  { %2789 = vst [vmem:[#allocation2 + $0x120] sm:$0xf] %v15098_v40  ;;  %v15227_v57 = vpack.c.bf16 %v1218_v32, %v1218_v32  ;;  %v1516_v60 = vrot.slane %v1216_v35, 7  ;;  %v1901_v61 = vrot.slane %v1216_v35, 1  ;;  %3427 = vst [vmem:[#allocation2 + $0x10c] sm:$0xf] %v15224_v29  ;;  %v15225_v33 = vpack.c.bf16 %v1216_v35, %v1216_v35  ;;  %16823 = vmatmul.mubr.bf16.gmra.mxu0 %v17510_v27 }
 0x14a   :  { %v1815_v53 = vsel %vm1484_vm0, 0.0, %v1515_v47  ;;  %v1520_v41 = vsel %vm1484_vm0, %v1518_v12, %v1519_v52  ;;  %v1524_v63 = vrot.slane %v18645_v42, 7  ;;  %v1905_v26 = vsel %vm1869_vm1, %v1903_v21, %v1904_v55  ;;  %v783_v12 = vpop.f32.mrf.mxu0  ;;  %6017 = vmatmul.mubr.bf16.gmra.mxu1 %v17514_v8 }
 0x14b   :  { %v15096_v3 = vpack.c.bf16 %v1815_v53, %v1815_v53  ;;  %v2201_v5 = vsel %vm1869_vm1, %v1904_v55, 0.0  ;;  %v15099_v7 = vpack.c.bf16 %v1520_v41, %v1520_v41  ;;  %3430 = vst [vmem:[#allocation2 + $0x130] sm:$0xf] %v15227_v57  ;;  %v15354_v9 = vpack.c.bf16 %v1905_v26, %v1905_v26  ;;  %3428 = vst [vmem:[#allocation2 + $0x118] sm:$0xf] %v15225_v33 }
 0x14c   :  { %v15355_v11 = vpack.c.bf16 %v2201_v5, %v2201_v5  ;;  %v1517_v13 = vsel %vm1484_vm0, %v1515_v47, %v1516_v60  ;;  %v1902_v14 = vsel %vm1869_vm1, %v1900_v51, %v1901_v61  ;;  %v2200_v17 = vsel %vm1869_vm1, %v1901_v61, 0.0  ;;  %v17515_v27 = vld [vmem:[#allocation2 + $0xf8] ss:$12 sps:$4 sm:$0xff]   ;;  %v16696_v40 = vpop.f32.mrf.mxu0  ;;  %6024 = vmatprep.mubr.bf16.mxu1 %v17516_v15 }
 0x14d   :  { %2787 = vst [vmem:[#allocation2 + $0x108] sm:$0xf] %v15096_v3  ;;  %2790 = vst [vmem:[#allocation2 + $0x12c] sm:$0xf] %v15099_v7  ;;  %v15097_v20 = vpack.c.bf16 %v1517_v13, %v1517_v13  ;;  %v15352_v21 = vpack.c.bf16 %v1902_v14, %v1902_v14  ;;  %v1818_v22 = vsel %vm1484_vm0, 0.0, %v1524_v63  ;;  %v15353_v31 = vpack.c.bf16 %v2200_v17, %v2200_v17  ;;  %v18688_v3 = vpop.f32.mrf.mxu1 }
 0x14e   :  { %4069 = vst [vmem:[#allocation2 + $0x128] sm:$0xf] %v15354_v9  ;;  %4070 = vst [vmem:[#allocation2 + $0x134] sm:$0xf] %v15355_v11  ;;  %v1909_v32 = vrot.slane %v18645_v42, 1  ;;  %v15102_v35 = vpack.c.bf16 %v1818_v22, %v1818_v22  ;;  %v15230_v37 = vpack.c.bf16 %v18645_v42, %v18645_v42  ;;  %v1219_v43 = vmax.f32 %v780_v54, 0.0  ;;  %v796_v55 = vpop.f32.mrf.mxu0 }
 0x14f   :  { %2788 = vst [vmem:[#allocation2 + $0x114] sm:$0xf] %v15097_v20  ;;  %4067 = vst [vmem:[#allocation2 + $0x110] sm:$0xf] %v15352_v21  ;;  %v1222_v47 = vmax.f32 %v16693_v2, 0.0  ;;  %v1220_v51 = vmax.f32 %v783_v12, 0.0  ;;  %v15143_v57 = vpack.c.bf16 %v18600_v23, %v18600_v23  ;;  %v15398_v60 = vpack.c.bf16 %v18652_v44, %v18652_v44 }
 0x150   :  { %v18677_v29 = vmax.f32 %v16696_v40, 0.0  ;;  %v17513_v52 = vld [vmem:[#allocation2 + $0xe0] ss:$12 sps:$4 sm:$0xff]   ;;  %4068 = vst [vmem:[#allocation2 + $0x11c] sm:$0xf] %v15353_v31  ;;  %v15399_v54 = vpack.c.bf16 %v18657_v45, %v18657_v45  ;;  %v18686_v61 = vmax.f32 %v18512_v59, 0.0  ;;  %v15228_v33 = vpack.c.bf16 %v1219_v43, %v1219_v43  ;;  %v16697_v8 = vpop.f32.mrf.mxu0  ;;  %v18699_v31 = vpop.f32.mrf.mxu1 }
 0x151   :  { %2793 = vst [vmem:[#allocation2 + $0x150] sm:$0xf] %v15102_v35  ;;  %3433 = vst [vmem:[#allocation2 + $0x154] sm:$0xf] %v15230_v37  ;;  %v1521_v53 = vrot.slane %v1219_v43, 7  ;;  %v1906_v41 = vrot.slane %v1219_v43, 1  ;;  %16826 = vmatprep.mubr.bf16.mxu0 %v17513_v52  ;;  %v15231_v5 = vpack.c.bf16 %v1222_v47, %v1222_v47  ;;  %v15229_v45 = vpack.c.bf16 %v1220_v51, %v1220_v51 }
 0x152   :  { %v1525_v2 = vrot.slane %v1222_v47, 7  ;;  %v1910_v26 = vrot.slane %v1222_v47, 1  ;;  %v1522_v7 = vrot.slane %v1220_v51, 7  ;;  %v1907_v23 = vrot.slane %v1220_v51, 1  ;;  %16827 = vmatmul.mubr.bf16.gmra.mxu0 %v17515_v27  ;;  %2834 = vst [vmem:[#allocation2 + $0x39c] sm:$0xf] %v15143_v57  ;;  %v799_v17 = vpop.f32.mrf.mxu0 }
 0x153   :  { %4113 = vst [vmem:[#allocation2 + $0x398] sm:$0xf] %v15398_v60  ;;  %4114 = vst [vmem:[#allocation2 + $0x3a4] sm:$0xf] %v15399_v54  ;;  %v1817_v44 = vsel %vm1484_vm0, 0.0, %v1521_v53  ;;  %v1530_v9 = vrot.slane %v18677_v29, 7  ;;  %v15234_v57 = vpack.c.bf16 %v18677_v29, %v18677_v29 }
 0x154   :  { %3431 = vst [vmem:[#allocation2 + $0x13c] sm:$0xf] %v15228_v33  ;;  %v1526_v59 = vsel %vm1484_vm0, %v1524_v63, %v1525_v2  ;;  %v17519_v11 = vld [vmem:[#allocation2 + $0x90] ss:$12 sps:$4 sm:$0xff]   ;;  %v15100_v13 = vpack.c.bf16 %v1817_v44, %v1817_v44  ;;  %v1911_v14 = vsel %vm1869_vm1, %v1909_v32, %v1910_v26  ;;  %v2203_v12 = vsel %vm1869_vm1, %v1910_v26, 0.0  ;;  %v16700_v43 = vpop.f32.mrf.mxu0 }
 0x155   :  { %v15103_v15 = vpack.c.bf16 %v1526_v59, %v1526_v59  ;;  %3434 = vst [vmem:[#allocation2 + $0x160] sm:$0xf] %v15231_v5  ;;  %v17521_v20 = vld [vmem:[#allocation2 + $0xac] ss:$12 sps:$4 sm:$0xff]   ;;  %v15358_v21 = vpack.c.bf16 %v1911_v14, %v1911_v14  ;;  %v15359_v22 = vpack.c.bf16 %v2203_v12, %v2203_v12  ;;  %v1523_v27 = vsel %vm1484_vm0, %v1521_v53, %v1522_v7  ;;  %v17520_v63 = vld [vmem:[#allocation2 + $0x128] ss:$12 sps:$4 sm:$0xff]  }
 0x156   :  { %v1908_v42 = vsel %vm1869_vm1, %v1906_v41, %v1907_v23  ;;  %3432 = vst [vmem:[#allocation2 + $0x148] sm:$0xf] %v15229_v45  ;;  %2791 = vst [vmem:[#allocation2 + $0x138] sm:$0xf] %v15100_v13  ;;  %v2202_v32 = vsel %vm1869_vm1, %v1907_v23, 0.0  ;;  %v15101_v35 = vpack.c.bf16 %v1523_v27, %v1523_v27  ;;  %v1820_v40 = vsel %vm1484_vm0, 0.0, %v1530_v9  ;;  %6025 = vmatmul.mubr.bf16.gmra.mxu1 %v17519_v11  ;;  %v812_v2 = vpop.f32.mrf.mxu0 }
 0x157   :  { %2794 = vst [vmem:[#allocation2 + $0x15c] sm:$0xf] %v15103_v15  ;;  %v15356_v37 = vpack.c.bf16 %v1908_v42, %v1908_v42  ;;  %4073 = vst [vmem:[#allocation2 + $0x158] sm:$0xf] %v15358_v21  ;;  %v15357_v47 = vpack.c.bf16 %v2202_v32, %v2202_v32  ;;  %v1915_v51 = vrot.slane %v18677_v29, 1  ;;  %v15106_v52 = vpack.c.bf16 %v1820_v40, %v1820_v40 }
 0x158   :  { %4074 = vst [vmem:[#allocation2 + $0x164] sm:$0xf] %v15359_v22  ;;  %v17518_v60 = vld [vmem:[#allocation2 + $0x110] ss:$12 sps:$4 sm:$0xff]   ;;  %2792 = vst [vmem:[#allocation2 + $0x144] sm:$0xf] %v15101_v35  ;;  %6032 = vmatprep.mubr.bf16.mxu1 %v17521_v20  ;;  %v15269_v7 = vpack.c.bf16 %v18686_v61, %v18686_v61  ;;  %v16701_v45 = vpop.f32.mrf.mxu0 }
 0x159   :  { %4071 = vst [vmem:[#allocation2 + $0x140] sm:$0xf] %v15356_v37  ;;  %v1223_v54 = vmax.f32 %v796_v55, 0.0  ;;  %v1226_v53 = vmax.f32 %v16697_v8, 0.0  ;;  %v1224_v41 = vmax.f32 %v799_v17, 0.0  ;;  %v18706_v33 = vmax.f32 %v16700_v43, 0.0  ;;  %16830 = vmatprep.mubr.bf16.mxu0 %v17518_v60  ;;  %v18714_v55 = vpop.f32.mrf.mxu1 }
 0x15a   :  { %4072 = vst [vmem:[#allocation2 + $0x14c] sm:$0xf] %v15357_v47  ;;  %2797 = vst [vmem:[#allocation2 + $0x180] sm:$0xf] %v15106_v52  ;;  %v18708_v26 = vmax.f32 %v812_v2, 0.0  ;;  %v1582_v5 = vrot.slane %v18686_v61, 7  ;;  %16831 = vmatmul.mubr.bf16.gmra.mxu0 %v17520_v63  ;;  %v815_v22 = vpop.f32.mrf.mxu0 }
 0x15b   :  { %3437 = vst [vmem:[#allocation2 + $0x184] sm:$0xf] %v15234_v57  ;;  %v1967_v29 = vrot.slane %v18686_v61, 1  ;;  %v1527_v23 = vrot.slane %v1223_v54, 7  ;;  %v1912_v8 = vrot.slane %v1223_v54, 1  ;;  %v15232_v44 = vpack.c.bf16 %v1223_v54, %v1223_v54  ;;  %v18721_v40 = vpop.f32.mrf.mxu1 }
 0x15c   :  { %v1531_v59 = vrot.slane %v1226_v53, 7  ;;  %v1916_v11 = vrot.slane %v1226_v53, 1  ;;  %v15235_v13 = vpack.c.bf16 %v1226_v53, %v1226_v53  ;;  %v1528_v14 = vrot.slane %v1224_v41, 7  ;;  %3472 = vst [vmem:[#allocation2 + $0x388] sm:$0xf] %v15269_v7  ;;  %v16704_v57 = vpop.f32.mrf.mxu0 }
 0x15d   :  { %v1913_v12 = vrot.slane %v1224_v41, 1  ;;  %v1819_v15 = vsel %vm1484_vm0, 0.0, %v1527_v23  ;;  %3435 = vst [vmem:[#allocation2 + $0x16c] sm:$0xf] %v15232_v44  ;;  %v15233_v20 = vpack.c.bf16 %v1224_v41, %v1224_v41  ;;  %v1536_v21 = vrot.slane %v18706_v33, 7 }
 0x15e   :  { %v1532_v17 = vsel %vm1484_vm0, %v1530_v9, %v1531_v59  ;;  %v17526_v27 = vld [vmem:[#allocation2 + $0xc4] ss:$12 sps:$4 sm:$0xff]   ;;  %v15104_v42 = vpack.c.bf16 %v1819_v15, %v1819_v15  ;;  %v1917_v32 = vsel %vm1869_vm1, %v1915_v51, %v1916_v11  ;;  %v2205_v63 = vsel %vm1869_vm1, %v1916_v11, 0.0  ;;  %3438 = vst [vmem:[#allocation2 + $0x190] sm:$0xf] %v15235_v13  ;;  %v828_v59 = vpop.f32.mrf.mxu0  ;;  %v18734_v15 = vpop.f32.mrf.mxu1 }
 0x15f   :  { %v15107_v35 = vpack.c.bf16 %v1532_v17, %v1532_v17  ;;  %v17524_v37 = vld [vmem:[#allocation2 + $0xa8] ss:$12 sps:$4 sm:$0xff]   ;;  %v15362_v43 = vpack.c.bf16 %v1917_v32, %v1917_v32  ;;  %v15363_v47 = vpack.c.bf16 %v2205_v63, %v2205_v63  ;;  %v1529_v52 = vsel %vm1484_vm0, %v1527_v23, %v1528_v14  ;;  %3436 = vst [vmem:[#allocation2 + $0x178] sm:$0xf] %v15233_v20  ;;  %v17525_v60 = vld [vmem:[#allocation2 + $0x158] ss:$12 sps:$4 sm:$0xff]  }
 0x160   :  { %v1914_v9 = vsel %vm1869_vm1, %v1912_v8, %v1913_v12  ;;  %2795 = vst [vmem:[#allocation2 + $0x168] sm:$0xf] %v15104_v42  ;;  %v2204_v51 = vsel %vm1869_vm1, %v1913_v12, 0.0  ;;  %v15105_v54 = vpack.c.bf16 %v1529_v52, %v1529_v52  ;;  %v1822_v41 = vsel %vm1484_vm0, 0.0, %v1536_v21  ;;  %6033 = vmatmul.mubr.bf16.gmra.mxu1 %v17524_v37  ;;  %v17576_v52 = vld [vmem:[#allocation8 + $0xa8] sm:$0xff]  }
 0x161   :  { %2798 = vst [vmem:[#allocation2 + $0x18c] sm:$0xf] %v15107_v35  ;;  %v15360_v53 = vpack.c.bf16 %v1914_v9, %v1914_v9  ;;  %4077 = vst [vmem:[#allocation2 + $0x188] sm:$0xf] %v15362_v43  ;;  %v15361_v2 = vpack.c.bf16 %v2204_v51, %v2204_v51  ;;  %v1921_v7 = vrot.slane %v18706_v33, 1  ;;  %v15110_v23 = vpack.c.bf16 %v1822_v41, %v1822_v41 }
 0x162   :  { %4078 = vst [vmem:[#allocation2 + $0x194] sm:$0xf] %v15363_v47  ;;  %v15238_v8 = vpack.c.bf16 %v18706_v33, %v18706_v33  ;;  %v17523_v44 = vld [vmem:[#allocation2 + $0x140] ss:$12 sps:$4 sm:$0xff]   ;;  %6040 = vmatprep.mubr.bf16.mxu1 %v17526_v27  ;;  %2796 = vst [vmem:[#allocation2 + $0x174] sm:$0xf] %v15105_v54  ;;  %v15236_v14 = vpack.c.bf16 %v18708_v26, %v18708_v26  ;;  %v16705_v27 = vpop.f32.mrf.mxu0  ;;  %v18745_v42 = vsel %vm1484_vm0, %v1581_v58, %v1582_v5  ;;  %v18752_v54 = vpop.f32.mrf.mxu1 }
 0x163   :  { %4075 = vst [vmem:[#allocation2 + $0x170] sm:$0xf] %v15360_v53  ;;  %v1533_v11 = vrot.slane %v18708_v26, 7  ;;  %v1918_v13 = vrot.slane %v18708_v26, 1  ;;  %v1230_v12 = vmax.f32 %v16701_v45, 0.0  ;;  %v1228_v17 = vmax.f32 %v815_v22, 0.0  ;;  %16834 = vmatprep.mubr.bf16.mxu0 %v17523_v44  ;;  %16942 = vmatprep.subr.bf16.mxu1 %v17576_v52 }
 0x164   :  { %4076 = vst [vmem:[#allocation2 + $0x17c] sm:$0xf] %v15361_v2  ;;  %2801 = vst [vmem:[#allocation2 + $0x1e0] sm:$0xf] %v15110_v23  ;;  %v18736_v33 = vmax.f32 %v16704_v57, 0.0  ;;  %v18738_v20 = vmax.f32 %v828_v59, 0.0  ;;  %16835 = vmatmul.mubr.bf16.gmra.mxu0 %v17525_v60  ;;  %v831_v47 = vpop.f32.mrf.mxu0  ;;  %16943 = vmatpush3.bf16.msra.mxu1 %v17576_v52 }
 0x165   :  { %3441 = vst [vmem:[#allocation2 + $0x1e4] sm:$0xf] %v15238_v8  ;;  %v1821_v26 = vsel %vm1484_vm0, 0.0, %v1533_v11  ;;  %3439 = vst [vmem:[#allocation2 + $0x1cc] sm:$0xf] %v15236_v14  ;;  %v1537_v45 = vrot.slane %v1230_v12, 7  ;;  %v15239_v63 = vpack.c.bf16 %v1230_v12, %v1230_v12  ;;  %v15237_v43 = vpack.c.bf16 %v1228_v17, %v1228_v17 }
 0x166   :  { %v1922_v32 = vrot.slane %v1230_v12, 1  ;;  %v15108_v22 = vpack.c.bf16 %v1821_v26, %v1821_v26  ;;  %v1534_v35 = vrot.slane %v1228_v17, 7  ;;  %v1919_v37 = vrot.slane %v1228_v17, 1  ;;  %v17529_v51 = vld [vmem:[#allocation2 + $0xc0] ss:$12 sps:$4 sm:$0xff]   ;;  %v16708_v23 = vpop.f32.mrf.mxu0 }
 0x167   :  { %v1538_v9 = vsel %vm1484_vm0, %v1536_v21, %v1537_v45  ;;  %3442 = vst [vmem:[#allocation2 + $0x1f0] sm:$0xf] %v15239_v63  ;;  %v1542_v5 = vrot.slane %v18736_v33, 7  ;;  %3440 = vst [vmem:[#allocation2 + $0x1d8] sm:$0xf] %v15237_v43  ;;  %v1924_v63 = vrot.slane %v18738_v20, 1 }
 0x168   :  { %v1923_v57 = vsel %vm1869_vm1, %v1921_v7, %v1922_v32  ;;  %v2207_v58 = vsel %vm1869_vm1, %v1922_v32, 0.0  ;;  %2799 = vst [vmem:[#allocation2 + $0x1c8] sm:$0xf] %v15108_v22  ;;  %v15111_v60 = vpack.c.bf16 %v1538_v9, %v1538_v9  ;;  %v1535_v2 = vsel %vm1484_vm0, %v1533_v11, %v1534_v35  ;;  %v17531_v8 = vld [vmem:[#allocation2 + $0xdc] ss:$12 sps:$4 sm:$0xff]   ;;  %6041 = vmatmul.mubr.bf16.gmra.mxu1 %v17529_v51  ;;  %v844_v45 = vpop.f32.mrf.mxu0 }
 0x169   :  { %v15366_v53 = vpack.c.bf16 %v1923_v57, %v1923_v57  ;;  %v15367_v41 = vpack.c.bf16 %v2207_v58, %v2207_v58  ;;  %v1920_v21 = vsel %vm1869_vm1, %v1918_v13, %v1919_v37  ;;  %v2206_v7 = vsel %vm1869_vm1, %v1919_v37, 0.0  ;;  %v17530_v26 = vld [vmem:[#allocation2 + $0x188] ss:$12 sps:$4 sm:$0xff]   ;;  %6048 = vmatprep.mubr.bf16.mxu1 %v17531_v8  ;;  %v18767_v37 = vpop.f32.mrf.mxu1  ;;  %v17535_v48 = vld [vmem:[#allocation2 + $0xd8] ss:$12 sps:$4 sm:$0xff]  }
 0x16a   :  { %v15109_v44 = vpack.c.bf16 %v1535_v2, %v1535_v2  ;;  %v1824_v59 = vsel %vm1484_vm0, 0.0, %v1542_v5  ;;  %2802 = vst [vmem:[#allocation2 + $0x1ec] sm:$0xf] %v15111_v60  ;;  %v15364_v14 = vpack.c.bf16 %v1920_v21, %v1920_v21  ;;  %v15365_v12 = vpack.c.bf16 %v2206_v7, %v2206_v7  ;;  %v16709_v58 = vpop.f32.mrf.mxu0 }
 0x16b   :  { %4081 = vst [vmem:[#allocation2 + $0x1e8] sm:$0xf] %v15366_v53  ;;  %4082 = vst [vmem:[#allocation2 + $0x1f4] sm:$0xf] %v15367_v41  ;;  %v1927_v11 = vrot.slane %v18736_v33, 1  ;;  %v15114_v17 = vpack.c.bf16 %v1824_v59, %v1824_v59  ;;  %v15242_v13 = vpack.c.bf16 %v18736_v33, %v18736_v33  ;;  %v1539_v32 = vrot.slane %v18738_v20, 7  ;;  %v18789_v59 = vpop.f32.mrf.mxu1 }
 0x16c   :  { %2800 = vst [vmem:[#allocation2 + $0x1d4] sm:$0xf] %v15109_v44  ;;  %v15240_v22 = vpack.c.bf16 %v18738_v20, %v18738_v20  ;;  %v17528_v35 = vld [vmem:[#allocation2 + $0x170] ss:$12 sps:$4 sm:$0xff]   ;;  %4079 = vst [vmem:[#allocation2 + $0x1d0] sm:$0xf] %v15364_v14  ;;  %v18781_v20 = vsel %vm1869_vm1, %v1966_v18, %v1967_v29 }
 0x16d   :  { %4080 = vst [vmem:[#allocation2 + $0x1dc] sm:$0xf] %v15365_v12  ;;  %2805 = vst [vmem:[#allocation2 + $0x210] sm:$0xf] %v15114_v17  ;;  %v1234_v43 = vmax.f32 %v16705_v27, 0.0  ;;  %v1232_v9 = vmax.f32 %v831_v47, 0.0  ;;  %16838 = vmatprep.mubr.bf16.mxu0 %v17528_v35 }
 0x16e   :  { %v18769_v52 = vmax.f32 %v16708_v23, 0.0  ;;  %v18771_v57 = vmax.f32 %v844_v45, 0.0  ;;  %3445 = vst [vmem:[#allocation2 + $0x214] sm:$0xf] %v15242_v13  ;;  %v1823_v51 = vsel %vm1484_vm0, 0.0, %v1539_v32  ;;  %v18774_v60 = vmax.f32 %v16709_v58, 0.0  ;;  %16839 = vmatmul.mubr.bf16.gmra.mxu0 %v17530_v26  ;;  %v847_v23 = vpop.f32.mrf.mxu0 }
 0x16f   :  { %3443 = vst [vmem:[#allocation2 + $0x1fc] sm:$0xf] %v15240_v22  ;;  %v18786_v27 = vsel %vm1869_vm1, %v1967_v29, 0.0  ;;  %v15112_v47 = vpack.c.bf16 %v1823_v51, %v1823_v51  ;;  %v1543_v53 = vrot.slane %v1234_v43, 7  ;;  %v1928_v41 = vrot.slane %v1234_v43, 1 }
 0x170   :  { %v15243_v2 = vpack.c.bf16 %v1234_v43, %v1234_v43  ;;  %v1540_v8 = vrot.slane %v1232_v9, 7  ;;  %v1925_v21 = vrot.slane %v1232_v9, 1  ;;  %v15241_v7 = vpack.c.bf16 %v1232_v9, %v1232_v9  ;;  %v18797_v12 = vpop.f32.mrf.mxu0  ;;  %v17537_v17 = vld [vmem:[#allocation2 + $0xf4] ss:$12 sps:$4 sm:$0xff]   ;;  %6049 = vmatmul.mubr.bf16.gmra.mxu1 %v17535_v48 }
 0x171   :  { %v1548_v44 = vrot.slane %v18769_v52, 7  ;;  %2803 = vst [vmem:[#allocation2 + $0x1f8] sm:$0xf] %v15112_v47  ;;  %v1544_v18 = vsel %vm1484_vm0, %v1542_v5, %v1543_v53  ;;  %v1929_v61 = vsel %vm1869_vm1, %v1927_v11, %v1928_v41  ;;  %v2209_v29 = vsel %vm1869_vm1, %v1928_v41, 0.0  ;;  %6056 = vmatprep.mubr.bf16.mxu1 %v17537_v17  ;;  %v18805_v53 = vpop.f32.mrf.mxu1 }
 0x172   :  { %3446 = vst [vmem:[#allocation2 + $0x220] sm:$0xf] %v15243_v2  ;;  %v1933_v14 = vrot.slane %v18769_v52, 1  ;;  %v15115_v26 = vpack.c.bf16 %v1544_v18, %v1544_v18  ;;  %v15370_v45 = vpack.c.bf16 %v1929_v61, %v1929_v61  ;;  %v15371_v13 = vpack.c.bf16 %v2209_v29, %v2209_v29  ;;  %3444 = vst [vmem:[#allocation2 + $0x208] sm:$0xf] %v15241_v7 }
 0x173   :  { %v1541_v22 = vsel %vm1484_vm0, %v1539_v32, %v1540_v8  ;;  %v1926_v33 = vsel %vm1869_vm1, %v1924_v63, %v1925_v21  ;;  %v2208_v5 = vsel %vm1869_vm1, %v1925_v21, 0.0  ;;  %v1826_v35 = vsel %vm1484_vm0, 0.0, %v1548_v44  ;;  %v17536_v43 = vld [vmem:[#allocation2 + $0x1e8] ss:$12 sps:$4 sm:$0xff]   ;;  %v860_v21 = vpop.f32.mrf.mxu0 }
 0x174   :  { %v15113_v11 = vpack.c.bf16 %v1541_v22, %v1541_v22  ;;  %2806 = vst [vmem:[#allocation2 + $0x21c] sm:$0xf] %v15115_v26  ;;  %4085 = vst [vmem:[#allocation2 + $0x218] sm:$0xf] %v15370_v45  ;;  %v15368_v9 = vpack.c.bf16 %v1926_v33, %v1926_v33  ;;  %v15369_v58 = vpack.c.bf16 %v2208_v5, %v2208_v5  ;;  %v17533_v47 = vld [vmem:[#allocation2 + $0x1d0] ss:$12 sps:$4 sm:$0xff]  }
 0x175   :  { %4086 = vst [vmem:[#allocation2 + $0x224] sm:$0xf] %v15371_v13  ;;  %v15118_v51 = vpack.c.bf16 %v1826_v35, %v1826_v35  ;;  %v15246_v32 = vpack.c.bf16 %v18769_v52, %v18769_v52  ;;  %v1545_v63 = vrot.slane %v18771_v57, 7  ;;  %v1930_v41 = vrot.slane %v18771_v57, 1  ;;  %16842 = vmatprep.mubr.bf16.mxu0 %v17533_v47  ;;  %v18825_v13 = vpop.f32.mrf.mxu1 }
 0x176   :  { %2804 = vst [vmem:[#allocation2 + $0x204] sm:$0xf] %v15113_v11  ;;  %v15244_v2 = vpack.c.bf16 %v18771_v57, %v18771_v57  ;;  %v1549_v8 = vrot.slane %v18774_v60, 7  ;;  %4083 = vst [vmem:[#allocation2 + $0x200] sm:$0xf] %v15368_v9  ;;  %v1934_v52 = vrot.slane %v18774_v60, 1  ;;  %v15247_v7 = vpack.c.bf16 %v18774_v60, %v18774_v60  ;;  %16843 = vmatmul.mubr.bf16.gmra.mxu0 %v17536_v43 }
 0x177   :  { %4084 = vst [vmem:[#allocation2 + $0x20c] sm:$0xf] %v15369_v58  ;;  %2809 = vst [vmem:[#allocation2 + $0x240] sm:$0xf] %v15118_v51  ;;  %v1236_v48 = vmax.f32 %v847_v23, 0.0  ;;  %v15141_v18 = vpack.c.bf16 %v18745_v42, %v18745_v42  ;;  %v1825_v61 = vsel %vm1484_vm0, 0.0, %v1545_v63  ;;  %v15396_v29 = vpack.c.bf16 %v18781_v20, %v18781_v20  ;;  %v16713_v20 = vpop.f32.mrf.mxu0 }
 0x178   :  { %3449 = vst [vmem:[#allocation2 + $0x244] sm:$0xf] %v15246_v32  ;;  %3447 = vst [vmem:[#allocation2 + $0x22c] sm:$0xf] %v15244_v2  ;;  %v1550_v57 = vsel %vm1484_vm0, %v1548_v44, %v1549_v8  ;;  %v15397_v17 = vpack.c.bf16 %v18786_v27, %v18786_v27  ;;  %v15116_v26 = vpack.c.bf16 %v1825_v61, %v1825_v61  ;;  %v2211_v23 = vsel %vm1869_vm1, %v1934_v52, 0.0 }
 0x179   :  { %v1935_v60 = vsel %vm1869_vm1, %v1933_v14, %v1934_v52  ;;  %v15119_v45 = vpack.c.bf16 %v1550_v57, %v1550_v57  ;;  %3450 = vst [vmem:[#allocation2 + $0x250] sm:$0xf] %v15247_v7  ;;  %2832 = vst [vmem:[#allocation2 + $0x384] sm:$0xf] %v15141_v18  ;;  %v17540_v42 = vld [vmem:[#allocation2 + $0xf0] ss:$12 sps:$4 sm:$0xff]   ;;  %v15375_v44 = vpack.c.bf16 %v2211_v23, %v2211_v23  ;;  %v863_v7 = vpop.f32.mrf.mxu0 }
 0x17a   :  { %v15374_v22 = vpack.c.bf16 %v1935_v60, %v1935_v60  ;;  %v1546_v33 = vrot.slane %v1236_v48, 7  ;;  %v1931_v5 = vrot.slane %v1236_v48, 1  ;;  %4111 = vst [vmem:[#allocation2 + $0x380] sm:$0xf] %v15396_v29  ;;  %4112 = vst [vmem:[#allocation2 + $0x38c] sm:$0xf] %v15397_v17  ;;  %v15245_v11 = vpack.c.bf16 %v1236_v48, %v1236_v48  ;;  %6057 = vmatmul.mubr.bf16.gmra.mxu1 %v17540_v42 }
 0x17b   :  { %v17542_v27 = vld [vmem:[#allocation2 + $0x10c] ss:$12 sps:$4 sm:$0xff]   ;;  %2807 = vst [vmem:[#allocation2 + $0x228] sm:$0xf] %v15116_v26  ;;  %2810 = vst [vmem:[#allocation2 + $0x24c] sm:$0xf] %v15119_v45 }
 0x17c   :  { %v18828_v14 = vmax.f32 %v18797_v12, 0.0  ;;  %v18831_v35 = vmax.f32 %v18515_v6, 0.0  ;;  %v18833_v43 = vmax.f32 %v860_v21, 0.0  ;;  %4089 = vst [vmem:[#allocation2 + $0x248] sm:$0xf] %v15374_v22  ;;  %v1547_v9 = vsel %vm1484_vm0, %v1545_v63, %v1546_v33  ;;  %6064 = vmatprep.mubr.bf16.mxu1 %v17542_v27  ;;  %v18842_v21 = vpop.f32.mrf.mxu1 }
 0x17d   :  { %4090 = vst [vmem:[#allocation2 + $0x254] sm:$0xf] %v15375_v44  ;;  %v1932_v58 = vsel %vm1869_vm1, %v1930_v41, %v1931_v5  ;;  %v2210_v51 = vsel %vm1869_vm1, %v1931_v5, 0.0  ;;  %v18839_v32 = vmax.f32 %v18525_v16, 0.0  ;;  %v15117_v12 = vpack.c.bf16 %v1547_v9, %v1547_v9  ;;  %3448 = vst [vmem:[#allocation2 + $0x238] sm:$0xf] %v15245_v11  ;;  %v16716_v9 = vpop.f32.mrf.mxu0 }
 0x17e   :  { %v15372_v47 = vpack.c.bf16 %v1932_v58, %v1932_v58  ;;  %v15373_v6 = vpack.c.bf16 %v2210_v51, %v2210_v51  ;;  %v1554_v2 = vrot.slane %v18828_v14, 7  ;;  %v17541_v8 = vld [vmem:[#allocation2 + $0x218] ss:$12 sps:$4 sm:$0xff]   ;;  %v1939_v52 = vrot.slane %v18828_v14, 1  ;;  %v17539_v23 = vld [vmem:[#allocation2 + $0x200] ss:$12 sps:$4 sm:$0xff]   ;;  %v18862_v5 = vpop.f32.mrf.mxu1 }
 0x17f   :  { %v15250_v63 = vpack.c.bf16 %v18828_v14, %v18828_v14  ;;  %v1590_v41 = vrot.slane %v18831_v35, 7  ;;  %v1975_v16 = vrot.slane %v18831_v35, 1  ;;  %2808 = vst [vmem:[#allocation2 + $0x234] sm:$0xf] %v15117_v12  ;;  %v15274_v18 = vpack.c.bf16 %v18831_v35, %v18831_v35  ;;  %v17545_v45 = vld [vmem:[#allocation2 + $0x108] ss:$12 sps:$4 sm:$0xff]   ;;  %16846 = vmatprep.mubr.bf16.mxu0 %v17539_v23 }
 0x180   :  { %4087 = vst [vmem:[#allocation2 + $0x230] sm:$0xf] %v15372_v47  ;;  %4088 = vst [vmem:[#allocation2 + $0x23c] sm:$0xf] %v15373_v6  ;;  %v1828_v48 = vsel %vm1484_vm0, 0.0, %v1554_v2  ;;  %v1551_v61 = vrot.slane %v18833_v43, 7  ;;  %v15248_v26 = vpack.c.bf16 %v18833_v43, %v18833_v43  ;;  %v15272_v33 = vpack.c.bf16 %v18839_v32, %v18839_v32  ;;  %16847 = vmatmul.mubr.bf16.gmra.mxu0 %v17541_v8  ;;  %v18873_v23 = vpop.f32.mrf.mxu1 }
 0x181   :  { %v1936_v57 = vrot.slane %v18833_v43, 1  ;;  %v15122_v29 = vpack.c.bf16 %v1828_v48, %v1828_v48  ;;  %3453 = vst [vmem:[#allocation2 + $0x274] sm:$0xf] %v15250_v63  ;;  %v1840_v17 = vsel %vm1484_vm0, 0.0, %v1590_v41  ;;  %v1587_v60 = vrot.slane %v18839_v32, 7 }
 0x182   :  { %v15146_v42 = vpack.c.bf16 %v1840_v17, %v1840_v17  ;;  %3477 = vst [vmem:[#allocation2 + $0x3c4] sm:$0xf] %v15274_v18  ;;  %v1827_v22 = vsel %vm1484_vm0, 0.0, %v1551_v61  ;;  %v1972_v44 = vrot.slane %v18839_v32, 1  ;;  %3451 = vst [vmem:[#allocation2 + $0x25c] sm:$0xf] %v15248_v26  ;;  %6065 = vmatmul.mubr.bf16.gmra.mxu1 %v17545_v45 }
 0x183   :  { %2813 = vst [vmem:[#allocation2 + $0x270] sm:$0xf] %v15122_v29  ;;  %v15120_v27 = vpack.c.bf16 %v1827_v22, %v1827_v22  ;;  %v1839_v11 = vsel %vm1484_vm0, 0.0, %v1587_v60  ;;  %v1242_v14 = vmax.f32 %v16713_v20, 0.0  ;;  %v1266_v35 = vmax.f32 %v18531_v25, 0.0 }
 0x184   :  { %v17547_v58 = vld [vmem:[#allocation2 + $0x124] ss:$12 sps:$4 sm:$0xff]   ;;  %2837 = vst [vmem:[#allocation2 + $0x3c0] sm:$0xf] %v15146_v42  ;;  %v15144_v51 = vpack.c.bf16 %v1839_v11, %v1839_v11  ;;  %3475 = vst [vmem:[#allocation2 + $0x3ac] sm:$0xf] %v15272_v33  ;;  %v876_v42 = vpop.f32.mrf.mxu0 }
 0x185   :  { %v1240_v12 = vmax.f32 %v863_v7, 0.0  ;;  %v18869_v47 = vmax.f32 %v18537_v36, 0.0  ;;  %v18871_v6 = vmax.f32 %v16716_v9, 0.0  ;;  %2811 = vst [vmem:[#allocation2 + $0x258] sm:$0xf] %v15120_v27  ;;  %v1555_v63 = vrot.slane %v1242_v14, 7  ;;  %6072 = vmatprep.mubr.bf16.mxu1 %v17547_v58 }
 0x186   :  { %v1940_v48 = vrot.slane %v1242_v14, 1  ;;  %v15251_v20 = vpack.c.bf16 %v1242_v14, %v1242_v14  ;;  %v1591_v18 = vrot.slane %v1266_v35, 7  ;;  %2835 = vst [vmem:[#allocation2 + $0x3a8] sm:$0xf] %v15144_v51  ;;  %v1976_v25 = vrot.slane %v1266_v35, 1 }
 0x187   :  { %v15275_v29 = vpack.c.bf16 %v1266_v35, %v1266_v35  ;;  %v1552_v17 = vrot.slane %v1240_v12, 7  ;;  %v1937_v26 = vrot.slane %v1240_v12, 1  ;;  %v1556_v36 = vsel %vm1484_vm0, %v1554_v2, %v1555_v63  ;;  %v17544_v14 = vld [vmem:[#allocation2 + $0x230] ss:$12 sps:$4 sm:$0xff]   ;;  %v17546_v35 = vld [vmem:[#allocation2 + $0x248] ss:$12 sps:$4 sm:$0xff]  }
 0x188   :  { %v1941_v7 = vsel %vm1869_vm1, %v1939_v52, %v1940_v48  ;;  %v2213_v8 = vsel %vm1869_vm1, %v1940_v48, 0.0  ;;  %3454 = vst [vmem:[#allocation2 + $0x280] sm:$0xf] %v15251_v20  ;;  %v1592_v45 = vsel %vm1484_vm0, %v1590_v41, %v1591_v18  ;;  %v15123_v22 = vpack.c.bf16 %v1556_v36, %v1556_v36  ;;  %16850 = vmatprep.mubr.bf16.mxu0 %v17544_v14  ;;  %v17550_v48 = vld [vmem:[#allocation2 + $0x120] ss:$12 sps:$4 sm:$0xff]   ;;  %v18886_v20 = vpop.f32.mrf.mxu1 }
 0x189   :  { %v15378_v33 = vpack.c.bf16 %v1941_v7, %v1941_v7  ;;  %v15379_v27 = vpack.c.bf16 %v2213_v8, %v2213_v8  ;;  %v1977_v11 = vsel %vm1869_vm1, %v1975_v16, %v1976_v25  ;;  %3478 = vst [vmem:[#allocation2 + $0x3d0] sm:$0xf] %v15275_v29  ;;  %v2225_v9 = vsel %vm1869_vm1, %v1976_v25, 0.0  ;;  %v17554_v36 = vld [vmem:[#allocation2 + $0x13c] ss:$12 sps:$4 sm:$0xff]   ;;  %16851 = vmatmul.mubr.bf16.gmra.mxu0 %v17546_v35 }
 0x18a   :  { %v15147_v58 = vpack.c.bf16 %v1592_v45, %v1592_v45  ;;  %v15402_v2 = vpack.c.bf16 %v1977_v11, %v1977_v11  ;;  %v1553_v52 = vsel %vm1484_vm0, %v1551_v61, %v1552_v17  ;;  %2814 = vst [vmem:[#allocation2 + $0x27c] sm:$0xf] %v15123_v22  ;;  %v15403_v51 = vpack.c.bf16 %v2225_v9, %v2225_v9  ;;  %v16717_v17 = vpop.f32.mrf.mxu0  ;;  %v18911_v11 = vpop.f32.mrf.mxu1 }
 0x18b   :  { %4093 = vst [vmem:[#allocation2 + $0x278] sm:$0xf] %v15378_v33  ;;  %4094 = vst [vmem:[#allocation2 + $0x284] sm:$0xf] %v15379_v27  ;;  %v1938_v41 = vsel %vm1869_vm1, %v1936_v57, %v1937_v26  ;;  %v2212_v63 = vsel %vm1869_vm1, %v1937_v26, 0.0  ;;  %v15121_v16 = vpack.c.bf16 %v1553_v52, %v1553_v52  ;;  %v15249_v18 = vpack.c.bf16 %v1240_v12, %v1240_v12 }
 0x18c   :  { %2838 = vst [vmem:[#allocation2 + $0x3cc] sm:$0xf] %v15147_v58  ;;  %4117 = vst [vmem:[#allocation2 + $0x3c8] sm:$0xf] %v15402_v2  ;;  %v15376_v25 = vpack.c.bf16 %v1938_v41, %v1938_v41  ;;  %v15377_v61 = vpack.c.bf16 %v2212_v63, %v2212_v63  ;;  %v1588_v29 = vrot.slane %v18869_v47, 7  ;;  %v1973_v43 = vrot.slane %v18869_v47, 1  ;;  %6073 = vmatmul.mubr.bf16.gmra.mxu1 %v17550_v48  ;;  %v879_v9 = vpop.f32.mrf.mxu0 }
 0x18d   :  { %4118 = vst [vmem:[#allocation2 + $0x3d4] sm:$0xf] %v15403_v51  ;;  %2812 = vst [vmem:[#allocation2 + $0x264] sm:$0xf] %v15121_v16  ;;  %v15273_v57 = vpack.c.bf16 %v18869_v47, %v18869_v47  ;;  %v1560_v26 = vrot.slane %v18871_v6, 7  ;;  %v1945_v7 = vrot.slane %v18871_v6, 1  ;;  %v15254_v8 = vpack.c.bf16 %v18871_v6, %v18871_v6  ;;  %6080 = vmatprep.mubr.bf16.mxu1 %v17554_v36  ;;  %v18929_v36 = vpop.f32.mrf.mxu1 }
 0x18e   :  { %3452 = vst [vmem:[#allocation2 + $0x268] sm:$0xf] %v15249_v18  ;;  %4091 = vst [vmem:[#allocation2 + $0x260] sm:$0xf] %v15376_v25  ;;  %v1589_v12 = vsel %vm1484_vm0, %v1587_v60, %v1588_v29  ;;  %v18900_v45 = vmax.f32 %v18544_v50, 0.0  ;;  %v18902_v47 = vmax.f32 %v876_v42, 0.0  ;;  %v1974_v22 = vsel %vm1869_vm1, %v1972_v44, %v1973_v43 }
 0x18f   :  { %4092 = vst [vmem:[#allocation2 + $0x26c] sm:$0xf] %v15377_v61  ;;  %v2224_v33 = vsel %vm1869_vm1, %v1973_v43, 0.0  ;;  %v15145_v27 = vpack.c.bf16 %v1589_v12, %v1589_v12  ;;  %3476 = vst [vmem:[#allocation2 + $0x3b8] sm:$0xf] %v15273_v57  ;;  %v1830_v60 = vsel %vm1484_vm0, 0.0, %v1560_v26  ;;  %v15400_v14 = vpack.c.bf16 %v1974_v22, %v1974_v22 }
 0x190   :  { %v15401_v50 = vpack.c.bf16 %v2224_v33, %v2224_v33  ;;  %v15126_v35 = vpack.c.bf16 %v1830_v60, %v1830_v60  ;;  %3457 = vst [vmem:[#allocation2 + $0x2a4] sm:$0xf] %v15254_v8  ;;  %v1596_v42 = vrot.slane %v18900_v45, 7  ;;  %v1981_v32 = vrot.slane %v18900_v45, 1  ;;  %v17552_v52 = vld [vmem:[#allocation2 + $0x138] ss:$12 sps:$4 sm:$0xff]  }
 0x191   :  { %2836 = vst [vmem:[#allocation2 + $0x3b4] sm:$0xf] %v15145_v27  ;;  %v15278_v44 = vpack.c.bf16 %v18900_v45, %v18900_v45  ;;  %v1557_v58 = vrot.slane %v18902_v47, 7  ;;  %v1942_v2 = vrot.slane %v18902_v47, 1  ;;  %4115 = vst [vmem:[#allocation2 + $0x3b0] sm:$0xf] %v15400_v14  ;;  %v15252_v41 = vpack.c.bf16 %v18902_v47, %v18902_v47 }
 0x192   :  { %4116 = vst [vmem:[#allocation2 + $0x3bc] sm:$0xf] %v15401_v50  ;;  %2817 = vst [vmem:[#allocation2 + $0x2a0] sm:$0xf] %v15126_v35  ;;  %v1842_v51 = vsel %vm1484_vm0, 0.0, %v1596_v42  ;;  %v18923_v63 = vmax.f32 %v18550_v62, 0.0 }
 0x193   :  { %v1246_v16 = vmax.f32 %v16717_v17, 0.0  ;;  %v17559_v48 = vld [vmem:[#allocation2 + $0x154] ss:$12 sps:$4 sm:$0xff]   ;;  %v15150_v18 = vpack.c.bf16 %v1842_v51, %v1842_v51  ;;  %3481 = vst [vmem:[#allocation2 + $0x3f4] sm:$0xf] %v15278_v44  ;;  %v1829_v25 = vsel %vm1484_vm0, 0.0, %v1557_v58 }
 0x194   :  { %v1270_v61 = vmax.f32 %v18556_v10, 0.0  ;;  %v18927_v29 = vmax.f32 %v879_v9, 0.0  ;;  %v15124_v43 = vpack.c.bf16 %v1829_v25, %v1829_v25  ;;  %3455 = vst [vmem:[#allocation2 + $0x28c] sm:$0xf] %v15252_v41  ;;  %v1593_v57 = vrot.slane %v18923_v63, 7  ;;  %v16720_v10 = vpop.f32.mrf.mxu0  ;;  %6081 = vmatmul.mubr.bf16.gmra.mxu1 %v17552_v52  ;;  %v18946_v41 = vpop.f32.mrf.mxu1 }
 0x195   :  { %v1978_v12 = vrot.slane %v18923_v63, 1  ;;  %v15276_v62 = vpack.c.bf16 %v18923_v63, %v18923_v63  ;;  %v17551_v17 = vld [vmem:[#allocation2 + $0x278] ss:$12 sps:$4 sm:$0xff]   ;;  %2841 = vst [vmem:[#allocation2 + $0x3f0] sm:$0xf] %v15150_v18  ;;  %v1561_v8 = vrot.slane %v1246_v16, 7  ;;  %v15255_v22 = vpack.c.bf16 %v1246_v16, %v1246_v16  ;;  %6088 = vmatprep.mubr.bf16.mxu1 %v17559_v48 }
 0x196   :  { %v1946_v45 = vrot.slane %v1246_v16, 1  ;;  %v1597_v33 = vrot.slane %v1270_v61, 7  ;;  %2815 = vst [vmem:[#allocation2 + $0x288] sm:$0xf] %v15124_v43  ;;  %v1841_v27 = vsel %vm1484_vm0, 0.0, %v1593_v57  ;;  %v1982_v60 = vrot.slane %v1270_v61, 1  ;;  %v892_v43 = vpop.f32.mrf.mxu0 }
 0x197   :  { %3479 = vst [vmem:[#allocation2 + $0x3dc] sm:$0xf] %v15276_v62  ;;  %v15279_v14 = vpack.c.bf16 %v1270_v61, %v1270_v61  ;;  %v1558_v50 = vrot.slane %v18927_v29, 7  ;;  %v15148_v35 = vpack.c.bf16 %v1841_v27, %v1841_v27  ;;  %v1562_v9 = vsel %vm1484_vm0, %v1560_v26, %v1561_v8  ;;  %3458 = vst [vmem:[#allocation2 + $0x2b0] sm:$0xf] %v15255_v22 }
 0x198   :  { %v1947_v44 = vsel %vm1869_vm1, %v1945_v7, %v1946_v45  ;;  %v2215_v52 = vsel %vm1869_vm1, %v1946_v45, 0.0  ;;  %v17549_v51 = vld [vmem:[#allocation2 + $0x260] ss:$12 sps:$4 sm:$0xff]   ;;  %v15127_v16 = vpack.c.bf16 %v1562_v9, %v1562_v9  ;;  %v1598_v48 = vsel %vm1484_vm0, %v1596_v42, %v1597_v33  ;;  %v17557_v27 = vld [vmem:[#allocation2 + $0x150] ss:$12 sps:$4 sm:$0xff]  }
 0x199   :  { %v15382_v18 = vpack.c.bf16 %v1947_v44, %v1947_v44  ;;  %v15383_v25 = vpack.c.bf16 %v2215_v52, %v2215_v52  ;;  %3482 = vst [vmem:[#allocation2 + $0x400] sm:$0xf] %v15279_v14  ;;  %2839 = vst [vmem:[#allocation2 + $0x3d8] sm:$0xf] %v15148_v35  ;;  %v1983_v61 = vsel %vm1869_vm1, %v1981_v32, %v1982_v60  ;;  %v2227_v26 = vsel %vm1869_vm1, %v1982_v60, 0.0  ;;  %v18961_v60 = vpop.f32.mrf.mxu1  ;;  %v16721_v44 = vpop.f32.mrf.mxu0 }
 0x19a   :  { %v15151_v6 = vpack.c.bf16 %v1598_v48, %v1598_v48  ;;  %v1559_v7 = vsel %vm1484_vm0, %v1557_v58, %v1558_v50  ;;  %16854 = vmatprep.mubr.bf16.mxu0 %v17549_v51  ;;  %2818 = vst [vmem:[#allocation2 + $0x2ac] sm:$0xf] %v15127_v16  ;;  %v15406_v62 = vpack.c.bf16 %v1983_v61, %v1983_v61  ;;  %v1943_v45 = vrot.slane %v18927_v29, 1 }
 0x19b   :  { %4097 = vst [vmem:[#allocation2 + $0x2a8] sm:$0xf] %v15382_v18  ;;  %4098 = vst [vmem:[#allocation2 + $0x2b4] sm:$0xf] %v15383_v25  ;;  %v15407_v8 = vpack.c.bf16 %v2227_v26, %v2227_v26  ;;  %v15125_v22 = vpack.c.bf16 %v1559_v7, %v1559_v7  ;;  %16855 = vmatmul.mubr.bf16.gmra.mxu0 %v17551_v17  ;;  %v15253_v42 = vpack.c.bf16 %v18927_v29, %v18927_v29  ;;  %v18984_v48 = vpop.f32.mrf.mxu1 }
 0x19c   :  { %2842 = vst [vmem:[#allocation2 + $0x3fc] sm:$0xf] %v15151_v6  ;;  %v1268_v32 = vmax.f32 %v18565_v24, 0.0  ;;  %v18956_v33 = vmax.f32 %v16720_v10, 0.0  ;;  %v18959_v58 = vmax.f32 %v18569_v39, 0.0  ;;  %v1944_v17 = vsel %vm1869_vm1, %v1942_v2, %v1943_v45  ;;  %6089 = vmatmul.mubr.bf16.gmra.mxu1 %v17557_v27 }
 0x19d   :  { %4121 = vst [vmem:[#allocation2 + $0x3f8] sm:$0xf] %v15406_v62  ;;  %4122 = vst [vmem:[#allocation2 + $0x404] sm:$0xf] %v15407_v8  ;;  %v2214_v14 = vsel %vm1869_vm1, %v1943_v45, 0.0  ;;  %v18967_v29 = vmax.f32 %v892_v43, 0.0  ;;  %v15380_v39 = vpack.c.bf16 %v1944_v17, %v1944_v17  ;;  %v895_v62 = vpop.f32.mrf.mxu0 }
 0x19e   :  { %2816 = vst [vmem:[#allocation2 + $0x294] sm:$0xf] %v15125_v22  ;;  %v18970_v24 = vmax.f32 %v18575_v56, 0.0  ;;  %v17564_v10 = vld [vmem:[#allocation2 + $0x16c] ss:$12 sps:$4 sm:$0xff]   ;;  %v15381_v50 = vpack.c.bf16 %v2214_v14, %v2214_v14  ;;  %v1594_v35 = vrot.slane %v1268_v32, 7  ;;  %v15277_v52 = vpack.c.bf16 %v1268_v32, %v1268_v32 }
 0x19f   :  { %3456 = vst [vmem:[#allocation2 + $0x298] sm:$0xf] %v15253_v42  ;;  %v1979_v9 = vrot.slane %v1268_v32, 1  ;;  %v1566_v47 = vrot.slane %v18956_v33, 7  ;;  %v1951_v2 = vrot.slane %v18956_v33, 1  ;;  %v15258_v51 = vpack.c.bf16 %v18956_v33, %v18956_v33  ;;  %6096 = vmatprep.mubr.bf16.mxu1 %v17564_v10  ;;  %v17617_v17 = vld [vmem:[#allocation8 + $0xa0] sm:$0xff]  }
 0x1a0   :  { %4095 = vst [vmem:[#allocation2 + $0x290] sm:$0xf] %v15380_v39  ;;  %4096 = vst [vmem:[#allocation2 + $0x29c] sm:$0xf] %v15381_v50  ;;  %v1595_v56 = vsel %vm1484_vm0, %v1593_v57, %v1594_v35  ;;  %v1602_v25 = vrot.slane %v18959_v58, 7  ;;  %v15282_v43 = vpack.c.bf16 %v18959_v58, %v18959_v58  ;;  %v1563_v22 = vrot.slane %v18967_v29, 7  ;;  %v19003_v35 = vpop.f32.mrf.mxu1  ;;  %16944 = vmatprep.subr.bf16.mxu1 %v17617_v17 }
 0x1a1   :  { %v1980_v16 = vsel %vm1869_vm1, %v1978_v12, %v1979_v9  ;;  %v2226_v18 = vsel %vm1869_vm1, %v1979_v9, 0.0  ;;  %v15149_v61 = vpack.c.bf16 %v1595_v56, %v1595_v56  ;;  %3480 = vst [vmem:[#allocation2 + $0x3e8] sm:$0xf] %v15277_v52  ;;  %v1832_v7 = vsel %vm1484_vm0, 0.0, %v1566_v47  ;;  %3461 = vst [vmem:[#allocation2 + $0x2d4] sm:$0xf] %v15258_v51  ;;  %16945 = vmatpush3.bf16.msra.mxu1 %v17617_v17 }
 0x1a2   :  { %v15404_v26 = vpack.c.bf16 %v1980_v16, %v1980_v16  ;;  %v15405_v6 = vpack.c.bf16 %v2226_v18, %v2226_v18  ;;  %v15130_v57 = vpack.c.bf16 %v1832_v7, %v1832_v7  ;;  %v1844_v63 = vsel %vm1484_vm0, 0.0, %v1602_v25  ;;  %v17562_v8 = vld [vmem:[#allocation2 + $0x168] ss:$12 sps:$4 sm:$0xff]   ;;  %v17569_v27 = vld [vmem:[#allocation2 + $0x184] ss:$12 sps:$4 sm:$0xff]   ;;  %v17623_v9 = vld [vmem:[#allocation8 + $0x38] sm:$0xff]  }
 0x1a3   :  { %v1987_v12 = vrot.slane %v18959_v58, 1  ;;  %2840 = vst [vmem:[#allocation2 + $0x3e4] sm:$0xf] %v15149_v61  ;;  %v15154_v45 = vpack.c.bf16 %v1844_v63, %v1844_v63  ;;  %v1948_v42 = vrot.slane %v18967_v29, 1  ;;  %v15256_v32 = vpack.c.bf16 %v18967_v29, %v18967_v29  ;;  %3485 = vst [vmem:[#allocation2 + $0x424] sm:$0xf] %v15282_v43  ;;  %8211 = vmatpush1.bf16.msra.mxu0 %v17623_v9 }
 0x1a4   :  { %4119 = vst [vmem:[#allocation2 + $0x3e0] sm:$0xf] %v15404_v26  ;;  %4120 = vst [vmem:[#allocation2 + $0x3ec] sm:$0xf] %v15405_v6  ;;  %v1599_v14 = vrot.slane %v18970_v24, 7  ;;  %v1984_v10 = vrot.slane %v18970_v24, 1  ;;  %v15280_v39 = vpack.c.bf16 %v18970_v24, %v18970_v24  ;;  %6097 = vmatmul.mubr.bf16.gmra.mxu1 %v17562_v8  ;;  %v16724_v8 = vpop.f32.mrf.mxu0 }
 0x1a5   :  { %2821 = vst [vmem:[#allocation2 + $0x2d0] sm:$0xf] %v15130_v57  ;;  %v1250_v50 = vmax.f32 %v16721_v44, 0.0  ;;  %2845 = vst [vmem:[#allocation2 + $0x420] sm:$0xf] %v15154_v45  ;;  %v1831_v52 = vsel %vm1484_vm0, 0.0, %v1563_v22  ;;  %6104 = vmatprep.mubr.bf16.mxu1 %v17569_v27 }
 0x1a6   :  { %3459 = vst [vmem:[#allocation2 + $0x2bc] sm:$0xf] %v15256_v32  ;;  %v1274_v51 = vmax.f32 %v18582_v4, 0.0  ;;  %v19009_v56 = vmax.f32 %v895_v62, 0.0  ;;  %v19012_v16 = vmax.f32 %v18591_v19, 0.0  ;;  %v15128_v18 = vpack.c.bf16 %v1831_v52, %v1831_v52  ;;  %v17624_v27 = vld [vmem:[#allocation8 + $0x30] sm:$0xff]  }
 0x1a7   :  { %v1843_v44 = vsel %vm1484_vm0, 0.0, %v1599_v14  ;;  %3483 = vst [vmem:[#allocation2 + $0x40c] sm:$0xf] %v15280_v39  ;;  %v1567_v61 = vrot.slane %v1250_v50, 7  ;;  %v1952_v26 = vrot.slane %v1250_v50, 1  ;;  %v15259_v57 = vpack.c.bf16 %v1250_v50, %v1250_v50  ;;  %v19024_v39 = vpop.f32.mrf.mxu1  ;;  %v19026_v50 = vld [vmem:[#allocation2] sm:$0xff] }
 0x1a8   :  { %v17556_v6 = vld [vmem:[#allocation2 + $0x2a8] ss:$12 sps:$4 sm:$0xff]   ;;  %v15152_v7 = vpack.c.bf16 %v1843_v44, %v1843_v44  ;;  %v1603_v4 = vrot.slane %v1274_v51, 7  ;;  %v1988_v63 = vrot.slane %v1274_v51, 1  ;;  %2819 = vst [vmem:[#allocation2 + $0x2b8] sm:$0xf] %v15128_v18  ;;  %v15283_v45 = vpack.c.bf16 %v1274_v51, %v1274_v51  ;;  %8212 = vmatprep.subr.bf16.mxu0 %v19026_v50 }
 0x1a9   :  { %v1568_v19 = vsel %vm1484_vm0, %v1566_v47, %v1567_v61  ;;  %v1953_v43 = vsel %vm1869_vm1, %v1951_v2, %v1952_v26  ;;  %v2217_v62 = vsel %vm1869_vm1, %v1952_v26, 0.0  ;;  %v17555_v32 = vld [vmem:[#allocation2 + $0x290] ss:$12 sps:$4 sm:$0xff]   ;;  %3462 = vst [vmem:[#allocation2 + $0x2e0] sm:$0xf] %v15259_v57  ;;  %v1564_v18 = vrot.slane %v19009_v56, 7  ;;  %8213 = vmatpush1.bf16.msra.mxu0 %v17624_v27 }
 0x1aa   :  { %2843 = vst [vmem:[#allocation2 + $0x408] sm:$0xf] %v15152_v7  ;;  %v15131_v17 = vpack.c.bf16 %v1568_v19, %v1568_v19  ;;  %v15386_v47 = vpack.c.bf16 %v1953_v43, %v1953_v43  ;;  %v15387_v9 = vpack.c.bf16 %v2217_v62, %v2217_v62  ;;  %v1604_v33 = vsel %vm1484_vm0, %v1602_v25, %v1603_v4  ;;  %v908_v4 = vpop.f32.mrf.mxu0  ;;  %v19046_v19 = vpop.f32.mrf.mxu1 }
 0x1ab   :  { %v1989_v2 = vsel %vm1869_vm1, %v1987_v12, %v1988_v63  ;;  %v2229_v52 = vsel %vm1869_vm1, %v1988_v63, 0.0  ;;  %v15155_v51 = vpack.c.bf16 %v1604_v33, %v1604_v33  ;;  %3486 = vst [vmem:[#allocation2 + $0x430] sm:$0xf] %v15283_v45  ;;  %16858 = vmatprep.mubr.bf16.mxu0 %v17555_v32  ;;  %v1949_v26 = vrot.slane %v19009_v56, 1  ;;  %8214 = vmatprep.subr.bf16.mxu0 %v19026_v50  ;;  %v17567_v63 = vld [vmem:[#allocation2 + $0x180] ss:$12 sps:$4 sm:$0xff]  }
 0x1ac   :  { %2822 = vst [vmem:[#allocation2 + $0x2dc] sm:$0xf] %v15131_v17  ;;  %4101 = vst [vmem:[#allocation2 + $0x2d8] sm:$0xf] %v15386_v47  ;;  %v15410_v44 = vpack.c.bf16 %v1989_v2, %v1989_v2  ;;  %v15411_v61 = vpack.c.bf16 %v2229_v52, %v2229_v52  ;;  %v15257_v58 = vpack.c.bf16 %v19009_v56, %v19009_v56  ;;  %16859 = vmatmul.mubr.bf16.gmra.mxu0 %v17556_v6  ;;  %v17630_v56 = vld [vmem:[#allocation8 + $0x28] sm:$0xff]   ;;  %v16725_v2 = vpop.f32.mrf.mxu0  ;;  %v19068_v52 = vpop.f32.mrf.mxu1 }
 0x1ad   :  { %4102 = vst [vmem:[#allocation2 + $0x2e4] sm:$0xf] %v15387_v9  ;;  %2846 = vst [vmem:[#allocation2 + $0x42c] sm:$0xf] %v15155_v51  ;;  %v1565_v25 = vsel %vm1484_vm0, %v1563_v22, %v1564_v18  ;;  %v1600_v12 = vrot.slane %v19012_v16, 7  ;;  %v1985_v7 = vrot.slane %v19012_v16, 1  ;;  %v15281_v57 = vpack.c.bf16 %v19012_v16, %v19012_v16  ;;  %6105 = vmatmul.mubr.bf16.gmra.mxu1 %v17567_v63 }
 0x1ae   :  { %4125 = vst [vmem:[#allocation2 + $0x428] sm:$0xf] %v15410_v44  ;;  %4126 = vst [vmem:[#allocation2 + $0x434] sm:$0xf] %v15411_v61  ;;  %v1950_v6 = vsel %vm1869_vm1, %v1948_v42, %v1949_v26  ;;  %v2216_v22 = vsel %vm1869_vm1, %v1949_v26, 0.0  ;;  %v15129_v43 = vpack.c.bf16 %v1565_v25, %v1565_v25  ;;  %v19052_v62 = vmax.f32 %v16724_v8, 0.0  ;;  %8215 = vmatpush1.bf16.msra.mxu0 %v17630_v56 }
 0x1af   :  { %3460 = vst [vmem:[#allocation2 + $0x2c8] sm:$0xf] %v15257_v58  ;;  %v17574_v45 = vld [vmem:[#allocation2 + $0x1cc] ss:$12 sps:$4 sm:$0xff]   ;;  %v15384_v32 = vpack.c.bf16 %v1950_v6, %v1950_v6  ;;  %v15385_v16 = vpack.c.bf16 %v2216_v22, %v2216_v22  ;;  %v1601_v27 = vsel %vm1484_vm0, %v1599_v14, %v1600_v12  ;;  %v1986_v17 = vsel %vm1869_vm1, %v1984_v10, %v1985_v7  ;;  %v17631_v9 = vld [vmem:[#allocation8 + $0x20] sm:$0xff]  }
 0x1b0   :  { %3484 = vst [vmem:[#allocation2 + $0x418] sm:$0xf] %v15281_v57  ;;  %2820 = vst [vmem:[#allocation2 + $0x2c4] sm:$0xf] %v15129_v43  ;;  %v2228_v29 = vsel %vm1869_vm1, %v1985_v7, 0.0  ;;  %v15153_v42 = vpack.c.bf16 %v1601_v27, %v1601_v27  ;;  %v15408_v47 = vpack.c.bf16 %v1986_v17, %v1986_v17  ;;  %v1572_v8 = vrot.slane %v19052_v62, 7  ;;  %6112 = vmatprep.mubr.bf16.mxu1 %v17574_v45  ;;  %v19092_v45 = vpop.f32.mrf.mxu1 }
 0x1b1   :  { %4099 = vst [vmem:[#allocation2 + $0x2c0] sm:$0xf] %v15384_v32  ;;  %4100 = vst [vmem:[#allocation2 + $0x2cc] sm:$0xf] %v15385_v16  ;;  %v15409_v33 = vpack.c.bf16 %v2228_v29, %v2228_v29  ;;  %v1957_v14 = vrot.slane %v19052_v62, 1  ;;  %v15262_v24 = vpack.c.bf16 %v19052_v62, %v19052_v62  ;;  %v19066_v10 = vmax.f32 %v18604_v34, 0.0  ;;  %8216 = vmatprep.subr.bf16.mxu0 %v19026_v50  ;;  %v911_v62 = vpop.f32.mrf.mxu0 }
 0x1b2   :  { %2844 = vst [vmem:[#allocation2 + $0x414] sm:$0xf] %v15153_v42  ;;  %4123 = vst [vmem:[#allocation2 + $0x410] sm:$0xf] %v15408_v47  ;;  %v1834_v51 = vsel %vm1484_vm0, 0.0, %v1572_v8  ;;  %v19072_v18 = vmax.f32 %v908_v4, 0.0  ;;  %8217 = vmatpush1.bf16.msra.mxu0 %v17631_v9 }
 0x1b3   :  { %v19075_v44 = vmax.f32 %v18606_v46, 0.0  ;;  %v1254_v61 = vmax.f32 %v16725_v2, 0.0  ;;  %4124 = vst [vmem:[#allocation2 + $0x41c] sm:$0xf] %v15409_v33  ;;  %v15134_v26 = vpack.c.bf16 %v1834_v51, %v1834_v51  ;;  %3465 = vst [vmem:[#allocation2 + $0x304] sm:$0xf] %v15262_v24  ;;  %v15286_v25 = vpack.c.bf16 %v19066_v10, %v19066_v10  ;;  %8218 = vmatprep.subr.bf16.mxu0 %v19026_v50 }
 0x1b4   :  { %v1608_v34 = vrot.slane %v19066_v10, 7  ;;  %v1993_v58 = vrot.slane %v19066_v10, 1  ;;  %v17572_v12 = vld [vmem:[#allocation2 + $0x1c8] ss:$12 sps:$4 sm:$0xff]   ;;  %v1569_v7 = vrot.slane %v19072_v18, 7  ;;  %v1954_v57 = vrot.slane %v19072_v18, 1 }
 0x1b5   :  { %v15260_v46 = vpack.c.bf16 %v19072_v18, %v19072_v18  ;;  %v1605_v4 = vrot.slane %v19075_v44, 7  ;;  %v17580_v63 = vld [vmem:[#allocation2 + $0x1e4] ss:$12 sps:$4 sm:$0xff]   ;;  %2825 = vst [vmem:[#allocation2 + $0x300] sm:$0xf] %v15134_v26  ;;  %v1990_v6 = vrot.slane %v19075_v44, 1  ;;  %v15284_v22 = vpack.c.bf16 %v19075_v44, %v19075_v44  ;;  %6113 = vmatmul.mubr.bf16.gmra.mxu1 %v17572_v12  ;;  %v16728_v12 = vpop.f32.mrf.mxu0 }
 0x1b6   :  { %v1846_v56 = vsel %vm1484_vm0, 0.0, %v1608_v34  ;;  %3489 = vst [vmem:[#allocation2 + $0x454] sm:$0xf] %v15286_v25  ;;  %v1573_v43 = vrot.slane %v1254_v61, 7  ;;  %v17637_v32 = vld [vmem:[#allocation8 + $0x18] sm:$0xff]   ;;  %v1833_v27 = vsel %vm1484_vm0, 0.0, %v1569_v7  ;;  %v15263_v33 = vpack.c.bf16 %v1254_v61, %v1254_v61  ;;  %6120 = vmatprep.mubr.bf16.mxu1 %v17580_v63 }
 0x1b7   :  { %v15158_v16 = vpack.c.bf16 %v1846_v56, %v1846_v56  ;;  %3463 = vst [vmem:[#allocation2 + $0x2ec] sm:$0xf] %v15260_v46  ;;  %v1845_v17 = vsel %vm1484_vm0, 0.0, %v1605_v4  ;;  %v1958_v29 = vrot.slane %v1254_v61, 1  ;;  %v15132_v42 = vpack.c.bf16 %v1833_v27, %v1833_v27  ;;  %3487 = vst [vmem:[#allocation2 + $0x43c] sm:$0xf] %v15284_v22  ;;  %8219 = vmatpush1.bf16.msra.mxu0 %v17637_v32 }
 0x1b8   :  { %v15156_v47 = vpack.c.bf16 %v1845_v17, %v1845_v17  ;;  %v1574_v9 = vsel %vm1484_vm0, %v1572_v8, %v1573_v43  ;;  %v17561_v24 = vld [vmem:[#allocation2 + $0x2d8] ss:$12 sps:$4 sm:$0xff]   ;;  %v17638_v2 = vld [vmem:[#allocation8 + $0x10] sm:$0xff]   ;;  %v1278_v46 = vmax.f32 %v18614_v1, 0.0  ;;  %3466 = vst [vmem:[#allocation2 + $0x310] sm:$0xf] %v15263_v33  ;;  %8220 = vmatprep.subr.bf16.mxu0 %v19026_v50 }
 0x1b9   :  { %2849 = vst [vmem:[#allocation2 + $0x450] sm:$0xf] %v15158_v16  ;;  %v1959_v51 = vsel %vm1869_vm1, %v1957_v14, %v1958_v29  ;;  %v2219_v26 = vsel %vm1869_vm1, %v1958_v29, 0.0  ;;  %v15135_v25 = vpack.c.bf16 %v1574_v9, %v1574_v9  ;;  %2823 = vst [vmem:[#allocation2 + $0x2e8] sm:$0xf] %v15132_v42  ;;  %v1252_v8 = vmax.f32 %v911_v62, 0.0  ;;  %v19108_v16 = vpop.f32.mrf.mxu1 }
 0x1ba   :  { %2847 = vst [vmem:[#allocation2 + $0x438] sm:$0xf] %v15156_v47  ;;  %v15390_v56 = vpack.c.bf16 %v1959_v51, %v1959_v51  ;;  %v15391_v22 = vpack.c.bf16 %v2219_v26, %v2219_v26  ;;  %v19106_v61 = vmax.f32 %v18623_v0, 0.0  ;;  %v17560_v43 = vld [vmem:[#allocation2 + $0x2c0] ss:$12 sps:$4 sm:$0xff]   ;;  %v1609_v14 = vrot.slane %v1278_v46, 7 }
 0x1bb   :  { %2826 = vst [vmem:[#allocation2 + $0x30c] sm:$0xf] %v15135_v25  ;;  %v1994_v1 = vrot.slane %v1278_v46, 1  ;;  %v15287_v63 = vpack.c.bf16 %v1278_v46, %v1278_v46  ;;  %v19111_v32 = vmax.f32 %v16728_v12, 0.0  ;;  %v1570_v27 = vrot.slane %v1252_v8, 7  ;;  %16862 = vmatprep.mubr.bf16.mxu0 %v17560_v43  ;;  %v924_v46 = vpop.f32.mrf.mxu0  ;;  %8221 = vmatpush1.bf16.msra.mxu0 %v17638_v2  ;;  %v17644_v10 = vld [vmem:[#allocation8 + $0x8] sm:$0xff]  }
 0x1bc   :  { %4105 = vst [vmem:[#allocation2 + $0x308] sm:$0xf] %v15390_v56  ;;  %4106 = vst [vmem:[#allocation2 + $0x314] sm:$0xf] %v15391_v22  ;;  %v1955_v17 = vrot.slane %v1252_v8, 1  ;;  %v15261_v62 = vpack.c.bf16 %v1252_v8, %v1252_v8  ;;  %v1606_v0 = vrot.slane %v19106_v61, 7  ;;  %v1610_v29 = vsel %vm1484_vm0, %v1608_v34, %v1609_v14  ;;  %16863 = vmatmul.mubr.bf16.gmra.mxu0 %v17561_v24  ;;  %v19125_v56 = vpop.f32.mrf.mxu1 }
 0x1bd   :  { %v1995_v42 = vsel %vm1869_vm1, %v1993_v58, %v1994_v1  ;;  %v2231_v47 = vsel %vm1869_vm1, %v1994_v1, 0.0  ;;  %3490 = vst [vmem:[#allocation2 + $0x460] sm:$0xf] %v15287_v63  ;;  %v1991_v9 = vrot.slane %v19106_v61, 1  ;;  %v15159_v33 = vpack.c.bf16 %v1610_v29, %v1610_v29  ;;  %v17578_v34 = vld [vmem:[#allocation2 + $0x1e0] ss:$12 sps:$4 sm:$0xff]   ;;  %8222 = vmatprep.subr.bf16.mxu0 %v19026_v50 }
 0x1be   :  { %v15414_v51 = vpack.c.bf16 %v1995_v42, %v1995_v42  ;;  %v15415_v26 = vpack.c.bf16 %v2231_v47, %v2231_v47  ;;  %v1571_v25 = vsel %vm1484_vm0, %v1569_v7, %v1570_v27  ;;  %3464 = vst [vmem:[#allocation2 + $0x2f8] sm:$0xf] %v15261_v62  ;;  %v1956_v58 = vsel %vm1869_vm1, %v1954_v57, %v1955_v17  ;;  %v17585_v12 = vld [vmem:[#allocation2 + $0x1fc] ss:$12 sps:$4 sm:$0xff]   ;;  %v19148_v62 = vpop.f32.mrf.mxu1 }
 0x1bf   :  { %v2218_v24 = vsel %vm1869_vm1, %v1955_v17, 0.0  ;;  %v15133_v22 = vpack.c.bf16 %v1571_v25, %v1571_v25  ;;  %v1607_v8 = vsel %vm1484_vm0, %v1605_v4, %v1606_v0  ;;  %2850 = vst [vmem:[#allocation2 + $0x45c] sm:$0xf] %v15159_v33  ;;  %v15388_v7 = vpack.c.bf16 %v1956_v58, %v1956_v58  ;;  %6121 = vmatmul.mubr.bf16.gmra.mxu1 %v17578_v34  ;;  %v16729_v17 = vpop.f32.mrf.mxu0  ;;  %v17583_v25 = vld [vmem:[#allocation2 + $0x1f8] ss:$12 sps:$4 sm:$0xff]  }
 0x1c0   :  { %4129 = vst [vmem:[#allocation2 + $0x458] sm:$0xf] %v15414_v51  ;;  %4130 = vst [vmem:[#allocation2 + $0x464] sm:$0xf] %v15415_v26  ;;  %v15389_v2 = vpack.c.bf16 %v2218_v24, %v2218_v24  ;;  %v1992_v18 = vsel %vm1869_vm1, %v1990_v6, %v1991_v9  ;;  %v2230_v57 = vsel %vm1869_vm1, %v1991_v9, 0.0  ;;  %v15157_v43 = vpack.c.bf16 %v1607_v8, %v1607_v8  ;;  %v17651_v8 = vld [vmem:[#allocation8 + $0x78] sm:$0xff]  }
 0x1c1   :  { %2824 = vst [vmem:[#allocation2 + $0x2f4] sm:$0xf] %v15133_v22  ;;  %v15285_v4 = vpack.c.bf16 %v19106_v61, %v19106_v61  ;;  %v15412_v14 = vpack.c.bf16 %v1992_v18, %v1992_v18  ;;  %v15413_v1 = vpack.c.bf16 %v2230_v57, %v2230_v57  ;;  %6128 = vmatprep.mubr.bf16.mxu1 %v17585_v12  ;;  %4103 = vst [vmem:[#allocation2 + $0x2f0] sm:$0xf] %v15388_v7  ;;  %v17645_v61 = vld [vmem:[#allocation8] sm:$0xff]   ;;  %v19173_v22 = vpop.f32.mrf.mxu1 }
 0x1c2   :  { %4104 = vst [vmem:[#allocation2 + $0x2fc] sm:$0xf] %v15389_v2  ;;  %v1578_v63 = vrot.slane %v19111_v32, 7  ;;  %v1963_v27 = vrot.slane %v19111_v32, 1  ;;  %v15266_v44 = vpack.c.bf16 %v19111_v32, %v19111_v32  ;;  %v19146_v6 = vmax.f32 %v18630_v49, 0.0  ;;  %8223 = vmatpush1.bf16.msra.mxu0 %v17644_v10 }
 0x1c3   :  { %2848 = vst [vmem:[#allocation2 + $0x444] sm:$0xf] %v15157_v43  ;;  %3488 = vst [vmem:[#allocation2 + $0x448] sm:$0xf] %v15285_v4  ;;  %v19150_v0 = vmax.f32 %v924_v46, 0.0  ;;  %v19153_v29 = vmax.f32 %v18642_v28, 0.0  ;;  %8224 = vmatprep.subr.bf16.mxu0 %v19026_v50 }
 0x1c4   :  { %4127 = vst [vmem:[#allocation2 + $0x440] sm:$0xf] %v15412_v14  ;;  %4128 = vst [vmem:[#allocation2 + $0x44c] sm:$0xf] %v15413_v1  ;;  %v1258_v42 = vmax.f32 %v16729_v17, 0.0  ;;  %v19156_v32 = vmax.f32 %v18659_v38, 0.0  ;;  %v15290_v33 = vpack.c.bf16 %v19146_v6, %v19146_v6 }
 0x1c5   :  { %v1836_v49 = vsel %vm1484_vm0, 0.0, %v1578_v63  ;;  %3469 = vst [vmem:[#allocation2 + $0x334] sm:$0xf] %v15266_v44  ;;  %v1614_v47 = vrot.slane %v19146_v6, 7  ;;  %v1999_v9 = vrot.slane %v19146_v6, 1  ;;  %v1575_v28 = vrot.slane %v19150_v0, 7  ;;  %v927_v44 = vpop.f32.mrf.mxu0 }
 0x1c6   :  { %v15138_v51 = vpack.c.bf16 %v1836_v49, %v1836_v49  ;;  %v1960_v26 = vrot.slane %v19150_v0, 1  ;;  %v15264_v38 = vpack.c.bf16 %v19150_v0, %v19150_v0  ;;  %v17590_v46 = vld [vmem:[#allocation2 + $0x214] ss:$12 sps:$4 sm:$0xff]   ;;  %3493 = vst [vmem:[#allocation2 + $0x484] sm:$0xf] %v15290_v33  ;;  %v1611_v10 = vrot.slane %v19153_v29, 7  ;;  %8225 = vmatpush1.bf16.msra.mxu0 %v17645_v61 }
 0x1c7   :  { %v1848_v34 = vsel %vm1484_vm0, 0.0, %v1614_v47  ;;  %v1996_v58 = vrot.slane %v19153_v29, 1  ;;  %v15288_v24 = vpack.c.bf16 %v19153_v29, %v19153_v29  ;;  %v1835_v7 = vsel %vm1484_vm0, 0.0, %v1575_v28  ;;  %v17566_v57 = vld [vmem:[#allocation2 + $0x308] ss:$12 sps:$4 sm:$0xff]   ;;  %8226 = vmatprep.subr.bf16.mxu0 %v19026_v50  ;;  %6129 = vmatmul.mubr.bf16.gmra.mxu1 %v17583_v25  ;;  %v17659_v29 = vld [vmem:[#allocation8 + $0x60] sm:$0xff]  }
 0x1c8   :  { %2829 = vst [vmem:[#allocation2 + $0x330] sm:$0xf] %v15138_v51  ;;  %v15162_v12 = vpack.c.bf16 %v1848_v34, %v1848_v34  ;;  %3467 = vst [vmem:[#allocation2 + $0x31c] sm:$0xf] %v15264_v38  ;;  %v1579_v2 = vrot.slane %v1258_v42, 7  ;;  %v1964_v18 = vrot.slane %v1258_v42, 1  ;;  %v15136_v43 = vpack.c.bf16 %v1835_v7, %v1835_v7  ;;  %6136 = vmatprep.mubr.bf16.mxu1 %v17590_v46  ;;  %v19187_v7 = vpop.f32.mrf.mxu1 }
 0x1c9   :  { %v1847_v4 = vsel %vm1484_vm0, 0.0, %v1611_v10  ;;  %3491 = vst [vmem:[#allocation2 + $0x46c] sm:$0xf] %v15288_v24  ;;  %v15267_v14 = vpack.c.bf16 %v1258_v42, %v1258_v42  ;;  %v1615_v1 = vrot.slane %v19156_v32, 7  ;;  %v17652_v6 = vld [vmem:[#allocation8 + $0x70] sm:$0xff]   ;;  %v2000_v25 = vrot.slane %v19156_v32, 1 }
 0x1ca   :  { %2853 = vst [vmem:[#allocation2 + $0x480] sm:$0xf] %v15162_v12  ;;  %v15160_v17 = vpack.c.bf16 %v1847_v4, %v1847_v4  ;;  %v1580_v61 = vsel %vm1484_vm0, %v1578_v63, %v1579_v2  ;;  %v1965_v49 = vsel %vm1869_vm1, %v1963_v27, %v1964_v18  ;;  %v2221_v33 = vsel %vm1869_vm1, %v1964_v18, 0.0  ;;  %2827 = vst [vmem:[#allocation2 + $0x318] sm:$0xf] %v15136_v43 }
 0x1cb   :  { %v15139_v51 = vpack.c.bf16 %v1580_v61, %v1580_v61  ;;  %3470 = vst [vmem:[#allocation2 + $0x340] sm:$0xf] %v15267_v14  ;;  %v15394_v38 = vpack.c.bf16 %v1965_v49, %v1965_v49  ;;  %v15395_v34 = vpack.c.bf16 %v2221_v33, %v2221_v33  ;;  %v1616_v42 = vsel %vm1484_vm0, %v1614_v47, %v1615_v1  ;;  %v17565_v24 = vld [vmem:[#allocation2 + $0x2f0] ss:$12 sps:$4 sm:$0xff]   ;;  %v17595_v49 = vld [vmem:[#allocation2 + $0x22c] ss:$12 sps:$4 sm:$0xff]  }
 0x1cc   :  { %8227 = vmatpush2.bf16.msra.mxu0 %v17651_v8  ;;  %2851 = vst [vmem:[#allocation2 + $0x468] sm:$0xf] %v15160_v17  ;;  %v15163_v63 = vpack.c.bf16 %v1616_v42, %v1616_v42  ;;  %v15291_v27 = vpack.c.bf16 %v19156_v32, %v19156_v32  ;;  %v1256_v12 = vmax.f32 %v927_v44, 0.0  ;;  %v1280_v46 = vmax.f32 %v18672_v30, 0.0  ;;  %16866 = vmatprep.mubr.bf16.mxu0 %v17565_v24  ;;  %v17588_v44 = vld [vmem:[#allocation2 + $0x210] ss:$12 sps:$4 sm:$0xff]  }
 0x1cd   :  { %8228 = vmatprep.subr.bf16.mxu0 %v19026_v50  ;;  %2830 = vst [vmem:[#allocation2 + $0x33c] sm:$0xf] %v15139_v51  ;;  %4109 = vst [vmem:[#allocation2 + $0x338] sm:$0xf] %v15394_v38  ;;  %v19195_v47 = vmax.f32 %v18688_v3, 0.0  ;;  %v19198_v8 = vmax.f32 %v18699_v31, 0.0  ;;  %v2001_v32 = vsel %vm1869_vm1, %v1999_v9, %v2000_v25  ;;  %16867 = vmatmul.mubr.bf16.gmra.mxu0 %v17566_v57  ;;  %v19205_v31 = vpop.f32.mrf.mxu1 }
 0x1ce   :  { %4110 = vst [vmem:[#allocation2 + $0x344] sm:$0xf] %v15395_v34  ;;  %v19201_v2 = vmax.f32 %v18714_v55, 0.0  ;;  %v2233_v18 = vsel %vm1869_vm1, %v2000_v25, 0.0  ;;  %2854 = vst [vmem:[#allocation2 + $0x48c] sm:$0xf] %v15163_v63  ;;  %v15418_v30 = vpack.c.bf16 %v2001_v32, %v2001_v32  ;;  %v15265_v3 = vpack.c.bf16 %v1256_v12, %v1256_v12 }
 0x1cf   :  { %3494 = vst [vmem:[#allocation2 + $0x490] sm:$0xf] %v15291_v27  ;;  %v1576_v43 = vrot.slane %v1256_v12, 7  ;;  %v1961_v4 = vrot.slane %v1256_v12, 1  ;;  %v15419_v14 = vpack.c.bf16 %v2233_v18, %v2233_v18  ;;  %v1612_v1 = vrot.slane %v1280_v46, 7  ;;  %v17658_v55 = vld [vmem:[#allocation8 + $0x68] sm:$0xff]   ;;  %6137 = vmatmul.mubr.bf16.gmra.mxu1 %v17588_v44 }
 0x1d0   :  { %8229 = vmatpush2.bf16.msra.mxu0 %v17652_v6  ;;  %v1997_v57 = vrot.slane %v1280_v46, 1  ;;  %4133 = vst [vmem:[#allocation2 + $0x488] sm:$0xf] %v15418_v30  ;;  %3468 = vst [vmem:[#allocation2 + $0x328] sm:$0xf] %v15265_v3  ;;  %v15289_v34 = vpack.c.bf16 %v1280_v46, %v1280_v46  ;;  %6144 = vmatprep.mubr.bf16.mxu1 %v17595_v49  ;;  %v1620_v25 = vrot.slane %v19195_v47, 7 }
 0x1d1   :  { %v1577_v9 = vsel %vm1484_vm0, %v1575_v28, %v1576_v43  ;;  %v1962_v17 = vsel %vm1869_vm1, %v1960_v26, %v1961_v4  ;;  %v2220_v61 = vsel %vm1869_vm1, %v1961_v4, 0.0  ;;  %8230 = vmatprep.subr.bf16.mxu0 %v19026_v50  ;;  %4134 = vst [vmem:[#allocation2 + $0x494] sm:$0xf] %v15419_v14  ;;  %v1613_v28 = vsel %vm1484_vm0, %v1611_v10, %v1612_v1  ;;  %v19224_v10 = vpop.f32.mrf.mxu1 }
 0x1d2   :  { %v15137_v33 = vpack.c.bf16 %v1577_v9, %v1577_v9  ;;  %v15392_v6 = vpack.c.bf16 %v1962_v17, %v1962_v17  ;;  %v15393_v51 = vpack.c.bf16 %v2220_v61, %v2220_v61  ;;  %v1998_v0 = vsel %vm1869_vm1, %v1996_v58, %v1997_v57  ;;  %3492 = vst [vmem:[#allocation2 + $0x478] sm:$0xf] %v15289_v34  ;;  %v17593_v9 = vld [vmem:[#allocation2 + $0x228] ss:$12 sps:$4 sm:$0xff]   ;;  %v17665_v61 = vld [vmem:[#allocation8 + $0x58] sm:$0xff]  }
 0x1d3   :  { %v2232_v26 = vsel %vm1869_vm1, %v1997_v57, 0.0  ;;  %v15161_v38 = vpack.c.bf16 %v1613_v28, %v1613_v28  ;;  %v15416_v42 = vpack.c.bf16 %v1998_v0, %v1998_v0  ;;  %v2005_v63 = vrot.slane %v19195_v47, 1  ;;  %v19246_v17 = vpop.f32.mrf.mxu1 }
 0x1d4   :  { %2828 = vst [vmem:[#allocation2 + $0x324] sm:$0xf] %v15137_v33  ;;  %4107 = vst [vmem:[#allocation2 + $0x320] sm:$0xf] %v15392_v6  ;;  %v15417_v24 = vpack.c.bf16 %v2232_v26, %v2232_v26  ;;  %8231 = vmatpush2.bf16.msra.mxu0 %v17658_v55  ;;  %v15294_v58 = vpack.c.bf16 %v19195_v47, %v19195_v47  ;;  %v1617_v27 = vrot.slane %v19198_v8, 7  ;;  %v2002_v12 = vrot.slane %v19198_v8, 1 }
 0x1d5   :  { %4108 = vst [vmem:[#allocation2 + $0x32c] sm:$0xf] %v15393_v51  ;;  %2852 = vst [vmem:[#allocation2 + $0x474] sm:$0xf] %v15161_v38  ;;  %v15292_v46 = vpack.c.bf16 %v19198_v8, %v19198_v8  ;;  %8232 = vmatprep.subr.bf16.mxu0 %v19026_v50  ;;  %v1850_v32 = vsel %vm1484_vm0, 0.0, %v1620_v25  ;;  %v1621_v18 = vrot.slane %v19201_v2, 7  ;;  %v15295_v47 = vpack.c.bf16 %v19201_v2, %v19201_v2 }
 0x1d6   :  { %4131 = vst [vmem:[#allocation2 + $0x470] sm:$0xf] %v15416_v42  ;;  %4132 = vst [vmem:[#allocation2 + $0x47c] sm:$0xf] %v15417_v24  ;;  %v2006_v43 = vrot.slane %v19201_v2, 1  ;;  %v15166_v4 = vpack.c.bf16 %v1850_v32, %v1850_v32  ;;  %v1849_v30 = vsel %vm1484_vm0, 0.0, %v1617_v27  ;;  %v19261_v32 = vpop.f32.mrf.mxu1 }
 0x1d7   :  { %3497 = vst [vmem:[#allocation2 + $0x4b4] sm:$0xf] %v15294_v58  ;;  %3495 = vst [vmem:[#allocation2 + $0x49c] sm:$0xf] %v15292_v46  ;;  %v1284_v8 = vmax.f32 %v18721_v40, 0.0  ;;  %v19241_v14 = vmax.f32 %v18734_v15, 0.0  ;;  %v15164_v3 = vpack.c.bf16 %v1849_v30, %v1849_v30  ;;  %v1622_v1 = vsel %vm1484_vm0, %v1620_v25, %v1621_v18  ;;  %6145 = vmatmul.mubr.bf16.gmra.mxu1 %v17593_v9 }
 0x1d8   :  { %v2007_v44 = vsel %vm1869_vm1, %v2005_v63, %v2006_v43  ;;  %v2235_v55 = vsel %vm1869_vm1, %v2006_v43, 0.0  ;;  %3498 = vst [vmem:[#allocation2 + $0x4c0] sm:$0xf] %v15295_v47  ;;  %v17600_v2 = vld [vmem:[#allocation2 + $0x244] ss:$12 sps:$4 sm:$0xff]   ;;  %8233 = vmatpush2.bf16.msra.mxu0 %v17659_v29  ;;  %v15167_v57 = vpack.c.bf16 %v1622_v1, %v1622_v1  ;;  %v19255_v42 = vmax.f32 %v18752_v54, 0.0 }
 0x1d9   :  { %2857 = vst [vmem:[#allocation2 + $0x4b0] sm:$0xf] %v15166_v4  ;;  %v15422_v40 = vpack.c.bf16 %v2007_v44, %v2007_v44  ;;  %v15423_v49 = vpack.c.bf16 %v2235_v55, %v2235_v55  ;;  %v1618_v15 = vrot.slane %v1284_v8, 7  ;;  %v17571_v33 = vld [vmem:[#allocation2 + $0x338] ss:$12 sps:$4 sm:$0xff]   ;;  %8234 = vmatprep.subr.bf16.mxu0 %v19026_v50  ;;  %v2003_v6 = vrot.slane %v1284_v8, 1  ;;  %6152 = vmatprep.mubr.bf16.mxu1 %v17600_v2 }
 0x1da   :  { %2855 = vst [vmem:[#allocation2 + $0x498] sm:$0xf] %v15164_v3  ;;  %v15293_v51 = vpack.c.bf16 %v1284_v8, %v1284_v8  ;;  %v1626_v28 = vrot.slane %v19241_v14, 7  ;;  %v2011_v0 = vrot.slane %v19241_v14, 1  ;;  %v17666_v26 = vld [vmem:[#allocation8 + $0x50] sm:$0xff]   ;;  %v15298_v34 = vpack.c.bf16 %v19241_v14, %v19241_v14 }
 0x1db   :  { %2858 = vst [vmem:[#allocation2 + $0x4bc] sm:$0xf] %v15167_v57  ;;  %4137 = vst [vmem:[#allocation2 + $0x4b8] sm:$0xf] %v15422_v40  ;;  %v1619_v38 = vsel %vm1484_vm0, %v1617_v27, %v1618_v15  ;;  %v1290_v24 = vmax.f32 %v18767_v37, 0.0  ;;  %v2004_v25 = vsel %vm1869_vm1, %v2002_v12, %v2003_v6  ;;  %v2234_v63 = vsel %vm1869_vm1, %v2003_v6, 0.0  ;;  %v19276_v57 = vpop.f32.mrf.mxu1 }
 0x1dc   :  { %4138 = vst [vmem:[#allocation2 + $0x4c4] sm:$0xf] %v15423_v49  ;;  %v15165_v29 = vpack.c.bf16 %v1619_v38, %v1619_v38  ;;  %3496 = vst [vmem:[#allocation2 + $0x4a8] sm:$0xf] %v15293_v51  ;;  %v1852_v58 = vsel %vm1484_vm0, 0.0, %v1626_v28  ;;  %8235 = vmatpush2.bf16.msra.mxu0 %v17665_v61  ;;  %v15420_v27 = vpack.c.bf16 %v2004_v25, %v2004_v25  ;;  %v1623_v54 = vrot.slane %v19255_v42, 7 }
 0x1dd   :  { %v17570_v46 = vld [vmem:[#allocation2 + $0x320] ss:$12 sps:$4 sm:$0xff]   ;;  %v15421_v18 = vpack.c.bf16 %v2234_v63, %v2234_v63  ;;  %v15170_v43 = vpack.c.bf16 %v1852_v58, %v1852_v58  ;;  %3501 = vst [vmem:[#allocation2 + $0x4e4] sm:$0xf] %v15298_v34  ;;  %8236 = vmatprep.subr.bf16.mxu0 %v19026_v50  ;;  %v2008_v37 = vrot.slane %v19255_v42, 1  ;;  %v15296_v12 = vpack.c.bf16 %v19255_v42, %v19255_v42  ;;  %v17673_v49 = vld [vmem:[#allocation8 + $0x98] sm:$0xff]  }
 0x1de   :  { %2856 = vst [vmem:[#allocation2 + $0x4a4] sm:$0xf] %v15165_v29  ;;  %v1627_v47 = vrot.slane %v1290_v24, 7  ;;  %v2012_v4 = vrot.slane %v1290_v24, 1  ;;  %16870 = vmatprep.mubr.bf16.mxu0 %v17570_v46  ;;  %v17575_v30 = vld [vmem:[#allocation2 + $0x380] ss:$12 sps:$4 sm:$0xff]   ;;  %v15299_v14 = vpack.c.bf16 %v1290_v24, %v1290_v24  ;;  %16946 = vmatprep.subr.bf16.mxu1 %v17673_v49  ;;  %v19291_v46 = vpop.f32.mrf.mxu1 }
 0x1df   :  { %4135 = vst [vmem:[#allocation2 + $0x4a0] sm:$0xf] %v15420_v27  ;;  %4136 = vst [vmem:[#allocation2 + $0x4ac] sm:$0xf] %v15421_v18  ;;  %v1851_v8 = vsel %vm1484_vm0, 0.0, %v1623_v54  ;;  %v1288_v3 = vmax.f32 %v18789_v59, 0.0  ;;  %16871 = vmatmul.mubr.bf16.gmra.mxu0 %v17571_v33  ;;  %16947 = vmatpush3.bf16.msra.mxu1 %v17673_v49 }
 0x1e0   :  { %2861 = vst [vmem:[#allocation2 + $0x4e0] sm:$0xf] %v15170_v43  ;;  %v19271_v1 = vmax.f32 %v18805_v53, 0.0  ;;  %v15168_v44 = vpack.c.bf16 %v1851_v8, %v1851_v8  ;;  %3499 = vst [vmem:[#allocation2 + $0x4cc] sm:$0xf] %v15296_v12  ;;  %v1628_v55 = vsel %vm1484_vm0, %v1626_v28, %v1627_v47  ;;  %v2013_v9 = vsel %vm1869_vm1, %v2011_v0, %v2012_v4  ;;  %v17671_v40 = vld [vmem:[#allocation8 + $0x48] sm:$0xff]  }
 0x1e1   :  { %v2237_v2 = vsel %vm1869_vm1, %v2012_v4, 0.0  ;;  %16874 = vmatprep.mubr.bf16.mxu0 %v17575_v30  ;;  %v17598_v61 = vld [vmem:[#allocation2 + $0x240] ss:$12 sps:$4 sm:$0xff]   ;;  %8237 = vmatpush2.bf16.msra.mxu0 %v17666_v26  ;;  %v15171_v59 = vpack.c.bf16 %v1628_v55, %v1628_v55  ;;  %3502 = vst [vmem:[#allocation2 + $0x4f0] sm:$0xf] %v15299_v14  ;;  %v15426_v53 = vpack.c.bf16 %v2013_v9, %v2013_v9  ;;  %v1624_v33 = vrot.slane %v1288_v3, 7 }
 0x1e2   :  { %v15427_v15 = vpack.c.bf16 %v2237_v2, %v2237_v2  ;;  %v17605_v6 = vld [vmem:[#allocation2 + $0x25c] ss:$12 sps:$4 sm:$0xff]   ;;  %8238 = vmatprep.subr.bf16.mxu0 %v19026_v50  ;;  %2859 = vst [vmem:[#allocation2 + $0x4c8] sm:$0xf] %v15168_v44  ;;  %v2009_v51 = vrot.slane %v1288_v3, 1  ;;  %v15297_v28 = vpack.c.bf16 %v1288_v3, %v1288_v3  ;;  %v1632_v0 = vrot.slane %v19271_v1, 7  ;;  %6153 = vmatmul.mubr.bf16.gmra.mxu1 %v17598_v61  ;;  %v19304_v61 = vpop.f32.mrf.mxu1 }
 0x1e3   :  { %v2017_v38 = vrot.slane %v19271_v1, 1  ;;  %2862 = vst [vmem:[#allocation2 + $0x4ec] sm:$0xf] %v15171_v59  ;;  %4141 = vst [vmem:[#allocation2 + $0x4e8] sm:$0xf] %v15426_v53  ;;  %v1625_v26 = vsel %vm1484_vm0, %v1623_v54, %v1624_v33  ;;  %v15302_v34 = vpack.c.bf16 %v19271_v1, %v19271_v1  ;;  %v19285_v42 = vmax.f32 %v18825_v13, 0.0  ;;  %6160 = vmatprep.mubr.bf16.mxu1 %v17605_v6 }
 0x1e4   :  { %4142 = vst [vmem:[#allocation2 + $0x4f4] sm:$0xf] %v15427_v15  ;;  %v1294_v24 = vmax.f32 %v18842_v21, 0.0  ;;  %v2010_v25 = vsel %vm1869_vm1, %v2008_v37, %v2009_v51  ;;  %v2236_v63 = vsel %vm1869_vm1, %v2009_v51, 0.0  ;;  %v15169_v29 = vpack.c.bf16 %v1625_v26, %v1625_v26  ;;  %3500 = vst [vmem:[#allocation2 + $0x4d8] sm:$0xf] %v15297_v28 }
 0x1e5   :  { %v1854_v58 = vsel %vm1484_vm0, 0.0, %v1632_v0  ;;  %8239 = vmatpush2.bf16.msra.mxu0 %v17671_v40  ;;  %v17672_v27 = vld [vmem:[#allocation8 + $0x40] sm:$0xff]   ;;  %v15424_v18 = vpack.c.bf16 %v2010_v25, %v2010_v25  ;;  %v15425_v43 = vpack.c.bf16 %v2236_v63, %v2236_v63  ;;  %3505 = vst [vmem:[#allocation2 + $0x544] sm:$0xf] %v15302_v34  ;;  %v1629_v21 = vrot.slane %v19285_v42, 7  ;;  %v19312_v25 = vpop.f32.mrf.mxu1 }
 0x1e6   :  { %v15174_v13 = vpack.c.bf16 %v1854_v58, %v1854_v58  ;;  %v17577_v54 = vld [vmem:[#allocation2 + $0x398] ss:$12 sps:$4 sm:$0xff]   ;;  %v17581_v12 = vld [vmem:[#allocation2 + $0x3b0] ss:$12 sps:$4 sm:$0xff]   ;;  %8240 = vmatprep.subr.bf16.mxu0 %v19026_v50  ;;  %2860 = vst [vmem:[#allocation2 + $0x4d4] sm:$0xf] %v15169_v29  ;;  %v15300_v47 = vpack.c.bf16 %v19285_v42, %v19285_v42  ;;  %v15303_v14 = vpack.c.bf16 %v1294_v24, %v1294_v24 }
 0x1e7   :  { %v2014_v37 = vrot.slane %v19285_v42, 1  ;;  %v1633_v4 = vrot.slane %v1294_v24, 7  ;;  %v2018_v30 = vrot.slane %v1294_v24, 1  ;;  %4139 = vst [vmem:[#allocation2 + $0x4d0] sm:$0xf] %v15424_v18  ;;  %v1853_v8 = vsel %vm1484_vm0, 0.0, %v1629_v21  ;;  %16875 = vmatmul.mubr.bf16.gmra.mxu0 %v17577_v54 }
 0x1e8   :  { %4140 = vst [vmem:[#allocation2 + $0x4dc] sm:$0xf] %v15425_v43  ;;  %2865 = vst [vmem:[#allocation2 + $0x540] sm:$0xf] %v15174_v13  ;;  %v1292_v3 = vmax.f32 %v18862_v5, 0.0  ;;  %v1297_v1 = vmax.f32 %v18873_v23, 0.0  ;;  %v15172_v50 = vpack.c.bf16 %v1853_v8, %v1853_v8  ;;  %16878 = vmatprep.mubr.bf16.mxu0 %v17581_v12 }
 0x1e9   :  { %3503 = vst [vmem:[#allocation2 + $0x52c] sm:$0xf] %v15300_v47  ;;  %v1634_v44 = vsel %vm1484_vm0, %v1632_v0, %v1633_v4  ;;  %v2019_v55 = vsel %vm1869_vm1, %v2017_v38, %v2018_v30  ;;  %v2239_v9 = vsel %vm1869_vm1, %v2018_v30, 0.0  ;;  %v17603_v2 = vld [vmem:[#allocation2 + $0x258] ss:$12 sps:$4 sm:$0xff]   ;;  %8241 = vmatpush2.bf16.msra.mxu0 %v17672_v27  ;;  %v1295_v0 = vmax.f32 %v18886_v20, 0.0 }
 0x1ea   :  { %v15175_v40 = vpack.c.bf16 %v1634_v44, %v1634_v44  ;;  %3506 = vst [vmem:[#allocation2 + $0x550] sm:$0xf] %v15303_v14  ;;  %v15430_v49 = vpack.c.bf16 %v2019_v55, %v2019_v55  ;;  %v15431_v5 = vpack.c.bf16 %v2239_v9, %v2239_v9  ;;  %v1630_v59 = vrot.slane %v1292_v3, 7  ;;  %v17610_v23 = vld [vmem:[#allocation2 + $0x274] ss:$12 sps:$4 sm:$0xff]   ;;  %6161 = vmatmul.mubr.bf16.gmra.mxu1 %v17603_v2 }
 0x1eb   :  { %2863 = vst [vmem:[#allocation2 + $0x528] sm:$0xf] %v15172_v50  ;;  %v2015_v53 = vrot.slane %v1292_v3, 1  ;;  %v15301_v15 = vpack.c.bf16 %v1292_v3, %v1292_v3  ;;  %v1638_v33 = vrot.slane %v1297_v1, 7  ;;  %v2023_v6 = vrot.slane %v1297_v1, 1  ;;  %6168 = vmatprep.mubr.bf16.mxu1 %v17610_v23  ;;  %v19320_v3 = vpop.f32.mrf.mxu1 }
 0x1ec   :  { %2866 = vst [vmem:[#allocation2 + $0x54c] sm:$0xf] %v15175_v40  ;;  %4145 = vst [vmem:[#allocation2 + $0x548] sm:$0xf] %v15430_v49  ;;  %v1631_v51 = vsel %vm1484_vm0, %v1629_v21, %v1630_v59  ;;  %v15306_v28 = vpack.c.bf16 %v1297_v1, %v1297_v1  ;;  %v1298_v38 = vmax.f32 %v18911_v11, 0.0  ;;  %v1635_v27 = vrot.slane %v1295_v0, 7 }
 0x1ed   :  { %4146 = vst [vmem:[#allocation2 + $0x554] sm:$0xf] %v15431_v5  ;;  %v2016_v26 = vsel %vm1869_vm1, %v2014_v37, %v2015_v53  ;;  %v2238_v34 = vsel %vm1869_vm1, %v2015_v53, 0.0  ;;  %v15173_v42 = vpack.c.bf16 %v1631_v51, %v1631_v51  ;;  %3504 = vst [vmem:[#allocation2 + $0x538] sm:$0xf] %v15301_v15  ;;  %v1856_v24 = vsel %vm1484_vm0, 0.0, %v1638_v33 }
 0x1ee   :  { %v15428_v63 = vpack.c.bf16 %v2016_v26, %v2016_v26  ;;  %v15429_v29 = vpack.c.bf16 %v2238_v34, %v2238_v34  ;;  %v15178_v58 = vpack.c.bf16 %v1856_v24, %v1856_v24  ;;  %3509 = vst [vmem:[#allocation2 + $0x574] sm:$0xf] %v15306_v28  ;;  %v17582_v18 = vld [vmem:[#allocation2 + $0x3c8] ss:$12 sps:$4 sm:$0xff]   ;;  %v17586_v20 = vld [vmem:[#allocation2 + $0x3e0] ss:$12 sps:$4 sm:$0xff]   ;;  %v15304_v43 = vpack.c.bf16 %v1295_v0, %v1295_v0  ;;  %v19328_v28 = vpop.f32.mrf.mxu1 }
 0x1ef   :  { %2864 = vst [vmem:[#allocation2 + $0x534] sm:$0xf] %v15173_v42  ;;  %v2020_v11 = vrot.slane %v1295_v0, 1  ;;  %v1639_v13 = vrot.slane %v1298_v38, 7  ;;  %v2024_v21 = vrot.slane %v1298_v38, 1  ;;  %v1855_v54 = vsel %vm1484_vm0, 0.0, %v1635_v27  ;;  %16879 = vmatmul.mubr.bf16.gmra.mxu0 %v17582_v18 }
 0x1f0   :  { %4143 = vst [vmem:[#allocation2 + $0x530] sm:$0xf] %v15428_v63  ;;  %4144 = vst [vmem:[#allocation2 + $0x53c] sm:$0xf] %v15429_v29  ;;  %v15307_v12 = vpack.c.bf16 %v1298_v38, %v1298_v38  ;;  %v1296_v37 = vmax.f32 %v18929_v36, 0.0  ;;  %v1301_v47 = vmax.f32 %v18946_v41, 0.0  ;;  %v15176_v4 = vpack.c.bf16 %v1855_v54, %v1855_v54  ;;  %16882 = vmatprep.mubr.bf16.mxu0 %v17586_v20  ;;  %v19338_v54 = vpop.f32.mrf.mxu1 }
 0x1f1   :  { %2869 = vst [vmem:[#allocation2 + $0x570] sm:$0xf] %v15178_v58  ;;  %3507 = vst [vmem:[#allocation2 + $0x55c] sm:$0xf] %v15304_v43  ;;  %v1640_v30 = vsel %vm1484_vm0, %v1638_v33, %v1639_v13  ;;  %v2025_v8 = vsel %vm1869_vm1, %v2023_v6, %v2024_v21  ;;  %v2241_v14 = vsel %vm1869_vm1, %v2024_v21, 0.0  ;;  %v1299_v23 = vmax.f32 %v18961_v60, 0.0 }
 0x1f2   :  { %v17608_v1 = vld [vmem:[#allocation2 + $0x270] ss:$12 sps:$4 sm:$0xff]   ;;  %v15179_v50 = vpack.c.bf16 %v1640_v30, %v1640_v30  ;;  %3510 = vst [vmem:[#allocation2 + $0x580] sm:$0xf] %v15307_v12  ;;  %v15434_v44 = vpack.c.bf16 %v2025_v8, %v2025_v8  ;;  %v15435_v55 = vpack.c.bf16 %v2241_v14, %v2241_v14  ;;  %v1636_v36 = vrot.slane %v1296_v37, 7 }
 0x1f3   :  { %v17615_v9 = vld [vmem:[#allocation2 + $0x28c] ss:$12 sps:$4 sm:$0xff]   ;;  %2867 = vst [vmem:[#allocation2 + $0x558] sm:$0xf] %v15176_v4  ;;  %v2021_v41 = vrot.slane %v1296_v37, 1  ;;  %v15305_v2 = vpack.c.bf16 %v1296_v37, %v1296_v37  ;;  %v1644_v40 = vrot.slane %v1301_v47, 7  ;;  %6169 = vmatmul.mubr.bf16.gmra.mxu1 %v17608_v1  ;;  %v15310_v59 = vpack.c.bf16 %v1301_v47, %v1301_v47 }
 0x1f4   :  { %v2029_v49 = vrot.slane %v1301_v47, 1  ;;  %2870 = vst [vmem:[#allocation2 + $0x57c] sm:$0xf] %v15179_v50  ;;  %4149 = vst [vmem:[#allocation2 + $0x578] sm:$0xf] %v15434_v44  ;;  %v1637_v5 = vsel %vm1484_vm0, %v1635_v27, %v1636_v36  ;;  %v1302_v53 = vmax.f32 %v18984_v48, 0.0  ;;  %6176 = vmatprep.mubr.bf16.mxu1 %v17615_v9  ;;  %v15308_v24 = vpack.c.bf16 %v1299_v23, %v1299_v23  ;;  %v19342_v50 = vpop.f32.mrf.mxu1 }
 0x1f5   :  { %4150 = vst [vmem:[#allocation2 + $0x584] sm:$0xf] %v15435_v55  ;;  %v2022_v15 = vsel %vm1869_vm1, %v2020_v11, %v2021_v41  ;;  %v2240_v33 = vsel %vm1869_vm1, %v2021_v41, 0.0  ;;  %v15177_v6 = vpack.c.bf16 %v1637_v5, %v1637_v5  ;;  %3508 = vst [vmem:[#allocation2 + $0x568] sm:$0xf] %v15305_v2  ;;  %v1858_v51 = vsel %vm1484_vm0, 0.0, %v1644_v40  ;;  %v19354_v5 = vpop.f32.mrf.mxu0 }
 0x1f6   :  { %v15432_v0 = vpack.c.bf16 %v2022_v15, %v2022_v15  ;;  %v15433_v38 = vpack.c.bf16 %v2240_v33, %v2240_v33  ;;  %v15182_v26 = vpack.c.bf16 %v1858_v51, %v1858_v51  ;;  %3513 = vst [vmem:[#allocation2 + $0x5a4] sm:$0xf] %v15310_v59  ;;  %v1641_v34 = vrot.slane %v1299_v23, 7  ;;  %v17587_v42 = vld [vmem:[#allocation2 + $0x3f8] ss:$12 sps:$4 sm:$0xff]   ;;  %v5988_v59 = vpop.f32.mrf.mxu1 }
 0x1f7   :  { %v17591_v60 = vld [vmem:[#allocation2 + $0x410] ss:$12 sps:$4 sm:$0xff]   ;;  %2868 = vst [vmem:[#allocation2 + $0x564] sm:$0xf] %v15177_v6  ;;  %v2026_v48 = vrot.slane %v1299_v23, 1  ;;  %v1645_v63 = vrot.slane %v1302_v53, 7  ;;  %v15311_v27 = vpack.c.bf16 %v1302_v53, %v1302_v53  ;;  %16883 = vmatmul.mubr.bf16.gmra.mxu0 %v17587_v42 }
 0x1f8   :  { %v2030_v29 = vrot.slane %v1302_v53, 1  ;;  %4147 = vst [vmem:[#allocation2 + $0x560] sm:$0xf] %v15432_v0  ;;  %4148 = vst [vmem:[#allocation2 + $0x56c] sm:$0xf] %v15433_v38  ;;  %v1857_v58 = vsel %vm1484_vm0, 0.0, %v1641_v34  ;;  %16886 = vmatprep.mubr.bf16.mxu0 %v17591_v60 }
 0x1f9   :  { %2873 = vst [vmem:[#allocation2 + $0x5a0] sm:$0xf] %v15182_v26  ;;  %v1300_v18 = vmax.f32 %v19003_v35, 0.0  ;;  %v19333_v20 = vmax.f32 %v19024_v39, 0.0  ;;  %v15180_v11 = vpack.c.bf16 %v1857_v58, %v1857_v58  ;;  %3511 = vst [vmem:[#allocation2 + $0x58c] sm:$0xf] %v15308_v24  ;;  %v1646_v43 = vsel %vm1484_vm0, %v1644_v40, %v1645_v63  ;;  %v19360_v26 = vpop.f32.mrf.mxu0 }
 0x1fa   :  { %v2031_v13 = vsel %vm1869_vm1, %v2029_v49, %v2030_v29  ;;  %v2243_v21 = vsel %vm1869_vm1, %v2030_v29, 0.0  ;;  %v17613_v12 = vld [vmem:[#allocation2 + $0x288] ss:$12 sps:$4 sm:$0xff]   ;;  %v15183_v37 = vpack.c.bf16 %v1646_v43, %v1646_v43  ;;  %3514 = vst [vmem:[#allocation2 + $0x5b0] sm:$0xf] %v15311_v27  ;;  %v19348_v36 = vmax.f32 %v19046_v19, 0.0 }
 0x1fb   :  { %v15438_v47 = vpack.c.bf16 %v2031_v13, %v2031_v13  ;;  %v15439_v35 = vpack.c.bf16 %v2243_v21, %v2243_v21  ;;  %v1642_v4 = vrot.slane %v1300_v18, 7  ;;  %v17621_v39 = vld [vmem:[#allocation2 + $0x2a4] ss:$12 sps:$4 sm:$0xff]   ;;  %2871 = vst [vmem:[#allocation2 + $0x588] sm:$0xf] %v15180_v11  ;;  %v2027_v30 = vrot.slane %v1300_v18, 1  ;;  %6177 = vmatmul.mubr.bf16.gmra.mxu1 %v17613_v12 }
 0x1fc   :  { %v15309_v8 = vpack.c.bf16 %v1300_v18, %v1300_v18  ;;  %v1650_v14 = vrot.slane %v19333_v20, 7  ;;  %v2035_v1 = vrot.slane %v19333_v20, 1  ;;  %2874 = vst [vmem:[#allocation2 + $0x5ac] sm:$0xf] %v15183_v37  ;;  %v15314_v55 = vpack.c.bf16 %v19333_v20, %v19333_v20  ;;  %6184 = vmatprep.mubr.bf16.mxu1 %v17621_v39  ;;  %v17592_v33 = vld [vmem:[#allocation2 + $0x428] ss:$12 sps:$4 sm:$0xff]   ;;  %v19372_v20 = vpop.f32.mrf.mxu0 }
 0x1fd   :  { %4153 = vst [vmem:[#allocation2 + $0x5a8] sm:$0xf] %v15438_v47  ;;  %4154 = vst [vmem:[#allocation2 + $0x5b4] sm:$0xf] %v15439_v35  ;;  %v1643_v44 = vsel %vm1484_vm0, %v1641_v34, %v1642_v4  ;;  %v1306_v9 = vmax.f32 %v19068_v52, 0.0  ;;  %v2028_v41 = vsel %vm1869_vm1, %v2026_v48, %v2027_v30  ;;  %v2242_v2 = vsel %vm1869_vm1, %v2027_v30, 0.0  ;;  %v19362_v34 = vpop.f32.mrf.mxu1 }
 0x1fe   :  { %v15181_v40 = vpack.c.bf16 %v1643_v44, %v1643_v44  ;;  %3512 = vst [vmem:[#allocation2 + $0x598] sm:$0xf] %v15309_v8  ;;  %v1860_v49 = vsel %vm1484_vm0, 0.0, %v1650_v14  ;;  %v15436_v23 = vpack.c.bf16 %v2028_v41, %v2028_v41  ;;  %v15437_v53 = vpack.c.bf16 %v2242_v2, %v2242_v2  ;;  %3517 = vst [vmem:[#allocation2 + $0x5d4] sm:$0xf] %v15314_v55  ;;  %v19376_v4 = vpop.f32.mrf.mxu0 }
 0x1ff   :  { %v15186_v15 = vpack.c.bf16 %v1860_v49, %v1860_v49  ;;  %v1647_v19 = vrot.slane %v19348_v36, 7  ;;  %v17596_v52 = vld [vmem:[#allocation2 + $0x440] ss:$12 sps:$4 sm:$0xff]   ;;  %v2032_v6 = vrot.slane %v19348_v36, 1  ;;  %v15312_v51 = vpack.c.bf16 %v19348_v36, %v19348_v36  ;;  %16887 = vmatmul.mubr.bf16.gmra.mxu0 %v17592_v33  ;;  %v5991_v11 = vpop.f32.mrf.mxu1  ;;  %v17628_v21 = vld [vmem:[#allocation2 + $0x2bc] ss:$12 sps:$4 sm:$0xff]  }
 0x200   :  { %2872 = vst [vmem:[#allocation2 + $0x594] sm:$0xf] %v15181_v40  ;;  %v1651_v0 = vrot.slane %v1306_v9, 7  ;;  %v2036_v38 = vrot.slane %v1306_v9, 1  ;;  %4151 = vst [vmem:[#allocation2 + $0x590] sm:$0xf] %v15436_v23  ;;  %v15315_v60 = vpack.c.bf16 %v1306_v9, %v1306_v9  ;;  %16890 = vmatprep.mubr.bf16.mxu0 %v17596_v52  ;;  %v19390_v41 = vpop.f32.mrf.mxu0 }
 0x201   :  { %4152 = vst [vmem:[#allocation2 + $0x59c] sm:$0xf] %v15437_v53  ;;  %2877 = vst [vmem:[#allocation2 + $0x5d0] sm:$0xf] %v15186_v15  ;;  %v1859_v42 = vsel %vm1484_vm0, 0.0, %v1647_v19  ;;  %v1304_v48 = vmax.f32 %v19092_v45, 0.0  ;;  %v19378_v39 = vpop.f32.mrf.mxu1 }
 0x202   :  { %v19367_v24 = vmax.f32 %v19108_v16, 0.0  ;;  %v15184_v63 = vpack.c.bf16 %v1859_v42, %v1859_v42  ;;  %3515 = vst [vmem:[#allocation2 + $0x5bc] sm:$0xf] %v15312_v51  ;;  %v1652_v29 = vsel %vm1484_vm0, %v1650_v14, %v1651_v0  ;;  %v2037_v58 = vsel %vm1869_vm1, %v2035_v1, %v2036_v38  ;;  %v17619_v18 = vld [vmem:[#allocation2 + $0x2a0] ss:$12 sps:$4 sm:$0xff]   ;;  %v19396_v52 = vpop.f32.mrf.mxu0 }
 0x203   :  { %v2245_v27 = vsel %vm1869_vm1, %v2036_v38, 0.0  ;;  %v15187_v43 = vpack.c.bf16 %v1652_v29, %v1652_v29  ;;  %3518 = vst [vmem:[#allocation2 + $0x5e0] sm:$0xf] %v15315_v60  ;;  %v15442_v45 = vpack.c.bf16 %v2037_v58, %v2037_v58  ;;  %v1648_v16 = vrot.slane %v1304_v48, 7  ;;  %6185 = vmatmul.mubr.bf16.gmra.mxu1 %v17619_v18  ;;  %v5996_v2 = vpop.f32.mrf.mxu1  ;;  %v17597_v23 = vld [vmem:[#allocation2 + $0x458] ss:$12 sps:$4 sm:$0xff]  }
 0x204   :  { %v15443_v13 = vpack.c.bf16 %v2245_v27, %v2245_v27  ;;  %2875 = vst [vmem:[#allocation2 + $0x5b8] sm:$0xf] %v15184_v63  ;;  %v2033_v12 = vrot.slane %v1304_v48, 1  ;;  %v15313_v37 = vpack.c.bf16 %v1304_v48, %v1304_v48  ;;  %v1656_v47 = vrot.slane %v19367_v24, 7  ;;  %6192 = vmatprep.mubr.bf16.mxu1 %v17628_v21  ;;  %v17626_v29 = vld [vmem:[#allocation2 + $0x2b8] ss:$12 sps:$4 sm:$0xff]   ;;  %v19408_v58 = vpop.f32.mrf.mxu0 }
 0x205   :  { %v2041_v35 = vrot.slane %v19367_v24, 1  ;;  %2878 = vst [vmem:[#allocation2 + $0x5dc] sm:$0xf] %v15187_v43  ;;  %4157 = vst [vmem:[#allocation2 + $0x5d8] sm:$0xf] %v15442_v45  ;;  %v1649_v30 = vsel %vm1484_vm0, %v1647_v19, %v1648_v16  ;;  %v15318_v8 = vpack.c.bf16 %v19367_v24, %v19367_v24  ;;  %v19384_v14 = vmax.f32 %v19125_v56, 0.0 }
 0x206   :  { %4158 = vst [vmem:[#allocation2 + $0x5e4] sm:$0xf] %v15443_v13  ;;  %v1310_v1 = vmax.f32 %v19148_v62, 0.0  ;;  %v2034_v44 = vsel %vm1869_vm1, %v2032_v6, %v2033_v12  ;;  %v2244_v55 = vsel %vm1869_vm1, %v2033_v12, 0.0  ;;  %v15185_v36 = vpack.c.bf16 %v1649_v30, %v1649_v30  ;;  %3516 = vst [vmem:[#allocation2 + $0x5c8] sm:$0xf] %v15313_v37  ;;  %v19398_v6 = vpop.f32.mrf.mxu1  ;;  %v19412_v12 = vpop.f32.mrf.mxu0 }
 0x207   :  { %v1862_v9 = vsel %vm1484_vm0, 0.0, %v1656_v47  ;;  %v15440_v40 = vpack.c.bf16 %v2034_v44, %v2034_v44  ;;  %v15441_v49 = vpack.c.bf16 %v2244_v55, %v2244_v55  ;;  %3521 = vst [vmem:[#allocation2 + $0x604] sm:$0xf] %v15318_v8  ;;  %v1653_v56 = vrot.slane %v19384_v14, 7  ;;  %v17601_v62 = vld [vmem:[#allocation2 + $0x470] ss:$12 sps:$4 sm:$0xff]   ;;  %16891 = vmatmul.mubr.bf16.gmra.mxu0 %v17597_v23 }
 0x208   :  { %v15190_v59 = vpack.c.bf16 %v1862_v9, %v1862_v9  ;;  %2876 = vst [vmem:[#allocation2 + $0x5c4] sm:$0xf] %v15185_v36  ;;  %v2038_v53 = vrot.slane %v19384_v14, 1  ;;  %v15316_v15 = vpack.c.bf16 %v19384_v14, %v19384_v14  ;;  %v1657_v19 = vrot.slane %v1310_v1, 7  ;;  %16894 = vmatprep.mubr.bf16.mxu0 %v17601_v62  ;;  %v5999_v27 = vpop.f32.mrf.mxu1  ;;  %v17635_v43 = vld [vmem:[#allocation2 + $0x2d4] ss:$12 sps:$4 sm:$0xff]   ;;  %v19426_v36 = vpop.f32.mrf.mxu0 }
 0x209   :  { %v2042_v33 = vrot.slane %v1310_v1, 1  ;;  %4155 = vst [vmem:[#allocation2 + $0x5c0] sm:$0xf] %v15440_v40  ;;  %4156 = vst [vmem:[#allocation2 + $0x5cc] sm:$0xf] %v15441_v49  ;;  %v1861_v51 = vsel %vm1484_vm0, 0.0, %v1653_v56  ;;  %v15319_v0 = vpack.c.bf16 %v1310_v1, %v1310_v1 }
 0x20a   :  { %2881 = vst [vmem:[#allocation2 + $0x600] sm:$0xf] %v15190_v59  ;;  %v1308_v38 = vmax.f32 %v19173_v22, 0.0  ;;  %v19403_v42 = vmax.f32 %v19187_v7, 0.0  ;;  %v15188_v60 = vpack.c.bf16 %v1861_v51, %v1861_v51  ;;  %3519 = vst [vmem:[#allocation2 + $0x5ec] sm:$0xf] %v15316_v15  ;;  %v1658_v48 = vsel %vm1484_vm0, %v1656_v47, %v1657_v19  ;;  %v19414_v37 = vpop.f32.mrf.mxu1  ;;  %v19432_v15 = vpop.f32.mrf.mxu0 }
 0x20b   :  { %v2043_v24 = vsel %vm1869_vm1, %v2041_v35, %v2042_v33  ;;  %v2247_v63 = vsel %vm1869_vm1, %v2042_v33, 0.0  ;;  %v15191_v18 = vpack.c.bf16 %v1658_v48, %v1658_v48  ;;  %3522 = vst [vmem:[#allocation2 + $0x610] sm:$0xf] %v15319_v0  ;;  %6193 = vmatmul.mubr.bf16.gmra.mxu1 %v17626_v29  ;;  %v19420_v30 = vmax.f32 %v19205_v31, 0.0  ;;  %v17602_v59 = vld [vmem:[#allocation2 + $0x488] ss:$12 sps:$4 sm:$0xff]  }
 0x20c   :  { %v15446_v22 = vpack.c.bf16 %v2043_v24, %v2043_v24  ;;  %v15447_v11 = vpack.c.bf16 %v2247_v63, %v2247_v63  ;;  %v1654_v7 = vrot.slane %v1308_v38, 7  ;;  %2879 = vst [vmem:[#allocation2 + $0x5e8] sm:$0xf] %v15188_v60  ;;  %v2039_v45 = vrot.slane %v1308_v38, 1  ;;  %6200 = vmatprep.mubr.bf16.mxu1 %v17635_v43  ;;  %v6004_v9 = vpop.f32.mrf.mxu1  ;;  %v17633_v63 = vld [vmem:[#allocation2 + $0x2d0] ss:$12 sps:$4 sm:$0xff]   ;;  %v19444_v29 = vpop.f32.mrf.mxu0 }
 0x20d   :  { %v15317_v13 = vpack.c.bf16 %v1308_v38, %v1308_v38  ;;  %v1662_v16 = vrot.slane %v19403_v42, 7  ;;  %v2047_v21 = vrot.slane %v19403_v42, 1  ;;  %2882 = vst [vmem:[#allocation2 + $0x60c] sm:$0xf] %v15191_v18  ;;  %v15322_v35 = vpack.c.bf16 %v19403_v42, %v19403_v42 }
 0x20e   :  { %4161 = vst [vmem:[#allocation2 + $0x608] sm:$0xf] %v15446_v22  ;;  %4162 = vst [vmem:[#allocation2 + $0x614] sm:$0xf] %v15447_v11  ;;  %v1655_v47 = vsel %vm1484_vm0, %v1653_v56, %v1654_v7  ;;  %v1314_v8 = vmax.f32 %v19224_v10, 0.0  ;;  %v2040_v14 = vsel %vm1869_vm1, %v2038_v53, %v2039_v45  ;;  %v2246_v1 = vsel %vm1869_vm1, %v2039_v45, 0.0  ;;  %v19434_v19 = vpop.f32.mrf.mxu1 }
 0x20f   :  { %v15189_v44 = vpack.c.bf16 %v1655_v47, %v1655_v47  ;;  %3520 = vst [vmem:[#allocation2 + $0x5f8] sm:$0xf] %v15317_v13  ;;  %v1864_v55 = vsel %vm1484_vm0, 0.0, %v1662_v16  ;;  %v15444_v2 = vpack.c.bf16 %v2040_v14, %v2040_v14  ;;  %v15445_v40 = vpack.c.bf16 %v2246_v1, %v2246_v1  ;;  %3525 = vst [vmem:[#allocation2 + $0x634] sm:$0xf] %v15322_v35 }
 0x210   :  { %v15194_v49 = vpack.c.bf16 %v1864_v55, %v1864_v55  ;;  %v1659_v31 = vrot.slane %v19420_v30, 7  ;;  %v17606_v10 = vld [vmem:[#allocation2 + $0x4a0] ss:$12 sps:$4 sm:$0xff]   ;;  %v2044_v56 = vrot.slane %v19420_v30, 1  ;;  %v15320_v23 = vpack.c.bf16 %v19420_v30, %v19420_v30  ;;  %16895 = vmatmul.mubr.bf16.gmra.mxu0 %v17602_v59  ;;  %v6007_v27 = vpop.f32.mrf.mxu1  ;;  %v17611_v59 = vld [vmem:[#allocation2 + $0x4d0] ss:$12 sps:$4 sm:$0xff]  }
 0x211   :  { %2880 = vst [vmem:[#allocation2 + $0x5f4] sm:$0xf] %v15189_v44  ;;  %v1663_v62 = vrot.slane %v1314_v8, 7  ;;  %v2048_v53 = vrot.slane %v1314_v8, 1  ;;  %4159 = vst [vmem:[#allocation2 + $0x5f0] sm:$0xf] %v15444_v2  ;;  %v15323_v51 = vpack.c.bf16 %v1314_v8, %v1314_v8  ;;  %16898 = vmatprep.mubr.bf16.mxu0 %v17606_v10 }
 0x212   :  { %4160 = vst [vmem:[#allocation2 + $0x5fc] sm:$0xf] %v15445_v40  ;;  %2885 = vst [vmem:[#allocation2 + $0x630] sm:$0xf] %v15194_v49  ;;  %v1863_v33 = vsel %vm1484_vm0, 0.0, %v1659_v31  ;;  %v1312_v0 = vmax.f32 %v19246_v17, 0.0 }
 0x213   :  { %v19439_v38 = vmax.f32 %v19261_v32, 0.0  ;;  %v15192_v42 = vpack.c.bf16 %v1863_v33, %v1863_v33  ;;  %3523 = vst [vmem:[#allocation2 + $0x61c] sm:$0xf] %v15320_v23  ;;  %v1664_v60 = vsel %vm1484_vm0, %v1662_v16, %v1663_v62  ;;  %v2049_v48 = vsel %vm1869_vm1, %v2047_v21, %v2048_v53  ;;  %3526 = vst [vmem:[#allocation2 + $0x640] sm:$0xf] %v15323_v51  ;;  %v19448_v16 = vpop.f32.mrf.mxu0  ;;  %v19450_v21 = vpop.f32.mrf.mxu1 }
 0x214   :  { %v2249_v24 = vsel %vm1869_vm1, %v2048_v53, 0.0  ;;  %v15195_v18 = vpack.c.bf16 %v1664_v60, %v1664_v60  ;;  %v15450_v17 = vpack.c.bf16 %v2049_v48, %v2049_v48  ;;  %v1660_v32 = vrot.slane %v1312_v0, 7  ;;  %v17642_v11 = vld [vmem:[#allocation2 + $0x2ec] ss:$12 sps:$4 sm:$0xff]   ;;  %6201 = vmatmul.mubr.bf16.gmra.mxu1 %v17633_v63  ;;  %v17640_v27 = vld [vmem:[#allocation2 + $0x2e8] ss:$12 sps:$4 sm:$0xff]  }
 0x215   :  { %v15451_v22 = vpack.c.bf16 %v2249_v24, %v2249_v24  ;;  %2883 = vst [vmem:[#allocation2 + $0x618] sm:$0xf] %v15192_v42  ;;  %v2045_v7 = vrot.slane %v1312_v0, 1  ;;  %v15321_v43 = vpack.c.bf16 %v1312_v0, %v1312_v0  ;;  %v1668_v45 = vrot.slane %v19439_v38, 7  ;;  %6208 = vmatprep.mubr.bf16.mxu1 %v17642_v11  ;;  %v6012_v9 = vpop.f32.mrf.mxu1  ;;  %v19463_v10 = vpop.f32.mrf.mxu0  ;;  %v17649_v11 = vld [vmem:[#allocation2 + $0x304] ss:$12 sps:$4 sm:$0xff]  }
 0x216   :  { %v2053_v13 = vrot.slane %v19439_v38, 1  ;;  %2886 = vst [vmem:[#allocation2 + $0x63c] sm:$0xf] %v15195_v18  ;;  %4165 = vst [vmem:[#allocation2 + $0x638] sm:$0xf] %v15450_v17  ;;  %v1661_v47 = vsel %vm1484_vm0, %v1659_v31, %v1660_v32  ;;  %v15326_v35 = vpack.c.bf16 %v19439_v38, %v19439_v38  ;;  %v19456_v30 = vmax.f32 %v19276_v57, 0.0 }
 0x217   :  { %4166 = vst [vmem:[#allocation2 + $0x644] sm:$0xf] %v15451_v22  ;;  %v1318_v8 = vmax.f32 %v19291_v46, 0.0  ;;  %v2046_v14 = vsel %vm1869_vm1, %v2044_v56, %v2045_v7  ;;  %v2248_v1 = vsel %vm1869_vm1, %v2045_v7, 0.0  ;;  %v15193_v44 = vpack.c.bf16 %v1661_v47, %v1661_v47  ;;  %3524 = vst [vmem:[#allocation2 + $0x628] sm:$0xf] %v15321_v43  ;;  %v19468_v53 = vpop.f32.mrf.mxu1  ;;  %v19475_v42 = vpop.f32.mrf.mxu0 }
 0x218   :  { %v1866_v55 = vsel %vm1484_vm0, 0.0, %v1668_v45  ;;  %v15448_v2 = vpack.c.bf16 %v2046_v14, %v2046_v14  ;;  %v15449_v40 = vpack.c.bf16 %v2248_v1, %v2248_v1  ;;  %3529 = vst [vmem:[#allocation2 + $0x664] sm:$0xf] %v15326_v35  ;;  %v1665_v31 = vrot.slane %v19456_v30, 7  ;;  %v17607_v57 = vld [vmem:[#allocation2 + $0x4b8] ss:$12 sps:$4 sm:$0xff]  }
 0x219   :  { %v15198_v49 = vpack.c.bf16 %v1866_v55, %v1866_v55  ;;  %2884 = vst [vmem:[#allocation2 + $0x624] sm:$0xf] %v15193_v44  ;;  %v2050_v46 = vrot.slane %v19456_v30, 1  ;;  %v15324_v56 = vpack.c.bf16 %v19456_v30, %v19456_v30  ;;  %v1669_v23 = vrot.slane %v1318_v8, 7  ;;  %16899 = vmatmul.mubr.bf16.gmra.mxu0 %v17607_v57  ;;  %v6015_v18 = vpop.f32.mrf.mxu1  ;;  %v19480_v32 = vpop.f32.mrf.mxu0 }
 0x21a   :  { %v2054_v62 = vrot.slane %v1318_v8, 1  ;;  %4163 = vst [vmem:[#allocation2 + $0x620] sm:$0xf] %v15448_v2  ;;  %4164 = vst [vmem:[#allocation2 + $0x62c] sm:$0xf] %v15449_v40  ;;  %v1865_v33 = vsel %vm1484_vm0, 0.0, %v1665_v31  ;;  %v15327_v51 = vpack.c.bf16 %v1318_v8, %v1318_v8  ;;  %16902 = vmatprep.mubr.bf16.mxu0 %v17611_v59 }
 0x21b   :  { %2889 = vst [vmem:[#allocation2 + $0x660] sm:$0xf] %v15198_v49  ;;  %v1316_v0 = vmax.f32 %v19304_v61, 0.0  ;;  %v19473_v38 = vmax.f32 %v19312_v25, 0.0  ;;  %v15196_v60 = vpack.c.bf16 %v1865_v33, %v1865_v33  ;;  %3527 = vst [vmem:[#allocation2 + $0x64c] sm:$0xf] %v15324_v56  ;;  %v1670_v48 = vsel %vm1484_vm0, %v1668_v45, %v1669_v23  ;;  %v19484_v47 = vpop.f32.mrf.mxu1  ;;  %v19493_v1 = vpop.f32.mrf.mxu0 }
 0x21c   :  { %v2055_v24 = vsel %vm1869_vm1, %v2053_v13, %v2054_v62  ;;  %v2251_v63 = vsel %vm1869_vm1, %v2054_v62, 0.0  ;;  %v15199_v17 = vpack.c.bf16 %v1670_v48, %v1670_v48  ;;  %3530 = vst [vmem:[#allocation2 + $0x670] sm:$0xf] %v15327_v51  ;;  %6209 = vmatmul.mubr.bf16.gmra.mxu1 %v17640_v27  ;;  %v19490_v8 = vmax.f32 %v19320_v3, 0.0  ;;  %v17612_v59 = vld [vmem:[#allocation2 + $0x4e8] ss:$12 sps:$4 sm:$0xff]  }
 0x21d   :  { %v15454_v61 = vpack.c.bf16 %v2055_v24, %v2055_v24  ;;  %v15455_v22 = vpack.c.bf16 %v2251_v63, %v2251_v63  ;;  %v1666_v25 = vrot.slane %v1316_v0, 7  ;;  %2887 = vst [vmem:[#allocation2 + $0x648] sm:$0xf] %v15196_v60  ;;  %v2051_v7 = vrot.slane %v1316_v0, 1  ;;  %6216 = vmatprep.mubr.bf16.mxu1 %v17649_v11  ;;  %v6020_v40 = vpop.f32.mrf.mxu1  ;;  %v19499_v56 = vpop.f32.mrf.mxu0 }
 0x21e   :  { %v15325_v43 = vpack.c.bf16 %v1316_v0, %v1316_v0  ;;  %v1674_v45 = vrot.slane %v19473_v38, 7  ;;  %v2059_v13 = vrot.slane %v19473_v38, 1  ;;  %2890 = vst [vmem:[#allocation2 + $0x66c] sm:$0xf] %v15199_v17  ;;  %v15330_v30 = vpack.c.bf16 %v19473_v38, %v19473_v38  ;;  %v17618_v40 = vld [vmem:[#allocation2 + $0x548] ss:$12 sps:$4 sm:$0xff]  }
 0x21f   :  { %4169 = vst [vmem:[#allocation2 + $0x668] sm:$0xf] %v15454_v61  ;;  %4170 = vst [vmem:[#allocation2 + $0x674] sm:$0xf] %v15455_v22  ;;  %v1667_v35 = vsel %vm1484_vm0, %v1665_v31, %v1666_v25  ;;  %v1322_v14 = vmax.f32 %v19328_v28, 0.0  ;;  %v2052_v44 = vsel %vm1869_vm1, %v2050_v46, %v2051_v7  ;;  %v2250_v55 = vsel %vm1869_vm1, %v2051_v7, 0.0  ;;  %v19504_v51 = vpop.f32.mrf.mxu1  ;;  %v19512_v24 = vpop.f32.mrf.mxu0 }
 0x220   :  { %v15197_v9 = vpack.c.bf16 %v1667_v35, %v1667_v35  ;;  %3528 = vst [vmem:[#allocation2 + $0x658] sm:$0xf] %v15325_v43  ;;  %v1868_v2 = vsel %vm1484_vm0, 0.0, %v1674_v45  ;;  %v15452_v49 = vpack.c.bf16 %v2052_v44, %v2052_v44  ;;  %v15453_v31 = vpack.c.bf16 %v2250_v55, %v2250_v55  ;;  %3533 = vst [vmem:[#allocation2 + $0x694] sm:$0xf] %v15330_v30 }
 0x221   :  { %v15202_v57 = vpack.c.bf16 %v1868_v2, %v1868_v2  ;;  %v1671_v3 = vrot.slane %v19490_v8, 7  ;;  %v17616_v28 = vld [vmem:[#allocation2 + $0x530] ss:$12 sps:$4 sm:$0xff]   ;;  %v2056_v46 = vrot.slane %v19490_v8, 1  ;;  %v15328_v23 = vpack.c.bf16 %v19490_v8, %v19490_v8  ;;  %16903 = vmatmul.mubr.bf16.gmra.mxu0 %v17612_v59  ;;  %v17647_v61 = vld [vmem:[#allocation2 + $0x300] ss:$12 sps:$4 sm:$0xff]   ;;  %v6023_v22 = vpop.f32.mrf.mxu1 }
 0x222   :  { %2888 = vst [vmem:[#allocation2 + $0x654] sm:$0xf] %v15197_v9  ;;  %v1675_v62 = vrot.slane %v1322_v14, 7  ;;  %v2060_v33 = vrot.slane %v1322_v14, 1  ;;  %4167 = vst [vmem:[#allocation2 + $0x650] sm:$0xf] %v15452_v49  ;;  %v15331_v38 = vpack.c.bf16 %v1322_v14, %v1322_v14  ;;  %v19510_v48 = vadd.f32 %v19360_v26, %v19342_v50  ;;  %16906 = vmatprep.mubr.bf16.mxu0 %v17616_v28  ;;  %v19517_v26 = vpop.f32.mrf.mxu0 }
 0x223   :  { %4168 = vst [vmem:[#allocation2 + $0x65c] sm:$0xf] %v15453_v31  ;;  %2893 = vst [vmem:[#allocation2 + $0x690] sm:$0xf] %v15202_v57  ;;  %v1867_v0 = vsel %vm1484_vm0, 0.0, %v1671_v3  ;;  %v1320_v60 = vmax.f32 %v19338_v54, 0.0  ;;  %v19526_v8 = vadd.f32 %v19372_v20, %v19398_v6  ;;  %v19530_v14 = vadd.f32 %v19396_v52, %v19414_v37 }
 0x224   :  { %v15200_v63 = vpack.c.bf16 %v1867_v0, %v1867_v0  ;;  %3531 = vst [vmem:[#allocation2 + $0x67c] sm:$0xf] %v15328_v23  ;;  %v1676_v27 = vsel %vm1484_vm0, %v1674_v45, %v1675_v62  ;;  %v2061_v18 = vsel %vm1869_vm1, %v2059_v13, %v2060_v33  ;;  %v2253_v17 = vsel %vm1869_vm1, %v2060_v33, 0.0  ;;  %v17656_v25 = vld [vmem:[#allocation2 + $0x31c] ss:$12 sps:$4 sm:$0xff]   ;;  %v6026_v13 = vpop.f32.mrf.mxu1  ;;  %6217 = vmatmul.mubr.bf16.gmra.mxu1 %v17647_v61  ;;  %v19532_v44 = vpop.f32.mrf.mxu0  ;;  %v17722_v31 = vld [vmem:[#allocation8 + $0x90] sm:$0xff]  }
 0x225   :  { %v15203_v54 = vpack.c.bf16 %v1676_v27, %v1676_v27  ;;  %3534 = vst [vmem:[#allocation2 + $0x6a0] sm:$0xf] %v15331_v38  ;;  %v15458_v11 = vpack.c.bf16 %v2061_v18, %v2061_v18  ;;  %v15459_v7 = vpack.c.bf16 %v2253_v17, %v2253_v17  ;;  %v1672_v50 = vrot.slane %v1320_v60, 7  ;;  %6224 = vmatprep.mubr.bf16.mxu1 %v17656_v25  ;;  %v17622_v57 = vld [vmem:[#allocation2 + $0x560] ss:$12 sps:$4 sm:$0xff]  }
 0x226   :  { %2891 = vst [vmem:[#allocation2 + $0x678] sm:$0xf] %v15200_v63  ;;  %v2057_v43 = vrot.slane %v1320_v60, 1  ;;  %v15329_v35 = vpack.c.bf16 %v1320_v60, %v1320_v60  ;;  %v19521_v45 = vadd.f32 %v19354_v5, %v19378_v39  ;;  %v19538_v9 = vadd.f32 %v19390_v41, %v19450_v21  ;;  %v6028_v2 = vpop.f32.mrf.mxu1  ;;  %v19548_v49 = vpop.f32.mrf.mxu0  ;;  %16948 = vmatprep.subr.bf16.mxu1 %v17722_v31  ;;  %v17625_v62 = vld [vmem:[#allocation2 + $0x578] ss:$12 sps:$4 sm:$0xff]  }
 0x227   :  { %2894 = vst [vmem:[#allocation2 + $0x69c] sm:$0xf] %v15203_v54  ;;  %4173 = vst [vmem:[#allocation2 + $0x698] sm:$0xf] %v15458_v11  ;;  %v1673_v30 = vsel %vm1484_vm0, %v1671_v3, %v1672_v50  ;;  %v19542_v52 = vadd.f32 %v19408_v58, %v19468_v53  ;;  %v19546_v37 = vadd.f32 %v19432_v15, %v19484_v47  ;;  %v17654_v15 = vld [vmem:[#allocation2 + $0x318] ss:$12 sps:$4 sm:$0xff]   ;;  %16949 = vmatpush3.bf16.msra.mxu1 %v17722_v31 }
 0x228   :  { %4174 = vst [vmem:[#allocation2 + $0x6a4] sm:$0xf] %v15459_v7  ;;  %v2058_v5 = vsel %vm1869_vm1, %v2056_v46, %v2057_v43  ;;  %v2252_v39 = vsel %vm1869_vm1, %v2057_v43, 0.0  ;;  %v15201_v55 = vpack.c.bf16 %v1673_v30, %v1673_v30  ;;  %3532 = vst [vmem:[#allocation2 + $0x688] sm:$0xf] %v15329_v35  ;;  %v19551_v41 = vadd.f32 %v19426_v36, %v6026_v13  ;;  %v6029_v21 = vpop.f32.mrf.mxu1  ;;  %v19553_v3 = vpop.f32.mrf.mxu0 }
 0x229   :  { %v15456_v20 = vpack.c.bf16 %v2058_v5, %v2058_v5  ;;  %v15457_v6 = vpack.c.bf16 %v2252_v39, %v2252_v39  ;;  %16907 = vmatmul.mubr.bf16.gmra.mxu0 %v17618_v40  ;;  %v19556_v58 = vadd.f32 %v19444_v29, %v6029_v21  ;;  %v17663_v47 = vld [vmem:[#allocation2 + $0x334] ss:$12 sps:$4 sm:$0xff]   ;;  %v17629_v29 = vld [vmem:[#allocation2 + $0x590] ss:$12 sps:$4 sm:$0xff]   ;;  %v17668_v43 = vld [vmem:[#allocation2 + $0x378] ss:$12 sps:$4 sm:$0xff]  }
 0x22a   :  { %2892 = vst [vmem:[#allocation2 + $0x684] sm:$0xf] %v15201_v55  ;;  %16910 = vmatprep.mubr.bf16.mxu0 %v17622_v57  ;;  %v6031_v53 = vpop.f32.mrf.mxu1  ;;  %v19558_v59 = vpop.f32.mrf.mxu0  ;;  %v17661_v38 = vld [vmem:[#allocation2 + $0x330] ss:$12 sps:$4 sm:$0xff]   ;;  %v17632_v25 = vld [vmem:[#allocation2 + $0x5a8] ss:$12 sps:$4 sm:$0xff]  }
 0x22b   :  { %4171 = vst [vmem:[#allocation2 + $0x680] sm:$0xf] %v15456_v20  ;;  %4172 = vst [vmem:[#allocation2 + $0x68c] sm:$0xf] %v15457_v6  ;;  %v17670_v27 = vld [vmem:[#allocation2 + $0x37c] ss:$12 sps:$4 sm:$0xff]  }
 0x22c   :  { %v6034_v28 = vpop.f32.mrf.mxu1  ;;  %6225 = vmatmul.mubr.bf16.gmra.mxu1 %v17654_v15  ;;  %v19560_v36 = vpop.f32.mrf.mxu0  ;;  %v17636_v54 = vld [vmem:[#allocation2 + $0x5c0] ss:$12 sps:$4 sm:$0xff]   ;;  %v17639_v2 = vld [vmem:[#allocation2 + $0x5d8] ss:$12 sps:$4 sm:$0xff]   ;;  %v17674_v31 = vld [vmem:[#allocation2 + $0x390] ss:$12 sps:$4 sm:$0xff]  }
 0x22d   :  { %v19563_v46 = vadd.f32 %v19475_v42, %v6034_v28  ;;  %6232 = vmatprep.mubr.bf16.mxu1 %v17663_v47  ;;  %v17682_v15 = vld [vmem:[#allocation2 + $0x3ac] ss:$12 sps:$4 sm:$0xff]  }
 0x22e   :  { %v6036_v23 = vpop.f32.mrf.mxu1  ;;  %v19565_v33 = vpop.f32.mrf.mxu0 }
 0x22f   :  { %v17646_v23 = vld [vmem:[#allocation2 + $0x608] ss:$12 sps:$4 sm:$0xff]  }
 0x230   :  { %v19567_v0 = vpop.f32.mrf.mxu1  ;;  %v19569_v60 = vpop.f32.mrf.mxu0 }
 0x231   :  { %16911 = vmatmul.mubr.bf16.gmra.mxu0 %v17625_v62  ;;  %v17650_v62 = vld [vmem:[#allocation2 + $0x620] ss:$12 sps:$4 sm:$0xff]  }
 0x232   :  { %16914 = vmatprep.mubr.bf16.mxu0 %v17629_v29  ;;  %v6039_v63 = vpop.f32.mrf.mxu1  ;;  %v19571_v18 = vpop.f32.mrf.mxu0 }
 0x234   :  { %v6042_v17 = vpop.f32.mrf.mxu1  ;;  %6233 = vmatmul.mubr.bf16.gmra.mxu1 %v17661_v38  ;;  %v19576_v61 = vpop.f32.mrf.mxu0 }
 0x235   :  { %v19574_v42 = vadd.f32 %v19463_v10, %v6042_v17  ;;  %6240 = vmatprep.mubr.bf16.mxu1 %v17670_v27  ;;  %v17676_v10 = vld [vmem:[#allocation2 + $0x394] ss:$12 sps:$4 sm:$0xff]  }
 0x236   :  { %v6044_v22 = vpop.f32.mrf.mxu1  ;;  %v19578_v7 = vpop.f32.mrf.mxu0  ;;  %v17680_v27 = vld [vmem:[#allocation2 + $0x3a8] ss:$12 sps:$4 sm:$0xff]  }
 0x237   :  { %v17688_v22 = vld [vmem:[#allocation2 + $0x3c4] ss:$12 sps:$4 sm:$0xff]  }
 0x238   :  { %v6045_v11 = vpop.f32.mrf.mxu1  ;;  %v19583_v13 = vpop.f32.mrf.mxu0 }
 0x239   :  { %16915 = vmatmul.mubr.bf16.gmra.mxu0 %v17632_v25  ;;  %v19581_v50 = vadd.f32 %v19480_v32, %v6045_v11  ;;  %v17643_v32 = vld [vmem:[#allocation2 + $0x5f0] ss:$12 sps:$4 sm:$0xff]   ;;  %v17653_v11 = vld [vmem:[#allocation2 + $0x638] ss:$12 sps:$4 sm:$0xff]  }
 0x23a   :  { %16918 = vmatprep.mubr.bf16.mxu0 %v17636_v54  ;;  %v6047_v35 = vpop.f32.mrf.mxu1  ;;  %v19585_v5 = vpop.f32.mrf.mxu0 }
 0x23c   :  { %v6050_v30 = vpop.f32.mrf.mxu1  ;;  %6241 = vmatmul.mubr.bf16.gmra.mxu1 %v17668_v43  ;;  %v19590_v20 = vpop.f32.mrf.mxu0  ;;  %v17657_v43 = vld [vmem:[#allocation2 + $0x650] ss:$12 sps:$4 sm:$0xff]  }
 0x23d   :  { %v19588_v39 = vadd.f32 %v19512_v24, %v6050_v30  ;;  %6248 = vmatprep.mubr.bf16.mxu1 %v17676_v10 }
 0x23e   :  { %v6052_v55 = vpop.f32.mrf.mxu1  ;;  %v19594_v40 = vpop.f32.mrf.mxu0 }
 0x240   :  { %v19592_v6 = vpop.f32.mrf.mxu1  ;;  %v19596_v21 = vpop.f32.mrf.mxu0 }
 0x241   :  { %16919 = vmatmul.mubr.bf16.gmra.mxu0 %v17639_v2  ;;  %v17686_v2 = vld [vmem:[#allocation2 + $0x3c0] ss:$12 sps:$4 sm:$0xff]  }
 0x242   :  { %16922 = vmatprep.mubr.bf16.mxu0 %v17643_v32  ;;  %v6055_v57 = vpop.f32.mrf.mxu1  ;;  %v19598_v24 = vpop.f32.mrf.mxu0 }
 0x243   :  { %21406 = vst [vmem:[#allocation16_spill] sm:$0xff] %v19598_v24 }
 0x244   :  { %v6058_v53 = vpop.f32.mrf.mxu1  ;;  %6249 = vmatmul.mubr.bf16.gmra.mxu1 %v17674_v31  ;;  %v19603_v29 = vpop.f32.mrf.mxu0  ;;  %v17694_v31 = vld [vmem:[#allocation2 + $0x3dc] ss:$12 sps:$4 sm:$0xff]  }
 0x245   :  { %v19601_v47 = vadd.f32 %v19499_v56, %v6058_v53  ;;  %6256 = vmatprep.mubr.bf16.mxu1 %v17682_v15 }
 0x246   :  { %v6060_v28 = vpop.f32.mrf.mxu1  ;;  %v19608_v25 = vpop.f32.mrf.mxu0 }
 0x247   :  { %21407 = vst [vmem:[#allocation17_spill] sm:$0xff] %v19608_v25 }
 0x248   :  { %v6061_v38 = vpop.f32.mrf.mxu1  ;;  %v19613_v35 = vpop.f32.mrf.mxu0 }
 0x249   :  { %16923 = vmatmul.mubr.bf16.gmra.mxu0 %v17646_v23  ;;  %v19606_v63 = vadd.f32 %v19517_v26, %v6061_v38  ;;  %v17660_v23 = vld [vmem:[#allocation2 + $0x668] ss:$12 sps:$4 sm:$0xff]  }
 0x24a   :  { %16926 = vmatprep.mubr.bf16.mxu0 %v17650_v62  ;;  %v6063_v17 = vpop.f32.mrf.mxu1  ;;  %v19615_v30 = vpop.f32.mrf.mxu0  ;;  %v17664_v62 = vld [vmem:[#allocation2 + $0x680] ss:$12 sps:$4 sm:$0xff]  }
 0x24b   :  { %21408 = vst [vmem:[#allocation18_spill] sm:$0xff] %v19615_v30 }
 0x24c   :  { %v6066_v54 = vpop.f32.mrf.mxu1  ;;  %6257 = vmatmul.mubr.bf16.gmra.mxu1 %v17680_v27  ;;  %v19619_v55 = vpop.f32.mrf.mxu0 }
 0x24d   :  { %v19611_v56 = vadd.f32 %v19553_v3, %v6066_v54  ;;  %6264 = vmatprep.mubr.bf16.mxu1 %v17688_v22  ;;  %v17692_v22 = vld [vmem:[#allocation2 + $0x3d8] ss:$12 sps:$4 sm:$0xff]  }
 0x24e   :  { %v6068_v10 = vpop.f32.mrf.mxu1  ;;  %v19621_v57 = vpop.f32.mrf.mxu0 }
 0x24f   :  { %21409 = vst [vmem:[#allocation19_spill] sm:$0xff] %v19621_v57  ;;  %v17677_v57 = vld [vmem:[#allocation2 + $0x18] ss:$12 sps:$4 sm:$0xff]  }
 0x250   :  { %v19617_v26 = vpop.f32.mrf.mxu1  ;;  %v19626_v53 = vpop.f32.mrf.mxu0 }
 0x251   :  { %16927 = vmatmul.mubr.bf16.gmra.mxu0 %v17653_v11  ;;  %21410 = vst [vmem:[#allocation20_spill] sm:$0xff] %v19626_v53  ;;  %v17700_v11 = vld [vmem:[#allocation2 + $0x3f4] ss:$12 sps:$4 sm:$0xff]  }
 0x252   :  { %16930 = vmatprep.mubr.bf16.mxu0 %v17657_v43  ;;  %v6071_v32 = vpop.f32.mrf.mxu1  ;;  %v19628_v27 = vpop.f32.mrf.mxu0 }
 0x253   :  { %21411 = vst [vmem:[#allocation21_spill] sm:$0xff] %v19628_v27 }
 0x254   :  { %v6074_v3 = vpop.f32.mrf.mxu1  ;;  %6265 = vmatmul.mubr.bf16.gmra.mxu1 %v17686_v2  ;;  %v19638_v2 = vld [vmem:[#allocation2] sm:$0xff] }
 0x255   :  { %v19624_v15 = vadd.f32 %v19548_v49, %v6074_v3  ;;  %6272 = vmatprep.mubr.bf16.mxu1 %v17694_v31  ;;  %v19633_v49 = vpop.f32.mrf.mxu0  ;;  %v19642_v32 = vcombine.high %v19638_v2, %v19638_v2  ;;  %v17667_v31 = vld [vmem:[#allocation2 + $0x698] ss:$12 sps:$4 sm:$0xff]  }
 0x256   :  { %v6076_v28 = vpop.f32.mrf.mxu1 }
 0x258   :  { %v6077_v38 = vpop.f32.mrf.mxu1 }
 0x259   :  { %16931 = vmatmul.mubr.bf16.gmra.mxu0 %v17660_v23  ;;  %v19631_v17 = vadd.f32 %v19558_v59, %v6077_v38  ;;  %v17706_v38 = vld [vmem:[#allocation2 + $0x40c] ss:$12 sps:$4 sm:$0xff]  }
 0x25a   :  { %16934 = vmatprep.mubr.bf16.mxu0 %v17664_v62  ;;  %v6079_v54 = vpop.f32.mrf.mxu1 }
 0x25b   :  { %v19644_v28 = vpop.f32.mrf.mxu0  ;;  %v19652_v54 = vcombine.low %v19638_v2, %v19638_v2 }
 0x25c   :  { %v6082_v43 = vpop.f32.mrf.mxu1  ;;  %6273 = vmatmul.mubr.bf16.gmra.mxu1 %v17692_v22  ;;  %21412 = vst [vmem:[#allocation22_spill] sm:$0xff] %v19644_v28  ;;  %v17704_v28 = vld [vmem:[#allocation2 + $0x408] ss:$12 sps:$4 sm:$0xff]  }
 0x25d   :  { %v19636_v10 = vadd.f32 %v19569_v60, %v6082_v43  ;;  %6280 = vmatprep.mubr.bf16.mxu1 %v17700_v11  ;;  %v17698_v60 = vld [vmem:[#allocation2 + $0x3f0] ss:$12 sps:$4 sm:$0xff]   ;;  %v19654_v11 = vpop.f32.mrf.mxu0 }
 0x25e   :  { %v6084_v59 = vpop.f32.mrf.mxu1  ;;  %21413 = vst [vmem:[#allocation23_spill] sm:$0xff] %v19654_v11  ;;  %v17712_v11 = vld [vmem:[#allocation2 + $0x424] ss:$12 sps:$4 sm:$0xff]  }
 0x260   :  { %v6085_v3 = vpop.f32.mrf.mxu1 }
 0x261   :  { %16935 = vmatmul.mubr.bf16.gmra.mxu0 %v17667_v31  ;;  %v19647_v23 = vadd.f32 %v19576_v61, %v6085_v3  ;;  %v17768_v61 = vld [vmem:[#allocation8 + $0x88] sm:$0xff]  }
 0x262   :  { %8242 = vmatprep.mubr.bf16.mxu0 %v19642_v32  ;;  %v6087_v62 = vpop.f32.mrf.mxu1  ;;  %v17679_v31 = vld [vmem:[#allocation2 + $0x1c] ss:$12 sps:$4 sm:$0xff]   ;;  %16950 = vmatprep.subr.bf16.mxu1 %v17768_v61 }
 0x263   :  { %v19660_v62 = vpop.f32.mrf.mxu0  ;;  %16951 = vmatpush3.bf16.msra.mxu1 %v17768_v61 }
 0x264   :  { %v6090_v22 = vpop.f32.mrf.mxu1  ;;  %6281 = vmatmul.mubr.bf16.gmra.mxu1 %v17698_v60  ;;  %21414 = vst [vmem:[#allocation24_spill] sm:$0xff] %v19660_v62  ;;  %v17685_v62 = vld [vmem:[#allocation2 + $0x34] ss:$12 sps:$4 sm:$0xff]  }
 0x265   :  { %v19657_v43 = vadd.f32 %v19565_v33, %v6090_v22  ;;  %6288 = vmatprep.mubr.bf16.mxu1 %v17706_v38  ;;  %v19665_v38 = vpop.f32.mrf.mxu0 }
 0x266   :  { %v6092_v59 = vpop.f32.mrf.mxu1 }
 0x268   :  { %v6093_v3 = vpop.f32.mrf.mxu1 }
 0x269   :  { %8243 = vmatmul.mubr.bf16.vlgmr.msra.gmra.mxu0 %v19652_v54  ;;  %v19663_v60 = vadd.f32 %v19571_v18, %v6093_v3 }
 0x26a   :  { %8250 = vmatprep.mubr.bf16.mxu0 %v17679_v31  ;;  %v6095_v27 = vpop.f32.mrf.mxu1 }
 0x26b   :  { %v17710_v27 = vld [vmem:[#allocation2 + $0x420] ss:$12 sps:$4 sm:$0xff]  }
 0x26c   :  { %v6098_v33 = vpop.f32.mrf.mxu1  ;;  %6289 = vmatmul.mubr.bf16.gmra.mxu1 %v17704_v28  ;;  %v19670_v18 = vpop.f32.mrf.mxu0  ;;  %v17718_v28 = vld [vmem:[#allocation2 + $0x43c] ss:$12 sps:$4 sm:$0xff]  }
 0x26d   :  { %v19668_v22 = vadd.f32 %v19583_v13, %v6098_v33  ;;  %6296 = vmatprep.mubr.bf16.mxu1 %v17712_v11  ;;  %21415 = vst [vmem:[#allocation25_spill] sm:$0xff] %v19670_v18  ;;  %v17683_v33 = vld [vmem:[#allocation2 + $0x30] ss:$12 sps:$4 sm:$0xff]  }
 0x26e   :  { %v6100_v59 = vpop.f32.mrf.mxu1  ;;  %v19675_v30 = vpop.f32.mrf.mxu0 }
 0x26f   :  { %21416 = vst [vmem:[#allocation26_spill] sm:$0xff] %v19675_v30 }
 0x270   :  { %v6101_v53 = vpop.f32.mrf.mxu1  ;;  %v19680_v18 = vpop.f32.mrf.mxu0 }
 0x271   :  { %8251 = vmatmul.mubr.bf16.gmra.mxu0 %v17677_v57  ;;  %v19673_v31 = vadd.f32 %v19590_v20, %v6101_v53  ;;  %v17691_v57 = vld [vmem:[#allocation2 + $0x4c] ss:$12 sps:$4 sm:$0xff]   ;;  %21417 = vst [vmem:[#allocation27_spill] sm:$0xff] %v19680_v18 }
 0x272   :  { %8258 = vmatprep.mubr.bf16.mxu0 %v17685_v62  ;;  %v6103_v61 = vpop.f32.mrf.mxu1  ;;  %v17716_v53 = vld [vmem:[#allocation2 + $0x438] ss:$12 sps:$4 sm:$0xff]   ;;  %v19685_v30 = vpop.f32.mrf.mxu0 }
 0x274   :  { %v6106_v3 = vpop.f32.mrf.mxu1  ;;  %6297 = vmatmul.mubr.bf16.gmra.mxu1 %v17710_v27  ;;  %v17725_v27 = vld [vmem:[#allocation2 + $0x454] ss:$12 sps:$4 sm:$0xff]  }
 0x275   :  { %v19678_v13 = vadd.f32 %v19578_v7, %v6106_v3  ;;  %6304 = vmatprep.mubr.bf16.mxu1 %v17718_v28  ;;  %v17689_v3 = vld [vmem:[#allocation2 + $0x48] ss:$12 sps:$4 sm:$0xff]  }
 0x276   :  { %v6108_v11 = vpop.f32.mrf.mxu1 }
 0x277   :  { %v17697_v11 = vld [vmem:[#allocation2 + $0x64] ss:$12 sps:$4 sm:$0xff]  }
 0x278   :  { %v6109_v59 = vpop.f32.mrf.mxu1 }
 0x279   :  { %8259 = vmatmul.mubr.bf16.gmra.mxu0 %v17683_v33  ;;  %v19683_v20 = vadd.f32 %v19585_v5, %v6109_v59 }
 0x27a   :  { %8266 = vmatprep.mubr.bf16.mxu0 %v17691_v57  ;;  %v6111_v62 = vpop.f32.mrf.mxu1  ;;  %v17723_v57 = vld [vmem:[#allocation2 + $0x450] ss:$12 sps:$4 sm:$0xff]  }
 0x27c   :  { %v6114_v61 = vpop.f32.mrf.mxu1  ;;  %6305 = vmatmul.mubr.bf16.gmra.mxu1 %v17716_v53  ;;  %v19690_v18 = vpop.f32.mrf.mxu0  ;;  %v17731_v53 = vld [vmem:[#allocation2 + $0x46c] ss:$12 sps:$4 sm:$0xff]  }
 0x27d   :  { %v19688_v7 = vadd.f32 %v19596_v21, %v6114_v61  ;;  %6312 = vmatprep.mubr.bf16.mxu1 %v17725_v27  ;;  %21418 = vst [vmem:[#allocation28_spill] sm:$0xff] %v19690_v18  ;;  %v17695_v61 = vld [vmem:[#allocation2 + $0x60] ss:$12 sps:$4 sm:$0xff]  }
 0x27e   :  { %v6116_v28 = vpop.f32.mrf.mxu1  ;;  %v19697_v21 = vpop.f32.mrf.mxu0 }
 0x27f   :  { %21419 = vst [vmem:[#allocation29_spill] sm:$0xff] %v19697_v21  ;;  %v17703_v28 = vld [vmem:[#allocation2 + $0x7c] ss:$12 sps:$4 sm:$0xff]   ;;  %v17709_v21 = vld [vmem:[#allocation2 + $0x94] ss:$12 sps:$4 sm:$0xff]  }
 0x280   :  { %v6117_v33 = vpop.f32.mrf.mxu1 }
 0x281   :  { %8267 = vmatmul.mubr.bf16.gmra.mxu0 %v17689_v3  ;;  %v19693_v5 = vadd.f32 %v19603_v29, %v6117_v33  ;;  %v19701_v3 = vpop.f32.mrf.mxu0  ;;  %v17729_v29 = vld [vmem:[#allocation2 + $0x468] ss:$12 sps:$4 sm:$0xff]   ;;  %v17737_v33 = vld [vmem:[#allocation2 + $0x484] ss:$12 sps:$4 sm:$0xff]  }
 0x282   :  { %8274 = vmatprep.mubr.bf16.mxu0 %v17697_v11  ;;  %v6119_v59 = vpop.f32.mrf.mxu1  ;;  %21421 = vst [vmem:[#allocation31_spill] sm:$0xff] %v19701_v3 }
 0x283   :  { %v19703_v18 = vpop.f32.mrf.mxu0 }
 0x284   :  { %v19695_v62 = vpop.f32.mrf.mxu1  ;;  %6313 = vmatmul.mubr.bf16.gmra.mxu1 %v17723_v57 }
 0x285   :  { %6320 = vmatprep.mubr.bf16.mxu1 %v17731_v53 }
 0x286   :  { %v6124_v27 = vpop.f32.mrf.mxu1 }
 0x287   :  { %v17701_v27 = vld [vmem:[#allocation2 + $0x78] ss:$12 sps:$4 sm:$0xff]  }
 0x288   :  { %v19699_v25 = vpop.f32.mrf.mxu1 }
 0x289   :  { %21420 = vst [vmem:[#allocation30_spill] sm:$0xff] %v19699_v25  ;;  %8275 = vmatmul.mubr.bf16.gmra.mxu0 %v17695_v61 }
 0x28a   :  { %8282 = vmatprep.mubr.bf16.mxu0 %v17703_v28  ;;  %v6127_v11 = vpop.f32.mrf.mxu1 }
 0x28b   :  { %v17735_v11 = vld [vmem:[#allocation2 + $0x480] ss:$12 sps:$4 sm:$0xff]  }
 0x28c   :  { %v6130_v59 = vpop.f32.mrf.mxu1  ;;  %6321 = vmatmul.mubr.bf16.gmra.mxu1 %v17729_v29  ;;  %v17743_v29 = vld [vmem:[#allocation2 + $0x49c] ss:$12 sps:$4 sm:$0xff]  }
 0x28d   :  { %v19706_v57 = vadd.f32 %v19613_v35, %v6130_v59  ;;  %6328 = vmatprep.mubr.bf16.mxu1 %v17737_v33  ;;  %v19708_v61 = vpop.f32.mrf.mxu0  ;;  %v17707_v59 = vld [vmem:[#allocation2 + $0x90] ss:$12 sps:$4 sm:$0xff]  }
 0x28e   :  { %v6132_v53 = vpop.f32.mrf.mxu1  ;;  %21423 = vst [vmem:[#allocation33_spill] sm:$0xff] %v19708_v61 }
 0x28f   :  { %21422 = vst [vmem:[#allocation32_spill] sm:$0xff] %v19706_v57  ;;  %v19715_v35 = vpop.f32.mrf.mxu0  ;;  %v17715_v53 = vld [vmem:[#allocation2 + $0xac] ss:$12 sps:$4 sm:$0xff]  }
 0x290   :  { %v6133_v24 = vpop.f32.mrf.mxu1  ;;  %21426 = vst [vmem:[#allocation36_spill] sm:$0xff] %v19715_v35 }
 0x291   :  { %8283 = vmatmul.mubr.bf16.gmra.mxu0 %v17701_v27  ;;  %v19711_v28 = vadd.f32 %v19619_v55, %v6133_v24  ;;  %v19719_v27 = vpop.f32.mrf.mxu0  ;;  %v17741_v24 = vld [vmem:[#allocation2 + $0x498] ss:$12 sps:$4 sm:$0xff]  }
 0x292   :  { %8290 = vmatprep.mubr.bf16.mxu0 %v17709_v21  ;;  %v6135_v3 = vpop.f32.mrf.mxu1  ;;  %21428 = vst [vmem:[#allocation38_spill] sm:$0xff] %v19719_v27  ;;  %v17749_v21 = vld [vmem:[#allocation2 + $0x4b4] ss:$12 sps:$4 sm:$0xff]  }
 0x293   :  { %21424 = vst [vmem:[#allocation34_spill] sm:$0xff] %v19711_v28  ;;  %v19723_v61 = vpop.f32.mrf.mxu0 }
 0x294   :  { %v19713_v25 = vpop.f32.mrf.mxu1  ;;  %6329 = vmatmul.mubr.bf16.gmra.mxu1 %v17735_v11 }
 0x295   :  { %21425 = vst [vmem:[#allocation35_spill] sm:$0xff] %v19713_v25  ;;  %6336 = vmatprep.mubr.bf16.mxu1 %v17743_v29  ;;  %v17713_v29 = vld [vmem:[#allocation2 + $0xa8] ss:$12 sps:$4 sm:$0xff]  }
 0x296   :  { %v6140_v33 = vpop.f32.mrf.mxu1 }
 0x297   :  { %v17721_v33 = vld [vmem:[#allocation2 + $0xc4] ss:$12 sps:$4 sm:$0xff]  }
 0x298   :  { %v19717_v57 = vpop.f32.mrf.mxu1 }
 0x299   :  { %21427 = vst [vmem:[#allocation37_spill] sm:$0xff] %v19717_v57  ;;  %8291 = vmatmul.mubr.bf16.gmra.mxu0 %v17707_v59 }
 0x29a   :  { %8298 = vmatprep.mubr.bf16.mxu0 %v17715_v53  ;;  %v6143_v55 = vpop.f32.mrf.mxu1  ;;  %v17747_v53 = vld [vmem:[#allocation2 + $0x4b0] ss:$12 sps:$4 sm:$0xff]  }
 0x29c   :  { %v19721_v3 = vpop.f32.mrf.mxu1  ;;  %6337 = vmatmul.mubr.bf16.gmra.mxu1 %v17741_v24 }
 0x29d   :  { %21429 = vst [vmem:[#allocation39_spill] sm:$0xff] %v19721_v3  ;;  %6344 = vmatprep.mubr.bf16.mxu1 %v17749_v21  ;;  %v17755_v3 = vld [vmem:[#allocation2 + $0x4cc] ss:$12 sps:$4 sm:$0xff]  }
 0x29e   :  { %v6148_v11 = vpop.f32.mrf.mxu1 }
 0x29f   :  { %v19725_v25 = vpop.f32.mrf.mxu0  ;;  %v17719_v11 = vld [vmem:[#allocation2 + $0xc0] ss:$12 sps:$4 sm:$0xff]  }
 0x2a0   :  { %v6149_v35 = vpop.f32.mrf.mxu1  ;;  %21430 = vst [vmem:[#allocation40_spill] sm:$0xff] %v19725_v25  ;;  %v17728_v25 = vld [vmem:[#allocation2 + $0xdc] ss:$12 sps:$4 sm:$0xff]  }
 0x2a1   :  { %8299 = vmatmul.mubr.bf16.gmra.mxu0 %v17713_v29  ;;  %v19728_v59 = vadd.f32 %v19633_v49, %v6149_v35  ;;  %v19730_v27 = vpop.f32.mrf.mxu0  ;;  %v17817_v29 = vld [vmem:[#allocation8 + $0x80] sm:$0xff]  }
 0x2a2   :  { %8306 = vmatprep.mubr.bf16.mxu0 %v17721_v33  ;;  %v6151_v55 = vpop.f32.mrf.mxu1  ;;  %21431 = vst [vmem:[#allocation41_spill] sm:$0xff] %v19730_v27  ;;  %16952 = vmatprep.subr.bf16.mxu1 %v17817_v29  ;;  %v17753_v33 = vld [vmem:[#allocation2 + $0x4c8] ss:$12 sps:$4 sm:$0xff]   ;;  %v17726_v27 = vld [vmem:[#allocation2 + $0xd8] ss:$12 sps:$4 sm:$0xff]  }
 0x2a3   :  { %v19734_v21 = vpop.f32.mrf.mxu0  ;;  %16953 = vmatpush3.bf16.msra.mxu1 %v17817_v29  ;;  %v17759_v29 = vld [vmem:[#allocation2 + $0x4e0] ss:$12 sps:$4 sm:$0xff]  }
 0x2a4   :  { %v19732_v24 = vpop.f32.mrf.mxu1  ;;  %6345 = vmatmul.mubr.bf16.gmra.mxu1 %v17747_v53  ;;  %21433 = vst [vmem:[#allocation43_spill] sm:$0xff] %v19734_v21  ;;  %v17761_v21 = vld [vmem:[#allocation2 + $0x4e4] ss:$12 sps:$4 sm:$0xff]   ;;  %10774 = vmatprep.subr.bf16.mxu1 %v19638_v2 }
 0x2a5   :  { %21432 = vst [vmem:[#allocation42_spill] sm:$0xff] %v19732_v24  ;;  %6352 = vmatprep.mubr.bf16.mxu1 %v17755_v3  ;;  %v19736_v28 = vpop.f32.mrf.mxu0 }
 0x2a6   :  { %v6156_v57 = vpop.f32.mrf.mxu1  ;;  %21434 = vst [vmem:[#allocation44_spill] sm:$0xff] %v19736_v28 }
 0x2a7   :  { %v19740_v35 = vpop.f32.mrf.mxu0 }
 0x2a8   :  { %v19738_v49 = vpop.f32.mrf.mxu1  ;;  %21436 = vst [vmem:[#allocation46_spill] sm:$0xff] %v19740_v35 }
 0x2a9   :  { %21435 = vst [vmem:[#allocation45_spill] sm:$0xff] %v19738_v49  ;;  %8307 = vmatmul.mubr.bf16.gmra.mxu0 %v17719_v11  ;;  %v19742_v53 = vpop.f32.mrf.mxu0  ;;  %v17734_v11 = vld [vmem:[#allocation2 + $0xf4] ss:$12 sps:$4 sm:$0xff]  }
 0x2aa   :  { %8314 = vmatprep.mubr.bf16.mxu0 %v17728_v25  ;;  %v6159_v55 = vpop.f32.mrf.mxu1  ;;  %21437 = vst [vmem:[#allocation47_spill] sm:$0xff] %v19742_v53  ;;  %v17767_v53 = vld [vmem:[#allocation2 + $0x52c] ss:$12 sps:$4 sm:$0xff]  }
 0x2ab   :  { %v19747_v3 = vpop.f32.mrf.mxu0 }
 0x2ac   :  { %v19745_v57 = vpop.f32.mrf.mxu1  ;;  %6353 = vmatmul.mubr.bf16.gmra.mxu1 %v17753_v33  ;;  %21439 = vst [vmem:[#allocation49_spill] sm:$0xff] %v19747_v3 }
 0x2ad   :  { %21438 = vst [vmem:[#allocation48_spill] sm:$0xff] %v19745_v57  ;;  %6360 = vmatprep.mubr.bf16.mxu1 %v17761_v21  ;;  %v19749_v35 = vpop.f32.mrf.mxu0  ;;  %v17732_v57 = vld [vmem:[#allocation2 + $0xf0] ss:$12 sps:$4 sm:$0xff]  }
 0x2ae   :  { %v6164_v28 = vpop.f32.mrf.mxu1  ;;  %21440 = vst [vmem:[#allocation50_spill] sm:$0xff] %v19749_v35  ;;  %v17830_v35 = vld [vmem:[#allocation8 + $0x238] sm:$0xff]  }
 0x2af   :  { %v19751_v49 = vpop.f32.mrf.mxu0  ;;  %17082 = vmatprep.subr.bf16.mxu0 %v17830_v35 }
 0x2b0   :  { %v6165_v25 = vpop.f32.mrf.mxu1  ;;  %21441 = vst [vmem:[#allocation51_spill] sm:$0xff] %v19751_v49  ;;  %17083 = vmatpush3.bf16.msra.mxu0 %v17830_v35 }
 0x2b1   :  { %8315 = vmatmul.mubr.bf16.gmra.mxu0 %v17726_v27  ;;  %v19754_v55 = vadd.f32 %v19665_v38, %v6165_v25  ;;  %v19756_v33 = vpop.f32.mrf.mxu0  ;;  %v17740_v27 = vld [vmem:[#allocation2 + $0x10c] ss:$12 sps:$4 sm:$0xff]  }
 0x2b2   :  { %8322 = vmatprep.mubr.bf16.mxu0 %v17734_v11  ;;  %v6167_v2 = vpop.f32.mrf.mxu1  ;;  %21442 = vst [vmem:[#allocation52_spill] sm:$0xff] %v19756_v33  ;;  %v17765_v11 = vld [vmem:[#allocation2 + $0x528] ss:$12 sps:$4 sm:$0xff]  }
 0x2b3   :  { %v19760_v28 = vpop.f32.mrf.mxu0  ;;  %v17771_v2 = vld [vmem:[#allocation2 + $0x544] ss:$12 sps:$4 sm:$0xff]  }
 0x2b4   :  { %v19758_v3 = vpop.f32.mrf.mxu1  ;;  %6361 = vmatmul.mubr.bf16.gmra.mxu1 %v17759_v29  ;;  %21443 = vst [vmem:[#allocation53_spill] sm:$0xff] %v19760_v28 }
 0x2b5   :  { %6368 = vmatprep.mubr.bf16.mxu1 %v17767_v53  ;;  %v19762_v49 = vpop.f32.mrf.mxu0 }
 0x2b6   :  { %v6172_v21 = vpop.f32.mrf.mxu1  ;;  %21444 = vst [vmem:[#allocation54_spill] sm:$0xff] %v19762_v49  ;;  %v17738_v49 = vld [vmem:[#allocation2 + $0x108] ss:$12 sps:$4 sm:$0xff]  }
 0x2b7   :  { %v19766_v38 = vpop.f32.mrf.mxu0 }
 0x2b8   :  { %v19764_v24 = vpop.f32.mrf.mxu1  ;;  %21446 = vst [vmem:[#allocation56_spill] sm:$0xff] %v19766_v38 }
 0x2b9   :  { %21445 = vst [vmem:[#allocation55_spill] sm:$0xff] %v19764_v24  ;;  %8323 = vmatmul.mubr.bf16.gmra.mxu0 %v17732_v57  ;;  %v19768_v29 = vpop.f32.mrf.mxu0  ;;  %v17746_v24 = vld [vmem:[#allocation2 + $0x124] ss:$12 sps:$4 sm:$0xff]  }
 0x2ba   :  { %8330 = vmatprep.mubr.bf16.mxu0 %v17740_v27  ;;  %v6175_v25 = vpop.f32.mrf.mxu1  ;;  %21447 = vst [vmem:[#allocation57_spill] sm:$0xff] %v19768_v29  ;;  %v17769_v27 = vld [vmem:[#allocation2 + $0x540] ss:$12 sps:$4 sm:$0xff]  }
 0x2bb   :  { %v19772_v21 = vpop.f32.mrf.mxu0 }
 0x2bc   :  { %v19770_v53 = vpop.f32.mrf.mxu1  ;;  %6369 = vmatmul.mubr.bf16.gmra.mxu1 %v17765_v11  ;;  %21449 = vst [vmem:[#allocation59_spill] sm:$0xff] %v19772_v21  ;;  %v17777_v11 = vld [vmem:[#allocation2 + $0x55c] ss:$12 sps:$4 sm:$0xff]  }
 0x2bd   :  { %21448 = vst [vmem:[#allocation58_spill] sm:$0xff] %v19770_v53  ;;  %6376 = vmatprep.mubr.bf16.mxu1 %v17771_v2  ;;  %v19774_v33 = vpop.f32.mrf.mxu0 }
 0x2be   :  { %v6180_v28 = vpop.f32.mrf.mxu1  ;;  %21450 = vst [vmem:[#allocation60_spill] sm:$0xff] %v19774_v33  ;;  %v17744_v33 = vld [vmem:[#allocation2 + $0x120] ss:$12 sps:$4 sm:$0xff]  }
 0x2bf   :  { %v19776_v57 = vpop.f32.mrf.mxu0 }
 0x2c0   :  { %v6181_v38 = vpop.f32.mrf.mxu1  ;;  %21451 = vst [vmem:[#allocation61_spill] sm:$0xff] %v19776_v57 }
 0x2c1   :  { %8331 = vmatmul.mubr.bf16.gmra.mxu0 %v17738_v49  ;;  %v19779_v35 = vadd.f32 %v19685_v30, %v6181_v38  ;;  %v19781_v29 = vpop.f32.mrf.mxu0  ;;  %v17752_v49 = vld [vmem:[#allocation2 + $0x13c] ss:$12 sps:$4 sm:$0xff]  }
 0x2c2   :  { %8338 = vmatprep.mubr.bf16.mxu0 %v17746_v24  ;;  %v6183_v25 = vpop.f32.mrf.mxu1  ;;  %21452 = vst [vmem:[#allocation62_spill] sm:$0xff] %v19781_v29  ;;  %v17775_v24 = vld [vmem:[#allocation2 + $0x558] ss:$12 sps:$4 sm:$0xff]   ;;  %v17783_v29 = vld [vmem:[#allocation2 + $0x574] ss:$12 sps:$4 sm:$0xff]  }
 0x2c3   :  { %v19785_v28 = vpop.f32.mrf.mxu0 }
 0x2c4   :  { %v19783_v21 = vpop.f32.mrf.mxu1  ;;  %6377 = vmatmul.mubr.bf16.gmra.mxu1 %v17769_v27  ;;  %21454 = vst [vmem:[#allocation64_spill] sm:$0xff] %v19785_v28  ;;  %v17750_v28 = vld [vmem:[#allocation2 + $0x138] ss:$12 sps:$4 sm:$0xff]  }
 0x2c5   :  { %21453 = vst [vmem:[#allocation63_spill] sm:$0xff] %v19783_v21  ;;  %6384 = vmatprep.mubr.bf16.mxu1 %v17777_v11  ;;  %v19787_v53 = vpop.f32.mrf.mxu0 }
 0x2c6   :  { %v6188_v2 = vpop.f32.mrf.mxu1  ;;  %21455 = vst [vmem:[#allocation65_spill] sm:$0xff] %v19787_v53 }
 0x2c7   :  { %v19791_v30 = vpop.f32.mrf.mxu0 }
 0x2c8   :  { %v19789_v57 = vpop.f32.mrf.mxu1  ;;  %21457 = vst [vmem:[#allocation67_spill] sm:$0xff] %v19791_v30 }
 0x2c9   :  { %21456 = vst [vmem:[#allocation66_spill] sm:$0xff] %v19789_v57  ;;  %8339 = vmatmul.mubr.bf16.gmra.mxu0 %v17744_v33  ;;  %v19793_v25 = vpop.f32.mrf.mxu0  ;;  %v17758_v57 = vld [vmem:[#allocation2 + $0x154] ss:$12 sps:$4 sm:$0xff]  }
 0x2ca   :  { %8346 = vmatprep.mubr.bf16.mxu0 %v17752_v49  ;;  %v6191_v38 = vpop.f32.mrf.mxu1  ;;  %21458 = vst [vmem:[#allocation68_spill] sm:$0xff] %v19793_v25  ;;  %v17781_v49 = vld [vmem:[#allocation2 + $0x570] ss:$12 sps:$4 sm:$0xff]  }
 0x2cb   :  { %v19797_v11 = vpop.f32.mrf.mxu0 }
 0x2cc   :  { %v19795_v27 = vpop.f32.mrf.mxu1  ;;  %6385 = vmatmul.mubr.bf16.gmra.mxu1 %v17775_v24  ;;  %21460 = vst [vmem:[#allocation70_spill] sm:$0xff] %v19797_v11  ;;  %v17789_v24 = vld [vmem:[#allocation2 + $0x58c] ss:$12 sps:$4 sm:$0xff]  }
 0x2cd   :  { %21459 = vst [vmem:[#allocation69_spill] sm:$0xff] %v19795_v27  ;;  %6392 = vmatprep.mubr.bf16.mxu1 %v17783_v29  ;;  %v19799_v53 = vpop.f32.mrf.mxu0 }
 0x2ce   :  { %v6196_v2 = vpop.f32.mrf.mxu1  ;;  %21461 = vst [vmem:[#allocation71_spill] sm:$0xff] %v19799_v53  ;;  %v17756_v53 = vld [vmem:[#allocation2 + $0x150] ss:$12 sps:$4 sm:$0xff]  }
 0x2d0   :  { %v6197_v21 = vpop.f32.mrf.mxu1  ;;  %v19801_v30 = vpop.f32.mrf.mxu0 }
 0x2d1   :  { %21462 = vst [vmem:[#allocation72_spill] sm:$0xff] %v19801_v30  ;;  %8347 = vmatmul.mubr.bf16.gmra.mxu0 %v17750_v28  ;;  %v19804_v33 = vadd.f32 %v19703_v18, %v6197_v21  ;;  %v17764_v28 = vld [vmem:[#allocation2 + $0x16c] ss:$12 sps:$4 sm:$0xff]   ;;  %v17787_v21 = vld [vmem:[#allocation2 + $0x588] ss:$12 sps:$4 sm:$0xff]  }
 0x2d2   :  { %8354 = vmatprep.mubr.bf16.mxu0 %v17758_v57  ;;  %v6199_v38 = vpop.f32.mrf.mxu1  ;;  %v19806_v25 = vpop.f32.mrf.mxu0 }
 0x2d3   :  { %21463 = vst [vmem:[#allocation73_spill] sm:$0xff] %v19806_v25  ;;  %v17795_v25 = vld [vmem:[#allocation2 + $0x5a4] ss:$12 sps:$4 sm:$0xff]  }
 0x2d4   :  { %v19808_v11 = vpop.f32.mrf.mxu1  ;;  %6393 = vmatmul.mubr.bf16.gmra.mxu1 %v17781_v49  ;;  %v19810_v29 = vpop.f32.mrf.mxu0 }
 0x2d5   :  { %21464 = vst [vmem:[#allocation74_spill] sm:$0xff] %v19808_v11  ;;  %21465 = vst [vmem:[#allocation75_spill] sm:$0xff] %v19810_v29  ;;  %6400 = vmatprep.mubr.bf16.mxu1 %v17789_v24  ;;  %v17762_v29 = vld [vmem:[#allocation2 + $0x168] ss:$12 sps:$4 sm:$0xff]  }
 0x2d6   :  { %v6204_v2 = vpop.f32.mrf.mxu1  ;;  %v19812_v27 = vpop.f32.mrf.mxu0 }
 0x2d7   :  { %21466 = vst [vmem:[#allocation76_spill] sm:$0xff] %v19812_v27 }
 0x2d8   :  { %v19814_v30 = vpop.f32.mrf.mxu1 }
 0x2d9   :  { %21467 = vst [vmem:[#allocation77_spill] sm:$0xff] %v19814_v30  ;;  %v19816_v18 = vpop.f32.mrf.mxu0  ;;  %8355 = vmatmul.mubr.bf16.gmra.mxu0 %v17756_v53 }
 0x2da   :  { %21468 = vst [vmem:[#allocation78_spill] sm:$0xff] %v19816_v18  ;;  %8362 = vmatprep.mubr.bf16.mxu0 %v17764_v28  ;;  %v6207_v57 = vpop.f32.mrf.mxu1  ;;  %v17793_v28 = vld [vmem:[#allocation2 + $0x5a0] ss:$12 sps:$4 sm:$0xff]  }
 0x2db   :  { %v19818_v38 = vpop.f32.mrf.mxu0 }
 0x2dc   :  { %21469 = vst [vmem:[#allocation79_spill] sm:$0xff] %v19818_v38  ;;  %v19820_v49 = vpop.f32.mrf.mxu1  ;;  %6401 = vmatmul.mubr.bf16.gmra.mxu1 %v17787_v21  ;;  %v17801_v21 = vld [vmem:[#allocation2 + $0x5bc] ss:$12 sps:$4 sm:$0xff]   ;;  %v17780_v38 = vld [vmem:[#allocation2 + $0x1e4] ss:$12 sps:$4 sm:$0xff]  }
 0x2dd   :  { %v19822_v24 = vpop.f32.mrf.mxu0  ;;  %6408 = vmatprep.mubr.bf16.mxu1 %v17795_v25 }
 0x2de   :  { %21470 = vst [vmem:[#allocation80_spill] sm:$0xff] %v19822_v24  ;;  %v6212_v2 = vpop.f32.mrf.mxu1 }
 0x2df   :  { %v19824_v27 = vpop.f32.mrf.mxu0 }
 0x2e0   :  { %21471 = vst [vmem:[#allocation81_spill] sm:$0xff] %v19824_v27  ;;  %v6213_v30 = vpop.f32.mrf.mxu1 }
 0x2e1   :  { %v19826_v11 = vpop.f32.mrf.mxu0  ;;  %8363 = vmatmul.mubr.bf16.gmra.mxu0 %v17762_v29  ;;  %v19829_v53 = vadd.f32 %v19723_v61, %v6213_v30  ;;  %v17774_v29 = vld [vmem:[#allocation2 + $0x1cc] ss:$12 sps:$4 sm:$0xff]  }
 0x2e2   :  { %21472 = vst [vmem:[#allocation82_spill] sm:$0xff] %v19826_v11  ;;  %8370 = vmatprep.mubr.bf16.mxu0 %v19642_v32  ;;  %v6215_v57 = vpop.f32.mrf.mxu1  ;;  %v17799_v32 = vld [vmem:[#allocation2 + $0x5b8] ss:$12 sps:$4 sm:$0xff]  }
 0x2e3   :  { %v19832_v18 = vpop.f32.mrf.mxu0 }
 0x2e4   :  { %21473 = vst [vmem:[#allocation83_spill] sm:$0xff] %v19832_v18  ;;  %v19834_v24 = vpop.f32.mrf.mxu1  ;;  %6409 = vmatmul.mubr.bf16.gmra.mxu1 %v17793_v28  ;;  %v17807_v18 = vld [vmem:[#allocation2 + $0x5d4] ss:$12 sps:$4 sm:$0xff]  }
 0x2e5   :  { %21474 = vst [vmem:[#allocation84_spill] sm:$0xff] %v19834_v24  ;;  %v19836_v25 = vpop.f32.mrf.mxu0  ;;  %6416 = vmatprep.mubr.bf16.mxu1 %v17801_v21 }
 0x2e6   :  { %21475 = vst [vmem:[#allocation85_spill] sm:$0xff] %v19836_v25  ;;  %v6220_v2 = vpop.f32.mrf.mxu1  ;;  %v17772_v25 = vld [vmem:[#allocation2 + $0x1c8] ss:$12 sps:$4 sm:$0xff]  }
 0x2e7   :  { %v19838_v27 = vpop.f32.mrf.mxu0 }
 0x2e8   :  { %21476 = vst [vmem:[#allocation86_spill] sm:$0xff] %v19838_v27  ;;  %v19840_v11 = vpop.f32.mrf.mxu1 }
 0x2e9   :  { %21477 = vst [vmem:[#allocation87_spill] sm:$0xff] %v19840_v11  ;;  %v19842_v61 = vpop.f32.mrf.mxu0  ;;  %8371 = vmatmul.mubr.bf16.gmra.mxu0 %v19652_v54 }
 0x2ea   :  { %21478 = vst [vmem:[#allocation88_spill] sm:$0xff] %v19842_v61  ;;  %8378 = vmatprep.mubr.bf16.mxu0 %v17774_v29  ;;  %v6223_v30 = vpop.f32.mrf.mxu1  ;;  %v17805_v29 = vld [vmem:[#allocation2 + $0x5d0] ss:$12 sps:$4 sm:$0xff]  }
 0x2eb   :  { %v19845_v57 = vpop.f32.mrf.mxu0 }
 0x2ec   :  { %21479 = vst [vmem:[#allocation89_spill] sm:$0xff] %v19845_v57  ;;  %v19847_v28 = vpop.f32.mrf.mxu1  ;;  %6417 = vmatmul.mubr.bf16.gmra.mxu1 %v17799_v32 }
 0x2ed   :  { %21480 = vst [vmem:[#allocation90_spill] sm:$0xff] %v19847_v28  ;;  %v19849_v21 = vpop.f32.mrf.mxu0  ;;  %6424 = vmatprep.mubr.bf16.mxu1 %v17807_v18  ;;  %v17813_v28 = vld [vmem:[#allocation2 + $0x5ec] ss:$12 sps:$4 sm:$0xff]  }
 0x2ee   :  { %21481 = vst [vmem:[#allocation91_spill] sm:$0xff] %v19849_v21  ;;  %v6228_v2 = vpop.f32.mrf.mxu1  ;;  %v17873_v21 = vld [vmem:[#allocation8 + $0x230] sm:$0xff]  }
 0x2ef   :  { %v19851_v27 = vpop.f32.mrf.mxu0  ;;  %17084 = vmatprep.subr.bf16.mxu0 %v17873_v21 }
 0x2f0   :  { %21482 = vst [vmem:[#allocation92_spill] sm:$0xff] %v19851_v27  ;;  %v19853_v61 = vpop.f32.mrf.mxu1  ;;  %v17778_v27 = vld [vmem:[#allocation2 + $0x1e0] ss:$12 sps:$4 sm:$0xff]   ;;  %17085 = vmatpush3.bf16.msra.mxu0 %v17873_v21 }
 0x2f1   :  { %21483 = vst [vmem:[#allocation93_spill] sm:$0xff] %v19853_v61  ;;  %v19855_v54 = vpop.f32.mrf.mxu0  ;;  %8379 = vmatmul.mubr.bf16.gmra.mxu0 %v17772_v25  ;;  %v17786_v61 = vld [vmem:[#allocation2 + $0x1fc] ss:$12 sps:$4 sm:$0xff]  }
 0x2f2   :  { %21484 = vst [vmem:[#allocation94_spill] sm:$0xff] %v19855_v54  ;;  %8386 = vmatprep.mubr.bf16.mxu0 %v17780_v38  ;;  %v6231_v30 = vpop.f32.mrf.mxu1  ;;  %v17811_v25 = vld [vmem:[#allocation2 + $0x5e8] ss:$12 sps:$4 sm:$0xff]  }
 0x2f3   :  { %v19857_v57 = vpop.f32.mrf.mxu0 }
 0x2f4   :  { %21485 = vst [vmem:[#allocation95_spill] sm:$0xff] %v19857_v57  ;;  %v19859_v32 = vpop.f32.mrf.mxu1  ;;  %6425 = vmatmul.mubr.bf16.gmra.mxu1 %v17805_v29  ;;  %v17784_v57 = vld [vmem:[#allocation2 + $0x1f8] ss:$12 sps:$4 sm:$0xff]  }
 0x2f5   :  { %21486 = vst [vmem:[#allocation96_spill] sm:$0xff] %v19859_v32  ;;  %v19861_v18 = vpop.f32.mrf.mxu0  ;;  %6432 = vmatprep.mubr.bf16.mxu1 %v17813_v28  ;;  %v17792_v32 = vld [vmem:[#allocation2 + $0x214] ss:$12 sps:$4 sm:$0xff]  }
 0x2f6   :  { %21487 = vst [vmem:[#allocation97_spill] sm:$0xff] %v19861_v18  ;;  %v6236_v2 = vpop.f32.mrf.mxu1  ;;  %v17820_v18 = vld [vmem:[#allocation2 + $0x604] ss:$12 sps:$4 sm:$0xff]  }
 0x2f7   :  { %v19863_v11 = vpop.f32.mrf.mxu0 }
 0x2f8   :  { %21488 = vst [vmem:[#allocation98_spill] sm:$0xff] %v19863_v11  ;;  %v19865_v54 = vpop.f32.mrf.mxu1 }
 0x2f9   :  { %21489 = vst [vmem:[#allocation99_spill] sm:$0xff] %v19865_v54  ;;  %v19867_v38 = vpop.f32.mrf.mxu0  ;;  %8387 = vmatmul.mubr.bf16.gmra.mxu0 %v17778_v27 }
 0x2fa   :  { %21490 = vst [vmem:[#allocation100_spill] sm:$0xff] %v19867_v38  ;;  %8394 = vmatprep.mubr.bf16.mxu0 %v17786_v61  ;;  %v6239_v30 = vpop.f32.mrf.mxu1  ;;  %v17818_v61 = vld [vmem:[#allocation2 + $0x600] ss:$12 sps:$4 sm:$0xff]  }
 0x2fb   :  { %v19869_v29 = vpop.f32.mrf.mxu0 }
 0x2fc   :  { %21491 = vst [vmem:[#allocation101_spill] sm:$0xff] %v19869_v29  ;;  %v19871_v28 = vpop.f32.mrf.mxu1  ;;  %6433 = vmatmul.mubr.bf16.gmra.mxu1 %v17811_v25  ;;  %v17826_v29 = vld [vmem:[#allocation2 + $0x61c] ss:$12 sps:$4 sm:$0xff]  }
 0x2fd   :  { %21492 = vst [vmem:[#allocation102_spill] sm:$0xff] %v19871_v28  ;;  %v19873_v2 = vpop.f32.mrf.mxu0  ;;  %6440 = vmatprep.mubr.bf16.mxu1 %v17820_v18 }
 0x2fe   :  { %21493 = vst [vmem:[#allocation103_spill] sm:$0xff] %v19873_v2  ;;  %v6244_v11 = vpop.f32.mrf.mxu1  ;;  %v17790_v2 = vld [vmem:[#allocation2 + $0x210] ss:$12 sps:$4 sm:$0xff]  }
 0x2ff   :  { %v19875_v54 = vpop.f32.mrf.mxu0 }
 0x300   :  { %21494 = vst [vmem:[#allocation104_spill] sm:$0xff] %v19875_v54  ;;  %v19877_v38 = vpop.f32.mrf.mxu1 }
 0x301   :  { %21495 = vst [vmem:[#allocation105_spill] sm:$0xff] %v19877_v38  ;;  %v19879_v27 = vpop.f32.mrf.mxu0  ;;  %8395 = vmatmul.mubr.bf16.gmra.mxu0 %v17784_v57  ;;  %v17798_v38 = vld [vmem:[#allocation2 + $0x22c] ss:$12 sps:$4 sm:$0xff]  }
 0x302   :  { %21496 = vst [vmem:[#allocation106_spill] sm:$0xff] %v19879_v27  ;;  %8402 = vmatprep.mubr.bf16.mxu0 %v17792_v32  ;;  %v6247_v21 = vpop.f32.mrf.mxu1  ;;  %v17824_v32 = vld [vmem:[#allocation2 + $0x618] ss:$12 sps:$4 sm:$0xff]  }
 0x303   :  { %v19881_v30 = vpop.f32.mrf.mxu0 }
 0x304   :  { %21497 = vst [vmem:[#allocation107_spill] sm:$0xff] %v19881_v30  ;;  %v19883_v25 = vpop.f32.mrf.mxu1  ;;  %6441 = vmatmul.mubr.bf16.gmra.mxu1 %v17818_v61  ;;  %v17833_v30 = vld [vmem:[#allocation2 + $0x634] ss:$12 sps:$4 sm:$0xff]  }
 0x305   :  { %21498 = vst [vmem:[#allocation108_spill] sm:$0xff] %v19883_v25  ;;  %v19885_v18 = vpop.f32.mrf.mxu0  ;;  %6448 = vmatprep.mubr.bf16.mxu1 %v17826_v29 }
 0x306   :  { %21499 = vst [vmem:[#allocation109_spill] sm:$0xff] %v19885_v18  ;;  %v6252_v11 = vpop.f32.mrf.mxu1  ;;  %v17796_v18 = vld [vmem:[#allocation2 + $0x228] ss:$12 sps:$4 sm:$0xff]  }
 0x307   :  { %v19887_v54 = vpop.f32.mrf.mxu0 }
 0x308   :  { %21500 = vst [vmem:[#allocation110_spill] sm:$0xff] %v19887_v54  ;;  %v19889_v28 = vpop.f32.mrf.mxu1 }
 0x309   :  { %21501 = vst [vmem:[#allocation111_spill] sm:$0xff] %v19889_v28  ;;  %v19891_v57 = vpop.f32.mrf.mxu0  ;;  %8403 = vmatmul.mubr.bf16.gmra.mxu0 %v17790_v2  ;;  %v17804_v28 = vld [vmem:[#allocation2 + $0x244] ss:$12 sps:$4 sm:$0xff]  }
 0x30a   :  { %21502 = vst [vmem:[#allocation112_spill] sm:$0xff] %v19891_v57  ;;  %8410 = vmatprep.mubr.bf16.mxu0 %v17798_v38  ;;  %v6255_v21 = vpop.f32.mrf.mxu1  ;;  %v17831_v38 = vld [vmem:[#allocation2 + $0x630] ss:$12 sps:$4 sm:$0xff]  }
 0x30b   :  { %v19893_v27 = vpop.f32.mrf.mxu0 }
 0x30c   :  { %21503 = vst [vmem:[#allocation113_spill] sm:$0xff] %v19893_v27  ;;  %v19895_v61 = vpop.f32.mrf.mxu1  ;;  %6449 = vmatmul.mubr.bf16.gmra.mxu1 %v17824_v32  ;;  %v17839_v27 = vld [vmem:[#allocation2 + $0x64c] ss:$12 sps:$4 sm:$0xff]  }
 0x30d   :  { %21504 = vst [vmem:[#allocation114_spill] sm:$0xff] %v19895_v61  ;;  %v19897_v29 = vpop.f32.mrf.mxu0  ;;  %6456 = vmatprep.mubr.bf16.mxu1 %v17833_v30 }
 0x30e   :  { %21505 = vst [vmem:[#allocation115_spill] sm:$0xff] %v19897_v29  ;;  %v6260_v11 = vpop.f32.mrf.mxu1  ;;  %v17802_v29 = vld [vmem:[#allocation2 + $0x240] ss:$12 sps:$4 sm:$0xff]  }
 0x30f   :  { %v19899_v54 = vpop.f32.mrf.mxu0 }
 0x310   :  { %21506 = vst [vmem:[#allocation116_spill] sm:$0xff] %v19899_v54  ;;  %v19901_v25 = vpop.f32.mrf.mxu1 }
 0x311   :  { %21507 = vst [vmem:[#allocation117_spill] sm:$0xff] %v19901_v25  ;;  %v19903_v2 = vpop.f32.mrf.mxu0  ;;  %8411 = vmatmul.mubr.bf16.gmra.mxu0 %v17796_v18  ;;  %v17810_v25 = vld [vmem:[#allocation2 + $0x25c] ss:$12 sps:$4 sm:$0xff]  }
 0x312   :  { %21508 = vst [vmem:[#allocation118_spill] sm:$0xff] %v19903_v2  ;;  %8418 = vmatprep.mubr.bf16.mxu0 %v17804_v28  ;;  %v6263_v21 = vpop.f32.mrf.mxu1  ;;  %v17837_v28 = vld [vmem:[#allocation2 + $0x648] ss:$12 sps:$4 sm:$0xff]  }
 0x313   :  { %v19905_v57 = vpop.f32.mrf.mxu0 }
 0x314   :  { %21509 = vst [vmem:[#allocation119_spill] sm:$0xff] %v19905_v57  ;;  %v19907_v32 = vpop.f32.mrf.mxu1  ;;  %6457 = vmatmul.mubr.bf16.gmra.mxu1 %v17831_v38  ;;  %v17845_v57 = vld [vmem:[#allocation2 + $0x664] ss:$12 sps:$4 sm:$0xff]  }
 0x315   :  { %21510 = vst [vmem:[#allocation120_spill] sm:$0xff] %v19907_v32  ;;  %v19909_v30 = vpop.f32.mrf.mxu0  ;;  %6464 = vmatprep.mubr.bf16.mxu1 %v17839_v27 }
 0x316   :  { %21511 = vst [vmem:[#allocation121_spill] sm:$0xff] %v19909_v30  ;;  %v6268_v11 = vpop.f32.mrf.mxu1  ;;  %v17808_v30 = vld [vmem:[#allocation2 + $0x258] ss:$12 sps:$4 sm:$0xff]  }
 0x317   :  { %v19911_v54 = vpop.f32.mrf.mxu0 }
 0x318   :  { %21512 = vst [vmem:[#allocation122_spill] sm:$0xff] %v19911_v54  ;;  %v19913_v61 = vpop.f32.mrf.mxu1 }
 0x319   :  { %21513 = vst [vmem:[#allocation123_spill] sm:$0xff] %v19913_v61  ;;  %v19915_v18 = vpop.f32.mrf.mxu0  ;;  %8419 = vmatmul.mubr.bf16.gmra.mxu0 %v17802_v29  ;;  %v17816_v61 = vld [vmem:[#allocation2 + $0x274] ss:$12 sps:$4 sm:$0xff]  }
 0x31a   :  { %21514 = vst [vmem:[#allocation124_spill] sm:$0xff] %v19915_v18  ;;  %8426 = vmatprep.mubr.bf16.mxu0 %v17810_v25  ;;  %v6271_v21 = vpop.f32.mrf.mxu1  ;;  %v17843_v25 = vld [vmem:[#allocation2 + $0x660] ss:$12 sps:$4 sm:$0xff]  }
 0x31b   :  { %v19917_v2 = vpop.f32.mrf.mxu0 }
 0x31c   :  { %21515 = vst [vmem:[#allocation125_spill] sm:$0xff] %v19917_v2  ;;  %v19919_v38 = vpop.f32.mrf.mxu1  ;;  %6465 = vmatmul.mubr.bf16.gmra.mxu1 %v17837_v28  ;;  %v17851_v2 = vld [vmem:[#allocation2 + $0x67c] ss:$12 sps:$4 sm:$0xff]  }
 0x31d   :  { %21516 = vst [vmem:[#allocation126_spill] sm:$0xff] %v19919_v38  ;;  %v19921_v27 = vpop.f32.mrf.mxu0  ;;  %6472 = vmatprep.mubr.bf16.mxu1 %v17845_v57 }
 0x31e   :  { %21517 = vst [vmem:[#allocation127_spill] sm:$0xff] %v19921_v27  ;;  %v6276_v11 = vpop.f32.mrf.mxu1  ;;  %v17814_v27 = vld [vmem:[#allocation2 + $0x270] ss:$12 sps:$4 sm:$0xff]  }
 0x31f   :  { %v19923_v54 = vpop.f32.mrf.mxu0 }
 0x320   :  { %21518 = vst [vmem:[#allocation128_spill] sm:$0xff] %v19923_v54  ;;  %v19925_v32 = vpop.f32.mrf.mxu1 }
 0x321   :  { %21519 = vst [vmem:[#allocation129_spill] sm:$0xff] %v19925_v32  ;;  %v19927_v29 = vpop.f32.mrf.mxu0  ;;  %8427 = vmatmul.mubr.bf16.gmra.mxu0 %v17808_v30  ;;  %v17823_v32 = vld [vmem:[#allocation2 + $0x28c] ss:$12 sps:$4 sm:$0xff]  }
 0x322   :  { %21520 = vst [vmem:[#allocation130_spill] sm:$0xff] %v19927_v29  ;;  %8434 = vmatprep.mubr.bf16.mxu0 %v17816_v61  ;;  %v6279_v21 = vpop.f32.mrf.mxu1 }
 0x323   :  { %v19929_v18 = vpop.f32.mrf.mxu0  ;;  %v17849_v21 = vld [vmem:[#allocation2 + $0x678] ss:$12 sps:$4 sm:$0xff]  }
 0x324   :  { %21521 = vst [vmem:[#allocation131_spill] sm:$0xff] %v19929_v18  ;;  %v19931_v28 = vpop.f32.mrf.mxu1  ;;  %6473 = vmatmul.mubr.bf16.gmra.mxu1 %v17843_v25  ;;  %v17857_v25 = vld [vmem:[#allocation2 + $0x694] ss:$12 sps:$4 sm:$0xff]  }
 0x325   :  { %21522 = vst [vmem:[#allocation132_spill] sm:$0xff] %v19931_v28  ;;  %v19933_v57 = vpop.f32.mrf.mxu0  ;;  %6480 = vmatprep.mubr.bf16.mxu1 %v17851_v2  ;;  %v6535_v2 = vadd.f32 %v19376_v4, %v19362_v34  ;;  %v17855_v34 = vld [vmem:[#allocation2 + $0x690] ss:$12 sps:$4 sm:$0xff]  }
 0x326   :  { %21523 = vst [vmem:[#allocation133_spill] sm:$0xff] %v19933_v57  ;;  %v6284_v11 = vpop.f32.mrf.mxu1 }
 0x327   :  { %v19935_v54 = vpop.f32.mrf.mxu0 }
 0x328   :  { %21524 = vst [vmem:[#allocation134_spill] sm:$0xff] %v19935_v54  ;;  %v19937_v38 = vpop.f32.mrf.mxu1 }
 0x329   :  { %21525 = vst [vmem:[#allocation135_spill] sm:$0xff] %v19937_v38  ;;  %v8244_v30 = vpop.f32.mrf.mxu0  ;;  %8435 = vmatmul.mubr.bf16.gmra.mxu0 %v17814_v27  ;;  %v17821_v27 = vld [vmem:[#allocation2 + $0x288] ss:$12 sps:$4 sm:$0xff]  }
 0x32a   :  { %v19940_v61 = vadd.f32 %v8244_v30, %v19510_v48  ;;  %8442 = vmatprep.mubr.bf16.mxu0 %v17823_v32  ;;  %v6287_v29 = vpop.f32.mrf.mxu1  ;;  %v17829_v48 = vld [vmem:[#allocation2 + $0x2a4] ss:$12 sps:$4 sm:$0xff]  }
 0x32b   :  { %v8246_v18 = vpop.f32.mrf.mxu0 }
 0x32c   :  { %v19944_v11 = vpop.f32.mrf.mxu1  ;;  %6481 = vmatmul.mubr.bf16.gmra.mxu1 %v17849_v21  ;;  %v17861_v18 = vld [vmem:[#allocation2 + $0x8] ss:$12 sps:$4 sm:$0xff]  }
 0x32d   :  { %21526 = vst [vmem:[#allocation136_spill] sm:$0xff] %v19944_v11  ;;  %v8247_v57 = vpop.f32.mrf.mxu0  ;;  %6488 = vmatprep.mubr.bf16.mxu1 %v17857_v25  ;;  %v17918_v25 = vld [vmem:[#allocation8 + $0x228] sm:$0xff]  }
 0x32e   :  { %v19946_v54 = vadd.f32 %v8247_v57, %v6535_v2  ;;  %v6292_v38 = vpop.f32.mrf.mxu1  ;;  %v17827_v2 = vld [vmem:[#allocation2 + $0x2a0] ss:$12 sps:$4 sm:$0xff]   ;;  %17086 = vmatprep.subr.bf16.mxu0 %v17918_v25 }
 0x32f   :  { %v8249_v28 = vpop.f32.mrf.mxu0  ;;  %17087 = vmatpush3.bf16.msra.mxu0 %v17918_v25 }
 0x330   :  { %v19948_v30 = vpop.f32.mrf.mxu1 }
 0x331   :  { %21527 = vst [vmem:[#allocation137_spill] sm:$0xff] %v19948_v30  ;;  %v8252_v32 = vpop.f32.mrf.mxu0  ;;  %8443 = vmatmul.mubr.bf16.gmra.mxu0 %v17821_v27  ;;  %v17836_v30 = vld [vmem:[#allocation2 + $0x2bc] ss:$12 sps:$4 sm:$0xff]  }
 0x332   :  { %v19951_v29 = vadd.f32 %v8252_v32, %v19521_v45  ;;  %8450 = vmatprep.mubr.bf16.mxu0 %v17829_v48  ;;  %v6295_v4 = vpop.f32.mrf.mxu1  ;;  %v17863_v48 = vld [vmem:[#allocation8 + $0x1b8] sm:$0xff]  }
 0x333   :  { %v8254_v21 = vpop.f32.mrf.mxu0  ;;  %v17867_v4 = vld [vmem:[#allocation2 + $0x38] ss:$12 sps:$4 sm:$0xff]  }
 0x334   :  { %v19953_v11 = vpop.f32.mrf.mxu1  ;;  %6489 = vmatmul.mubr.bf16.gmra.mxu1 %v17855_v34  ;;  %v6551_v21 = vadd.f32 %v19412_v12, %v19434_v19  ;;  %v17886_v19 = vld [vmem:[#allocation8 + $0x1a8] sm:$0xff]  }
 0x335   :  { %21528 = vst [vmem:[#allocation138_spill] sm:$0xff] %v19953_v11  ;;  %v8255_v57 = vpop.f32.mrf.mxu0  ;;  %16954 = vmatprep.mubr.bf16.mxu1 %v17861_v18  ;;  %v17862_v18 = vld [vmem:[#allocation2 + $0x20] ss:$12 sps:$4 sm:$0xff]  }
 0x336   :  { %v19956_v38 = vadd.f32 %v8255_v57, %v19526_v8  ;;  %v6300_v28 = vpop.f32.mrf.mxu1 }
 0x337   :  { %v8257_v27 = vpop.f32.mrf.mxu0 }
 0x338   :  { %v19958_v24 = vpop.f32.mrf.mxu1 }
 0x339   :  { %21529 = vst [vmem:[#allocation139_spill] sm:$0xff] %v19958_v24  ;;  %v8260_v45 = vpop.f32.mrf.mxu0  ;;  %8451 = vmatmul.mubr.bf16.gmra.mxu0 %v17827_v2  ;;  %v17875_v2 = vld [vmem:[#allocation8 + $0x1b0] sm:$0xff]  }
 0x33a   :  { %v19961_v32 = vadd.f32 %v8260_v45, %v19530_v14  ;;  %8458 = vmatprep.mubr.bf16.mxu0 %v17836_v30  ;;  %v6303_v34 = vpop.f32.mrf.mxu1  ;;  %v19969_v45 = vld [vmem:[#allocation2] sm:$0xff] }
 0x33b   :  { %v8262_v8 = vpop.f32.mrf.mxu0  ;;  %v17834_v30 = vld [vmem:[#allocation2 + $0x2b8] ss:$12 sps:$4 sm:$0xff]   ;;  %v17842_v34 = vld [vmem:[#allocation2 + $0x2d4] ss:$12 sps:$4 sm:$0xff]  }
 0x33c   :  { %v19965_v57 = vpop.f32.mrf.mxu1  ;;  %16955 = vmatmul.mubr.bf16.vlgmr.msra.gmra.mxu1 %v17862_v18 }
 0x33d   :  { %21530 = vst [vmem:[#allocation140_spill] sm:$0xff] %v19965_v57  ;;  %v8263_v28 = vpop.f32.mrf.mxu0  ;;  %10775 = vmatpush1.bf16.msra.mxu1 %v17863_v48  ;;  %16958 = vmatprep.mubr.bf16.mxu1 %v17867_v4  ;;  %v17868_v4 = vld [vmem:[#allocation2 + $0x50] ss:$12 sps:$4 sm:$0xff]  }
 0x33e   :  { %v19967_v27 = vadd.f32 %v8263_v28, %v6551_v21  ;;  %v6308_v14 = vpop.f32.mrf.mxu1  ;;  %10776 = vmatprep.subr.bf16.mxu1 %v19969_v45  ;;  %v17872_v28 = vld [vmem:[#allocation2 + $0x68] ss:$12 sps:$4 sm:$0xff]  }
 0x33f   :  { %v8265_v25 = vpop.f32.mrf.mxu0 }
 0x340   :  { %v19972_v8 = vpop.f32.mrf.mxu1 }
 0x341   :  { %21531 = vst [vmem:[#allocation141_spill] sm:$0xff] %v19972_v8  ;;  %v8268_v12 = vpop.f32.mrf.mxu0  ;;  %8459 = vmatmul.mubr.bf16.gmra.mxu0 %v17834_v30  ;;  %10777 = vmatpush1.bf16.msra.mxu1 %v17875_v2  ;;  %v17897_v8 = vld [vmem:[#allocation8 + $0x1a0] sm:$0xff]  }
 0x342   :  { %v19975_v48 = vadd.f32 %v8268_v12, %v19538_v9  ;;  %8466 = vmatprep.mubr.bf16.mxu0 %v17842_v34  ;;  %v6311_v18 = vpop.f32.mrf.mxu1  ;;  %10778 = vmatprep.subr.bf16.mxu1 %v19969_v45  ;;  %v17840_v9 = vld [vmem:[#allocation2 + $0x2d0] ss:$12 sps:$4 sm:$0xff]   ;;  %v17848_v12 = vld [vmem:[#allocation2 + $0x2ec] ss:$12 sps:$4 sm:$0xff]  }
 0x343   :  { %v8270_v21 = vpop.f32.mrf.mxu0 }
 0x344   :  { %v19978_v14 = vpop.f32.mrf.mxu1  ;;  %16959 = vmatmul.mubr.bf16.gmra.mxu1 %v17868_v4 }
 0x345   :  { %21532 = vst [vmem:[#allocation142_spill] sm:$0xff] %v19978_v14  ;;  %v8271_v25 = vpop.f32.mrf.mxu0  ;;  %16962 = vmatprep.mubr.bf16.mxu1 %v17872_v28  ;;  %10779 = vmatpush1.bf16.msra.mxu1 %v17886_v19  ;;  %v17908_v14 = vld [vmem:[#allocation8 + $0x198] sm:$0xff]   ;;  %v17874_v28 = vld [vmem:[#allocation2 + $0x80] ss:$12 sps:$4 sm:$0xff]  }
 0x346   :  { %v19981_v2 = vadd.f32 %v8271_v25, %v19542_v52  ;;  %v6316_v30 = vpop.f32.mrf.mxu1  ;;  %10780 = vmatprep.subr.bf16.mxu1 %v19969_v45  ;;  %v17879_v25 = vld [vmem:[#allocation2 + $0x98] ss:$12 sps:$4 sm:$0xff]  }
 0x347   :  { %v8273_v34 = vpop.f32.mrf.mxu0  ;;  %v6567_v30 = vadd.f32 %v19448_v16, %v19504_v51  ;;  %v17931_v16 = vld [vmem:[#allocation8 + $0x188] sm:$0xff]  }
 0x348   :  { %v19984_v18 = vpop.f32.mrf.mxu1 }
 0x349   :  { %21533 = vst [vmem:[#allocation143_spill] sm:$0xff] %v19984_v18  ;;  %v8276_v21 = vpop.f32.mrf.mxu0  ;;  %8467 = vmatmul.mubr.bf16.gmra.mxu0 %v17840_v9  ;;  %10781 = vmatpush1.bf16.msra.mxu1 %v17897_v8  ;;  %v17920_v8 = vld [vmem:[#allocation8 + $0x190] sm:$0xff]  }
 0x34a   :  { %v19987_v4 = vadd.f32 %v8276_v21, %v19546_v37  ;;  %8474 = vmatprep.mubr.bf16.mxu0 %v17848_v12  ;;  %v6319_v19 = vpop.f32.mrf.mxu1  ;;  %10782 = vmatprep.subr.bf16.mxu1 %v19969_v45  ;;  %v17846_v12 = vld [vmem:[#allocation2 + $0x2e8] ss:$12 sps:$4 sm:$0xff]  }
 0x34b   :  { %v8278_v52 = vpop.f32.mrf.mxu0  ;;  %v17854_v19 = vld [vmem:[#allocation2 + $0x304] ss:$12 sps:$4 sm:$0xff]  }
 0x34c   :  { %v19992_v34 = vpop.f32.mrf.mxu1  ;;  %16963 = vmatmul.mubr.bf16.gmra.mxu1 %v17874_v28  ;;  %v17880_v28 = vld [vmem:[#allocation2 + $0xb0] ss:$12 sps:$4 sm:$0xff]  }
 0x34d   :  { %21534 = vst [vmem:[#allocation144_spill] sm:$0xff] %v19992_v34  ;;  %v8279_v18 = vpop.f32.mrf.mxu0  ;;  %16966 = vmatprep.mubr.bf16.mxu1 %v17879_v25  ;;  %10783 = vmatpush1.bf16.msra.mxu1 %v17908_v14  ;;  %v17884_v25 = vld [vmem:[#allocation2 + $0xc8] ss:$12 sps:$4 sm:$0xff]   ;;  %v17906_v34 = vld [vmem:[#allocation2 + $0x1b8] ss:$12 sps:$4 sm:$0xff]  }
 0x34e   :  { %v19994_v9 = vadd.f32 %v8279_v18, %v6567_v30  ;;  %v6324_v37 = vpop.f32.mrf.mxu1  ;;  %10784 = vmatprep.subr.bf16.mxu1 %v19969_v45 }
 0x34f   :  { %v8281_v21 = vpop.f32.mrf.mxu0 }
 0x350   :  { %v19997_v52 = vpop.f32.mrf.mxu1  ;;  %v17860_v21 = vld [vmem:[#allocation2 + $0x31c] ss:$12 sps:$4 sm:$0xff]  }
 0x351   :  { %21535 = vst [vmem:[#allocation145_spill] sm:$0xff] %v19997_v52  ;;  %v8284_v57 = vpop.f32.mrf.mxu0  ;;  %8475 = vmatmul.mubr.bf16.gmra.mxu0 %v17846_v12  ;;  %10785 = vmatpush1.bf16.msra.mxu1 %v17920_v8 }
 0x352   :  { %v20000_v51 = vadd.f32 %v8284_v57, %v19551_v41  ;;  %8482 = vmatprep.mubr.bf16.mxu0 %v17854_v19  ;;  %v6327_v14 = vpop.f32.mrf.mxu1  ;;  %10786 = vmatprep.subr.bf16.mxu1 %v19969_v45  ;;  %v17852_v41 = vld [vmem:[#allocation2 + $0x300] ss:$12 sps:$4 sm:$0xff]  }
 0x353   :  { %v8286_v18 = vpop.f32.mrf.mxu0 }
 0x354   :  { %v20003_v30 = vpop.f32.mrf.mxu1  ;;  %16967 = vmatmul.mubr.bf16.gmra.mxu1 %v17880_v28 }
 0x355   :  { %21536 = vst [vmem:[#allocation146_spill] sm:$0xff] %v20003_v30  ;;  %v8287_v37 = vpop.f32.mrf.mxu0  ;;  %16970 = vmatprep.mubr.bf16.mxu1 %v17884_v25  ;;  %10787 = vmatpush1.bf16.msra.mxu1 %v17931_v16  ;;  %v17885_v25 = vld [vmem:[#allocation2 + $0xe0] ss:$12 sps:$4 sm:$0xff]  }
 0x356   :  { %v20006_v12 = vadd.f32 %v8287_v37, %v19556_v58  ;;  %v6332_v8 = vpop.f32.mrf.mxu1  ;;  %10788 = vmatprep.subr.bf16.mxu1 %v19969_v45  ;;  %v17942_v16 = vld [vmem:[#allocation8 + $0x180] sm:$0xff]   ;;  %v6583_v37 = vadd.f32 %v19493_v1, %v19567_v0 }
 0x357   :  { %v8289_v57 = vpop.f32.mrf.mxu0  ;;  %v17890_v58 = vld [vmem:[#allocation2 + $0xf8] ss:$12 sps:$4 sm:$0xff]  }
 0x358   :  { %v20009_v19 = vpop.f32.mrf.mxu1 }
 0x359   :  { %21537 = vst [vmem:[#allocation147_spill] sm:$0xff] %v20009_v19  ;;  %v8292_v14 = vpop.f32.mrf.mxu0  ;;  %8483 = vmatmul.mubr.bf16.gmra.mxu0 %v17852_v41  ;;  %10789 = vmatpush1.bf16.msra.mxu1 %v17942_v16 }
 0x35a   :  { %v20012_v18 = vadd.f32 %v8292_v14, %v19563_v46  ;;  %8490 = vmatprep.mubr.bf16.mxu0 %v17860_v21  ;;  %v6335_v28 = vpop.f32.mrf.mxu1  ;;  %v20022_v46 = vcombine.high %v19969_v45, %v19969_v45  ;;  %10790 = vmatprep.subr.bf16.mxu1 %v19969_v45 }
 0x35b   :  { %v8294_v30 = vpop.f32.mrf.mxu0 }
 0x35c   :  { %v20016_v8 = vpop.f32.mrf.mxu1  ;;  %16971 = vmatmul.mubr.bf16.gmra.mxu1 %v17885_v25  ;;  %v17858_v30 = vld [vmem:[#allocation2 + $0x318] ss:$12 sps:$4 sm:$0xff]   ;;  %v17891_v25 = vld [vmem:[#allocation2 + $0x110] ss:$12 sps:$4 sm:$0xff]  }
 0x35d   :  { %21538 = vst [vmem:[#allocation148_spill] sm:$0xff] %v20016_v8  ;;  %v8295_v57 = vpop.f32.mrf.mxu0  ;;  %16974 = vmatprep.mubr.bf16.mxu1 %v17890_v58  ;;  %v17895_v58 = vld [vmem:[#allocation2 + $0x128] ss:$12 sps:$4 sm:$0xff]   ;;  %v17950_v8 = vld [vmem:[#allocation8 + $0x1f8] sm:$0xff]  }
 0x35e   :  { %v20018_v19 = vadd.f32 %v8295_v57, %v6583_v37  ;;  %v6340_v41 = vpop.f32.mrf.mxu1  ;;  %10791 = vmatpush2.bf16.msra.mxu1 %v17950_v8 }
 0x35f   :  { %v8297_v21 = vpop.f32.mrf.mxu0  ;;  %v20035_v41 = vcombine.low %v19969_v45, %v19969_v45  ;;  %10792 = vmatprep.subr.bf16.mxu1 %v19969_v45 }
 0x360   :  { %v20025_v14 = vpop.f32.mrf.mxu1 }
 0x361   :  { %21539 = vst [vmem:[#allocation149_spill] sm:$0xff] %v20025_v14  ;;  %v8300_v1 = vpop.f32.mrf.mxu0  ;;  %8491 = vmatmul.mubr.bf16.gmra.mxu0 %v17858_v30 }
 0x362   :  { %v20028_v0 = vadd.f32 %v8300_v1, %v19574_v42  ;;  %8498 = vmatprep.mubr.bf16.mxu0 %v20022_v46  ;;  %v6343_v28 = vpop.f32.mrf.mxu1  ;;  %v17866_v1 = vld [vmem:[#allocation2 + $0x37c] ss:$12 sps:$4 sm:$0xff]  }
 0x363   :  { %v8302_v16 = vpop.f32.mrf.mxu0 }
 0x364   :  { %v20031_v37 = vpop.f32.mrf.mxu1  ;;  %16975 = vmatmul.mubr.bf16.gmra.mxu1 %v17891_v25 }
 0x365   :  { %21540 = vst [vmem:[#allocation150_spill] sm:$0xff] %v20031_v37  ;;  %v8303_v57 = vpop.f32.mrf.mxu0  ;;  %16978 = vmatprep.mubr.bf16.mxu1 %v17895_v58  ;;  %v17896_v37 = vld [vmem:[#allocation2 + $0x140] ss:$12 sps:$4 sm:$0xff]   ;;  %v17901_v58 = vld [vmem:[#allocation2 + $0x158] ss:$12 sps:$4 sm:$0xff]  }
 0x366   :  { %v20038_v30 = vadd.f32 %v8303_v57, %v19581_v50  ;;  %v6348_v42 = vpop.f32.mrf.mxu1  ;;  %v6599_v50 = vadd.f32 %v19532_v44, %v19592_v6 }
 0x367   :  { %v8305_v21 = vpop.f32.mrf.mxu0 }
 0x368   :  { %v20040_v14 = vpop.f32.mrf.mxu1 }
 0x369   :  { %21541 = vst [vmem:[#allocation151_spill] sm:$0xff] %v20040_v14  ;;  %v8308_v28 = vpop.f32.mrf.mxu0  ;;  %8499 = vmatmul.mubr.bf16.gmra.mxu0 %v20035_v41 }
 0x36a   :  { %v20044_v16 = vadd.f32 %v8308_v28, %v19588_v39  ;;  %8506 = vmatprep.mubr.bf16.mxu0 %v17866_v1  ;;  %v6351_v25 = vpop.f32.mrf.mxu1  ;;  %v17864_v39 = vld [vmem:[#allocation2 + $0x378] ss:$12 sps:$4 sm:$0xff]   ;;  %v17871_v28 = vld [vmem:[#allocation2 + $0x394] ss:$12 sps:$4 sm:$0xff]  }
 0x36b   :  { %v8310_v52 = vpop.f32.mrf.mxu0 }
 0x36c   :  { %v20048_v57 = vpop.f32.mrf.mxu1  ;;  %16979 = vmatmul.mubr.bf16.gmra.mxu1 %v17896_v37  ;;  %v17902_v37 = vld [vmem:[#allocation2 + $0x170] ss:$12 sps:$4 sm:$0xff]  }
 0x36d   :  { %21542 = vst [vmem:[#allocation152_spill] sm:$0xff] %v20048_v57  ;;  %v8311_v42 = vpop.f32.mrf.mxu0  ;;  %16982 = vmatprep.mubr.bf16.mxu1 %v17901_v58  ;;  %v17878_v57 = vld [vmem:[#allocation2 + $0x3ac] ss:$12 sps:$4 sm:$0xff]  }
 0x36e   :  { %v20050_v21 = vadd.f32 %v8311_v42, %v6599_v50  ;;  %v6356_v14 = vpop.f32.mrf.mxu1 }
 0x36f   :  { %v8313_v1 = vpop.f32.mrf.mxu0 }
 0x370   :  { %v20053_v25 = vpop.f32.mrf.mxu1  ;;  %v17960_v1 = vld [vmem:[#allocation8 + $0x220] sm:$0xff]  }
 0x371   :  { %21543 = vst [vmem:[#allocation153_spill] sm:$0xff] %v20053_v25  ;;  %v8316_v52 = vpop.f32.mrf.mxu0  ;;  %8507 = vmatmul.mubr.bf16.gmra.mxu0 %v17864_v39  ;;  %v17869_v25 = vld [vmem:[#allocation2 + $0x390] ss:$12 sps:$4 sm:$0xff]   ;;  %17088 = vmatprep.subr.bf16.mxu0 %v17960_v1 }
 0x372   :  { %v20056_v44 = vadd.f32 %v8316_v52, %v19601_v47  ;;  %8514 = vmatprep.mubr.bf16.mxu0 %v17871_v28  ;;  %v6359_v6 = vpop.f32.mrf.mxu1  ;;  %17089 = vmatpush3.bf16.msra.mxu0 %v17960_v1  ;;  %v17883_v1 = vld [vmem:[#allocation2 + $0x3c4] ss:$12 sps:$4 sm:$0xff]  }
 0x373   :  { %v8318_v8 = vpop.f32.mrf.mxu0  ;;  %v17907_v6 = vld [vmem:[#allocation2 + $0x1d0] ss:$12 sps:$4 sm:$0xff]  }
 0x374   :  { %v20058_v58 = vpop.f32.mrf.mxu1  ;;  %16983 = vmatmul.mubr.bf16.gmra.mxu1 %v17902_v37  ;;  %v17912_v37 = vld [vmem:[#allocation2 + $0x1e8] ss:$12 sps:$4 sm:$0xff]   ;;  %v6615_v8 = vadd.f32 %v19560_v36, %v19617_v26 }
 0x375   :  { %21544 = vst [vmem:[#allocation154_spill] sm:$0xff] %v20058_v58  ;;  %v8319_v14 = vpop.f32.mrf.mxu0  ;;  %16986 = vmatprep.mubr.bf16.mxu1 %v17906_v34  ;;  %v17962_v34 = vld [vmem:[#allocation8 + $0x1f0] sm:$0xff]  }
 0x376   :  { %v20061_v50 = vadd.f32 %v8319_v14, %v19606_v63  ;;  %v6364_v42 = vpop.f32.mrf.mxu1  ;;  %10793 = vmatpush2.bf16.msra.mxu1 %v17962_v34  ;;  %v17917_v34 = vld [vmem:[#allocation2 + $0x218] ss:$12 sps:$4 sm:$0xff]  }
 0x377   :  { %v8321_v39 = vpop.f32.mrf.mxu0  ;;  %10794 = vmatprep.subr.bf16.mxu1 %v19969_v45 }
 0x378   :  { %v20063_v24 = vpop.f32.mrf.mxu1 }
 0x379   :  { %21545 = vst [vmem:[#allocation155_spill] sm:$0xff] %v20063_v24  ;;  %v8324_v47 = vpop.f32.mrf.mxu0  ;;  %8515 = vmatmul.mubr.bf16.gmra.mxu0 %v17869_v25 }
 0x37a   :  { %v20066_v28 = vadd.f32 %v8324_v47, %v19611_v56  ;;  %8522 = vmatprep.mubr.bf16.mxu0 %v17878_v57  ;;  %v6367_v52 = vpop.f32.mrf.mxu1  ;;  %v17876_v57 = vld [vmem:[#allocation2 + $0x3a8] ss:$12 sps:$4 sm:$0xff]  }
 0x37b   :  { %v8326_v63 = vpop.f32.mrf.mxu0 }
 0x37c   :  { %v20070_v14 = vpop.f32.mrf.mxu1  ;;  %16987 = vmatmul.mubr.bf16.gmra.mxu1 %v17907_v6  ;;  %v17913_v6 = vld [vmem:[#allocation2 + $0x200] ss:$12 sps:$4 sm:$0xff]  }
 0x37d   :  { %21546 = vst [vmem:[#allocation156_spill] sm:$0xff] %v20070_v14  ;;  %v8327_v42 = vpop.f32.mrf.mxu0  ;;  %16990 = vmatprep.mubr.bf16.mxu1 %v17912_v37 }
 0x37e   :  { %v20072_v25 = vadd.f32 %v8327_v42, %v6615_v8  ;;  %v6372_v56 = vpop.f32.mrf.mxu1 }
 0x37f   :  { %v8329_v39 = vpop.f32.mrf.mxu0 }
 0x380   :  { %v20075_v47 = vpop.f32.mrf.mxu1  ;;  %v17881_v39 = vld [vmem:[#allocation2 + $0x3c0] ss:$12 sps:$4 sm:$0xff]  }
 0x381   :  { %21547 = vst [vmem:[#allocation157_spill] sm:$0xff] %v20075_v47  ;;  %v8332_v52 = vpop.f32.mrf.mxu0  ;;  %8523 = vmatmul.mubr.bf16.gmra.mxu0 %v17876_v57  ;;  %v17889_v57 = vld [vmem:[#allocation2 + $0x3dc] ss:$12 sps:$4 sm:$0xff]  }
 0x382   :  { %v20078_v36 = vadd.f32 %v8332_v52, %v19624_v15  ;;  %8530 = vmatprep.mubr.bf16.mxu0 %v17883_v1  ;;  %v6375_v26 = vpop.f32.mrf.mxu1 }
 0x383   :  { %v8334_v63 = vpop.f32.mrf.mxu0  ;;  %v17919_v26 = vld [vmem:[#allocation2 + $0x230] ss:$12 sps:$4 sm:$0xff]  }
 0x384   :  { %v20080_v37 = vpop.f32.mrf.mxu1  ;;  %16991 = vmatmul.mubr.bf16.gmra.mxu1 %v17913_v6  ;;  %v17973_v6 = vld [vmem:[#allocation8 + $0x1e8] sm:$0xff]  }
 0x385   :  { %21548 = vst [vmem:[#allocation158_spill] sm:$0xff] %v20080_v37  ;;  %v8335_v8 = vpop.f32.mrf.mxu0  ;;  %16994 = vmatprep.mubr.bf16.mxu1 %v17917_v34  ;;  %v17924_v34 = vld [vmem:[#allocation2 + $0x248] ss:$12 sps:$4 sm:$0xff]   ;;  %10795 = vmatpush2.bf16.msra.mxu1 %v17973_v6 }
 0x386   :  { %v20083_v42 = vadd.f32 %v8335_v8, %v19631_v17  ;;  %v6380_v56 = vpop.f32.mrf.mxu1  ;;  %10796 = vmatprep.subr.bf16.mxu1 %v19969_v45 }
 0x387   :  { %v8337_v47 = vpop.f32.mrf.mxu0 }
 0x388   :  { %v20085_v14 = vpop.f32.mrf.mxu1 }
 0x389   :  { %21549 = vst [vmem:[#allocation159_spill] sm:$0xff] %v20085_v14  ;;  %v8340_v15 = vpop.f32.mrf.mxu0  ;;  %8531 = vmatmul.mubr.bf16.gmra.mxu0 %v17881_v39  ;;  %v17894_v39 = vld [vmem:[#allocation2 + $0x3f4] ss:$12 sps:$4 sm:$0xff]  }
 0x38a   :  { %v20088_v1 = vadd.f32 %v8340_v15, %v19636_v10  ;;  %8538 = vmatprep.mubr.bf16.mxu0 %v17889_v57  ;;  %v6383_v52 = vpop.f32.mrf.mxu1  ;;  %v17887_v10 = vld [vmem:[#allocation2 + $0x3d8] ss:$12 sps:$4 sm:$0xff]  }
 0x38b   :  { %v8342_v63 = vpop.f32.mrf.mxu0 }
 0x38c   :  { %v20090_v37 = vpop.f32.mrf.mxu1  ;;  %16995 = vmatmul.mubr.bf16.gmra.mxu1 %v17919_v26  ;;  %v17925_v63 = vld [vmem:[#allocation2 + $0x260] ss:$12 sps:$4 sm:$0xff]  }
 0x38d   :  { %21550 = vst [vmem:[#allocation160_spill] sm:$0xff] %v20090_v37  ;;  %v8343_v17 = vpop.f32.mrf.mxu0  ;;  %16998 = vmatprep.mubr.bf16.mxu1 %v17924_v34  ;;  %v17929_v34 = vld [vmem:[#allocation2 + $0x278] ss:$12 sps:$4 sm:$0xff]  }
 0x38e   :  { %v20093_v47 = vadd.f32 %v8343_v17, %v19647_v23  ;;  %v6388_v8 = vpop.f32.mrf.mxu1 }
 0x38f   :  { %v8345_v56 = vpop.f32.mrf.mxu0 }
 0x390   :  { %v20096_v57 = vpop.f32.mrf.mxu1 }
 0x391   :  { %21551 = vst [vmem:[#allocation161_spill] sm:$0xff] %v20096_v57  ;;  %v8348_v15 = vpop.f32.mrf.mxu0  ;;  %8539 = vmatmul.mubr.bf16.gmra.mxu0 %v17887_v10  ;;  %v17892_v57 = vld [vmem:[#allocation2 + $0x3f0] ss:$12 sps:$4 sm:$0xff]   ;;  %v17900_v10 = vld [vmem:[#allocation2 + $0x40c] ss:$12 sps:$4 sm:$0xff]  }
 0x392   :  { %v20099_v52 = vadd.f32 %v8348_v15, %v19657_v43  ;;  %8546 = vmatprep.mubr.bf16.mxu0 %v17894_v39  ;;  %v6391_v26 = vpop.f32.mrf.mxu1 }
 0x393   :  { %v8350_v6 = vpop.f32.mrf.mxu0  ;;  %v17930_v26 = vld [vmem:[#allocation2 + $0x290] ss:$12 sps:$4 sm:$0xff]  }
 0x394   :  { %v20101_v23 = vpop.f32.mrf.mxu1  ;;  %16999 = vmatmul.mubr.bf16.gmra.mxu1 %v17925_v63  ;;  %v17984_v63 = vld [vmem:[#allocation8 + $0x1e0] sm:$0xff]  }
 0x395   :  { %21552 = vst [vmem:[#allocation162_spill] sm:$0xff] %v20101_v23  ;;  %v8351_v17 = vpop.f32.mrf.mxu0  ;;  %17002 = vmatprep.mubr.bf16.mxu1 %v17929_v34  ;;  %v17935_v34 = vld [vmem:[#allocation2 + $0x2a8] ss:$12 sps:$4 sm:$0xff]   ;;  %10797 = vmatpush2.bf16.msra.mxu1 %v17984_v63 }
 0x396   :  { %v20104_v8 = vadd.f32 %v8351_v17, %v19663_v60  ;;  %v6396_v56 = vpop.f32.mrf.mxu1  ;;  %10798 = vmatprep.subr.bf16.mxu1 %v19969_v45 }
 0x397   :  { %v8353_v37 = vpop.f32.mrf.mxu0  ;;  %v17905_v56 = vld [vmem:[#allocation2 + $0x424] ss:$12 sps:$4 sm:$0xff]  }
 0x398   :  { %v20106_v14 = vpop.f32.mrf.mxu1 }
 0x399   :  { %21553 = vst [vmem:[#allocation163_spill] sm:$0xff] %v20106_v14  ;;  %v8356_v43 = vpop.f32.mrf.mxu0  ;;  %8547 = vmatmul.mubr.bf16.gmra.mxu0 %v17892_v57 }
 0x39a   :  { %v20109_v39 = vadd.f32 %v8356_v43, %v19668_v22  ;;  %8554 = vmatprep.mubr.bf16.mxu0 %v17900_v10  ;;  %v6399_v15 = vpop.f32.mrf.mxu1  ;;  %v17898_v22 = vld [vmem:[#allocation2 + $0x408] ss:$12 sps:$4 sm:$0xff]  }
 0x39b   :  { %v8358_v6 = vpop.f32.mrf.mxu0 }
 0x39c   :  { %v20111_v23 = vpop.f32.mrf.mxu1  ;;  %17003 = vmatmul.mubr.bf16.gmra.mxu1 %v17930_v26  ;;  %v17936_v6 = vld [vmem:[#allocation2 + $0x2c0] ss:$12 sps:$4 sm:$0xff]  }
 0x39d   :  { %21554 = vst [vmem:[#allocation164_spill] sm:$0xff] %v20111_v23  ;;  %v8359_v60 = vpop.f32.mrf.mxu0  ;;  %17006 = vmatprep.mubr.bf16.mxu1 %v17935_v34  ;;  %v17940_v34 = vld [vmem:[#allocation2 + $0x2d8] ss:$12 sps:$4 sm:$0xff]  }
 0x39e   :  { %v20114_v37 = vadd.f32 %v8359_v60, %v19673_v31  ;;  %v6404_v17 = vpop.f32.mrf.mxu1 }
 0x39f   :  { %v8361_v57 = vpop.f32.mrf.mxu0 }
 0x3a0   :  { %v20117_v10 = vpop.f32.mrf.mxu1 }
 0x3a1   :  { %21555 = vst [vmem:[#allocation165_spill] sm:$0xff] %v20117_v10  ;;  %v8364_v43 = vpop.f32.mrf.mxu0  ;;  %8555 = vmatmul.mubr.bf16.gmra.mxu0 %v17898_v22  ;;  %v17903_v10 = vld [vmem:[#allocation2 + $0x420] ss:$12 sps:$4 sm:$0xff]   ;;  %v17911_v22 = vld [vmem:[#allocation2 + $0x43c] ss:$12 sps:$4 sm:$0xff]  }
 0x3a2   :  { %v20120_v15 = vadd.f32 %v8364_v43, %v19678_v13  ;;  %8562 = vmatprep.mubr.bf16.mxu0 %v17905_v56  ;;  %v6407_v26 = vpop.f32.mrf.mxu1 }
 0x3a3   :  { %v8366_v63 = vpop.f32.mrf.mxu0  ;;  %v17941_v26 = vld [vmem:[#allocation2 + $0x2f0] ss:$12 sps:$4 sm:$0xff]  }
 0x3a4   :  { %v20122_v31 = vpop.f32.mrf.mxu1  ;;  %17007 = vmatmul.mubr.bf16.gmra.mxu1 %v17936_v6  ;;  %v17995_v6 = vld [vmem:[#allocation8 + $0x1d8] sm:$0xff]  }
 0x3a5   :  { %21556 = vst [vmem:[#allocation166_spill] sm:$0xff] %v20122_v31  ;;  %v8367_v60 = vpop.f32.mrf.mxu0  ;;  %17010 = vmatprep.mubr.bf16.mxu1 %v17940_v34  ;;  %v17946_v34 = vld [vmem:[#allocation2 + $0x308] ss:$12 sps:$4 sm:$0xff]   ;;  %10799 = vmatpush2.bf16.msra.mxu1 %v17995_v6 }
 0x3a6   :  { %v20125_v17 = vadd.f32 %v8367_v60, %v19683_v20  ;;  %v6412_v57 = vpop.f32.mrf.mxu1  ;;  %10800 = vmatprep.subr.bf16.mxu1 %v19969_v45 }
 0x3a7   :  { %v8369_v23 = vpop.f32.mrf.mxu0  ;;  %v6668_v57 = vadd.f32 %v19594_v40, %v19695_v62 }
 0x3a8   :  { %v20127_v14 = vpop.f32.mrf.mxu1 }
 0x3a9   :  { %21557 = vst [vmem:[#allocation167_spill] sm:$0xff] %v20127_v14  ;;  %v8372_v13 = vpop.f32.mrf.mxu0  ;;  %8563 = vmatmul.mubr.bf16.gmra.mxu0 %v17903_v10 }
 0x3aa   :  { %v20130_v56 = vadd.f32 %v8372_v13, %v19688_v7  ;;  %8570 = vmatprep.mubr.bf16.mxu0 %v17911_v22  ;;  %v6415_v43 = vpop.f32.mrf.mxu1  ;;  %v17909_v7 = vld [vmem:[#allocation2 + $0x438] ss:$12 sps:$4 sm:$0xff]   ;;  %v17916_v22 = vld [vmem:[#allocation2 + $0x454] ss:$12 sps:$4 sm:$0xff]  }
 0x3ab   :  { %v8374_v63 = vpop.f32.mrf.mxu0 }
 0x3ac   :  { %v20132_v31 = vpop.f32.mrf.mxu1  ;;  %17011 = vmatmul.mubr.bf16.gmra.mxu1 %v17941_v26  ;;  %v17948_v26 = vld [vmem:[#allocation2 + $0x368] ss:$12 sps:$4 sm:$0xff]  }
 0x3ad   :  { %21558 = vst [vmem:[#allocation168_spill] sm:$0xff] %v20132_v31  ;;  %v8375_v20 = vpop.f32.mrf.mxu0  ;;  %17014 = vmatprep.mubr.bf16.mxu1 %v17946_v34 }
 0x3ae   :  { %v20135_v23 = vadd.f32 %v8375_v20, %v19693_v5  ;;  %v6420_v60 = vpop.f32.mrf.mxu1  ;;  %v17947_v5 = vld [vmem:[#allocation2 + $0x320] ss:$12 sps:$4 sm:$0xff]   ;;  %v21560_v20 = vld [vmem:[#allocation30_spill] sm:$0xff] }
 0x3af   :  { %v8377_v10 = vpop.f32.mrf.mxu0  ;;  %v21561_v60 = vld [vmem:[#allocation16_spill] sm:$0xff] }
 0x3b0   :  { %v20140_v13 = vpop.f32.mrf.mxu1  ;;  %v6671_v31 = vadd.f32 %v21561_v60, %v21560_v20  ;;  %v17954_v60 = vld [vmem:[#allocation2 + $0x398] ss:$12 sps:$4 sm:$0xff]  }
 0x3b1   :  { %21559 = vst [vmem:[#allocation169_spill] sm:$0xff] %v20140_v13  ;;  %v8380_v43 = vpop.f32.mrf.mxu0  ;;  %8571 = vmatmul.mubr.bf16.gmra.mxu0 %v17909_v7  ;;  %v18005_v13 = vld [vmem:[#allocation8 + $0x218] sm:$0xff]  }
 0x3b2   :  { %v20142_v63 = vadd.f32 %v8380_v43, %v6668_v57  ;;  %8578 = vmatprep.mubr.bf16.mxu0 %v17916_v22  ;;  %v6423_v6 = vpop.f32.mrf.mxu1  ;;  %v17914_v7 = vld [vmem:[#allocation2 + $0x450] ss:$12 sps:$4 sm:$0xff]   ;;  %v17923_v57 = vld [vmem:[#allocation2 + $0x46c] ss:$12 sps:$4 sm:$0xff]   ;;  %17090 = vmatprep.subr.bf16.mxu0 %v18005_v13 }
 0x3b3   :  { %v8382_v34 = vpop.f32.mrf.mxu0  ;;  %v21564_v6 = vld [vmem:[#allocation32_spill] sm:$0xff]  ;;  %17091 = vmatpush3.bf16.msra.mxu0 %v18005_v13 }
 0x3b4   :  { %v20146_v14 = vpop.f32.mrf.mxu1  ;;  %17015 = vmatmul.mubr.bf16.gmra.mxu1 %v17947_v5  ;;  %v17949_v5 = vld [vmem:[#allocation2 + $0x380] ss:$12 sps:$4 sm:$0xff]  }
 0x3b5   :  { %21562 = vst [vmem:[#allocation30_spill] sm:$0xff] %v20146_v14  ;;  %v8383_v10 = vpop.f32.mrf.mxu0  ;;  %17018 = vmatprep.mubr.bf16.mxu1 %v17948_v26  ;;  %v18007_v26 = vld [vmem:[#allocation8 + $0x1d0] sm:$0xff]  }
 0x3b6   :  { %v20148_v40 = vadd.f32 %v8383_v10, %v6671_v31  ;;  %v6428_v62 = vpop.f32.mrf.mxu1  ;;  %10801 = vmatpush2.bf16.msra.mxu1 %v18007_v26  ;;  %v17928_v14 = vld [vmem:[#allocation2 + $0x484] ss:$12 sps:$4 sm:$0xff]  }
 0x3b7   :  { %v8385_v24 = vpop.f32.mrf.mxu0  ;;  %v21567_v62 = vld [vmem:[#allocation34_spill] sm:$0xff]  ;;  %10802 = vmatprep.subr.bf16.mxu1 %v19969_v45 }
 0x3b8   :  { %v20150_v43 = vpop.f32.mrf.mxu1 }
 0x3b9   :  { %21563 = vst [vmem:[#allocation16_spill] sm:$0xff] %v20150_v43  ;;  %v8388_v22 = vpop.f32.mrf.mxu0  ;;  %8579 = vmatmul.mubr.bf16.gmra.mxu0 %v17914_v7 }
 0x3ba   :  { %v20153_v34 = vadd.f32 %v8388_v22, %v21564_v6  ;;  %8586 = vmatprep.mubr.bf16.mxu0 %v17923_v57  ;;  %v6431_v20 = vpop.f32.mrf.mxu1  ;;  %v17921_v22 = vld [vmem:[#allocation2 + $0x468] ss:$12 sps:$4 sm:$0xff]   ;;  %v21569_v6 = vld [vmem:[#allocation35_spill] sm:$0xff] }
 0x3bb   :  { %v8390_v31 = vpop.f32.mrf.mxu0  ;;  %v21570_v20 = vld [vmem:[#allocation17_spill] sm:$0xff] }
 0x3bc   :  { %21565 = vst [vmem:[#allocation32_spill] sm:$0xff] %v20153_v34  ;;  %v20155_v10 = vpop.f32.mrf.mxu1  ;;  %17019 = vmatmul.mubr.bf16.gmra.mxu1 %v17949_v5  ;;  %v6684_v13 = vadd.f32 %v21570_v20, %v21569_v6 }
 0x3bd   :  { %21566 = vst [vmem:[#allocation170_spill] sm:$0xff] %v20155_v10  ;;  %v8391_v24 = vpop.f32.mrf.mxu0  ;;  %17022 = vmatprep.mubr.bf16.mxu1 %v17954_v60  ;;  %v17955_v60 = vld [vmem:[#allocation2 + $0x3b0] ss:$12 sps:$4 sm:$0xff]  }
 0x3be   :  { %v20158_v43 = vadd.f32 %v8391_v24, %v21567_v62  ;;  %v6436_v7 = vpop.f32.mrf.mxu1  ;;  %v17959_v62 = vld [vmem:[#allocation2 + $0x3c8] ss:$12 sps:$4 sm:$0xff]  }
 0x3bf   :  { %v8393_v57 = vpop.f32.mrf.mxu0  ;;  %v21573_v7 = vld [vmem:[#allocation37_spill] sm:$0xff]  ;;  %v21574_v10 = vld [vmem:[#allocation18_spill] sm:$0xff] }
 0x3c0   :  { %21568 = vst [vmem:[#allocation34_spill] sm:$0xff] %v20158_v43  ;;  %v20163_v31 = vpop.f32.mrf.mxu1  ;;  %v6687_v11 = vadd.f32 %v21574_v10, %v21573_v7  ;;  %v18018_v7 = vld [vmem:[#allocation8 + $0x1c8] sm:$0xff]  }
 0x3c1   :  { %21571 = vst [vmem:[#allocation35_spill] sm:$0xff] %v20163_v31  ;;  %v8396_v58 = vpop.f32.mrf.mxu0  ;;  %8587 = vmatmul.mubr.bf16.gmra.mxu0 %v17921_v22  ;;  %v17926_v31 = vld [vmem:[#allocation2 + $0x480] ss:$12 sps:$4 sm:$0xff]   ;;  %10803 = vmatpush2.bf16.msra.mxu1 %v18018_v7 }
 0x3c2   :  { %v20165_v5 = vadd.f32 %v8396_v58, %v6684_v13  ;;  %8594 = vmatprep.mubr.bf16.mxu0 %v17928_v14  ;;  %v6439_v26 = vpop.f32.mrf.mxu1  ;;  %v21576_v58 = vld [vmem:[#allocation39_spill] sm:$0xff]  ;;  %v21577_v13 = vld [vmem:[#allocation20_spill] sm:$0xff]  ;;  %10804 = vmatprep.subr.bf16.mxu1 %v19969_v45 }
 0x3c3   :  { %v8398_v24 = vpop.f32.mrf.mxu0  ;;  %v6692_v14 = vadd.f32 %v21577_v13, %v21576_v58  ;;  %v17934_v26 = vld [vmem:[#allocation2 + $0x49c] ss:$12 sps:$4 sm:$0xff]  }
 0x3c4   :  { %21572 = vst [vmem:[#allocation17_spill] sm:$0xff] %v20165_v5  ;;  %v20169_v43 = vpop.f32.mrf.mxu1  ;;  %17023 = vmatmul.mubr.bf16.gmra.mxu1 %v17955_v60  ;;  %v17961_v60 = vld [vmem:[#allocation2 + $0x3e0] ss:$12 sps:$4 sm:$0xff]  }
 0x3c5   :  { %21575 = vst [vmem:[#allocation37_spill] sm:$0xff] %v20169_v43  ;;  %v8399_v57 = vpop.f32.mrf.mxu0  ;;  %17026 = vmatprep.mubr.bf16.mxu1 %v17959_v62 }
 0x3c6   :  { %v20171_v6 = vadd.f32 %v8399_v57, %v6687_v11  ;;  %v6444_v20 = vpop.f32.mrf.mxu1  ;;  %v17966_v11 = vld [vmem:[#allocation2 + $0x3f8] ss:$12 sps:$4 sm:$0xff]  }
 0x3c7   :  { %v8401_v22 = vpop.f32.mrf.mxu0 }
 0x3c8   :  { %v20175_v34 = vpop.f32.mrf.mxu1 }
 0x3c9   :  { %21578 = vst [vmem:[#allocation18_spill] sm:$0xff] %v20175_v34  ;;  %v8404_v24 = vpop.f32.mrf.mxu0  ;;  %8595 = vmatmul.mubr.bf16.gmra.mxu0 %v17926_v31  ;;  %v17932_v31 = vld [vmem:[#allocation2 + $0x498] ss:$12 sps:$4 sm:$0xff]  }
 0x3ca   :  { %v20177_v5 = vadd.f32 %v8404_v24, %v6692_v14  ;;  %8602 = vmatprep.mubr.bf16.mxu0 %v17934_v26  ;;  %v6447_v10 = vpop.f32.mrf.mxu1  ;;  %v21582_v14 = vld [vmem:[#allocation42_spill] sm:$0xff]  ;;  %v21583_v26 = vld [vmem:[#allocation19_spill] sm:$0xff] }
 0x3cb   :  { %v8406_v62 = vpop.f32.mrf.mxu0  ;;  %v6700_v24 = vadd.f32 %v21583_v26, %v21582_v14  ;;  %v17939_v10 = vld [vmem:[#allocation2 + $0x4b4] ss:$12 sps:$4 sm:$0xff]  }
 0x3cc   :  { %21579 = vst [vmem:[#allocation39_spill] sm:$0xff] %v20177_v5  ;;  %v20179_v57 = vpop.f32.mrf.mxu1  ;;  %17027 = vmatmul.mubr.bf16.gmra.mxu1 %v17961_v60 }
 0x3cd   :  { %21580 = vst [vmem:[#allocation20_spill] sm:$0xff] %v20179_v57  ;;  %v8407_v20 = vpop.f32.mrf.mxu0  ;;  %17030 = vmatprep.mubr.bf16.mxu1 %v17966_v11  ;;  %v17967_v11 = vld [vmem:[#allocation2 + $0x410] ss:$12 sps:$4 sm:$0xff]   ;;  %v21586_v57 = vld [vmem:[#allocation21_spill] sm:$0xff] }
 0x3ce   :  { %v20182_v22 = vadd.f32 %v8407_v20, %v19728_v59  ;;  %v6452_v58 = vpop.f32.mrf.mxu1  ;;  %v17971_v20 = vld [vmem:[#allocation2 + $0x428] ss:$12 sps:$4 sm:$0xff]  }
 0x3cf   :  { %v8409_v13 = vpop.f32.mrf.mxu0  ;;  %v21585_v58 = vld [vmem:[#allocation45_spill] sm:$0xff] }
 0x3d0   :  { %21581 = vst [vmem:[#allocation171_spill] sm:$0xff] %v20182_v22  ;;  %v20187_v62 = vpop.f32.mrf.mxu1  ;;  %v6703_v45 = vadd.f32 %v21586_v57, %v21585_v58  ;;  %v18029_v58 = vld [vmem:[#allocation8 + $0x1c0] sm:$0xff]  }
 0x3d1   :  { %21584 = vst [vmem:[#allocation42_spill] sm:$0xff] %v20187_v62  ;;  %v8412_v34 = vpop.f32.mrf.mxu0  ;;  %8603 = vmatmul.mubr.bf16.gmra.mxu0 %v17932_v31  ;;  %v17937_v62 = vld [vmem:[#allocation2 + $0x4b0] ss:$12 sps:$4 sm:$0xff]   ;;  %10805 = vmatpush2.bf16.msra.mxu1 %v18029_v58 }
 0x3d2   :  { %v20189_v60 = vadd.f32 %v8412_v34, %v6700_v24  ;;  %8610 = vmatprep.mubr.bf16.mxu0 %v17939_v10  ;;  %v6455_v7 = vpop.f32.mrf.mxu1  ;;  %v21588_v34 = vld [vmem:[#allocation48_spill] sm:$0xff]  ;;  %v21589_v24 = vld [vmem:[#allocation23_spill] sm:$0xff] }
 0x3d3   :  { %v8414_v59 = vpop.f32.mrf.mxu0  ;;  %v6708_v10 = vadd.f32 %v21589_v24, %v21588_v34  ;;  %v17945_v7 = vld [vmem:[#allocation2 + $0x4cc] ss:$12 sps:$4 sm:$0xff]   ;;  %v18034_v24 = vld [vmem:[#allocation8 + $0x210] sm:$0xff]  }
 0x3d4   :  { %v20193_v43 = vpop.f32.mrf.mxu1  ;;  %17031 = vmatmul.mubr.bf16.gmra.mxu1 %v17967_v11  ;;  %v17972_v11 = vld [vmem:[#allocation2 + $0x440] ss:$12 sps:$4 sm:$0xff]   ;;  %17092 = vmatprep.subr.bf16.mxu0 %v18034_v24  ;;  %v17978_v58 = vld [vmem:[#allocation2 + $0x470] ss:$12 sps:$4 sm:$0xff]  }
 0x3d5   :  { %21587 = vst [vmem:[#allocation19_spill] sm:$0xff] %v20193_v43  ;;  %v8415_v13 = vpop.f32.mrf.mxu0  ;;  %17034 = vmatprep.mubr.bf16.mxu1 %v17971_v20  ;;  %17093 = vmatpush3.bf16.msra.mxu0 %v18034_v24  ;;  %v21598_v24 = vld [vmem:[#allocation26_spill] sm:$0xff] }
 0x3d6   :  { %v20195_v14 = vadd.f32 %v8415_v13, %v6703_v45  ;;  %v6460_v26 = vpop.f32.mrf.mxu1  ;;  %v17977_v45 = vld [vmem:[#allocation2 + $0x458] ss:$12 sps:$4 sm:$0xff]  }
 0x3d7   :  { %v8417_v31 = vpop.f32.mrf.mxu0 }
 0x3d8   :  { %v20199_v22 = vpop.f32.mrf.mxu1 }
 0x3d9   :  { %21590 = vst [vmem:[#allocation45_spill] sm:$0xff] %v20199_v22  ;;  %v8420_v59 = vpop.f32.mrf.mxu0  ;;  %8611 = vmatmul.mubr.bf16.gmra.mxu0 %v17937_v62  ;;  %v17943_v62 = vld [vmem:[#allocation2 + $0x4c8] ss:$12 sps:$4 sm:$0xff]  }
 0x3da   :  { %v20201_v5 = vadd.f32 %v8420_v59, %v6708_v10  ;;  %8618 = vmatprep.mubr.bf16.mxu0 %v17945_v7  ;;  %v6463_v57 = vpop.f32.mrf.mxu1  ;;  %v21592_v7 = vld [vmem:[#allocation22_spill] sm:$0xff] }
 0x3db   :  { %v8422_v20 = vpop.f32.mrf.mxu0  ;;  %v6716_v59 = vadd.f32 %v21592_v7, %v19758_v3 }
 0x3dc   :  { %v20203_v13 = vpop.f32.mrf.mxu1  ;;  %17035 = vmatmul.mubr.bf16.gmra.mxu1 %v17972_v11 }
 0x3dd   :  { %21591 = vst [vmem:[#allocation21_spill] sm:$0xff] %v20203_v13  ;;  %v8423_v26 = vpop.f32.mrf.mxu0  ;;  %17038 = vmatprep.mubr.bf16.mxu1 %v17977_v45 }
 0x3de   :  { %v20206_v31 = vadd.f32 %v8423_v26, %v19754_v55  ;;  %v6468_v34 = vpop.f32.mrf.mxu1  ;;  %v18036_v55 = vld [vmem:[#allocation8 + $0x208] sm:$0xff]  }
 0x3df   :  { %v8425_v10 = vpop.f32.mrf.mxu0  ;;  %v17982_v26 = vld [vmem:[#allocation2 + $0x488] ss:$12 sps:$4 sm:$0xff]   ;;  %v21594_v34 = vld [vmem:[#allocation55_spill] sm:$0xff]  ;;  %17094 = vmatprep.subr.bf16.mxu0 %v18036_v55 }
 0x3e0   :  { %v20210_v57 = vpop.f32.mrf.mxu1  ;;  %v21595_v10 = vld [vmem:[#allocation24_spill] sm:$0xff]  ;;  %17095 = vmatpush3.bf16.msra.mxu0 %v18036_v55 }
 0x3e1   :  { %21593 = vst [vmem:[#allocation48_spill] sm:$0xff] %v20210_v57  ;;  %v8428_v20 = vpop.f32.mrf.mxu0  ;;  %8619 = vmatmul.mubr.bf16.gmra.mxu0 %v17943_v62  ;;  %v6719_v22 = vadd.f32 %v21595_v10, %v21594_v34  ;;  %v17988_v55 = vld [vmem:[#allocation2 + $0x4b8] ss:$12 sps:$4 sm:$0xff]  }
 0x3e2   :  { %v20212_v13 = vadd.f32 %v8428_v20, %v6716_v59  ;;  %8626 = vmatprep.mubr.bf16.mxu0 %v20022_v46  ;;  %v6471_v11 = vpop.f32.mrf.mxu1  ;;  %v18041_v46 = vld [vmem:[#allocation8 + $0x200] sm:$0xff]   ;;  %v21597_v20 = vld [vmem:[#allocation58_spill] sm:$0xff] }
 0x3e3   :  { %v8430_v45 = vpop.f32.mrf.mxu0  ;;  %v6724_v11 = vadd.f32 %v21598_v24, %v21597_v20  ;;  %17096 = vmatprep.subr.bf16.mxu0 %v18041_v46  ;;  %v17951_v24 = vld [vmem:[#allocation2 + $0x528] ss:$12 sps:$4 sm:$0xff]  }
 0x3e4   :  { %v20217_v43 = vpop.f32.mrf.mxu1  ;;  %17039 = vmatmul.mubr.bf16.gmra.mxu1 %v17978_v58  ;;  %v17953_v45 = vld [vmem:[#allocation2 + $0x52c] ss:$12 sps:$4 sm:$0xff]   ;;  %17097 = vmatpush3.bf16.msra.mxu0 %v18041_v46 }
 0x3e5   :  { %21596 = vst [vmem:[#allocation23_spill] sm:$0xff] %v20217_v43  ;;  %v8431_v3 = vpop.f32.mrf.mxu0  ;;  %17042 = vmatprep.mubr.bf16.mxu1 %v17982_v26 }
 0x3e6   :  { %v20219_v62 = vadd.f32 %v8431_v3, %v6719_v22  ;;  %v6476_v7 = vpop.f32.mrf.mxu1  ;;  %v17983_v22 = vld [vmem:[#allocation2 + $0x4a0] ss:$12 sps:$4 sm:$0xff]  }
 0x3e7   :  { %v8433_v59 = vpop.f32.mrf.mxu0 }
 0x3e8   :  { %v20223_v57 = vpop.f32.mrf.mxu1 }
 0x3e9   :  { %21599 = vst [vmem:[#allocation22_spill] sm:$0xff] %v20223_v57  ;;  %v8436_v34 = vpop.f32.mrf.mxu0  ;;  %8627 = vmatmul.mubr.bf16.gmra.mxu0 %v20035_v41  ;;  %v21603_v41 = vld [vmem:[#allocation63_spill] sm:$0xff] }
 0x3ea   :  { %v20226_v58 = vadd.f32 %v8436_v34, %v6724_v11  ;;  %8634 = vmatprep.mubr.bf16.mxu0 %v17953_v45  ;;  %v6479_v26 = vpop.f32.mrf.mxu1  ;;  %v21604_v11 = vld [vmem:[#allocation25_spill] sm:$0xff]  ;;  %v17958_v45 = vld [vmem:[#allocation2 + $0x544] ss:$12 sps:$4 sm:$0xff]  }
 0x3eb   :  { %v8438_v10 = vpop.f32.mrf.mxu0  ;;  %v6732_v34 = vadd.f32 %v21604_v11, %v21603_v41 }
 0x3ec   :  { %21600 = vst [vmem:[#allocation55_spill] sm:$0xff] %v20226_v58  ;;  %v20228_v3 = vpop.f32.mrf.mxu1  ;;  %17043 = vmatmul.mubr.bf16.gmra.mxu1 %v17983_v22  ;;  %v17993_v10 = vld [vmem:[#allocation2 + $0x518] ss:$12 sps:$4 sm:$0xff]   ;;  %v21609_v58 = vld [vmem:[#allocation69_spill] sm:$0xff] }
 0x3ed   :  { %21601 = vst [vmem:[#allocation24_spill] sm:$0xff] %v20228_v3  ;;  %v8439_v7 = vpop.f32.mrf.mxu0  ;;  %17046 = vmatprep.mubr.bf16.mxu1 %v17988_v55  ;;  %v17989_v55 = vld [vmem:[#allocation2 + $0x4d0] ss:$12 sps:$4 sm:$0xff]  }
 0x3ee   :  { %v20231_v59 = vadd.f32 %v8439_v7, %v19779_v35  ;;  %v6484_v20 = vpop.f32.mrf.mxu1  ;;  %v21607_v35 = vld [vmem:[#allocation66_spill] sm:$0xff]  ;;  %v21608_v7 = vld [vmem:[#allocation27_spill] sm:$0xff] }
 0x3ef   :  { %v8441_v57 = vpop.f32.mrf.mxu0  ;;  %v6735_v20 = vadd.f32 %v21608_v7, %v21607_v35 }
 0x3f0   :  { %21602 = vst [vmem:[#allocation58_spill] sm:$0xff] %v20231_v59  ;;  %v20235_v26 = vpop.f32.mrf.mxu1 }
 0x3f1   :  { %21605 = vst [vmem:[#allocation26_spill] sm:$0xff] %v20235_v26  ;;  %v8444_v46 = vpop.f32.mrf.mxu0  ;;  %8635 = vmatmul.mubr.bf16.gmra.mxu0 %v17951_v24  ;;  %v17956_v26 = vld [vmem:[#allocation2 + $0x540] ss:$12 sps:$4 sm:$0xff]  }
 0x3f2   :  { %v20237_v43 = vadd.f32 %v8444_v46, %v6732_v34  ;;  %8642 = vmatprep.mubr.bf16.mxu0 %v17958_v45  ;;  %v6487_v22 = vpop.f32.mrf.mxu1  ;;  %v21610_v34 = vld [vmem:[#allocation29_spill] sm:$0xff] }
 0x3f3   :  { %v8446_v3 = vpop.f32.mrf.mxu0  ;;  %v6740_v46 = vadd.f32 %v21610_v34, %v21609_v58  ;;  %v17965_v45 = vld [vmem:[#allocation2 + $0x55c] ss:$12 sps:$4 sm:$0xff]   ;;  %v17963_v34 = vld [vmem:[#allocation2 + $0x558] ss:$12 sps:$4 sm:$0xff]  }
 0x3f4   :  { %21606 = vst [vmem:[#allocation63_spill] sm:$0xff] %v20237_v43  ;;  %v20241_v59 = vpop.f32.mrf.mxu1  ;;  %17047 = vmatmul.mubr.bf16.gmra.mxu1 %v17989_v55  ;;  %v17994_v55 = vld [vmem:[#allocation2 + $0x530] ss:$12 sps:$4 sm:$0xff]  }
 0x3f5   :  { %v8447_v57 = vpop.f32.mrf.mxu0  ;;  %17050 = vmatprep.mubr.bf16.mxu1 %v17993_v10  ;;  %v17999_v10 = vld [vmem:[#allocation2 + $0x548] ss:$12 sps:$4 sm:$0xff]  }
 0x3f6   :  { %v20243_v41 = vadd.f32 %v8447_v57, %v6735_v20  ;;  %v6492_v11 = vpop.f32.mrf.mxu1 }
 0x3f7   :  { %v8449_v24 = vpop.f32.mrf.mxu0 }
 0x3f8   :  { %v20247_v22 = vpop.f32.mrf.mxu1 }
 0x3f9   :  { %21611 = vst [vmem:[#allocation25_spill] sm:$0xff] %v20247_v22  ;;  %v8452_v3 = vpop.f32.mrf.mxu0  ;;  %8643 = vmatmul.mubr.bf16.gmra.mxu0 %v17956_v26 }
 0x3fa   :  { %v20249_v43 = vadd.f32 %v8452_v3, %v6740_v46  ;;  %8650 = vmatprep.mubr.bf16.mxu0 %v17965_v45  ;;  %v6495_v35 = vpop.f32.mrf.mxu1  ;;  %v21614_v45 = vld [vmem:[#allocation74_spill] sm:$0xff]  ;;  %v21615_v3 = vld [vmem:[#allocation28_spill] sm:$0xff] }
 0x3fb   :  { %v8454_v7 = vpop.f32.mrf.mxu0  ;;  %v6748_v35 = vadd.f32 %v21615_v3, %v21614_v45 }
 0x3fc   :  { %v16956_v20 = vpop.f32.mrf.mxu1  ;;  %17051 = vmatmul.mubr.bf16.gmra.mxu1 %v17994_v55  ;;  %v17970_v7 = vld [vmem:[#allocation2 + $0x574] ss:$12 sps:$4 sm:$0xff]  }
 0x3fd   :  { %v8455_v57 = vpop.f32.mrf.mxu0  ;;  %v20252_v11 = vadd.f32 %v16956_v20, %v19951_v29  ;;  %17054 = vmatprep.mubr.bf16.mxu1 %v17999_v10  ;;  %v18000_v20 = vld [vmem:[#allocation2 + $0x560] ss:$12 sps:$4 sm:$0xff]  }
 0x3fe   :  { %v20255_v58 = vadd.f32 %v8455_v57, %v19804_v33  ;;  %v8789_v24 = vpop.f32.mrf.mxu1 }
 0x3ff   :  { %21612 = vst [vmem:[#allocation66_spill] sm:$0xff] %v20252_v11  ;;  %v8457_v26 = vpop.f32.mrf.mxu0  ;;  %v20258_v46 = vadd.f32 %v8789_v24, %v19940_v61  ;;  %v18004_v61 = vld [vmem:[#allocation2 + $0x578] ss:$12 sps:$4 sm:$0xff]   ;;  %v21616_v24 = vld [vmem:[#allocation77_spill] sm:$0xff] }
 0x400   :  { %v16957_v22 = vpop.f32.mrf.mxu1 }
 0x401   :  { %21613 = vst [vmem:[#allocation27_spill] sm:$0xff] %v20258_v46  ;;  %v8460_v55 = vpop.f32.mrf.mxu0  ;;  %8651 = vmatmul.mubr.bf16.gmra.mxu0 %v17963_v34  ;;  %v20263_v29 = vadd.f32 %v16957_v22, %v19956_v38  ;;  %v21617_v46 = vld [vmem:[#allocation31_spill] sm:$0xff] }
 0x402   :  { %v20265_v10 = vadd.f32 %v8460_v55, %v6748_v35  ;;  %8658 = vmatprep.mubr.bf16.mxu0 %v17970_v7  ;;  %v8792_v33 = vpop.f32.mrf.mxu1  ;;  %v6751_v45 = vadd.f32 %v21617_v46, %v21616_v24  ;;  %v17968_v35 = vld [vmem:[#allocation2 + $0x570] ss:$12 sps:$4 sm:$0xff]  }
 0x403   :  { %v8462_v57 = vpop.f32.mrf.mxu0  ;;  %v20268_v26 = vadd.f32 %v8792_v33, %v19946_v54  ;;  %v21618_v54 = vld [vmem:[#allocation36_spill] sm:$0xff] }
 0x404   :  { %v16960_v3 = vpop.f32.mrf.mxu1  ;;  %17055 = vmatmul.mubr.bf16.gmra.mxu1 %v18000_v20  ;;  %v6756_v33 = vadd.f32 %v21618_v54, %v19820_v49  ;;  %v17976_v57 = vld [vmem:[#allocation2 + $0x58c] ss:$12 sps:$4 sm:$0xff]   ;;  %v17974_v54 = vld [vmem:[#allocation2 + $0x588] ss:$12 sps:$4 sm:$0xff]  }
 0x405   :  { %v8463_v11 = vpop.f32.mrf.mxu0  ;;  %v20273_v34 = vadd.f32 %v16960_v3, %v19975_v48  ;;  %17058 = vmatprep.mubr.bf16.mxu1 %v18004_v61  ;;  %v18006_v61 = vld [vmem:[#allocation2 + $0x590] ss:$12 sps:$4 sm:$0xff]  }
 0x406   :  { %v20275_v38 = vadd.f32 %v8463_v11, %v6751_v45  ;;  %v8805_v22 = vpop.f32.mrf.mxu1 }
 0x407   :  { %v8465_v7 = vpop.f32.mrf.mxu0  ;;  %v20278_v55 = vadd.f32 %v8805_v22, %v19961_v32  ;;  %v18011_v32 = vld [vmem:[#allocation2 + $0x5a8] ss:$12 sps:$4 sm:$0xff]  }
 0x408   :  { %v16961_v46 = vpop.f32.mrf.mxu1 }
 0x409   :  { %v8468_v24 = vpop.f32.mrf.mxu0  ;;  %8659 = vmatmul.mubr.bf16.gmra.mxu0 %v17968_v35  ;;  %v20283_v20 = vadd.f32 %v16961_v46, %v19981_v2  ;;  %v21621_v46 = vld [vmem:[#allocation84_spill] sm:$0xff] }
 0x40a   :  { %v20285_v48 = vadd.f32 %v8468_v24, %v6756_v33  ;;  %8666 = vmatprep.mubr.bf16.mxu0 %v17976_v57  ;;  %v8808_v11 = vpop.f32.mrf.mxu1 }
 0x40b   :  { %v8470_v45 = vpop.f32.mrf.mxu0  ;;  %v20288_v3 = vadd.f32 %v8808_v11, %v19967_v27  ;;  %v21622_v27 = vld [vmem:[#allocation33_spill] sm:$0xff]  ;;  %v17981_v11 = vld [vmem:[#allocation2 + $0x5a4] ss:$12 sps:$4 sm:$0xff]  }
 0x40c   :  { %v16964_v22 = vpop.f32.mrf.mxu1  ;;  %17059 = vmatmul.mubr.bf16.gmra.mxu1 %v18006_v61  ;;  %v6764_v24 = vadd.f32 %v21622_v27, %v21621_v46 }
 0x40d   :  { %v8471_v49 = vpop.f32.mrf.mxu0  ;;  %v20291_v7 = vadd.f32 %v16964_v22, %v20000_v51  ;;  %17062 = vmatprep.mubr.bf16.mxu1 %v18011_v32  ;;  %v18012_v22 = vld [vmem:[#allocation2 + $0x5c0] ss:$12 sps:$4 sm:$0xff]  }
 0x40e   :  { %v20294_v2 = vadd.f32 %v8471_v49, %v19829_v53  ;;  %v8821_v35 = vpop.f32.mrf.mxu1 }
 0x40f   :  { %21619 = vst [vmem:[#allocation69_spill] sm:$0xff] %v20291_v7  ;;  %v8473_v33 = vpop.f32.mrf.mxu0  ;;  %v20297_v57 = vadd.f32 %v8821_v35, %v19987_v4  ;;  %v18016_v4 = vld [vmem:[#allocation2 + $0x5d8] ss:$12 sps:$4 sm:$0xff]  }
 0x410   :  { %v16965_v45 = vpop.f32.mrf.mxu1  ;;  %v21624_v35 = vld [vmem:[#allocation87_spill] sm:$0xff] }
 0x411   :  { %21620 = vst [vmem:[#allocation29_spill] sm:$0xff] %v20297_v57  ;;  %v8476_v61 = vpop.f32.mrf.mxu0  ;;  %8667 = vmatmul.mubr.bf16.gmra.mxu0 %v17974_v54  ;;  %v20302_v51 = vadd.f32 %v16965_v45, %v20006_v12  ;;  %v21625_v57 = vld [vmem:[#allocation38_spill] sm:$0xff] }
 0x412   :  { %v20304_v32 = vadd.f32 %v8476_v61, %v6764_v24  ;;  %8674 = vmatprep.mubr.bf16.mxu0 %v17981_v11  ;;  %v8824_v53 = vpop.f32.mrf.mxu1  ;;  %v6767_v46 = vadd.f32 %v21625_v57, %v21624_v35  ;;  %v17979_v11 = vld [vmem:[#allocation2 + $0x5a0] ss:$12 sps:$4 sm:$0xff]  }
 0x413   :  { %v8478_v49 = vpop.f32.mrf.mxu0  ;;  %v20307_v33 = vadd.f32 %v8824_v53, %v19994_v9  ;;  %v21627_v9 = vld [vmem:[#allocation90_spill] sm:$0xff]  ;;  %v21628_v53 = vld [vmem:[#allocation41_spill] sm:$0xff] }
 0x414   :  { %v16968_v27 = vpop.f32.mrf.mxu1  ;;  %17063 = vmatmul.mubr.bf16.gmra.mxu1 %v18012_v22  ;;  %v6772_v49 = vadd.f32 %v21628_v53, %v21627_v9 }
 0x415   :  { %21623 = vst [vmem:[#allocation74_spill] sm:$0xff] %v20307_v33  ;;  %v8479_v7 = vpop.f32.mrf.mxu0  ;;  %v20312_v54 = vadd.f32 %v16968_v27, %v20028_v0  ;;  %17066 = vmatprep.mubr.bf16.mxu1 %v18016_v4  ;;  %v17987_v33 = vld [vmem:[#allocation2 + $0x5bc] ss:$12 sps:$4 sm:$0xff]  }
 0x416   :  { %v20314_v12 = vadd.f32 %v8479_v7, %v6767_v46  ;;  %v8837_v24 = vpop.f32.mrf.mxu1  ;;  %v18017_v4 = vld [vmem:[#allocation2 + $0x5f0] ss:$12 sps:$4 sm:$0xff]  }
 0x417   :  { %v8481_v45 = vpop.f32.mrf.mxu0  ;;  %v20317_v61 = vadd.f32 %v8837_v24, %v20012_v18  ;;  %v18022_v18 = vld [vmem:[#allocation2 + $0x608] ss:$12 sps:$4 sm:$0xff]  }
 0x418   :  { %v16969_v57 = vpop.f32.mrf.mxu1  ;;  %v21630_v24 = vld [vmem:[#allocation93_spill] sm:$0xff]  ;;  %v21631_v45 = vld [vmem:[#allocation44_spill] sm:$0xff] }
 0x419   :  { %21626 = vst [vmem:[#allocation28_spill] sm:$0xff] %v20317_v61  ;;  %v8484_v35 = vpop.f32.mrf.mxu0  ;;  %8675 = vmatmul.mubr.bf16.gmra.mxu0 %v17979_v11  ;;  %v20322_v22 = vadd.f32 %v16969_v57, %v20038_v30  ;;  %v6775_v9 = vadd.f32 %v21631_v45, %v21630_v24 }
 0x41a   :  { %v20324_v0 = vadd.f32 %v8484_v35, %v6772_v49  ;;  %8682 = vmatprep.mubr.bf16.mxu0 %v17987_v33  ;;  %v8840_v7 = vpop.f32.mrf.mxu1  ;;  %v17985_v49 = vld [vmem:[#allocation2 + $0x5b8] ss:$12 sps:$4 sm:$0xff]  }
 0x41b   :  { %v8486_v46 = vpop.f32.mrf.mxu0  ;;  %v20327_v27 = vadd.f32 %v8840_v7, %v20018_v19  ;;  %v21633_v19 = vld [vmem:[#allocation96_spill] sm:$0xff] }
 0x41c   :  { %v16972_v53 = vpop.f32.mrf.mxu1  ;;  %17067 = vmatmul.mubr.bf16.gmra.mxu1 %v18017_v4  ;;  %v21634_v7 = vld [vmem:[#allocation40_spill] sm:$0xff] }
 0x41d   :  { %21629 = vst [vmem:[#allocation77_spill] sm:$0xff] %v20327_v27  ;;  %v8487_v61 = vpop.f32.mrf.mxu0  ;;  %v20332_v11 = vadd.f32 %v16972_v53, %v20056_v44  ;;  %17070 = vmatprep.mubr.bf16.mxu1 %v18022_v18  ;;  %v6780_v46 = vadd.f32 %v21634_v7, %v21633_v19  ;;  %v17992_v27 = vld [vmem:[#allocation2 + $0x5d4] ss:$12 sps:$4 sm:$0xff]  }
 0x41e   :  { %v20334_v30 = vadd.f32 %v8487_v61, %v6775_v9  ;;  %v8853_v33 = vpop.f32.mrf.mxu1  ;;  %v18023_v18 = vld [vmem:[#allocation2 + $0x620] ss:$12 sps:$4 sm:$0xff]  }
 0x41f   :  { %v8489_v57 = vpop.f32.mrf.mxu0  ;;  %v20337_v35 = vadd.f32 %v8853_v33, %v20044_v16  ;;  %v18027_v16 = vld [vmem:[#allocation2 + $0x638] ss:$12 sps:$4 sm:$0xff]  }
 0x420   :  { %v16973_v24 = vpop.f32.mrf.mxu1  ;;  %v21636_v33 = vld [vmem:[#allocation99_spill] sm:$0xff] }
 0x421   :  { %21632 = vst [vmem:[#allocation31_spill] sm:$0xff] %v20337_v35  ;;  %v8492_v45 = vpop.f32.mrf.mxu0  ;;  %8683 = vmatmul.mubr.bf16.gmra.mxu0 %v17985_v49  ;;  %v20342_v4 = vadd.f32 %v16973_v24, %v20061_v50  ;;  %v21637_v57 = vld [vmem:[#allocation43_spill] sm:$0xff] }
 0x422   :  { %v20344_v44 = vadd.f32 %v8492_v45, %v6780_v46  ;;  %8690 = vmatprep.mubr.bf16.mxu0 %v17992_v27  ;;  %v8856_v61 = vpop.f32.mrf.mxu1  ;;  %v6783_v19 = vadd.f32 %v21637_v57, %v21636_v33  ;;  %v17990_v46 = vld [vmem:[#allocation2 + $0x5d0] ss:$12 sps:$4 sm:$0xff]  }
 0x423   :  { %v8494_v9 = vpop.f32.mrf.mxu0  ;;  %v20347_v53 = vadd.f32 %v8856_v61, %v20050_v21  ;;  %v21639_v21 = vld [vmem:[#allocation102_spill] sm:$0xff]  ;;  %v21640_v61 = vld [vmem:[#allocation47_spill] sm:$0xff] }
 0x424   :  { %v16976_v7 = vpop.f32.mrf.mxu1  ;;  %17071 = vmatmul.mubr.bf16.gmra.mxu1 %v18023_v18  ;;  %v6788_v9 = vadd.f32 %v21640_v61, %v21639_v21 }
 0x425   :  { %21635 = vst [vmem:[#allocation36_spill] sm:$0xff] %v20347_v53  ;;  %v8495_v35 = vpop.f32.mrf.mxu0  ;;  %v20352_v49 = vadd.f32 %v16976_v7, %v20078_v36  ;;  %17074 = vmatprep.mubr.bf16.mxu1 %v18027_v16  ;;  %v17998_v53 = vld [vmem:[#allocation2 + $0x5ec] ss:$12 sps:$4 sm:$0xff]   ;;  %v18028_v16 = vld [vmem:[#allocation2 + $0x650] ss:$12 sps:$4 sm:$0xff]  }
 0x426   :  { %v20354_v50 = vadd.f32 %v8495_v35, %v6783_v19  ;;  %v8869_v27 = vpop.f32.mrf.mxu1 }
 0x427   :  { %21638 = vst [vmem:[#allocation84_spill] sm:$0xff] %v20352_v49  ;;  %v8497_v24 = vpop.f32.mrf.mxu0  ;;  %v20357_v45 = vadd.f32 %v8869_v27, %v20066_v28  ;;  %v18033_v28 = vld [vmem:[#allocation2 + $0x668] ss:$12 sps:$4 sm:$0xff]  }
 0x428   :  { %v16977_v33 = vpop.f32.mrf.mxu1  ;;  %v21642_v27 = vld [vmem:[#allocation105_spill] sm:$0xff]  ;;  %v21643_v24 = vld [vmem:[#allocation50_spill] sm:$0xff] }
 0x429   :  { %v8500_v57 = vpop.f32.mrf.mxu0  ;;  %8691 = vmatmul.mubr.bf16.gmra.mxu0 %v17990_v46  ;;  %v20362_v18 = vadd.f32 %v16977_v33, %v20083_v42  ;;  %v6791_v21 = vadd.f32 %v21643_v24, %v21642_v27 }
 0x42a   :  { %v20364_v36 = vadd.f32 %v8500_v57, %v6788_v9  ;;  %8698 = vmatprep.mubr.bf16.mxu0 %v17998_v53  ;;  %v8872_v35 = vpop.f32.mrf.mxu1  ;;  %v17996_v9 = vld [vmem:[#allocation2 + $0x5e8] ss:$12 sps:$4 sm:$0xff]  }
 0x42b   :  { %21641 = vst [vmem:[#allocation33_spill] sm:$0xff] %v20362_v18  ;;  %v8502_v19 = vpop.f32.mrf.mxu0  ;;  %v20367_v7 = vadd.f32 %v8872_v35, %v20072_v25  ;;  %v21645_v25 = vld [vmem:[#allocation108_spill] sm:$0xff]  ;;  %v21646_v35 = vld [vmem:[#allocation46_spill] sm:$0xff] }
 0x42c   :  { %v16980_v61 = vpop.f32.mrf.mxu1  ;;  %17075 = vmatmul.mubr.bf16.gmra.mxu1 %v18028_v16  ;;  %v6796_v19 = vadd.f32 %v21646_v35, %v21645_v25  ;;  %v18003_v18 = vld [vmem:[#allocation2 + $0x604] ss:$12 sps:$4 sm:$0xff]  }
 0x42d   :  { %v8503_v49 = vpop.f32.mrf.mxu0  ;;  %v20372_v46 = vadd.f32 %v16980_v61, %v20099_v52  ;;  %17078 = vmatprep.mubr.bf16.mxu1 %v18033_v28  ;;  %v18035_v28 = vld [vmem:[#allocation2 + $0x680] ss:$12 sps:$4 sm:$0xff]  }
 0x42e   :  { %v20374_v42 = vadd.f32 %v8503_v49, %v6791_v21  ;;  %v8885_v53 = vpop.f32.mrf.mxu1 }
 0x42f   :  { %21644 = vst [vmem:[#allocation87_spill] sm:$0xff] %v20372_v46  ;;  %v8505_v33 = vpop.f32.mrf.mxu0  ;;  %v20377_v57 = vadd.f32 %v8885_v53, %v20088_v1  ;;  %v18039_v1 = vld [vmem:[#allocation2 + $0x34] ss:$12 sps:$4 sm:$0xff]   ;;  %v21648_v53 = vld [vmem:[#allocation111_spill] sm:$0xff] }
 0x430   :  { %v16981_v27 = vpop.f32.mrf.mxu1  ;;  %v21649_v33 = vld [vmem:[#allocation49_spill] sm:$0xff] }
 0x431   :  { %v8508_v24 = vpop.f32.mrf.mxu0  ;;  %8699 = vmatmul.mubr.bf16.gmra.mxu0 %v17996_v9  ;;  %v20382_v16 = vadd.f32 %v16981_v27, %v20104_v8  ;;  %v6799_v25 = vadd.f32 %v21649_v33, %v21648_v53 }
 0x432   :  { %v20384_v52 = vadd.f32 %v8508_v24, %v6796_v19  ;;  %8706 = vmatprep.mubr.bf16.mxu0 %v18003_v18  ;;  %v8888_v49 = vpop.f32.mrf.mxu1  ;;  %v18001_v19 = vld [vmem:[#allocation2 + $0x600] ss:$12 sps:$4 sm:$0xff]  }
 0x433   :  { %21647 = vst [vmem:[#allocation38_spill] sm:$0xff] %v20382_v16  ;;  %v8510_v21 = vpop.f32.mrf.mxu0  ;;  %v20387_v61 = vadd.f32 %v8888_v49, %v20093_v47  ;;  %v21651_v47 = vld [vmem:[#allocation114_spill] sm:$0xff]  ;;  %v21652_v49 = vld [vmem:[#allocation52_spill] sm:$0xff]  ;;  %v18010_v16 = vld [vmem:[#allocation2 + $0x61c] ss:$12 sps:$4 sm:$0xff]  }
 0x434   :  { %v16984_v35 = vpop.f32.mrf.mxu1  ;;  %17079 = vmatmul.mubr.bf16.gmra.mxu1 %v18035_v28  ;;  %v6804_v21 = vadd.f32 %v21652_v49, %v21651_v47 }
 0x435   :  { %v8511_v46 = vpop.f32.mrf.mxu0  ;;  %v20392_v9 = vadd.f32 %v16984_v35, %v20120_v15  ;;  %10806 = vmatprep.mubr.bf16.mxu1 %v18039_v1 }
 0x436   :  { %v20394_v8 = vadd.f32 %v8511_v46, %v6799_v25  ;;  %v8901_v18 = vpop.f32.mrf.mxu1  ;;  %v18037_v46 = vld [vmem:[#allocation2 + $0x30] ss:$12 sps:$4 sm:$0xff]  }
 0x437   :  { %21650 = vst [vmem:[#allocation90_spill] sm:$0xff] %v20392_v9  ;;  %v8513_v27 = vpop.f32.mrf.mxu0  ;;  %v20397_v24 = vadd.f32 %v8901_v18, %v20109_v39  ;;  %v18045_v39 = vld [vmem:[#allocation2 + $0x4c] ss:$12 sps:$4 sm:$0xff]  }
 0x438   :  { %v16985_v53 = vpop.f32.mrf.mxu1  ;;  %v21654_v18 = vld [vmem:[#allocation117_spill] sm:$0xff]  ;;  %v21655_v27 = vld [vmem:[#allocation54_spill] sm:$0xff] }
 0x439   :  { %v8516_v33 = vpop.f32.mrf.mxu0  ;;  %8707 = vmatmul.mubr.bf16.gmra.mxu0 %v18001_v19  ;;  %v20402_v28 = vadd.f32 %v16985_v53, %v20125_v17  ;;  %v6807_v47 = vadd.f32 %v21655_v27, %v21654_v18 }
 0x43a   :  { %v20404_v15 = vadd.f32 %v8516_v33, %v6804_v21  ;;  %8714 = vmatprep.mubr.bf16.mxu0 %v18010_v16  ;;  %v8904_v1 = vpop.f32.mrf.mxu1  ;;  %v18008_v21 = vld [vmem:[#allocation2 + $0x618] ss:$12 sps:$4 sm:$0xff]  }
 0x43b   :  { %21653 = vst [vmem:[#allocation41_spill] sm:$0xff] %v20402_v28  ;;  %v8518_v25 = vpop.f32.mrf.mxu0  ;;  %v20407_v35 = vadd.f32 %v8904_v1, %v20114_v37  ;;  %v21658_v37 = vld [vmem:[#allocation120_spill] sm:$0xff]  ;;  %v21659_v1 = vld [vmem:[#allocation51_spill] sm:$0xff] }
 0x43c   :  { %v16988_v49 = vpop.f32.mrf.mxu1  ;;  %10807 = vmatmul.mubr.bf16.vlgmr.msra.gmra.mxu1 %v18037_v46  ;;  %v6812_v25 = vadd.f32 %v21659_v1, %v21658_v37  ;;  %v18015_v28 = vld [vmem:[#allocation2 + $0x634] ss:$12 sps:$4 sm:$0xff]  }
 0x43d   :  { %v8519_v9 = vpop.f32.mrf.mxu0  ;;  %v20412_v19 = vadd.f32 %v16988_v49, %v20142_v63  ;;  %10814 = vmatprep.mubr.bf16.mxu1 %v18045_v39 }
 0x43e   :  { %v20414_v17 = vadd.f32 %v8519_v9, %v6807_v47  ;;  %v8917_v16 = vpop.f32.mrf.mxu1  ;;  %v18043_v9 = vld [vmem:[#allocation2 + $0x48] ss:$12 sps:$4 sm:$0xff]  }
 0x43f   :  { %21656 = vst [vmem:[#allocation93_spill] sm:$0xff] %v20412_v19  ;;  %v8521_v53 = vpop.f32.mrf.mxu0  ;;  %v20417_v33 = vadd.f32 %v8917_v16, %v20130_v56  ;;  %v18050_v56 = vld [vmem:[#allocation2 + $0x64] ss:$12 sps:$4 sm:$0xff]   ;;  %v21662_v16 = vld [vmem:[#allocation123_spill] sm:$0xff] }
 0x440   :  { %v16989_v18 = vpop.f32.mrf.mxu1  ;;  %v21663_v53 = vld [vmem:[#allocation53_spill] sm:$0xff] }
 0x441   :  { %21657 = vst [vmem:[#allocation44_spill] sm:$0xff] %v20417_v33  ;;  %v8524_v27 = vpop.f32.mrf.mxu0  ;;  %8715 = vmatmul.mubr.bf16.gmra.mxu0 %v18008_v21  ;;  %v20422_v46 = vadd.f32 %v16989_v18, %v20148_v40  ;;  %v6815_v37 = vadd.f32 %v21663_v53, %v21662_v16  ;;  %v21664_v21 = vld [vmem:[#allocation17_spill] sm:$0xff] }
 0x442   :  { %v20424_v63 = vadd.f32 %v8524_v27, %v6812_v25  ;;  %8722 = vmatprep.mubr.bf16.mxu0 %v18015_v28  ;;  %v8920_v39 = vpop.f32.mrf.mxu1  ;;  %v18013_v25 = vld [vmem:[#allocation2 + $0x630] ss:$12 sps:$4 sm:$0xff]   ;;  %v21666_v27 = vld [vmem:[#allocation32_spill] sm:$0xff] }
 0x443   :  { %21660 = vst [vmem:[#allocation96_spill] sm:$0xff] %v20422_v46  ;;  %v8526_v47 = vpop.f32.mrf.mxu0  ;;  %v20427_v49 = vadd.f32 %v8920_v39, %v20135_v23  ;;  %v21668_v23 = vld [vmem:[#allocation126_spill] sm:$0xff]  ;;  %v21669_v39 = vld [vmem:[#allocation57_spill] sm:$0xff] }
 0x444   :  { %v16992_v1 = vpop.f32.mrf.mxu1  ;;  %10815 = vmatmul.mubr.bf16.gmra.mxu1 %v18043_v9  ;;  %v6820_v46 = vadd.f32 %v21669_v39, %v21668_v23 }
 0x445   :  { %21661 = vst [vmem:[#allocation40_spill] sm:$0xff] %v20427_v49  ;;  %v8527_v19 = vpop.f32.mrf.mxu0  ;;  %v20432_v33 = vadd.f32 %v16992_v1, %v21664_v21  ;;  %10822 = vmatprep.mubr.bf16.mxu1 %v18050_v56  ;;  %v18021_v49 = vld [vmem:[#allocation2 + $0x64c] ss:$12 sps:$4 sm:$0xff]   ;;  %v21671_v21 = vld [vmem:[#allocation34_spill] sm:$0xff] }
 0x446   :  { %v20434_v40 = vadd.f32 %v8527_v19, %v6815_v37  ;;  %v8933_v28 = vpop.f32.mrf.mxu1  ;;  %v18048_v19 = vld [vmem:[#allocation2 + $0x60] ss:$12 sps:$4 sm:$0xff]  }
 0x447   :  { %21665 = vst [vmem:[#allocation99_spill] sm:$0xff] %v20432_v33  ;;  %v8529_v18 = vpop.f32.mrf.mxu0  ;;  %v20437_v47 = vadd.f32 %v8933_v28, %v21666_v27  ;;  %v18055_v28 = vld [vmem:[#allocation2 + $0x7c] ss:$12 sps:$4 sm:$0xff]   ;;  %v21674_v33 = vld [vmem:[#allocation60_spill] sm:$0xff] }
 0x448   :  { %v16993_v16 = vpop.f32.mrf.mxu1  ;;  %v21673_v27 = vld [vmem:[#allocation129_spill] sm:$0xff] }
 0x449   :  { %21667 = vst [vmem:[#allocation43_spill] sm:$0xff] %v20437_v47  ;;  %v8532_v53 = vpop.f32.mrf.mxu0  ;;  %8723 = vmatmul.mubr.bf16.gmra.mxu0 %v18013_v25  ;;  %v20442_v9 = vadd.f32 %v16993_v16, %v20171_v6  ;;  %v6823_v23 = vadd.f32 %v21674_v33, %v21673_v27 }
 0x44a   :  { %v20444_v1 = vadd.f32 %v8532_v53, %v6820_v46  ;;  %8730 = vmatprep.mubr.bf16.mxu0 %v18021_v49  ;;  %v8936_v56 = vpop.f32.mrf.mxu1  ;;  %v18019_v49 = vld [vmem:[#allocation2 + $0x648] ss:$12 sps:$4 sm:$0xff]   ;;  %v21676_v53 = vld [vmem:[#allocation39_spill] sm:$0xff] }
 0x44b   :  { %21670 = vst [vmem:[#allocation102_spill] sm:$0xff] %v20442_v9  ;;  %v8534_v37 = vpop.f32.mrf.mxu0  ;;  %v20447_v18 = vadd.f32 %v8936_v56, %v21671_v21  ;;  %v21678_v56 = vld [vmem:[#allocation132_spill] sm:$0xff] }
 0x44c   :  { %v16996_v39 = vpop.f32.mrf.mxu1  ;;  %10823 = vmatmul.mubr.bf16.gmra.mxu1 %v18048_v19  ;;  %v21679_v21 = vld [vmem:[#allocation56_spill] sm:$0xff] }
 0x44d   :  { %21672 = vst [vmem:[#allocation47_spill] sm:$0xff] %v20447_v18  ;;  %v8535_v47 = vpop.f32.mrf.mxu0  ;;  %v20452_v25 = vadd.f32 %v16996_v39, %v20189_v60  ;;  %10830 = vmatprep.mubr.bf16.mxu1 %v18055_v28  ;;  %v6828_v9 = vadd.f32 %v21679_v21, %v21678_v56  ;;  %v18026_v18 = vld [vmem:[#allocation2 + $0x664] ss:$12 sps:$4 sm:$0xff]   ;;  %v21681_v39 = vld [vmem:[#allocation171_spill] sm:$0xff] }
 0x44e   :  { %v20454_v6 = vadd.f32 %v8535_v47, %v6823_v23  ;;  %v8949_v46 = vpop.f32.mrf.mxu1  ;;  %v18053_v47 = vld [vmem:[#allocation2 + $0x78] ss:$12 sps:$4 sm:$0xff]  }
 0x44f   :  { %21675 = vst [vmem:[#allocation105_spill] sm:$0xff] %v20452_v25  ;;  %v8537_v16 = vpop.f32.mrf.mxu0  ;;  %v20457_v37 = vadd.f32 %v8949_v46, %v21676_v53  ;;  %v18060_v46 = vld [vmem:[#allocation2 + $0x94] ss:$12 sps:$4 sm:$0xff]   ;;  %v21682_v53 = vld [vmem:[#allocation135_spill] sm:$0xff] }
 0x450   :  { %v16997_v33 = vpop.f32.mrf.mxu1  ;;  %v21683_v25 = vld [vmem:[#allocation59_spill] sm:$0xff] }
 0x451   :  { %21677 = vst [vmem:[#allocation50_spill] sm:$0xff] %v20457_v37  ;;  %v8540_v27 = vpop.f32.mrf.mxu0  ;;  %8731 = vmatmul.mubr.bf16.gmra.mxu0 %v18019_v49  ;;  %v20462_v19 = vadd.f32 %v16997_v33, %v20195_v14  ;;  %v6831_v56 = vadd.f32 %v21683_v25, %v21682_v53 }
 0x452   :  { %v20464_v60 = vadd.f32 %v8540_v27, %v6828_v9  ;;  %8738 = vmatprep.mubr.bf16.mxu0 %v18026_v18  ;;  %v8952_v28 = vpop.f32.mrf.mxu1  ;;  %v18024_v18 = vld [vmem:[#allocation2 + $0x660] ss:$12 sps:$4 sm:$0xff]  }
 0x453   :  { %21680 = vst [vmem:[#allocation108_spill] sm:$0xff] %v20462_v19  ;;  %v8542_v23 = vpop.f32.mrf.mxu0  ;;  %v20467_v16 = vadd.f32 %v8952_v28, %v21681_v39  ;;  %v21686_v28 = vld [vmem:[#allocation136_spill] sm:$0xff]  ;;  %v18032_v19 = vld [vmem:[#allocation2 + $0x67c] ss:$12 sps:$4 sm:$0xff]  }
 0x454   :  { %v17000_v21 = vpop.f32.mrf.mxu1  ;;  %10831 = vmatmul.mubr.bf16.gmra.mxu1 %v18053_v47  ;;  %v21687_v23 = vld [vmem:[#allocation62_spill] sm:$0xff] }
 0x455   :  { %v8543_v37 = vpop.f32.mrf.mxu0  ;;  %v20472_v49 = vadd.f32 %v17000_v21, %v20212_v13  ;;  %10838 = vmatprep.mubr.bf16.mxu1 %v18060_v46  ;;  %v6836_v39 = vadd.f32 %v21687_v23, %v21686_v28 }
 0x456   :  { %v20474_v14 = vadd.f32 %v8543_v37, %v6831_v56  ;;  %v8965_v9 = vpop.f32.mrf.mxu1  ;;  %v18058_v37 = vld [vmem:[#allocation2 + $0x90] ss:$12 sps:$4 sm:$0xff]  }
 0x457   :  { %21684 = vst [vmem:[#allocation46_spill] sm:$0xff] %v20472_v49  ;;  %v8545_v33 = vpop.f32.mrf.mxu0  ;;  %v20477_v27 = vadd.f32 %v8965_v9, %v20201_v5  ;;  %v18065_v5 = vld [vmem:[#allocation2 + $0xac] ss:$12 sps:$4 sm:$0xff]  }
 0x458   :  { %v17001_v25 = vpop.f32.mrf.mxu1  ;;  %v21690_v9 = vld [vmem:[#allocation137_spill] sm:$0xff] }
 0x459   :  { %21685 = vst [vmem:[#allocation111_spill] sm:$0xff] %v20477_v27  ;;  %v8548_v53 = vpop.f32.mrf.mxu0  ;;  %8739 = vmatmul.mubr.bf16.gmra.mxu0 %v18024_v18  ;;  %v20482_v47 = vadd.f32 %v17001_v25, %v20219_v62  ;;  %v21691_v33 = vld [vmem:[#allocation65_spill] sm:$0xff]  ;;  %v21692_v18 = vld [vmem:[#allocation63_spill] sm:$0xff] }
 0x45a   :  { %v20484_v13 = vadd.f32 %v8548_v53, %v6836_v39  ;;  %8746 = vmatprep.mubr.bf16.mxu0 %v18032_v19  ;;  %v8968_v46 = vpop.f32.mrf.mxu1  ;;  %v6839_v28 = vadd.f32 %v21691_v33, %v21690_v9  ;;  %v18030_v39 = vld [vmem:[#allocation2 + $0x678] ss:$12 sps:$4 sm:$0xff]  }
 0x45b   :  { %21688 = vst [vmem:[#allocation49_spill] sm:$0xff] %v20482_v47  ;;  %v8550_v56 = vpop.f32.mrf.mxu0  ;;  %v20487_v21 = vadd.f32 %v8968_v46, %v20206_v31  ;;  %v21694_v53 = vld [vmem:[#allocation55_spill] sm:$0xff]  ;;  %v21696_v31 = vld [vmem:[#allocation138_spill] sm:$0xff]  ;;  %v21697_v46 = vld [vmem:[#allocation61_spill] sm:$0xff] }
 0x45c   :  { %v17004_v23 = vpop.f32.mrf.mxu1  ;;  %10839 = vmatmul.mubr.bf16.gmra.mxu1 %v18058_v37  ;;  %v6844_v47 = vadd.f32 %v21697_v46, %v21696_v31 }
 0x45d   :  { %21689 = vst [vmem:[#allocation114_spill] sm:$0xff] %v20487_v21  ;;  %v8551_v49 = vpop.f32.mrf.mxu0  ;;  %v20492_v27 = vadd.f32 %v17004_v23, %v21692_v18  ;;  %10846 = vmatprep.mubr.bf16.mxu1 %v18065_v5  ;;  %v18040_v21 = vld [vmem:[#allocation2 + $0x38] ss:$12 sps:$4 sm:$0xff]   ;;  %v21699_v18 = vld [vmem:[#allocation58_spill] sm:$0xff] }
 0x45e   :  { %v20494_v62 = vadd.f32 %v8551_v49, %v6839_v28  ;;  %v8981_v19 = vpop.f32.mrf.mxu1  ;;  %v18063_v49 = vld [vmem:[#allocation2 + $0xa8] ss:$12 sps:$4 sm:$0xff]  }
 0x45f   :  { %21693 = vst [vmem:[#allocation52_spill] sm:$0xff] %v20492_v27  ;;  %v8553_v25 = vpop.f32.mrf.mxu0  ;;  %v20497_v56 = vadd.f32 %v8981_v19, %v21694_v53  ;;  %v18070_v19 = vld [vmem:[#allocation2 + $0xc4] ss:$12 sps:$4 sm:$0xff]   ;;  %v21700_v53 = vld [vmem:[#allocation139_spill] sm:$0xff] }
 0x460   :  { %v17005_v9 = vpop.f32.mrf.mxu1  ;;  %v21701_v27 = vld [vmem:[#allocation64_spill] sm:$0xff] }
 0x461   :  { %21695 = vst [vmem:[#allocation117_spill] sm:$0xff] %v20497_v56  ;;  %v8556_v33 = vpop.f32.mrf.mxu0  ;;  %8747 = vmatmul.mubr.bf16.gmra.mxu0 %v18030_v39  ;;  %v20502_v37 = vadd.f32 %v17005_v9, %v20243_v41  ;;  %v6847_v31 = vadd.f32 %v21701_v27, %v21700_v53  ;;  %v18042_v9 = vld [vmem:[#allocation2 + $0x50] ss:$12 sps:$4 sm:$0xff]  }
 0x462   :  { %v20504_v23 = vadd.f32 %v8556_v33, %v6844_v47  ;;  %17098 = vmatprep.mubr.bf16.mxu0 %v18040_v21  ;;  %v8984_v5 = vpop.f32.mrf.mxu1 }
 0x463   :  { %21698 = vst [vmem:[#allocation54_spill] sm:$0xff] %v20502_v37  ;;  %v8558_v28 = vpop.f32.mrf.mxu0  ;;  %v20507_v25 = vadd.f32 %v8984_v5, %v21699_v18  ;;  %v21703_v5 = vld [vmem:[#allocation140_spill] sm:$0xff]  ;;  %v18046_v37 = vld [vmem:[#allocation2 + $0x68] ss:$12 sps:$4 sm:$0xff]  }
 0x464   :  { %v17008_v46 = vpop.f32.mrf.mxu1  ;;  %10847 = vmatmul.mubr.bf16.gmra.mxu1 %v18063_v49  ;;  %v21704_v28 = vld [vmem:[#allocation68_spill] sm:$0xff] }
 0x465   :  { %v8559_v56 = vpop.f32.mrf.mxu0  ;;  %v20512_v39 = vadd.f32 %v17008_v46, %v20265_v10  ;;  %10854 = vmatprep.mubr.bf16.mxu1 %v18070_v19  ;;  %v6852_v18 = vadd.f32 %v21704_v28, %v21703_v5 }
 0x466   :  { %v20514_v41 = vadd.f32 %v8559_v56, %v6847_v31  ;;  %v8997_v47 = vpop.f32.mrf.mxu1  ;;  %v18068_v56 = vld [vmem:[#allocation2 + $0xc0] ss:$12 sps:$4 sm:$0xff]  }
 0x467   :  { %21702 = vst [vmem:[#allocation120_spill] sm:$0xff] %v20512_v39  ;;  %v8561_v21 = vpop.f32.mrf.mxu0  ;;  %v20517_v33 = vadd.f32 %v8997_v47, %v20249_v43  ;;  %v18075_v43 = vld [vmem:[#allocation2 + $0xdc] ss:$12 sps:$4 sm:$0xff]  }
 0x468   :  { %v17009_v27 = vpop.f32.mrf.mxu1  ;;  %v21706_v47 = vld [vmem:[#allocation141_spill] sm:$0xff]  ;;  %v21707_v21 = vld [vmem:[#allocation71_spill] sm:$0xff] }
 0x469   :  { %v8564_v53 = vpop.f32.mrf.mxu0  ;;  %17099 = vmatmul.mubr.bf16.vlgmr.msra.gmra.mxu0 %v18042_v9  ;;  %v20522_v49 = vadd.f32 %v17009_v27, %v20275_v38  ;;  %v6855_v5 = vadd.f32 %v21707_v21, %v21706_v47  ;;  %v18047_v27 = vld [vmem:[#allocation2 + $0x80] ss:$12 sps:$4 sm:$0xff]  }
 0x46a   :  { %v20524_v10 = vadd.f32 %v8564_v53, %v6852_v18  ;;  %17102 = vmatprep.mubr.bf16.mxu0 %v18046_v37  ;;  %v9000_v19 = vpop.f32.mrf.mxu1 }
 0x46b   :  { %21705 = vst [vmem:[#allocation51_spill] sm:$0xff] %v20522_v49  ;;  %v8566_v31 = vpop.f32.mrf.mxu0  ;;  %v20527_v46 = vadd.f32 %v9000_v19, %v20255_v58  ;;  %v21709_v58 = vld [vmem:[#allocation142_spill] sm:$0xff]  ;;  %v21710_v19 = vld [vmem:[#allocation67_spill] sm:$0xff] }
 0x46c   :  { %v17012_v28 = vpop.f32.mrf.mxu1  ;;  %10855 = vmatmul.mubr.bf16.gmra.mxu1 %v18068_v56  ;;  %v6860_v31 = vadd.f32 %v21710_v19, %v21709_v58  ;;  %v18051_v49 = vld [vmem:[#allocation2 + $0x98] ss:$12 sps:$4 sm:$0xff]  }
 0x46d   :  { %v8567_v39 = vpop.f32.mrf.mxu0  ;;  %v20532_v9 = vadd.f32 %v17012_v28, %v20304_v32  ;;  %10862 = vmatprep.mubr.bf16.mxu1 %v18075_v43 }
 0x46e   :  { %v20534_v38 = vadd.f32 %v8567_v39, %v6855_v5  ;;  %v9013_v37 = vpop.f32.mrf.mxu1  ;;  %v18073_v39 = vld [vmem:[#allocation2 + $0xd8] ss:$12 sps:$4 sm:$0xff]  }
 0x46f   :  { %21708 = vst [vmem:[#allocation123_spill] sm:$0xff] %v20532_v9  ;;  %v8569_v18 = vpop.f32.mrf.mxu0  ;;  %v20537_v53 = vadd.f32 %v9013_v37, %v20285_v48  ;;  %v18080_v48 = vld [vmem:[#allocation2 + $0xf4] ss:$12 sps:$4 sm:$0xff]   ;;  %v21712_v37 = vld [vmem:[#allocation143_spill] sm:$0xff] }
 0x470   :  { %v17013_v47 = vpop.f32.mrf.mxu1  ;;  %v21713_v18 = vld [vmem:[#allocation70_spill] sm:$0xff] }
 0x471   :  { %v8572_v21 = vpop.f32.mrf.mxu0  ;;  %17103 = vmatmul.mubr.bf16.gmra.mxu0 %v18047_v27  ;;  %v20542_v56 = vadd.f32 %v17013_v47, %v20314_v12  ;;  %v6863_v58 = vadd.f32 %v21713_v18, %v21712_v37  ;;  %v18052_v47 = vld [vmem:[#allocation2 + $0xb0] ss:$12 sps:$4 sm:$0xff]  }
 0x472   :  { %v20544_v32 = vadd.f32 %v8572_v21, %v6860_v31  ;;  %17106 = vmatprep.mubr.bf16.mxu0 %v18051_v49  ;;  %v9016_v43 = vpop.f32.mrf.mxu1 }
 0x473   :  { %21711 = vst [vmem:[#allocation53_spill] sm:$0xff] %v20542_v56  ;;  %v8574_v5 = vpop.f32.mrf.mxu0  ;;  %v20547_v28 = vadd.f32 %v9016_v43, %v20294_v2  ;;  %v21715_v2 = vld [vmem:[#allocation144_spill] sm:$0xff]  ;;  %v21716_v43 = vld [vmem:[#allocation73_spill] sm:$0xff] }
 0x474   :  { %v17016_v19 = vpop.f32.mrf.mxu1  ;;  %10863 = vmatmul.mubr.bf16.gmra.mxu1 %v18073_v39  ;;  %v6868_v5 = vadd.f32 %v21716_v43, %v21715_v2  ;;  %v18056_v56 = vld [vmem:[#allocation2 + $0xc8] ss:$12 sps:$4 sm:$0xff]  }
 0x475   :  { %v8575_v9 = vpop.f32.mrf.mxu0  ;;  %v20552_v27 = vadd.f32 %v17016_v19, %v20344_v44  ;;  %10870 = vmatprep.mubr.bf16.mxu1 %v18080_v48 }
 0x476   :  { %v20554_v12 = vadd.f32 %v8575_v9, %v6863_v58  ;;  %v9029_v49 = vpop.f32.mrf.mxu1  ;;  %v18078_v9 = vld [vmem:[#allocation2 + $0xf0] ss:$12 sps:$4 sm:$0xff]  }
 0x477   :  { %21714 = vst [vmem:[#allocation17_spill] sm:$0xff] %v20552_v27  ;;  %v8577_v31 = vpop.f32.mrf.mxu0  ;;  %v20557_v21 = vadd.f32 %v9029_v49, %v20324_v0  ;;  %v18085_v0 = vld [vmem:[#allocation2 + $0x10c] ss:$12 sps:$4 sm:$0xff]  }
 0x478   :  { %v17017_v37 = vpop.f32.mrf.mxu1  ;;  %v21718_v49 = vld [vmem:[#allocation145_spill] sm:$0xff]  ;;  %v21719_v31 = vld [vmem:[#allocation76_spill] sm:$0xff] }
 0x479   :  { %v8580_v18 = vpop.f32.mrf.mxu0  ;;  %17107 = vmatmul.mubr.bf16.gmra.mxu0 %v18052_v47  ;;  %v20562_v39 = vadd.f32 %v17017_v37, %v20354_v50  ;;  %v6871_v2 = vadd.f32 %v21719_v31, %v21718_v49  ;;  %v18057_v37 = vld [vmem:[#allocation2 + $0xe0] ss:$12 sps:$4 sm:$0xff]  }
 0x47a   :  { %v20564_v44 = vadd.f32 %v8580_v18, %v6868_v5  ;;  %17110 = vmatprep.mubr.bf16.mxu0 %v18056_v56  ;;  %v9032_v48 = vpop.f32.mrf.mxu1 }
 0x47b   :  { %21717 = vst [vmem:[#allocation32_spill] sm:$0xff] %v20562_v39  ;;  %v8582_v58 = vpop.f32.mrf.mxu0  ;;  %v20567_v19 = vadd.f32 %v9032_v48, %v20334_v30  ;;  %v21721_v30 = vld [vmem:[#allocation146_spill] sm:$0xff]  ;;  %v21722_v48 = vld [vmem:[#allocation72_spill] sm:$0xff] }
 0x47c   :  { %v17020_v43 = vpop.f32.mrf.mxu1  ;;  %10871 = vmatmul.mubr.bf16.gmra.mxu1 %v18078_v9  ;;  %v6876_v58 = vadd.f32 %v21722_v48, %v21721_v30  ;;  %v18061_v39 = vld [vmem:[#allocation2 + $0xf8] ss:$12 sps:$4 sm:$0xff]  }
 0x47d   :  { %v8583_v27 = vpop.f32.mrf.mxu0  ;;  %v20572_v47 = vadd.f32 %v17020_v43, %v20384_v52  ;;  %10878 = vmatprep.mubr.bf16.mxu1 %v18085_v0 }
 0x47e   :  { %v20574_v50 = vadd.f32 %v8583_v27, %v6871_v2  ;;  %v9045_v56 = vpop.f32.mrf.mxu1  ;;  %v18083_v27 = vld [vmem:[#allocation2 + $0x108] ss:$12 sps:$4 sm:$0xff]  }
 0x47f   :  { %21720 = vst [vmem:[#allocation126_spill] sm:$0xff] %v20572_v47  ;;  %v8585_v5 = vpop.f32.mrf.mxu0  ;;  %v20577_v18 = vadd.f32 %v9045_v56, %v20364_v36  ;;  %v18090_v36 = vld [vmem:[#allocation2 + $0x124] ss:$12 sps:$4 sm:$0xff]   ;;  %v21724_v56 = vld [vmem:[#allocation147_spill] sm:$0xff] }
 0x480   :  { %v17021_v49 = vpop.f32.mrf.mxu1  ;;  %v21725_v5 = vld [vmem:[#allocation75_spill] sm:$0xff] }
 0x481   :  { %v8588_v31 = vpop.f32.mrf.mxu0  ;;  %17111 = vmatmul.mubr.bf16.gmra.mxu0 %v18057_v37  ;;  %v20582_v9 = vadd.f32 %v17021_v49, %v20394_v8  ;;  %v6879_v30 = vadd.f32 %v21725_v5, %v21724_v56  ;;  %v18062_v49 = vld [vmem:[#allocation2 + $0x110] ss:$12 sps:$4 sm:$0xff]  }
 0x482   :  { %v20584_v52 = vadd.f32 %v8588_v31, %v6876_v58  ;;  %17114 = vmatprep.mubr.bf16.mxu0 %v18061_v39  ;;  %v9048_v0 = vpop.f32.mrf.mxu1 }
 0x483   :  { %21723 = vst [vmem:[#allocation57_spill] sm:$0xff] %v20582_v9  ;;  %v8590_v2 = vpop.f32.mrf.mxu0  ;;  %v20587_v43 = vadd.f32 %v9048_v0, %v20374_v42  ;;  %v21727_v42 = vld [vmem:[#allocation148_spill] sm:$0xff]  ;;  %v21728_v0 = vld [vmem:[#allocation79_spill] sm:$0xff]  ;;  %v18066_v9 = vld [vmem:[#allocation2 + $0x128] ss:$12 sps:$4 sm:$0xff]  }
 0x484   :  { %v17024_v48 = vpop.f32.mrf.mxu1  ;;  %10879 = vmatmul.mubr.bf16.gmra.mxu1 %v18083_v27  ;;  %v6884_v2 = vadd.f32 %v21728_v0, %v21727_v42 }
 0x485   :  { %v8591_v47 = vpop.f32.mrf.mxu0  ;;  %v20592_v37 = vadd.f32 %v17024_v48, %v20424_v63  ;;  %10886 = vmatprep.mubr.bf16.mxu1 %v18090_v36 }
 0x486   :  { %v20594_v8 = vadd.f32 %v8591_v47, %v6879_v30  ;;  %v9061_v39 = vpop.f32.mrf.mxu1  ;;  %v18088_v47 = vld [vmem:[#allocation2 + $0x120] ss:$12 sps:$4 sm:$0xff]  }
 0x487   :  { %21726 = vst [vmem:[#allocation34_spill] sm:$0xff] %v20592_v37  ;;  %v8593_v58 = vpop.f32.mrf.mxu0  ;;  %v20597_v31 = vadd.f32 %v9061_v39, %v20404_v15  ;;  %v18095_v15 = vld [vmem:[#allocation2 + $0x13c] ss:$12 sps:$4 sm:$0xff]  }
 0x488   :  { %v17025_v56 = vpop.f32.mrf.mxu1  ;;  %v21730_v39 = vld [vmem:[#allocation149_spill] sm:$0xff] }
 0x489   :  { %v8596_v5 = vpop.f32.mrf.mxu0  ;;  %17115 = vmatmul.mubr.bf16.gmra.mxu0 %v18062_v49  ;;  %v20602_v27 = vadd.f32 %v17025_v56, %v20434_v40  ;;  %v21731_v58 = vld [vmem:[#allocation81_spill] sm:$0xff] }
 0x48a   :  { %v20604_v63 = vadd.f32 %v8596_v5, %v6884_v2  ;;  %17118 = vmatprep.mubr.bf16.mxu0 %v18066_v9  ;;  %v9064_v36 = vpop.f32.mrf.mxu1  ;;  %v6887_v42 = vadd.f32 %v21731_v58, %v21730_v39  ;;  %v18067_v56 = vld [vmem:[#allocation2 + $0x140] ss:$12 sps:$4 sm:$0xff]  }
 0x48b   :  { %21729 = vst [vmem:[#allocation129_spill] sm:$0xff] %v20602_v27  ;;  %v8598_v30 = vpop.f32.mrf.mxu0  ;;  %v20607_v48 = vadd.f32 %v9064_v36, %v20414_v17  ;;  %v21733_v17 = vld [vmem:[#allocation150_spill] sm:$0xff]  ;;  %v18071_v27 = vld [vmem:[#allocation2 + $0x158] ss:$12 sps:$4 sm:$0xff]  }
 0x48c   :  { %v17028_v0 = vpop.f32.mrf.mxu1  ;;  %10887 = vmatmul.mubr.bf16.gmra.mxu1 %v18088_v47  ;;  %v21734_v36 = vld [vmem:[#allocation78_spill] sm:$0xff] }
 0x48d   :  { %v8599_v37 = vpop.f32.mrf.mxu0  ;;  %v20612_v49 = vadd.f32 %v17028_v0, %v20464_v60  ;;  %10894 = vmatprep.mubr.bf16.mxu1 %v18095_v15  ;;  %v6892_v30 = vadd.f32 %v21734_v36, %v21733_v17 }
 0x48e   :  { %v20614_v40 = vadd.f32 %v8599_v37, %v6887_v42  ;;  %v9077_v9 = vpop.f32.mrf.mxu1  ;;  %v18093_v37 = vld [vmem:[#allocation2 + $0x138] ss:$12 sps:$4 sm:$0xff]  }
 0x48f   :  { %21732 = vst [vmem:[#allocation60_spill] sm:$0xff] %v20612_v49  ;;  %v8601_v2 = vpop.f32.mrf.mxu0  ;;  %v20617_v5 = vadd.f32 %v9077_v9, %v20444_v1  ;;  %v18100_v1 = vld [vmem:[#allocation2 + $0x154] ss:$12 sps:$4 sm:$0xff]   ;;  %v21737_v9 = vld [vmem:[#allocation151_spill] sm:$0xff] }
 0x490   :  { %v17029_v39 = vpop.f32.mrf.mxu1  ;;  %v21738_v2 = vld [vmem:[#allocation80_spill] sm:$0xff] }
 0x491   :  { %v8604_v58 = vpop.f32.mrf.mxu0  ;;  %17119 = vmatmul.mubr.bf16.gmra.mxu0 %v18067_v56  ;;  %v20622_v47 = vadd.f32 %v17029_v39, %v20474_v14  ;;  %v6895_v17 = vadd.f32 %v21738_v2, %v21737_v9  ;;  %v18072_v39 = vld [vmem:[#allocation2 + $0x170] ss:$12 sps:$4 sm:$0xff]  }
 0x492   :  { %v20624_v60 = vadd.f32 %v8604_v58, %v6892_v30  ;;  %17122 = vmatprep.mubr.bf16.mxu0 %v18071_v27  ;;  %v9080_v15 = vpop.f32.mrf.mxu1 }
 0x493   :  { %21735 = vst [vmem:[#allocation39_spill] sm:$0xff] %v20622_v47  ;;  %v8606_v42 = vpop.f32.mrf.mxu0  ;;  %v20627_v0 = vadd.f32 %v9080_v15, %v20454_v6  ;;  %v21741_v6 = vld [vmem:[#allocation152_spill] sm:$0xff]  ;;  %v21742_v15 = vld [vmem:[#allocation83_spill] sm:$0xff]  ;;  %v18076_v47 = vld [vmem:[#allocation2 + $0x188] ss:$12 sps:$4 sm:$0xff]  }
 0x494   :  { %v17032_v36 = vpop.f32.mrf.mxu1  ;;  %10895 = vmatmul.mubr.bf16.gmra.mxu1 %v18093_v37  ;;  %v6900_v42 = vadd.f32 %v21742_v15, %v21741_v6 }
 0x495   :  { %21736 = vst [vmem:[#allocation132_spill] sm:$0xff] %v20627_v0  ;;  %v8607_v49 = vpop.f32.mrf.mxu0  ;;  %v20632_v56 = vadd.f32 %v17032_v36, %v20504_v23  ;;  %10902 = vmatprep.mubr.bf16.mxu1 %v18100_v1 }
 0x496   :  { %v20634_v14 = vadd.f32 %v8607_v49, %v6895_v17  ;;  %v9093_v27 = vpop.f32.mrf.mxu1  ;;  %v18098_v49 = vld [vmem:[#allocation2 + $0x150] ss:$12 sps:$4 sm:$0xff]  }
 0x497   :  { %21739 = vst [vmem:[#allocation56_spill] sm:$0xff] %v20632_v56  ;;  %v8609_v30 = vpop.f32.mrf.mxu0  ;;  %v20637_v58 = vadd.f32 %v9093_v27, %v20484_v13  ;;  %v18105_v13 = vld [vmem:[#allocation2 + $0x16c] ss:$12 sps:$4 sm:$0xff]  }
 0x498   :  { %v17033_v9 = vpop.f32.mrf.mxu1  ;;  %v21745_v27 = vld [vmem:[#allocation153_spill] sm:$0xff]  ;;  %v21746_v30 = vld [vmem:[#allocation86_spill] sm:$0xff] }
 0x499   :  { %21740 = vst [vmem:[#allocation171_spill] sm:$0xff] %v20637_v58  ;;  %v8612_v2 = vpop.f32.mrf.mxu0  ;;  %17123 = vmatmul.mubr.bf16.gmra.mxu0 %v18072_v39  ;;  %v20642_v37 = vadd.f32 %v17033_v9, %v20514_v41  ;;  %v6903_v6 = vadd.f32 %v21746_v30, %v21745_v27  ;;  %v18077_v39 = vld [vmem:[#allocation2 + $0x1a0] ss:$12 sps:$4 sm:$0xff]   ;;  %v18138_v58 = vld [vmem:[#allocation2 + $0x458] ss:$12 sps:$4 sm:$0xff]  }
 0x49a   :  { %v20644_v23 = vadd.f32 %v8612_v2, %v6900_v42  ;;  %17126 = vmatprep.mubr.bf16.mxu0 %v18076_v47  ;;  %v9096_v1 = vpop.f32.mrf.mxu1 }
 0x49b   :  { %21743 = vst [vmem:[#allocation135_spill] sm:$0xff] %v20642_v37  ;;  %v8614_v17 = vpop.f32.mrf.mxu0  ;;  %v20647_v36 = vadd.f32 %v9096_v1, %v20494_v62  ;;  %v21749_v62 = vld [vmem:[#allocation154_spill] sm:$0xff] }
 0x49c   :  { %v17036_v15 = vpop.f32.mrf.mxu1  ;;  %10903 = vmatmul.mubr.bf16.gmra.mxu1 %v18098_v49  ;;  %v21750_v1 = vld [vmem:[#allocation82_spill] sm:$0xff] }
 0x49d   :  { %21744 = vst [vmem:[#allocation59_spill] sm:$0xff] %v20647_v36  ;;  %v8615_v56 = vpop.f32.mrf.mxu0  ;;  %v20652_v41 = vadd.f32 %v17036_v15, %v20544_v32  ;;  %10910 = vmatprep.mubr.bf16.mxu1 %v18105_v13  ;;  %v6908_v17 = vadd.f32 %v21750_v1, %v21749_v62  ;;  %v18081_v37 = vld [vmem:[#allocation2 + $0x1e8] ss:$12 sps:$4 sm:$0xff]  }
 0x49e   :  { %v20654_v42 = vadd.f32 %v8615_v56, %v6903_v6  ;;  %v9109_v47 = vpop.f32.mrf.mxu1  ;;  %v18103_v13 = vld [vmem:[#allocation2 + $0x168] ss:$12 sps:$4 sm:$0xff]  }
 0x49f   :  { %21747 = vst [vmem:[#allocation136_spill] sm:$0xff] %v20652_v41  ;;  %v8617_v9 = vpop.f32.mrf.mxu0  ;;  %v20657_v2 = vadd.f32 %v9109_v47, %v20524_v10  ;;  %v18110_v10 = vld [vmem:[#allocation2 + $0x184] ss:$12 sps:$4 sm:$0xff]   ;;  %v21753_v47 = vld [vmem:[#allocation155_spill] sm:$0xff] }
 0x4a0   :  { %v17037_v27 = vpop.f32.mrf.mxu1  ;;  %v21754_v9 = vld [vmem:[#allocation85_spill] sm:$0xff] }
 0x4a1   :  { %21748 = vst [vmem:[#allocation62_spill] sm:$0xff] %v20657_v2  ;;  %v8620_v30 = vpop.f32.mrf.mxu0  ;;  %17127 = vmatmul.mubr.bf16.gmra.mxu0 %v18077_v39  ;;  %v20662_v49 = vadd.f32 %v17037_v27, %v20554_v12  ;;  %v6911_v41 = vadd.f32 %v21754_v9, %v21753_v47  ;;  %v18082_v27 = vld [vmem:[#allocation2 + $0x200] ss:$12 sps:$4 sm:$0xff]  }
 0x4a2   :  { %v8621_v32 = vadd.f32 %v8620_v30, %v6908_v17  ;;  %17130 = vmatprep.mubr.bf16.mxu0 %v18081_v37  ;;  %v9112_v56 = vpop.f32.mrf.mxu1 }
 0x4a3   :  { %21751 = vst [vmem:[#allocation137_spill] sm:$0xff] %v20662_v49  ;;  %v8622_v6 = vpop.f32.mrf.mxu0  ;;  %v20665_v15 = vadd.f32 %v9112_v56, %v20534_v38  ;;  %v21757_v38 = vld [vmem:[#allocation156_spill] sm:$0xff]  ;;  %v21758_v56 = vld [vmem:[#allocation89_spill] sm:$0xff] }
 0x4a4   :  { %v17040_v62 = vpop.f32.mrf.mxu1  ;;  %10911 = vmatmul.mubr.bf16.gmra.mxu1 %v18103_v13  ;;  %v6916_v6 = vadd.f32 %v21758_v56, %v21757_v38  ;;  %v18086_v49 = vld [vmem:[#allocation2 + $0x218] ss:$12 sps:$4 sm:$0xff]  }
 0x4a5   :  { %21752 = vst [vmem:[#allocation65_spill] sm:$0xff] %v20665_v15  ;;  %v8623_v1 = vpop.f32.mrf.mxu0  ;;  %v20670_v39 = vadd.f32 %v17040_v62, %v20584_v52  ;;  %10918 = vmatprep.mubr.bf16.mxu1 %v18110_v10  ;;  %v18294_v52 = vld [vmem:[#allocation2] sm:$0xff] }
 0x4a6   :  { %v8624_v12 = vadd.f32 %v8623_v1, %v6911_v41  ;;  %v9125_v17 = vpop.f32.mrf.mxu1  ;;  %v20680_v9 = vcombine.high %v18294_v52, %v18294_v52  ;;  %v18108_v10 = vld [vmem:[#allocation2 + $0x180] ss:$12 sps:$4 sm:$0xff]  }
 0x4a7   :  { %21755 = vst [vmem:[#allocation63_spill] sm:$0xff] %v20670_v39  ;;  %v8625_v37 = vpop.f32.mrf.mxu0  ;;  %v20673_v30 = vadd.f32 %v9125_v17, %v20564_v44  ;;  %v21761_v17 = vld [vmem:[#allocation157_spill] sm:$0xff] }
 0x4a8   :  { %v17041_v15 = vpop.f32.mrf.mxu1  ;;  %v21762_v37 = vld [vmem:[#allocation92_spill] sm:$0xff] }
 0x4a9   :  { %21756 = vst [vmem:[#allocation55_spill] sm:$0xff] %v20673_v30  ;;  %v8628_v47 = vpop.f32.mrf.mxu0  ;;  %17131 = vmatmul.mubr.bf16.gmra.mxu0 %v18082_v27  ;;  %v20678_v13 = vadd.f32 %v17041_v15, %v20594_v8  ;;  %v6919_v38 = vadd.f32 %v21762_v37, %v21761_v17  ;;  %v18091_v17 = vld [vmem:[#allocation2 + $0x248] ss:$12 sps:$4 sm:$0xff]  }
 0x4aa   :  { %v20682_v41 = vadd.f32 %v8628_v47, %v6916_v6  ;;  %17134 = vmatprep.mubr.bf16.mxu0 %v18086_v49  ;;  %v9128_v62 = vpop.f32.mrf.mxu1  ;;  %v18087_v47 = vld [vmem:[#allocation2 + $0x230] ss:$12 sps:$4 sm:$0xff]  }
 0x4ab   :  { %21759 = vst [vmem:[#allocation138_spill] sm:$0xff] %v20678_v13  ;;  %v8630_v44 = vpop.f32.mrf.mxu0  ;;  %v20685_v1 = vadd.f32 %v9128_v62, %v20574_v50  ;;  %v21765_v50 = vld [vmem:[#allocation158_spill] sm:$0xff]  ;;  %v21766_v62 = vld [vmem:[#allocation88_spill] sm:$0xff] }
 0x4ac   :  { %v17044_v56 = vpop.f32.mrf.mxu1  ;;  %10919 = vmatmul.mubr.bf16.gmra.mxu1 %v18108_v10  ;;  %v6924_v13 = vadd.f32 %v21766_v62, %v21765_v50  ;;  %v20700_v10 = vcombine.low %v18294_v52, %v18294_v52 }
 0x4ad   :  { %21760 = vst [vmem:[#allocation61_spill] sm:$0xff] %v20685_v1  ;;  %v8631_v27 = vpop.f32.mrf.mxu0  ;;  %v20690_v8 = vadd.f32 %v17044_v56, %v20624_v60  ;;  %10926 = vmatprep.mubr.bf16.mxu1 %v20680_v9 }
 0x4ae   :  { %v20693_v15 = vadd.f32 %v8631_v27, %v6919_v38  ;;  %v9141_v49 = vpop.f32.mrf.mxu1 }
 0x4af   :  { %21763 = vst [vmem:[#allocation58_spill] sm:$0xff] %v20690_v8  ;;  %v8633_v6 = vpop.f32.mrf.mxu0  ;;  %v20696_v44 = vadd.f32 %v9141_v49, %v20604_v63  ;;  %v18117_v63 = vld [vmem:[#allocation2 + $0x1e4] ss:$12 sps:$4 sm:$0xff]   ;;  %v21769_v49 = vld [vmem:[#allocation159_spill] sm:$0xff] }
 0x4b0   :  { %v17045_v37 = vpop.f32.mrf.mxu1  ;;  %v21770_v8 = vld [vmem:[#allocation91_spill] sm:$0xff] }
 0x4b1   :  { %21764 = vst [vmem:[#allocation139_spill] sm:$0xff] %v20696_v44  ;;  %v8636_v39 = vpop.f32.mrf.mxu0  ;;  %17135 = vmatmul.mubr.bf16.gmra.mxu0 %v18087_v47  ;;  %v20703_v60 = vadd.f32 %v17045_v37, %v20634_v14  ;;  %v6927_v50 = vadd.f32 %v21770_v8, %v21769_v49  ;;  %v18169_v14 = vld [vmem:[#allocation9 + $0x38] sm:$0xff]  }
 0x4b2   :  { %v8637_v38 = vadd.f32 %v8636_v39, %v6924_v13  ;;  %17138 = vmatprep.mubr.bf16.mxu0 %v18091_v17  ;;  %v9144_v56 = vpop.f32.mrf.mxu1  ;;  %v18092_v17 = vld [vmem:[#allocation2 + $0x260] ss:$12 sps:$4 sm:$0xff]   ;;  %17226 = vmatprep.subr.bf16.mxu0 %v18169_v14  ;;  %v18096_v8 = vld [vmem:[#allocation2 + $0x278] ss:$12 sps:$4 sm:$0xff]  }
 0x4b3   :  { %21767 = vst [vmem:[#allocation64_spill] sm:$0xff] %v20703_v60  ;;  %v8638_v27 = vpop.f32.mrf.mxu0  ;;  %v20706_v6 = vadd.f32 %v9144_v56, %v20614_v40  ;;  %v21773_v40 = vld [vmem:[#allocation160_spill] sm:$0xff]  ;;  %v21774_v56 = vld [vmem:[#allocation95_spill] sm:$0xff]  ;;  %17227 = vmatpush3.bf16.msra.mxu0 %v18169_v14 }
 0x4b4   :  { %v17048_v62 = vpop.f32.mrf.mxu1  ;;  %10927 = vmatmul.mubr.bf16.gmra.mxu1 %v20700_v10  ;;  %v6932_v27 = vadd.f32 %v21774_v56, %v21773_v40 }
 0x4b5   :  { %21768 = vst [vmem:[#allocation140_spill] sm:$0xff] %v20706_v6  ;;  %v8639_v52 = vpop.f32.mrf.mxu0  ;;  %v20711_v44 = vadd.f32 %v17048_v62, %v8621_v32  ;;  %10934 = vmatprep.mubr.bf16.mxu1 %v18117_v63  ;;  %v18123_v6 = vld [vmem:[#allocation2 + $0x3c8] ss:$12 sps:$4 sm:$0xff]  }
 0x4b6   :  { %v8640_v47 = vadd.f32 %v8639_v52, %v6927_v50  ;;  %v9157_v39 = vpop.f32.mrf.mxu1  ;;  %v18115_v50 = vld [vmem:[#allocation2 + $0x1e0] ss:$12 sps:$4 sm:$0xff]  }
 0x4b7   :  { %21771 = vst [vmem:[#allocation68_spill] sm:$0xff] %v20711_v44  ;;  %v8641_v13 = vpop.f32.mrf.mxu0  ;;  %v20714_v37 = vadd.f32 %v9157_v39, %v20644_v23  ;;  %v18122_v23 = vld [vmem:[#allocation2 + $0x1fc] ss:$12 sps:$4 sm:$0xff]   ;;  %v21778_v44 = vld [vmem:[#allocation98_spill] sm:$0xff] }
 0x4b8   :  { %v17049_v49 = vpop.f32.mrf.mxu1  ;;  %v21777_v39 = vld [vmem:[#allocation161_spill] sm:$0xff] }
 0x4b9   :  { %21772 = vst [vmem:[#allocation141_spill] sm:$0xff] %v20714_v37  ;;  %v8644_v60 = vpop.f32.mrf.mxu0  ;;  %17139 = vmatmul.mubr.bf16.gmra.mxu0 %v18092_v17  ;;  %v20718_v32 = vadd.f32 %v17049_v49, %v8624_v12  ;;  %v6935_v37 = vadd.f32 %v21778_v44, %v21777_v39  ;;  %v21781_v49 = vld [vmem:[#allocation162_spill] sm:$0xff] }
 0x4ba   :  { %v8645_v63 = vadd.f32 %v8644_v60, %v6932_v27  ;;  %17142 = vmatprep.mubr.bf16.mxu0 %v18096_v8  ;;  %v9160_v62 = vpop.f32.mrf.mxu1  ;;  %v18097_v27 = vld [vmem:[#allocation2 + $0x290] ss:$12 sps:$4 sm:$0xff]  }
 0x4bb   :  { %21775 = vst [vmem:[#allocation71_spill] sm:$0xff] %v20718_v32  ;;  %v8646_v52 = vpop.f32.mrf.mxu0  ;;  %v20721_v13 = vadd.f32 %v9160_v62, %v20654_v42  ;;  %v21782_v42 = vld [vmem:[#allocation94_spill] sm:$0xff] }
 0x4bc   :  { %v17052_v40 = vpop.f32.mrf.mxu1  ;;  %10935 = vmatmul.mubr.bf16.gmra.mxu1 %v18115_v50  ;;  %v6940_v62 = vadd.f32 %v21782_v42, %v21781_v49  ;;  %v18101_v52 = vld [vmem:[#allocation2 + $0x2a8] ss:$12 sps:$4 sm:$0xff]  }
 0x4bd   :  { %21776 = vst [vmem:[#allocation142_spill] sm:$0xff] %v20721_v13  ;;  %v8647_v56 = vpop.f32.mrf.mxu0  ;;  %v20725_v14 = vadd.f32 %v17052_v40, %v8637_v38  ;;  %10942 = vmatprep.mubr.bf16.mxu1 %v18122_v23  ;;  %v18120_v38 = vld [vmem:[#allocation2 + $0x1f8] ss:$12 sps:$4 sm:$0xff]   ;;  %v18127_v40 = vld [vmem:[#allocation2 + $0x214] ss:$12 sps:$4 sm:$0xff]  }
 0x4be   :  { %v8648_v12 = vadd.f32 %v8647_v56, %v6935_v37  ;;  %v9173_v17 = vpop.f32.mrf.mxu1  ;;  %v21786_v56 = vld [vmem:[#allocation97_spill] sm:$0xff] }
 0x4bf   :  { %21779 = vst [vmem:[#allocation67_spill] sm:$0xff] %v20725_v14  ;;  %v8649_v60 = vpop.f32.mrf.mxu0  ;;  %v20728_v8 = vadd.f32 %v9173_v17, %v20682_v41  ;;  %v21785_v41 = vld [vmem:[#allocation163_spill] sm:$0xff] }
 0x4c0   :  { %v17053_v32 = vpop.f32.mrf.mxu1  ;;  %v6943_v17 = vadd.f32 %v21786_v56, %v21785_v41 }
 0x4c1   :  { %21780 = vst [vmem:[#allocation143_spill] sm:$0xff] %v20728_v8  ;;  %v8652_v13 = vpop.f32.mrf.mxu0  ;;  %17143 = vmatmul.mubr.bf16.gmra.mxu0 %v18097_v27  ;;  %v20732_v44 = vadd.f32 %v17053_v32, %v8640_v47  ;;  %v18102_v27 = vld [vmem:[#allocation2 + $0x2c0] ss:$12 sps:$4 sm:$0xff]  }
 0x4c2   :  { %v8653_v50 = vadd.f32 %v8652_v13, %v6940_v62  ;;  %17146 = vmatprep.mubr.bf16.mxu0 %v18101_v52  ;;  %v9176_v23 = vpop.f32.mrf.mxu1  ;;  %v21789_v52 = vld [vmem:[#allocation164_spill] sm:$0xff] }
 0x4c3   :  { %21783 = vst [vmem:[#allocation70_spill] sm:$0xff] %v20732_v44  ;;  %v8654_v37 = vpop.f32.mrf.mxu0  ;;  %v20735_v39 = vadd.f32 %v9176_v23, %v20693_v15  ;;  %v18106_v23 = vld [vmem:[#allocation2 + $0x2d8] ss:$12 sps:$4 sm:$0xff]  }
 0x4c4   :  { %v17056_v60 = vpop.f32.mrf.mxu1  ;;  %10943 = vmatmul.mubr.bf16.gmra.mxu1 %v18120_v38  ;;  %v21790_v37 = vld [vmem:[#allocation101_spill] sm:$0xff] }
 0x4c5   :  { %21784 = vst [vmem:[#allocation144_spill] sm:$0xff] %v20735_v39  ;;  %v8655_v49 = vpop.f32.mrf.mxu0  ;;  %v20739_v42 = vadd.f32 %v17056_v60, %v8653_v50  ;;  %10950 = vmatprep.mubr.bf16.mxu1 %v18127_v40  ;;  %v6948_v15 = vadd.f32 %v21790_v37, %v21789_v52  ;;  %v18125_v50 = vld [vmem:[#allocation2 + $0x210] ss:$12 sps:$4 sm:$0xff]   ;;  %v18132_v60 = vld [vmem:[#allocation2 + $0x22c] ss:$12 sps:$4 sm:$0xff]  }
 0x4c6   :  { %v8656_v47 = vadd.f32 %v8655_v49, %v6943_v17  ;;  %v9189_v32 = vpop.f32.mrf.mxu1  ;;  %v21793_v49 = vld [vmem:[#allocation165_spill] sm:$0xff]  ;;  %v18185_v37 = vld [vmem:[#allocation9 + $0x30] sm:$0xff]  }
 0x4c7   :  { %21787 = vst [vmem:[#allocation73_spill] sm:$0xff] %v20739_v42  ;;  %v8657_v13 = vpop.f32.mrf.mxu0  ;;  %v20741_v62 = vadd.f32 %v9189_v32, %v8645_v63  ;;  %v21794_v63 = vld [vmem:[#allocation104_spill] sm:$0xff]  ;;  %17228 = vmatprep.subr.bf16.mxu0 %v18185_v37 }
 0x4c8   :  { %v17057_v44 = vpop.f32.mrf.mxu1  ;;  %v6951_v32 = vadd.f32 %v21794_v63, %v21793_v49  ;;  %17229 = vmatpush3.bf16.msra.mxu0 %v18185_v37  ;;  %v18187_v49 = vld [vmem:[#allocation9 + $0x28] sm:$0xff]  }
 0x4c9   :  { %21788 = vst [vmem:[#allocation145_spill] sm:$0xff] %v20741_v62  ;;  %v8660_v14 = vpop.f32.mrf.mxu0  ;;  %17147 = vmatmul.mubr.bf16.gmra.mxu0 %v18102_v27  ;;  %v20745_v41 = vadd.f32 %v17057_v44, %v8656_v47  ;;  %v18107_v47 = vld [vmem:[#allocation2 + $0x2f0] ss:$12 sps:$4 sm:$0xff]   ;;  %17230 = vmatprep.subr.bf16.mxu0 %v18187_v49 }
 0x4ca   :  { %v8661_v38 = vadd.f32 %v8660_v14, %v6948_v15  ;;  %17150 = vmatprep.mubr.bf16.mxu0 %v18106_v23  ;;  %v9192_v56 = vpop.f32.mrf.mxu1  ;;  %v21796_v15 = vld [vmem:[#allocation166_spill] sm:$0xff]  ;;  %v21797_v23 = vld [vmem:[#allocation100_spill] sm:$0xff] }
 0x4cb   :  { %21791 = vst [vmem:[#allocation76_spill] sm:$0xff] %v20745_v41  ;;  %v8662_v40 = vpop.f32.mrf.mxu0  ;;  %v20747_v17 = vadd.f32 %v9192_v56, %v8648_v12  ;;  %v6956_v12 = vadd.f32 %v21797_v23, %v21796_v15  ;;  %v18111_v56 = vld [vmem:[#allocation2 + $0x308] ss:$12 sps:$4 sm:$0xff]  }
 0x4cc   :  { %v17060_v13 = vpop.f32.mrf.mxu1  ;;  %10951 = vmatmul.mubr.bf16.gmra.mxu1 %v18125_v50  ;;  %17231 = vmatpush3.bf16.msra.mxu0 %v18187_v49 }
 0x4cd   :  { %21792 = vst [vmem:[#allocation146_spill] sm:$0xff] %v20747_v17  ;;  %v8663_v52 = vpop.f32.mrf.mxu0  ;;  %10958 = vmatprep.mubr.bf16.mxu1 %v18132_v60  ;;  %v18130_v60 = vld [vmem:[#allocation2 + $0x228] ss:$12 sps:$4 sm:$0xff]  }
 0x4ce   :  { %v8664_v42 = vadd.f32 %v8663_v52, %v6951_v32  ;;  %v9205_v27 = vpop.f32.mrf.mxu1 }
 0x4cf   :  { %v8665_v44 = vpop.f32.mrf.mxu0  ;;  %v20751_v14 = vadd.f32 %v9205_v27, %v8661_v38  ;;  %v21799_v38 = vld [vmem:[#allocation167_spill] sm:$0xff] }
 0x4d0   :  { %v17061_v40 = vpop.f32.mrf.mxu1  ;;  %v18137_v44 = vld [vmem:[#allocation2 + $0x244] ss:$12 sps:$4 sm:$0xff]   ;;  %v21800_v27 = vld [vmem:[#allocation103_spill] sm:$0xff] }
 0x4d1   :  { %21795 = vst [vmem:[#allocation72_spill] sm:$0xff] %v20751_v14  ;;  %v8668_v41 = vpop.f32.mrf.mxu0  ;;  %17151 = vmatmul.mubr.bf16.gmra.mxu0 %v18107_v47  ;;  %v6959_v14 = vadd.f32 %v21800_v27, %v21799_v38  ;;  %v18192_v47 = vld [vmem:[#allocation9 + $0x20] sm:$0xff]   ;;  %v18142_v27 = vld [vmem:[#allocation2 + $0x25c] ss:$12 sps:$4 sm:$0xff]  }
 0x4d2   :  { %v8669_v50 = vadd.f32 %v8668_v41, %v6956_v12  ;;  %17154 = vmatprep.mubr.bf16.mxu0 %v18111_v56  ;;  %v9208_v63 = vpop.f32.mrf.mxu1  ;;  %v18112_v56 = vld [vmem:[#allocation2 + $0x320] ss:$12 sps:$4 sm:$0xff]   ;;  %17232 = vmatprep.subr.bf16.mxu0 %v18192_v47 }
 0x4d3   :  { %v8670_v32 = vpop.f32.mrf.mxu0  ;;  %v20755_v52 = vadd.f32 %v9208_v63, %v8664_v42  ;;  %v21802_v42 = vld [vmem:[#allocation168_spill] sm:$0xff]  ;;  %v21803_v63 = vld [vmem:[#allocation107_spill] sm:$0xff]  ;;  %17233 = vmatpush3.bf16.msra.mxu0 %v18192_v47 }
 0x4d4   :  { %v20759_v17 = vadd.f32 %v17060_v13, %v8669_v50  ;;  %v17064_v15 = vpop.f32.mrf.mxu1  ;;  %10959 = vmatmul.mubr.bf16.gmra.mxu1 %v18130_v60  ;;  %v6964_v32 = vadd.f32 %v21803_v63, %v21802_v42  ;;  %v18194_v50 = vld [vmem:[#allocation9 + $0x18] sm:$0xff]   ;;  %v18135_v60 = vld [vmem:[#allocation2 + $0x240] ss:$12 sps:$4 sm:$0xff]  }
 0x4d5   :  { %21798 = vst [vmem:[#allocation147_spill] sm:$0xff] %v20755_v52  ;;  %v8671_v37 = vpop.f32.mrf.mxu0  ;;  %10966 = vmatprep.mubr.bf16.mxu1 %v18137_v44  ;;  %v18113_v52 = vld [vmem:[#allocation2 + $0x338] ss:$12 sps:$4 sm:$0xff]   ;;  %17234 = vmatprep.subr.bf16.mxu0 %v18194_v50  ;;  %v18114_v47 = vld [vmem:[#allocation2 + $0x350] ss:$12 sps:$4 sm:$0xff]  }
 0x4d6   :  { %21801 = vst [vmem:[#allocation75_spill] sm:$0xff] %v20759_v17  ;;  %v8672_v41 = vadd.f32 %v8671_v37, %v6959_v14  ;;  %v9221_v23 = vpop.f32.mrf.mxu1  ;;  %v21805_v37 = vld [vmem:[#allocation169_spill] sm:$0xff] }
 0x4d7   :  { %v8673_v12 = vpop.f32.mrf.mxu0  ;;  %17235 = vmatpush3.bf16.msra.mxu0 %v18194_v50  ;;  %v18198_v50 = vld [vmem:[#allocation9 + $0x8] sm:$0xff]  }
 0x4d8   :  { %v20763_v62 = vadd.f32 %v17061_v40, %v8672_v41  ;;  %v17065_v38 = vpop.f32.mrf.mxu1  ;;  %v21806_v12 = vld [vmem:[#allocation110_spill] sm:$0xff] }
 0x4d9   :  { %v8676_v13 = vpop.f32.mrf.mxu0  ;;  %17155 = vmatmul.mubr.bf16.gmra.mxu0 %v18112_v56  ;;  %v6967_v17 = vadd.f32 %v21806_v12, %v21805_v37  ;;  %v18196_v41 = vld [vmem:[#allocation9 + $0x10] sm:$0xff]  }
 0x4da   :  { %21804 = vst [vmem:[#allocation148_spill] sm:$0xff] %v20763_v62  ;;  %v8677_v49 = vadd.f32 %v8676_v13, %v6964_v32  ;;  %17158 = vmatprep.mubr.bf16.mxu0 %v18113_v52  ;;  %v9224_v44 = vpop.f32.mrf.mxu1  ;;  %17236 = vmatprep.subr.bf16.mxu0 %v18196_v41  ;;  %v21808_v32 = vld [vmem:[#allocation30_spill] sm:$0xff]  ;;  %v18118_v62 = vld [vmem:[#allocation2 + $0x398] ss:$12 sps:$4 sm:$0xff]  }
 0x4db   :  { %v8678_v14 = vpop.f32.mrf.mxu0  ;;  %v21809_v13 = vld [vmem:[#allocation106_spill] sm:$0xff]  ;;  %17237 = vmatpush3.bf16.msra.mxu0 %v18196_v41 }
 0x4dc   :  { %v20767_v39 = vadd.f32 %v9221_v23, %v8677_v49  ;;  %v20769_v42 = vpop.f32.mrf.mxu1  ;;  %10967 = vmatmul.mubr.bf16.gmra.mxu1 %v18135_v60  ;;  %v6972_v14 = vadd.f32 %v21809_v13, %v21808_v32  ;;  %v18147_v12 = vld [vmem:[#allocation2 + $0x274] ss:$12 sps:$4 sm:$0xff]   ;;  %17238 = vmatprep.subr.bf16.mxu0 %v18198_v50 }
 0x4dd   :  { %v8679_v40 = vpop.f32.mrf.mxu0  ;;  %10974 = vmatprep.mubr.bf16.mxu1 %v18142_v27  ;;  %v18140_v27 = vld [vmem:[#allocation2 + $0x258] ss:$12 sps:$4 sm:$0xff]  }
 0x4de   :  { %21807 = vst [vmem:[#allocation79_spill] sm:$0xff] %v20767_v39  ;;  %v8680_v56 = vadd.f32 %v8679_v40, %v6967_v17  ;;  %v9237_v52 = vpop.f32.mrf.mxu1  ;;  %v21811_v40 = vld [vmem:[#allocation16_spill] sm:$0xff] }
 0x4df   :  { %v8681_v63 = vpop.f32.mrf.mxu0  ;;  %17239 = vmatpush3.bf16.msra.mxu0 %v18198_v50 }
 0x4e0   :  { %v20773_v8 = vadd.f32 %v9224_v44, %v8680_v56  ;;  %v20775_v23 = vpop.f32.mrf.mxu1  ;;  %v21812_v63 = vld [vmem:[#allocation109_spill] sm:$0xff] }
 0x4e1   :  { %v8684_v49 = vpop.f32.mrf.mxu0  ;;  %17159 = vmatmul.mubr.bf16.gmra.mxu0 %v18114_v47  ;;  %v6975_v39 = vadd.f32 %v21812_v63, %v21811_v40  ;;  %v18202_v47 = vld [vmem:[#allocation9] sm:$0xff]   ;;  %v18152_v40 = vld [vmem:[#allocation2 + $0x28c] ss:$12 sps:$4 sm:$0xff]  }
 0x4e2   :  { %21810 = vst [vmem:[#allocation149_spill] sm:$0xff] %v20773_v8  ;;  %v8685_v60 = vadd.f32 %v8684_v49, %v6972_v14  ;;  %17162 = vmatprep.mubr.bf16.mxu0 %v18118_v62  ;;  %v9240_v37 = vpop.f32.mrf.mxu1  ;;  %v18119_v14 = vld [vmem:[#allocation2 + $0x3b0] ss:$12 sps:$4 sm:$0xff]   ;;  %17240 = vmatprep.subr.bf16.mxu0 %v18202_v47 }
 0x4e3   :  { %v8686_v17 = vpop.f32.mrf.mxu0  ;;  %v21814_v49 = vld [vmem:[#allocation170_spill] sm:$0xff]  ;;  %17241 = vmatpush3.bf16.msra.mxu0 %v18202_v47  ;;  %v21817_v63 = vld [vmem:[#allocation35_spill] sm:$0xff] }
 0x4e4   :  { %v20779_v32 = vadd.f32 %v17064_v15, %v8685_v60  ;;  %v20781_v44 = vpop.f32.mrf.mxu1  ;;  %10975 = vmatmul.mubr.bf16.gmra.mxu1 %v18140_v27  ;;  %v21815_v17 = vld [vmem:[#allocation113_spill] sm:$0xff]  ;;  %v18145_v27 = vld [vmem:[#allocation2 + $0x270] ss:$12 sps:$4 sm:$0xff]  }
 0x4e5   :  { %v8687_v41 = vpop.f32.mrf.mxu0  ;;  %10982 = vmatprep.mubr.bf16.mxu1 %v18147_v12  ;;  %v6980_v8 = vadd.f32 %v21815_v17, %v21814_v49  ;;  %v21821_v17 = vld [vmem:[#allocation112_spill] sm:$0xff] }
 0x4e6   :  { %21813 = vst [vmem:[#allocation81_spill] sm:$0xff] %v20779_v32  ;;  %v8688_v56 = vadd.f32 %v8687_v41, %v6975_v39  ;;  %v9253_v13 = vpop.f32.mrf.mxu1  ;;  %v21818_v41 = vld [vmem:[#allocation116_spill] sm:$0xff] }
 0x4e7   :  { %v8689_v62 = vpop.f32.mrf.mxu0 }
 0x4e8   :  { %v20785_v1 = vadd.f32 %v17065_v38, %v8688_v56  ;;  %v20787_v15 = vpop.f32.mrf.mxu1  ;;  %v6983_v62 = vadd.f32 %v21818_v41, %v21817_v63  ;;  %v18157_v41 = vld [vmem:[#allocation2 + $0x2a4] ss:$12 sps:$4 sm:$0xff]  }
 0x4e9   :  { %v8692_v60 = vpop.f32.mrf.mxu0  ;;  %17163 = vmatmul.mubr.bf16.gmra.mxu0 %v18119_v14 }
 0x4ea   :  { %21816 = vst [vmem:[#allocation150_spill] sm:$0xff] %v20785_v1  ;;  %v8693_v50 = vadd.f32 %v8692_v60, %v6980_v8  ;;  %17166 = vmatprep.mubr.bf16.mxu0 %v18123_v6  ;;  %v9256_v12 = vpop.f32.mrf.mxu1  ;;  %v18124_v8 = vld [vmem:[#allocation2 + $0x3e0] ss:$12 sps:$4 sm:$0xff]  }
 0x4eb   :  { %v8694_v39 = vpop.f32.mrf.mxu0  ;;  %v21820_v6 = vld [vmem:[#allocation37_spill] sm:$0xff] }
 0x4ec   :  { %v20791_v32 = vadd.f32 %v9237_v52, %v8693_v50  ;;  %v20793_v49 = vpop.f32.mrf.mxu1  ;;  %10983 = vmatmul.mubr.bf16.gmra.mxu1 %v18145_v27  ;;  %v6988_v60 = vadd.f32 %v21821_v17, %v21820_v6  ;;  %v18128_v39 = vld [vmem:[#allocation2 + $0x3f8] ss:$12 sps:$4 sm:$0xff]   ;;  %v18150_v27 = vld [vmem:[#allocation2 + $0x288] ss:$12 sps:$4 sm:$0xff]  }
 0x4ed   :  { %v8695_v38 = vpop.f32.mrf.mxu0  ;;  %10990 = vmatprep.mubr.bf16.mxu1 %v18152_v40 }
 0x4ee   :  { %21819 = vst [vmem:[#allocation78_spill] sm:$0xff] %v20791_v32  ;;  %v8696_v56 = vadd.f32 %v8695_v38, %v6983_v62  ;;  %v20795_v47 = vpop.f32.mrf.mxu1  ;;  %v21823_v62 = vld [vmem:[#allocation18_spill] sm:$0xff]  ;;  %v21824_v38 = vld [vmem:[#allocation115_spill] sm:$0xff] }
 0x4ef   :  { %v8697_v14 = vpop.f32.mrf.mxu0 }
 0x4f0   :  { %v20799_v1 = vadd.f32 %v9240_v37, %v8696_v56  ;;  %v20801_v30 = vpop.f32.mrf.mxu1  ;;  %v6991_v14 = vadd.f32 %v21824_v38, %v21823_v62 }
 0x4f1   :  { %v8700_v52 = vpop.f32.mrf.mxu0  ;;  %17167 = vmatmul.mubr.bf16.gmra.mxu0 %v18124_v8 }
 0x4f2   :  { %21822 = vst [vmem:[#allocation151_spill] sm:$0xff] %v20799_v1  ;;  %v8701_v50 = vadd.f32 %v8700_v52, %v6988_v60  ;;  %17170 = vmatprep.mubr.bf16.mxu0 %v18128_v39  ;;  %v20803_v63 = vpop.f32.mrf.mxu1  ;;  %v18129_v60 = vld [vmem:[#allocation2 + $0x410] ss:$12 sps:$4 sm:$0xff]   ;;  %v21826_v39 = vld [vmem:[#allocation20_spill] sm:$0xff]  ;;  %v18133_v1 = vld [vmem:[#allocation2 + $0x428] ss:$12 sps:$4 sm:$0xff]  }
 0x4f3   :  { %v8702_v40 = vpop.f32.mrf.mxu0  ;;  %v21827_v52 = vld [vmem:[#allocation119_spill] sm:$0xff] }
 0x4f4   :  { %v20808_v32 = vadd.f32 %v20769_v42, %v8701_v50  ;;  %v20810_v6 = vpop.f32.mrf.mxu1  ;;  %10991 = vmatmul.mubr.bf16.gmra.mxu1 %v18150_v27  ;;  %v6996_v40 = vadd.f32 %v21827_v52, %v21826_v39  ;;  %v18155_v27 = vld [vmem:[#allocation2 + $0x2a0] ss:$12 sps:$4 sm:$0xff]  }
 0x4f5   :  { %v8703_v37 = vpop.f32.mrf.mxu0  ;;  %10998 = vmatprep.mubr.bf16.mxu1 %v18157_v41 }
 0x4f6   :  { %21825 = vst [vmem:[#allocation80_spill] sm:$0xff] %v20808_v32  ;;  %v8704_v56 = vadd.f32 %v8703_v37, %v6991_v14  ;;  %v20812_v8 = vpop.f32.mrf.mxu1  ;;  %v18162_v14 = vld [vmem:[#allocation2 + $0x2bc] ss:$12 sps:$4 sm:$0xff]   ;;  %v21829_v37 = vld [vmem:[#allocation42_spill] sm:$0xff] }
 0x4f7   :  { %v8705_v17 = vpop.f32.mrf.mxu0 }
 0x4f8   :  { %v20817_v2 = vadd.f32 %v20775_v23, %v8704_v56  ;;  %v20819_v62 = vpop.f32.mrf.mxu1  ;;  %v21830_v17 = vld [vmem:[#allocation122_spill] sm:$0xff] }
 0x4f9   :  { %v8708_v42 = vpop.f32.mrf.mxu0  ;;  %17171 = vmatmul.mubr.bf16.gmra.mxu0 %v18129_v60  ;;  %v6999_v32 = vadd.f32 %v21830_v17, %v21829_v37 }
 0x4fa   :  { %21828 = vst [vmem:[#allocation152_spill] sm:$0xff] %v20817_v2  ;;  %v8709_v50 = vadd.f32 %v8708_v42, %v6996_v40  ;;  %17174 = vmatprep.mubr.bf16.mxu0 %v18133_v1  ;;  %v20821_v41 = vpop.f32.mrf.mxu1  ;;  %v18134_v40 = vld [vmem:[#allocation2 + $0x440] ss:$12 sps:$4 sm:$0xff]   ;;  %v21832_v1 = vld [vmem:[#allocation19_spill] sm:$0xff]  ;;  %v21833_v42 = vld [vmem:[#allocation118_spill] sm:$0xff] }
 0x4fb   :  { %v8710_v38 = vpop.f32.mrf.mxu0  ;;  %v7004_v2 = vadd.f32 %v21833_v42, %v21832_v1 }
 0x4fc   :  { %v20825_v36 = vadd.f32 %v9253_v13, %v8709_v50  ;;  %v20827_v39 = vpop.f32.mrf.mxu1  ;;  %10999 = vmatmul.mubr.bf16.gmra.mxu1 %v18155_v27  ;;  %v18160_v50 = vld [vmem:[#allocation2 + $0x2b8] ss:$12 sps:$4 sm:$0xff]  }
 0x4fd   :  { %v8711_v23 = vpop.f32.mrf.mxu0  ;;  %11006 = vmatprep.mubr.bf16.mxu1 %v18162_v14  ;;  %v18167_v14 = vld [vmem:[#allocation2 + $0x2d4] ss:$12 sps:$4 sm:$0xff]  }
 0x4fe   :  { %21831 = vst [vmem:[#allocation83_spill] sm:$0xff] %v20825_v36  ;;  %v8712_v56 = vadd.f32 %v8711_v23, %v6999_v32  ;;  %v10810_v52 = vpop.f32.mrf.mxu1  ;;  %v21835_v32 = vld [vmem:[#allocation45_spill] sm:$0xff] }
 0x4ff   :  { %v8713_v60 = vpop.f32.mrf.mxu0  ;;  %v21836_v23 = vld [vmem:[#allocation121_spill] sm:$0xff] }
 0x500   :  { %v20831_v38 = vadd.f32 %v9256_v12, %v8712_v56  ;;  %v20833_v0 = vpop.f32.mrf.mxu1  ;;  %v7007_v52 = vadd.f32 %v21836_v23, %v21835_v32 }
 0x501   :  { %v8716_v37 = vpop.f32.mrf.mxu0  ;;  %17175 = vmatmul.mubr.bf16.gmra.mxu0 %v18134_v40 }
 0x502   :  { %21834 = vst [vmem:[#allocation153_spill] sm:$0xff] %v20831_v38  ;;  %v8717_v13 = vadd.f32 %v8716_v37, %v7004_v2  ;;  %17178 = vmatprep.mubr.bf16.mxu0 %v18138_v58  ;;  %v10813_v27 = vpop.f32.mrf.mxu1  ;;  %v18139_v2 = vld [vmem:[#allocation2 + $0x470] ss:$12 sps:$4 sm:$0xff]   ;;  %v21838_v58 = vld [vmem:[#allocation21_spill] sm:$0xff] }
 0x503   :  { %v8718_v17 = vpop.f32.mrf.mxu0  ;;  %v21839_v37 = vld [vmem:[#allocation125_spill] sm:$0xff] }
 0x504   :  { %v20838_v60 = vadd.f32 %v20781_v44, %v8717_v13  ;;  %v20840_v1 = vpop.f32.mrf.mxu1  ;;  %11007 = vmatmul.mubr.bf16.gmra.mxu1 %v18160_v50  ;;  %v7012_v27 = vadd.f32 %v21839_v37, %v21838_v58  ;;  %v18143_v17 = vld [vmem:[#allocation2 + $0x488] ss:$12 sps:$4 sm:$0xff]   ;;  %v18165_v50 = vld [vmem:[#allocation2 + $0x2d0] ss:$12 sps:$4 sm:$0xff]  }
 0x505   :  { %v8719_v12 = vpop.f32.mrf.mxu0  ;;  %11014 = vmatprep.mubr.bf16.mxu1 %v18167_v14 }
 0x506   :  { %21837 = vst [vmem:[#allocation86_spill] sm:$0xff] %v20838_v60  ;;  %v8720_v56 = vadd.f32 %v8719_v12, %v7007_v52  ;;  %v10818_v42 = vpop.f32.mrf.mxu1  ;;  %v18173_v52 = vld [vmem:[#allocation2 + $0x2ec] ss:$12 sps:$4 sm:$0xff]   ;;  %v21841_v12 = vld [vmem:[#allocation48_spill] sm:$0xff] }
 0x507   :  { %v8721_v40 = vpop.f32.mrf.mxu0  ;;  %v21842_v42 = vld [vmem:[#allocation128_spill] sm:$0xff] }
 0x508   :  { %v20845_v38 = vadd.f32 %v20787_v15, %v8720_v56  ;;  %v20847_v32 = vpop.f32.mrf.mxu1  ;;  %v7015_v40 = vadd.f32 %v21842_v42, %v21841_v12 }
 0x509   :  { %v8724_v44 = vpop.f32.mrf.mxu0  ;;  %17179 = vmatmul.mubr.bf16.gmra.mxu0 %v18139_v2 }
 0x50a   :  { %21840 = vst [vmem:[#allocation154_spill] sm:$0xff] %v20845_v38  ;;  %v8725_v13 = vadd.f32 %v8724_v44, %v7012_v27  ;;  %17182 = vmatprep.mubr.bf16.mxu0 %v18143_v17  ;;  %v10821_v23 = vpop.f32.mrf.mxu1  ;;  %v18144_v27 = vld [vmem:[#allocation2 + $0x4a0] ss:$12 sps:$4 sm:$0xff]   ;;  %v21844_v17 = vld [vmem:[#allocation23_spill] sm:$0xff] }
 0x50b   :  { %v8726_v14 = vpop.f32.mrf.mxu0  ;;  %v21845_v44 = vld [vmem:[#allocation124_spill] sm:$0xff] }
 0x50c   :  { %v20852_v60 = vadd.f32 %v20795_v47, %v8725_v13  ;;  %v20854_v58 = vpop.f32.mrf.mxu1  ;;  %11015 = vmatmul.mubr.bf16.gmra.mxu1 %v18165_v50  ;;  %v7020_v23 = vadd.f32 %v21845_v44, %v21844_v17  ;;  %v18148_v14 = vld [vmem:[#allocation2 + $0x4b8] ss:$12 sps:$4 sm:$0xff]   ;;  %v18171_v50 = vld [vmem:[#allocation2 + $0x2e8] ss:$12 sps:$4 sm:$0xff]  }
 0x50d   :  { %v8727_v15 = vpop.f32.mrf.mxu0  ;;  %11022 = vmatprep.mubr.bf16.mxu1 %v18173_v52 }
 0x50e   :  { %21843 = vst [vmem:[#allocation82_spill] sm:$0xff] %v20852_v60  ;;  %v8728_v56 = vadd.f32 %v8727_v15, %v7015_v40  ;;  %v10826_v37 = vpop.f32.mrf.mxu1  ;;  %v18178_v40 = vld [vmem:[#allocation2 + $0x304] ss:$12 sps:$4 sm:$0xff]  }
 0x50f   :  { %v8729_v2 = vpop.f32.mrf.mxu0  ;;  %v21847_v15 = vld [vmem:[#allocation22_spill] sm:$0xff]  ;;  %v21848_v37 = vld [vmem:[#allocation127_spill] sm:$0xff] }
 0x510   :  { %v20859_v38 = vadd.f32 %v20803_v63, %v8728_v56  ;;  %v20861_v12 = vpop.f32.mrf.mxu1  ;;  %v7023_v2 = vadd.f32 %v21848_v37, %v21847_v15 }
 0x511   :  { %v8732_v47 = vpop.f32.mrf.mxu0  ;;  %17183 = vmatmul.mubr.bf16.gmra.mxu0 %v18144_v27 }
 0x512   :  { %21846 = vst [vmem:[#allocation155_spill] sm:$0xff] %v20859_v38  ;;  %v8733_v13 = vadd.f32 %v8732_v47, %v7020_v23  ;;  %17186 = vmatprep.mubr.bf16.mxu0 %v18148_v14  ;;  %v10829_v42 = vpop.f32.mrf.mxu1  ;;  %v18149_v23 = vld [vmem:[#allocation2 + $0x4d0] ss:$12 sps:$4 sm:$0xff]   ;;  %v21850_v14 = vld [vmem:[#allocation24_spill] sm:$0xff] }
 0x513   :  { %v8734_v52 = vpop.f32.mrf.mxu0  ;;  %v21851_v47 = vld [vmem:[#allocation131_spill] sm:$0xff] }
 0x514   :  { %v20866_v60 = vadd.f32 %v20793_v49, %v8733_v13  ;;  %v20868_v17 = vpop.f32.mrf.mxu1  ;;  %11023 = vmatmul.mubr.bf16.gmra.mxu1 %v18171_v50  ;;  %v7028_v42 = vadd.f32 %v21851_v47, %v21850_v14  ;;  %v18153_v52 = vld [vmem:[#allocation2 + $0x4e8] ss:$12 sps:$4 sm:$0xff]   ;;  %v18176_v50 = vld [vmem:[#allocation2 + $0x300] ss:$12 sps:$4 sm:$0xff]  }
 0x515   :  { %v8735_v63 = vpop.f32.mrf.mxu0  ;;  %11030 = vmatprep.mubr.bf16.mxu1 %v18178_v40 }
 0x516   :  { %21849 = vst [vmem:[#allocation85_spill] sm:$0xff] %v20866_v60  ;;  %v8736_v56 = vadd.f32 %v8735_v63, %v7023_v2  ;;  %v10834_v44 = vpop.f32.mrf.mxu1  ;;  %v18183_v2 = vld [vmem:[#allocation2 + $0x31c] ss:$12 sps:$4 sm:$0xff]   ;;  %v21853_v63 = vld [vmem:[#allocation26_spill] sm:$0xff] }
 0x517   :  { %v8737_v27 = vpop.f32.mrf.mxu0  ;;  %v21854_v44 = vld [vmem:[#allocation134_spill] sm:$0xff] }
 0x518   :  { %v20873_v38 = vadd.f32 %v20801_v30, %v8736_v56  ;;  %v20875_v15 = vpop.f32.mrf.mxu1  ;;  %v7031_v27 = vadd.f32 %v21854_v44, %v21853_v63  ;;  %v18154_v56 = vld [vmem:[#allocation2 + $0x500] ss:$12 sps:$4 sm:$0xff]  }
 0x519   :  { %v8740_v49 = vpop.f32.mrf.mxu0  ;;  %17187 = vmatmul.mubr.bf16.gmra.mxu0 %v18149_v23 }
 0x51a   :  { %21852 = vst [vmem:[#allocation156_spill] sm:$0xff] %v20873_v38  ;;  %v8741_v13 = vadd.f32 %v8740_v49, %v7028_v42  ;;  %17190 = vmatprep.mubr.bf16.mxu0 %v18153_v52  ;;  %v10837_v37 = vpop.f32.mrf.mxu1  ;;  %v21856_v52 = vld [vmem:[#allocation130_spill] sm:$0xff] }
 0x51b   :  { %v8742_v40 = vpop.f32.mrf.mxu0  ;;  %v7036_v49 = vadd.f32 %v21856_v52, %v20241_v59  ;;  %v18158_v37 = vld [vmem:[#allocation2 + $0x548] ss:$12 sps:$4 sm:$0xff]  }
 0x51c   :  { %v20880_v60 = vadd.f32 %v20812_v8, %v8741_v13  ;;  %v20882_v14 = vpop.f32.mrf.mxu1  ;;  %11031 = vmatmul.mubr.bf16.gmra.mxu1 %v18176_v50  ;;  %v18181_v50 = vld [vmem:[#allocation2 + $0x318] ss:$12 sps:$4 sm:$0xff]  }
 0x51d   :  { %v8743_v30 = vpop.f32.mrf.mxu0  ;;  %11038 = vmatprep.mubr.bf16.mxu1 %v18183_v2  ;;  %v18190_v2 = vld [vmem:[#allocation2 + $0x334] ss:$12 sps:$4 sm:$0xff]  }
 0x51e   :  { %21855 = vst [vmem:[#allocation89_spill] sm:$0xff] %v20880_v60  ;;  %v8744_v47 = vadd.f32 %v8743_v30, %v7031_v27  ;;  %v10842_v23 = vpop.f32.mrf.mxu1  ;;  %v21858_v27 = vld [vmem:[#allocation25_spill] sm:$0xff] }
 0x51f   :  { %v8745_v42 = vpop.f32.mrf.mxu0  ;;  %v21859_v30 = vld [vmem:[#allocation133_spill] sm:$0xff] }
 0x520   :  { %v20887_v40 = vadd.f32 %v20821_v41, %v8744_v47  ;;  %v20889_v63 = vpop.f32.mrf.mxu1  ;;  %v7039_v23 = vadd.f32 %v21859_v30, %v21858_v27  ;;  %v21862_v30 = vld [vmem:[#allocation66_spill] sm:$0xff] }
 0x521   :  { %v8748_v8 = vpop.f32.mrf.mxu0  ;;  %17191 = vmatmul.mubr.bf16.gmra.mxu0 %v18154_v56 }
 0x522   :  { %21857 = vst [vmem:[#allocation157_spill] sm:$0xff] %v20887_v40  ;;  %v8749_v13 = vadd.f32 %v8748_v8, %v7036_v49  ;;  %17194 = vmatprep.mubr.bf16.mxu0 %v18158_v37  ;;  %v10845_v44 = vpop.f32.mrf.mxu1  ;;  %v18159_v49 = vld [vmem:[#allocation2 + $0x560] ss:$12 sps:$4 sm:$0xff]  }
 0x523   :  { %v8750_v60 = vpop.f32.mrf.mxu0 }
 0x524   :  { %v20894_v42 = vadd.f32 %v20810_v6, %v8749_v13  ;;  %v20896_v59 = vpop.f32.mrf.mxu1  ;;  %11039 = vmatmul.mubr.bf16.gmra.mxu1 %v18181_v50  ;;  %v18163_v60 = vld [vmem:[#allocation2 + $0x578] ss:$12 sps:$4 sm:$0xff]   ;;  %v18188_v13 = vld [vmem:[#allocation2 + $0x330] ss:$12 sps:$4 sm:$0xff]  }
 0x525   :  { %v8751_v41 = vpop.f32.mrf.mxu0  ;;  %11046 = vmatprep.mubr.bf16.mxu1 %v18190_v2 }
 0x526   :  { %21860 = vst [vmem:[#allocation92_spill] sm:$0xff] %v20894_v42  ;;  %v8752_v47 = vadd.f32 %v8751_v41, %v7039_v23  ;;  %v10850_v52 = vpop.f32.mrf.mxu1 }
 0x527   :  { %v8753_v56 = vpop.f32.mrf.mxu0 }
 0x528   :  { %v20899_v37 = vadd.f32 %v20819_v62, %v8752_v47  ;;  %v20901_v8 = vpop.f32.mrf.mxu1  ;;  %v21863_v47 = vld [vmem:[#allocation27_spill] sm:$0xff] }
 0x529   :  { %v17100_v44 = vpop.f32.mrf.mxu0  ;;  %17195 = vmatmul.mubr.bf16.gmra.mxu0 %v18159_v49 }
 0x52a   :  { %21861 = vst [vmem:[#allocation158_spill] sm:$0xff] %v20899_v37  ;;  %17198 = vmatprep.mubr.bf16.mxu0 %v18163_v60  ;;  %v11362_v6 = vadd.f32 %v17100_v44, %v20840_v1  ;;  %v10853_v27 = vpop.f32.mrf.mxu1  ;;  %v18164_v1 = vld [vmem:[#allocation2 + $0x590] ss:$12 sps:$4 sm:$0xff]  }
 0x52b   :  { %v11353_v50 = vpop.f32.mrf.mxu0  ;;  %v18168_v27 = vld [vmem:[#allocation2 + $0x5a8] ss:$12 sps:$4 sm:$0xff]  }
 0x52c   :  { %v11354_v2 = vadd.f32 %v11353_v50, %v20827_v39  ;;  %v11866_v23 = vadd.f32 %v11362_v6, %v21862_v30  ;;  %v20906_v41 = vpop.f32.mrf.mxu1  ;;  %11047 = vmatmul.mubr.bf16.gmra.mxu1 %v18188_v13 }
 0x52d   :  { %v17101_v62 = vpop.f32.mrf.mxu0  ;;  %11054 = vmatprep.mubr.bf16.mxu1 %v20680_v9 }
 0x52e   :  { %v11864_v52 = vadd.f32 %v11354_v2, %v21863_v47  ;;  %v11365_v56 = vadd.f32 %v17101_v62, %v20847_v32  ;;  %v10858_v49 = vpop.f32.mrf.mxu1  ;;  %v11994_v30 = vmax.f32 %v11866_v23, 0.0 }
 0x52f   :  { %v11356_v60 = vpop.f32.mrf.mxu0  ;;  %v18201_v49 = vld [vmem:[#allocation2 + $0x394] ss:$12 sps:$4 sm:$0xff]  }
 0x530   :  { %v11357_v44 = vadd.f32 %v11356_v60, %v20833_v0  ;;  %v11867_v39 = vadd.f32 %v11365_v56, %v20263_v29  ;;  %v20913_v50 = vpop.f32.mrf.mxu1  ;;  %v11992_v62 = vmax.f32 %v11864_v52, 0.0 }
 0x531   :  { %v17104_v6 = vpop.f32.mrf.mxu0  ;;  %17199 = vmatmul.mubr.bf16.gmra.mxu0 %v18164_v1 }
 0x532   :  { %v11865_v13 = vadd.f32 %v11357_v44, %v20268_v26  ;;  %17202 = vmatprep.mubr.bf16.mxu0 %v18168_v27  ;;  %v11995_v9 = vmax.f32 %v11867_v39, 0.0  ;;  %v11378_v2 = vadd.f32 %v17104_v6, %v20868_v17  ;;  %v10861_v32 = vpop.f32.mrf.mxu1  ;;  %v18170_v27 = vld [vmem:[#allocation2 + $0x5c0] ss:$12 sps:$4 sm:$0xff]   ;;  %v18174_v39 = vld [vmem:[#allocation2 + $0x5d8] ss:$12 sps:$4 sm:$0xff]  }
 0x533   :  { %v11369_v47 = vpop.f32.mrf.mxu0 }
 0x534   :  { %v11993_v37 = vmax.f32 %v11865_v13, 0.0  ;;  %v20917_v0 = vpack.c.bf16 %v11995_v9, %v11994_v30  ;;  %v11370_v29 = vadd.f32 %v11369_v47, %v20854_v58  ;;  %v11870_v56 = vadd.f32 %v11378_v2, %v20273_v34  ;;  %v10864_v60 = vpop.f32.mrf.mxu1  ;;  %11055 = vmatmul.mubr.bf16.gmra.mxu1 %v20700_v10 }
 0x535   :  { %v17105_v26 = vpop.f32.mrf.mxu0  ;;  %11062 = vmatprep.mubr.bf16.mxu1 %v18201_v49 }
 0x536   :  { %v11868_v23 = vadd.f32 %v11370_v29, %v20278_v55  ;;  %v11381_v17 = vadd.f32 %v17105_v26, %v20875_v15  ;;  %v20924_v1 = vpack.c.bf16 %v11993_v37, %v11992_v62  ;;  %v10866_v52 = vpop.f32.mrf.mxu1  ;;  %v11998_v30 = vmax.f32 %v11870_v56, 0.0  ;;  %v18199_v37 = vld [vmem:[#allocation2 + $0x390] ss:$12 sps:$4 sm:$0xff]   ;;  %v18205_v62 = vld [vmem:[#allocation2 + $0x3ac] ss:$12 sps:$4 sm:$0xff]  }
 0x537   :  { %v11372_v44 = vpop.f32.mrf.mxu0 }
 0x538   :  { %v11373_v6 = vadd.f32 %v11372_v44, %v20861_v12  ;;  %v11871_v58 = vadd.f32 %v11381_v17, %v20283_v20  ;;  %v10867_v34 = vpop.f32.mrf.mxu1  ;;  %v11996_v2 = vmax.f32 %v11868_v23, 0.0  ;;  %v21864_v12 = vld [vmem:[#allocation69_spill] sm:$0xff] }
 0x539   :  { %v17108_v13 = vpop.f32.mrf.mxu0  ;;  %17203 = vmatmul.mubr.bf16.gmra.mxu0 %v18170_v27  ;;  %v18175_v27 = vld [vmem:[#allocation2 + $0x5f0] ss:$12 sps:$4 sm:$0xff]  }
 0x53a   :  { %17206 = vmatprep.mubr.bf16.mxu0 %v18174_v39  ;;  %v11869_v10 = vadd.f32 %v11373_v6, %v20288_v3  ;;  %v11999_v55 = vmax.f32 %v11871_v58, 0.0  ;;  %v11394_v15 = vadd.f32 %v17108_v13, %v20896_v59  ;;  %v10869_v9 = vpop.f32.mrf.mxu1  ;;  %v21865_v3 = vld [vmem:[#allocation29_spill] sm:$0xff] }
 0x53b   :  { %v11385_v32 = vpop.f32.mrf.mxu0  ;;  %v18179_v39 = vld [vmem:[#allocation2 + $0x608] ss:$12 sps:$4 sm:$0xff]  }
 0x53c   :  { %v11997_v47 = vmax.f32 %v11869_v10, 0.0  ;;  %v20930_v49 = vpack.c.bf16 %v11999_v55, %v11998_v30  ;;  %v11386_v20 = vadd.f32 %v11385_v32, %v20882_v14  ;;  %v11874_v29 = vadd.f32 %v11394_v15, %v21864_v12  ;;  %v10872_v26 = vpop.f32.mrf.mxu1  ;;  %11063 = vmatmul.mubr.bf16.gmra.mxu1 %v18199_v37  ;;  %v21866_v10 = vld [vmem:[#allocation74_spill] sm:$0xff] }
 0x53d   :  { %v17109_v17 = vpop.f32.mrf.mxu0  ;;  %11070 = vmatprep.mubr.bf16.mxu1 %v18205_v62  ;;  %v18208_v62 = vld [vmem:[#allocation2 + $0x3c4] ss:$12 sps:$4 sm:$0xff]  }
 0x53e   :  { %v11872_v56 = vadd.f32 %v11386_v20, %v21865_v3  ;;  %v11397_v59 = vadd.f32 %v17109_v17, %v20901_v8  ;;  %v20936_v52 = vpack.c.bf16 %v11997_v47, %v11996_v2  ;;  %v10874_v23 = vpop.f32.mrf.mxu1  ;;  %v12002_v55 = vmax.f32 %v11874_v29, 0.0  ;;  %v18203_v8 = vld [vmem:[#allocation2 + $0x3a8] ss:$12 sps:$4 sm:$0xff]   ;;  %v21867_v3 = vld [vmem:[#allocation28_spill] sm:$0xff] }
 0x53f   :  { %v11388_v44 = vpop.f32.mrf.mxu0 }
 0x540   :  { %v11389_v6 = vadd.f32 %v11388_v44, %v20889_v63  ;;  %v11875_v14 = vadd.f32 %v11397_v59, %v20302_v51  ;;  %v10875_v58 = vpop.f32.mrf.mxu1  ;;  %v12000_v32 = vmax.f32 %v11872_v56, 0.0  ;;  %v18180_v56 = vld [vmem:[#allocation2 + $0x620] ss:$12 sps:$4 sm:$0xff]  }
 0x541   :  { %v17112_v13 = vpop.f32.mrf.mxu0  ;;  %17207 = vmatmul.mubr.bf16.gmra.mxu0 %v18175_v27  ;;  %v18184_v27 = vld [vmem:[#allocation2 + $0x638] ss:$12 sps:$4 sm:$0xff]  }
 0x542   :  { %17210 = vmatprep.mubr.bf16.mxu0 %v18179_v39  ;;  %v11873_v30 = vadd.f32 %v11389_v6, %v21866_v10  ;;  %v12003_v15 = vmax.f32 %v11875_v14, 0.0  ;;  %v11410_v37 = vadd.f32 %v17112_v13, %v10864_v60  ;;  %v10877_v9 = vpop.f32.mrf.mxu1 }
 0x543   :  { %v11401_v2 = vpop.f32.mrf.mxu0 }
 0x544   :  { %v12001_v47 = vmax.f32 %v11873_v30, 0.0  ;;  %v20941_v20 = vpack.c.bf16 %v12003_v15, %v12002_v55  ;;  %v11402_v63 = vadd.f32 %v11401_v2, %v20906_v41  ;;  %v11878_v51 = vadd.f32 %v11410_v37, %v20312_v54  ;;  %v10880_v12 = vpop.f32.mrf.mxu1  ;;  %11071 = vmatmul.mubr.bf16.gmra.mxu1 %v18203_v8  ;;  %v21868_v54 = vld [vmem:[#allocation77_spill] sm:$0xff] }
 0x545   :  { %v17113_v17 = vpop.f32.mrf.mxu0  ;;  %11078 = vmatprep.mubr.bf16.mxu1 %v18208_v62  ;;  %v18211_v8 = vld [vmem:[#allocation2 + $0x3dc] ss:$12 sps:$4 sm:$0xff]  }
 0x546   :  { %v11876_v29 = vadd.f32 %v11402_v63, %v21867_v3  ;;  %v11413_v59 = vadd.f32 %v17113_v17, %v10867_v34  ;;  %v20946_v60 = vpack.c.bf16 %v12001_v47, %v12000_v32  ;;  %v10882_v23 = vpop.f32.mrf.mxu1  ;;  %v12006_v10 = vmax.f32 %v11878_v51, 0.0  ;;  %v18206_v34 = vld [vmem:[#allocation2 + $0x3c0] ss:$12 sps:$4 sm:$0xff]   ;;  %v18186_v3 = vld [vmem:[#allocation2 + $0x650] ss:$12 sps:$4 sm:$0xff]  }
 0x547   :  { %v11404_v44 = vpop.f32.mrf.mxu0  ;;  %v21869_v23 = vld [vmem:[#allocation31_spill] sm:$0xff] }
 0x548   :  { %v11405_v39 = vadd.f32 %v11404_v44, %v20913_v50  ;;  %v11879_v6 = vadd.f32 %v11413_v59, %v20322_v22  ;;  %v10883_v41 = vpop.f32.mrf.mxu1  ;;  %v12004_v9 = vmax.f32 %v11876_v29, 0.0  ;;  %v18191_v59 = vld [vmem:[#allocation2 + $0x668] ss:$12 sps:$4 sm:$0xff]  }
 0x549   :  { %v17116_v14 = vpop.f32.mrf.mxu0  ;;  %17211 = vmatmul.mubr.bf16.gmra.mxu0 %v18180_v56 }
 0x54a   :  { %17214 = vmatprep.mubr.bf16.mxu0 %v18184_v27  ;;  %v11877_v13 = vadd.f32 %v11405_v39, %v21868_v54  ;;  %v12007_v30 = vmax.f32 %v11879_v6, 0.0  ;;  %v11426_v55 = vadd.f32 %v17116_v14, %v10880_v12  ;;  %v10885_v15 = vpop.f32.mrf.mxu1  ;;  %v21870_v39 = vld [vmem:[#allocation36_spill] sm:$0xff] }
 0x54b   :  { %v11417_v37 = vpop.f32.mrf.mxu0 }
 0x54c   :  { %v12005_v2 = vmax.f32 %v11877_v13, 0.0  ;;  %v20951_v32 = vpack.c.bf16 %v12007_v30, %v12006_v10  ;;  %v11418_v50 = vadd.f32 %v11417_v37, %v10872_v26  ;;  %v10888_v62 = vpop.f32.mrf.mxu1  ;;  %11079 = vmatmul.mubr.bf16.gmra.mxu1 %v18206_v34  ;;  %v11882_v47 = vadd.f32 %v11426_v55, %v20332_v11  ;;  %v18214_v10 = vld [vmem:[#allocation2 + $0x3f4] ss:$12 sps:$4 sm:$0xff]  }
 0x54d   :  { %v17117_v22 = vpop.f32.mrf.mxu0  ;;  %11086 = vmatprep.mubr.bf16.mxu1 %v18211_v8 }
 0x54e   :  { %v11429_v63 = vadd.f32 %v17117_v22, %v10883_v41  ;;  %v20954_v17 = vpack.c.bf16 %v12005_v2, %v12004_v9  ;;  %v10890_v51 = vpop.f32.mrf.mxu1  ;;  %v11880_v44 = vadd.f32 %v11418_v50, %v21869_v23  ;;  %v12010_v14 = vmax.f32 %v11882_v47, 0.0  ;;  %v18209_v41 = vld [vmem:[#allocation2 + $0x3d8] ss:$12 sps:$4 sm:$0xff]   ;;  %v18193_v50 = vld [vmem:[#allocation2 + $0x680] ss:$12 sps:$4 sm:$0xff]  }
 0x54f   :  { %v11420_v12 = vpop.f32.mrf.mxu0  ;;  %v18195_v22 = vld [vmem:[#allocation2 + $0x698] ss:$12 sps:$4 sm:$0xff]  }
 0x550   :  { %v11421_v29 = vadd.f32 %v11420_v12, %v10875_v58  ;;  %v11883_v56 = vadd.f32 %v11429_v63, %v20342_v4  ;;  %v10891_v27 = vpop.f32.mrf.mxu1  ;;  %v12008_v30 = vmax.f32 %v11880_v44, 0.0  ;;  %v18212_v44 = vld [vmem:[#allocation2 + $0x3f0] ss:$12 sps:$4 sm:$0xff]  }
 0x551   :  { %v17120_v26 = vpop.f32.mrf.mxu0  ;;  %17215 = vmatmul.mubr.bf16.gmra.mxu0 %v18186_v3  ;;  %v21871_v3 = vld [vmem:[#allocation84_spill] sm:$0xff] }
 0x552   :  { %17218 = vmatprep.mubr.bf16.mxu0 %v18191_v59  ;;  %v11881_v6 = vadd.f32 %v11421_v29, %v21870_v39  ;;  %v12011_v11 = vmax.f32 %v11883_v56, 0.0  ;;  %v10893_v54 = vpop.f32.mrf.mxu1 }
 0x553   :  { %v11433_v13 = vpop.f32.mrf.mxu0 }
 0x554   :  { %v12009_v55 = vmax.f32 %v11881_v6, 0.0  ;;  %v20959_v34 = vpack.c.bf16 %v12011_v11, %v12010_v14  ;;  %v11434_v15 = vadd.f32 %v11433_v13, %v10888_v62  ;;  %v10896_v58 = vpop.f32.mrf.mxu1  ;;  %11087 = vmatmul.mubr.bf16.gmra.mxu1 %v18209_v41  ;;  %v18217_v6 = vld [vmem:[#allocation2 + $0x40c] ss:$12 sps:$4 sm:$0xff]  }
 0x555   :  { %v17121_v4 = vpop.f32.mrf.mxu0  ;;  %v11442_v37 = vadd.f32 %v17120_v26, %v10896_v58  ;;  %11094 = vmatprep.mubr.bf16.mxu1 %v18214_v10  ;;  %v21872_v26 = vld [vmem:[#allocation33_spill] sm:$0xff] }
 0x556   :  { %v20961_v8 = vpack.c.bf16 %v12009_v55, %v12008_v30  ;;  %v10898_v9 = vpop.f32.mrf.mxu1  ;;  %v11884_v47 = vadd.f32 %v11434_v15, %v20357_v45 }
 0x557   :  { %v11436_v2 = vpop.f32.mrf.mxu0  ;;  %v11886_v59 = vadd.f32 %v11442_v37, %v21871_v3 }
 0x558   :  { %v11437_v63 = vadd.f32 %v11436_v2, %v10891_v27  ;;  %v10899_v51 = vpop.f32.mrf.mxu1  ;;  %v12012_v14 = vmax.f32 %v11884_v47, 0.0  ;;  %v18197_v27 = vld [vmem:[#allocation2 + $0x6b0] ss:$12 sps:$4 sm:$0xff]   ;;  %v18215_v2 = vld [vmem:[#allocation2 + $0x408] ss:$12 sps:$4 sm:$0xff]  }
 0x559   :  { %v17124_v12 = vpop.f32.mrf.mxu0  ;;  %17219 = vmatmul.mubr.bf16.gmra.mxu0 %v18193_v50  ;;  %v11445_v62 = vadd.f32 %v17121_v4, %v10899_v51  ;;  %v12014_v54 = vmax.f32 %v11886_v59, 0.0 }
 0x55a   :  { %17222 = vmatprep.mubr.bf16.mxu0 %v18195_v22  ;;  %v11885_v23 = vadd.f32 %v11437_v63, %v20367_v7  ;;  %v10901_v29 = vpop.f32.mrf.mxu1  ;;  %v18220_v63 = vld [vmem:[#allocation2 + $0x424] ss:$12 sps:$4 sm:$0xff]  }
 0x55b   :  { %v11449_v56 = vpop.f32.mrf.mxu0  ;;  %v11887_v39 = vadd.f32 %v11445_v62, %v21872_v26 }
 0x55c   :  { %v12013_v11 = vmax.f32 %v11885_v23, 0.0  ;;  %v10904_v41 = vpop.f32.mrf.mxu1  ;;  %11095 = vmatmul.mubr.bf16.gmra.mxu1 %v18212_v44 }
 0x55d   :  { %v17125_v45 = vpop.f32.mrf.mxu0  ;;  %v12015_v13 = vmax.f32 %v11887_v39, 0.0  ;;  %v11450_v10 = vadd.f32 %v11449_v56, %v10904_v41  ;;  %11102 = vmatprep.mubr.bf16.mxu1 %v18217_v6  ;;  %v18218_v6 = vld [vmem:[#allocation2 + $0x420] ss:$12 sps:$4 sm:$0xff]   ;;  %v21874_v41 = vld [vmem:[#allocation38_spill] sm:$0xff] }
 0x55e   :  { %v20967_v30 = vpack.c.bf16 %v12013_v11, %v12012_v14  ;;  %v10906_v55 = vpop.f32.mrf.mxu1 }
 0x55f   :  { %v11452_v7 = vpop.f32.mrf.mxu0  ;;  %v20969_v15 = vpack.c.bf16 %v12015_v13, %v12014_v54  ;;  %v11888_v37 = vadd.f32 %v11450_v10, %v20377_v57 }
 0x560   :  { %v10907_v58 = vpop.f32.mrf.mxu1 }
 0x561   :  { %v17128_v4 = vpop.f32.mrf.mxu0  ;;  %17223 = vmatmul.mubr.bf16.gmra.mxu0 %v18197_v27  ;;  %v11453_v9 = vadd.f32 %v11452_v7, %v10907_v58  ;;  %v12016_v59 = vmax.f32 %v11888_v37, 0.0  ;;  %v18223_v27 = vld [vmem:[#allocation2 + $0x43c] ss:$12 sps:$4 sm:$0xff]  }
 0x562   :  { %17242 = vmatprep.mubr.bf16.mxu0 %v20924_v1  ;;  %v10909_v50 = vpop.f32.mrf.mxu1  ;;  %v21873_v1 = vld [vmem:[#allocation87_spill] sm:$0xff] }
 0x563   :  { %v11465_v22 = vpop.f32.mrf.mxu0  ;;  %v11889_v47 = vadd.f32 %v11453_v9, %v20387_v61  ;;  %v18221_v50 = vld [vmem:[#allocation2 + $0x438] ss:$12 sps:$4 sm:$0xff]  }
 0x564   :  { %v10912_v51 = vpop.f32.mrf.mxu1  ;;  %11103 = vmatmul.mubr.bf16.gmra.mxu1 %v18215_v2 }
 0x565   :  { %v17129_v3 = vpop.f32.mrf.mxu0  ;;  %v12017_v62 = vmax.f32 %v11889_v47, 0.0  ;;  %v11458_v23 = vadd.f32 %v17124_v12, %v10912_v51  ;;  %11110 = vmatprep.mubr.bf16.mxu1 %v18220_v63  ;;  %v18226_v51 = vld [vmem:[#allocation2 + $0x454] ss:$12 sps:$4 sm:$0xff]  }
 0x566   :  { %v10914_v44 = vpop.f32.mrf.mxu1 }
 0x567   :  { %v11468_v29 = vpop.f32.mrf.mxu0  ;;  %v20974_v56 = vpack.c.bf16 %v12017_v62, %v12016_v59  ;;  %v11890_v39 = vadd.f32 %v11458_v23, %v21873_v1 }
 0x568   :  { %v10915_v57 = vpop.f32.mrf.mxu1 }
 0x569   :  { %v20976_v26 = vpop.f32.mrf.mxu0  ;;  %17243 = vmatmul.mubr.bf16.vlgmr.msra.gmra.mxu0 %v20917_v0  ;;  %v11461_v61 = vadd.f32 %v17125_v45, %v10915_v57  ;;  %v12018_v10 = vmax.f32 %v11890_v39, 0.0 }
 0x56a   :  { %17246 = vmatprep.mubr.bf16.mxu0 %v20936_v52  ;;  %v10917_v14 = vpop.f32.mrf.mxu1 }
 0x56b   :  { %v11481_v11 = vpop.f32.mrf.mxu0  ;;  %v11891_v12 = vadd.f32 %v11461_v61, %v21874_v41 }
 0x56c   :  { %v10920_v54 = vpop.f32.mrf.mxu1  ;;  %11111 = vmatmul.mubr.bf16.gmra.mxu1 %v18218_v6  ;;  %v18224_v6 = vld [vmem:[#allocation2 + $0x450] ss:$12 sps:$4 sm:$0xff]  }
 0x56d   :  { %v20982_v13 = vpop.f32.mrf.mxu0  ;;  %v12019_v55 = vmax.f32 %v11891_v12, 0.0  ;;  %v11466_v7 = vadd.f32 %v11465_v22, %v10920_v54  ;;  %11118 = vmatprep.mubr.bf16.mxu1 %v18223_v27  ;;  %v18229_v27 = vld [vmem:[#allocation2 + $0x46c] ss:$12 sps:$4 sm:$0xff]  }
 0x56e   :  { %v10922_v0 = vpop.f32.mrf.mxu1 }
 0x56f   :  { %v11484_v58 = vpop.f32.mrf.mxu0  ;;  %v20984_v37 = vpack.c.bf16 %v12019_v55, %v12018_v10  ;;  %v11892_v9 = vadd.f32 %v11466_v7, %v20397_v24 }
 0x570   :  { %v10923_v45 = vpop.f32.mrf.mxu1 }
 0x571   :  { %v20986_v52 = vpop.f32.mrf.mxu0  ;;  %17247 = vmatmul.mubr.bf16.gmra.mxu0 %v20930_v49  ;;  %v11469_v2 = vadd.f32 %v11468_v29, %v10923_v45  ;;  %v12020_v23 = vmax.f32 %v11892_v9, 0.0 }
 0x572   :  { %17250 = vmatprep.mubr.bf16.mxu0 %v20946_v60  ;;  %v10925_v47 = vpop.f32.mrf.mxu1 }
 0x573   :  { %v20991_v63 = vpop.f32.mrf.mxu0  ;;  %v11893_v22 = vadd.f32 %v11469_v2, %v20407_v35  ;;  %v21875_v35 = vld [vmem:[#allocation90_spill] sm:$0xff]  ;;  %v21877_v2 = vld [vmem:[#allocation44_spill] sm:$0xff] }
 0x574   :  { %v10928_v59 = vpop.f32.mrf.mxu1  ;;  %11119 = vmatmul.mubr.bf16.gmra.mxu1 %v18221_v50 }
 0x575   :  { %v20994_v62 = vpop.f32.mrf.mxu0  ;;  %v12021_v44 = vmax.f32 %v11893_v22, 0.0  ;;  %v11474_v57 = vadd.f32 %v17128_v4, %v10928_v59  ;;  %11126 = vmatprep.mubr.bf16.mxu1 %v18226_v51  ;;  %v21876_v4 = vld [vmem:[#allocation41_spill] sm:$0xff] }
 0x576   :  { %v10930_v49 = vpop.f32.mrf.mxu1  ;;  %v18227_v22 = vld [vmem:[#allocation2 + $0x468] ss:$12 sps:$4 sm:$0xff]  }
 0x577   :  { %v20996_v24 = vpop.f32.mrf.mxu0  ;;  %v20998_v29 = vpack.c.bf16 %v12021_v44, %v12020_v23  ;;  %v11894_v39 = vadd.f32 %v11474_v57, %v21875_v35  ;;  %v18232_v44 = vld [vmem:[#allocation2 + $0x484] ss:$12 sps:$4 sm:$0xff]  }
 0x578   :  { %v10931_v60 = vpop.f32.mrf.mxu1 }
 0x579   :  { %v21000_v1 = vpop.f32.mrf.mxu0  ;;  %17251 = vmatmul.mubr.bf16.gmra.mxu0 %v20941_v20  ;;  %v11477_v61 = vadd.f32 %v17129_v3, %v10931_v60  ;;  %v12022_v55 = vmax.f32 %v11894_v39, 0.0 }
 0x57a   :  { %17254 = vmatprep.mubr.bf16.mxu0 %v20954_v17  ;;  %v10933_v14 = vpop.f32.mrf.mxu1 }
 0x57b   :  { %v21005_v41 = vpop.f32.mrf.mxu0  ;;  %v11895_v12 = vadd.f32 %v11477_v61, %v21876_v4  ;;  %v21879_v14 = vld [vmem:[#allocation93_spill] sm:$0xff] }
 0x57c   :  { %v10936_v54 = vpop.f32.mrf.mxu1  ;;  %11127 = vmatmul.mubr.bf16.gmra.mxu1 %v18224_v6 }
 0x57d   :  { %v21008_v10 = vpop.f32.mrf.mxu0  ;;  %v12023_v7 = vmax.f32 %v11895_v12, 0.0  ;;  %v11482_v0 = vadd.f32 %v11481_v11, %v10936_v54  ;;  %11134 = vmatprep.mubr.bf16.mxu1 %v18229_v27  ;;  %v21878_v11 = vld [vmem:[#allocation40_spill] sm:$0xff] }
 0x57e   :  { %v10938_v20 = vpop.f32.mrf.mxu1  ;;  %v18230_v27 = vld [vmem:[#allocation2 + $0x480] ss:$12 sps:$4 sm:$0xff]  }
 0x57f   :  { %v21010_v45 = vpop.f32.mrf.mxu0  ;;  %v21012_v3 = vpack.c.bf16 %v12023_v7, %v12022_v55  ;;  %v11896_v50 = vadd.f32 %v11482_v0, %v21877_v2  ;;  %v21880_v55 = vld [vmem:[#allocation96_spill] sm:$0xff]  ;;  %v18235_v0 = vld [vmem:[#allocation2 + $0x49c] ss:$12 sps:$4 sm:$0xff]  }
 0x580   :  { %v10939_v17 = vpop.f32.mrf.mxu1 }
 0x581   :  { %v21014_v9 = vpop.f32.mrf.mxu0  ;;  %17255 = vmatmul.mubr.bf16.gmra.mxu0 %v20951_v32  ;;  %v11485_v47 = vadd.f32 %v11484_v58, %v10939_v17  ;;  %v12024_v60 = vmax.f32 %v11896_v50, 0.0 }
 0x582   :  { %17258 = vmatprep.mubr.bf16.mxu0 %v20961_v8  ;;  %v10941_v51 = vpop.f32.mrf.mxu1 }
 0x583   :  { %v21019_v59 = vpop.f32.mrf.mxu0  ;;  %v11897_v23 = vadd.f32 %v11485_v47, %v21878_v11  ;;  %v21881_v11 = vld [vmem:[#allocation43_spill] sm:$0xff] }
 0x584   :  { %v10944_v57 = vpop.f32.mrf.mxu1  ;;  %11135 = vmatmul.mubr.bf16.gmra.mxu1 %v18227_v22 }
 0x585   :  { %v21022_v49 = vpop.f32.mrf.mxu0  ;;  %v12025_v35 = vmax.f32 %v11897_v23, 0.0  ;;  %v11490_v32 = vadd.f32 %v20976_v26, %v10944_v57  ;;  %11142 = vmatprep.mubr.bf16.mxu1 %v18232_v44  ;;  %v18233_v57 = vld [vmem:[#allocation2 + $0x498] ss:$12 sps:$4 sm:$0xff]  }
 0x586   :  { %v10946_v39 = vpop.f32.mrf.mxu1 }
 0x587   :  { %v21025_v58 = vpop.f32.mrf.mxu0  ;;  %v21027_v8 = vpack.c.bf16 %v12025_v35, %v12024_v60  ;;  %v11898_v4 = vadd.f32 %v11490_v32, %v21879_v14  ;;  %v21882_v35 = vld [vmem:[#allocation47_spill] sm:$0xff]  ;;  %v18238_v39 = vld [vmem:[#allocation2 + $0x4b4] ss:$12 sps:$4 sm:$0xff]  }
 0x588   :  { %v10947_v61 = vpop.f32.mrf.mxu1 }
 0x589   :  { %v21029_v6 = vpop.f32.mrf.mxu0  ;;  %17259 = vmatmul.mubr.bf16.gmra.mxu0 %v20959_v34  ;;  %v11493_v12 = vadd.f32 %v20982_v13, %v10947_v61  ;;  %v12026_v2 = vmax.f32 %v11898_v4, 0.0 }
 0x58a   :  { %17262 = vmatprep.mubr.bf16.mxu0 %v20967_v30  ;;  %v10949_v54 = vpop.f32.mrf.mxu1 }
 0x58b   :  { %v21035_v26 = vpop.f32.mrf.mxu0  ;;  %v11899_v7 = vadd.f32 %v11493_v12, %v21880_v55 }
 0x58c   :  { %v10952_v20 = vpop.f32.mrf.mxu1  ;;  %11143 = vmatmul.mubr.bf16.gmra.mxu1 %v18230_v27 }
 0x58d   :  { %v21038_v17 = vpop.f32.mrf.mxu0  ;;  %v12027_v50 = vmax.f32 %v11899_v7, 0.0  ;;  %v11498_v34 = vadd.f32 %v20991_v63, %v10952_v20  ;;  %11150 = vmatprep.mubr.bf16.mxu1 %v18235_v0  ;;  %v21883_v7 = vld [vmem:[#allocation99_spill] sm:$0xff] }
 0x58e   :  { %v10954_v47 = vpop.f32.mrf.mxu1 }
 0x58f   :  { %v21041_v13 = vpop.f32.mrf.mxu0  ;;  %v21043_v30 = vpack.c.bf16 %v12027_v50, %v12026_v2  ;;  %v11900_v23 = vadd.f32 %v11498_v34, %v21881_v11  ;;  %v18236_v2 = vld [vmem:[#allocation2 + $0x4b0] ss:$12 sps:$4 sm:$0xff]  }
 0x590   :  { %v10955_v22 = vpop.f32.mrf.mxu1 }
 0x591   :  { %v21045_v51 = vpop.f32.mrf.mxu0  ;;  %17263 = vmatmul.mubr.bf16.gmra.mxu0 %v20969_v15  ;;  %v11501_v44 = vadd.f32 %v20996_v24, %v10955_v22  ;;  %v12028_v4 = vmax.f32 %v11900_v23, 0.0  ;;  %v18241_v22 = vld [vmem:[#allocation2 + $0x4cc] ss:$12 sps:$4 sm:$0xff]  }
 0x592   :  { %17266 = vmatprep.mubr.bf16.mxu0 %v20974_v56  ;;  %v10957_v60 = vpop.f32.mrf.mxu1 }
 0x593   :  { %v21051_v63 = vpop.f32.mrf.mxu0  ;;  %v11901_v32 = vadd.f32 %v11501_v44, %v21882_v35 }
 0x594   :  { %v10960_v61 = vpop.f32.mrf.mxu1  ;;  %11151 = vmatmul.mubr.bf16.gmra.mxu1 %v18233_v57 }
 0x595   :  { %v21054_v14 = vpop.f32.mrf.mxu0  ;;  %v12029_v12 = vmax.f32 %v11901_v32, 0.0  ;;  %v11506_v15 = vadd.f32 %v20986_v52, %v10960_v61  ;;  %11158 = vmatprep.mubr.bf16.mxu1 %v18238_v39  ;;  %v21884_v52 = vld [vmem:[#allocation102_spill] sm:$0xff] }
 0x596   :  { %v10962_v27 = vpop.f32.mrf.mxu1  ;;  %v21885_v39 = vld [vmem:[#allocation50_spill] sm:$0xff] }
 0x597   :  { %v21057_v24 = vpop.f32.mrf.mxu0  ;;  %v12138_v56 = vpack.c.bf16 %v12029_v12, %v12028_v4  ;;  %v11902_v0 = vadd.f32 %v11506_v15, %v21883_v7  ;;  %v18239_v12 = vld [vmem:[#allocation2 + $0x4c8] ss:$12 sps:$4 sm:$0xff]  }
 0x598   :  { %v10963_v54 = vpop.f32.mrf.mxu1 }
 0x599   :  { %v21059_v55 = vpop.f32.mrf.mxu0  ;;  %17267 = vmatmul.mubr.bf16.gmra.mxu0 %v20984_v37  ;;  %v11509_v20 = vadd.f32 %v20994_v62, %v10963_v54  ;;  %v12030_v44 = vmax.f32 %v11902_v0, 0.0  ;;  %v18244_v54 = vld [vmem:[#allocation2 + $0x4e4] ss:$12 sps:$4 sm:$0xff]  }
 0x59a   :  { %17270 = vmatprep.mubr.bf16.mxu0 %v20998_v29  ;;  %v10965_v50 = vpop.f32.mrf.mxu1 }
 0x59b   :  { %v21065_v34 = vpop.f32.mrf.mxu0  ;;  %v11903_v47 = vadd.f32 %v11509_v20, %v21884_v52 }
 0x59c   :  { %v10968_v11 = vpop.f32.mrf.mxu1  ;;  %11159 = vmatmul.mubr.bf16.gmra.mxu1 %v18236_v2 }
 0x59d   :  { %v21068_v23 = vpop.f32.mrf.mxu0  ;;  %v12031_v57 = vmax.f32 %v11903_v47, 0.0  ;;  %v11514_v37 = vadd.f32 %v21005_v41, %v10968_v11  ;;  %11166 = vmatprep.mubr.bf16.mxu1 %v18241_v22 }
 0x59e   :  { %v10970_v60 = vpop.f32.mrf.mxu1 }
 0x59f   :  { %v21071_v62 = vpop.f32.mrf.mxu0  ;;  %v12139_v29 = vpack.c.bf16 %v12031_v57, %v12030_v44  ;;  %v11904_v61 = vadd.f32 %v11514_v37, %v21885_v39  ;;  %v18295_v44 = vld [vmem:[#allocation2] sm:$0xff] }
 0x5a0   :  { %v10971_v35 = vpop.f32.mrf.mxu1  ;;  %v21092_v57 = vcombine.high %v18295_v44, %v18295_v44  ;;  %v18242_v37 = vld [vmem:[#allocation2 + $0x4e0] ss:$12 sps:$4 sm:$0xff]  }
 0x5a1   :  { %v21073_v32 = vpop.f32.mrf.mxu0  ;;  %17271 = vmatmul.mubr.bf16.gmra.mxu0 %v21012_v3  ;;  %v11517_v4 = vadd.f32 %v21010_v45, %v10971_v35  ;;  %v12032_v20 = vmax.f32 %v11904_v61, 0.0  ;;  %v21887_v35 = vld [vmem:[#allocation108_spill] sm:$0xff] }
 0x5a2   :  { %17274 = vmatprep.mubr.bf16.mxu0 %v21027_v8  ;;  %v10973_v15 = vpop.f32.mrf.mxu1 }
 0x5a3   :  { %v21079_v27 = vpop.f32.mrf.mxu0  ;;  %v11905_v41 = vadd.f32 %v11517_v4, %v20467_v16  ;;  %v21886_v16 = vld [vmem:[#allocation105_spill] sm:$0xff] }
 0x5a4   :  { %v10976_v7 = vpop.f32.mrf.mxu1  ;;  %11167 = vmatmul.mubr.bf16.gmra.mxu1 %v18239_v12 }
 0x5a5   :  { %v21082_v0 = vpop.f32.mrf.mxu0  ;;  %v12033_v2 = vmax.f32 %v11905_v41, 0.0  ;;  %v11522_v3 = vadd.f32 %v21000_v1, %v10976_v7  ;;  %11174 = vmatprep.mubr.bf16.mxu1 %v18244_v54  ;;  %v21103_v7 = vcombine.low %v18295_v44, %v18295_v44 }
 0x5a6   :  { %v10978_v50 = vpop.f32.mrf.mxu1 }
 0x5a7   :  { %v21085_v45 = vpop.f32.mrf.mxu0  ;;  %v12140_v8 = vpack.c.bf16 %v12033_v2, %v12032_v20  ;;  %v11906_v22 = vadd.f32 %v11522_v3, %v21886_v16  ;;  %v21888_v2 = vld [vmem:[#allocation111_spill] sm:$0xff] }
 0x5a8   :  { %v10979_v52 = vpop.f32.mrf.mxu1 }
 0x5a9   :  { %v21087_v47 = vpop.f32.mrf.mxu0  ;;  %17275 = vmatmul.mubr.bf16.gmra.mxu0 %v21043_v30  ;;  %v11525_v11 = vadd.f32 %v21008_v10, %v10979_v52  ;;  %v12034_v12 = vmax.f32 %v11906_v22, 0.0 }
 0x5aa   :  { %17278 = vmatprep.mubr.bf16.mxu0 %v12138_v56  ;;  %v10981_v1 = vpop.f32.mrf.mxu1 }
 0x5ab   :  { %v21094_v60 = vpop.f32.mrf.mxu0  ;;  %v11907_v39 = vadd.f32 %v11525_v11, %v21887_v35  ;;  %v18247_v11 = vld [vmem:[#allocation2 + $0x544] ss:$12 sps:$4 sm:$0xff]  }
 0x5ac   :  { %v10984_v61 = vpop.f32.mrf.mxu1  ;;  %11175 = vmatmul.mubr.bf16.gmra.mxu1 %v18242_v37 }
 0x5ad   :  { %v21097_v4 = vpop.f32.mrf.mxu0  ;;  %v12035_v30 = vmax.f32 %v11907_v39, 0.0  ;;  %v11530_v15 = vadd.f32 %v21019_v59, %v10984_v61  ;;  %11182 = vmatprep.mubr.bf16.mxu1 %v21092_v57  ;;  %v21889_v59 = vld [vmem:[#allocation114_spill] sm:$0xff] }
 0x5ae   :  { %v10986_v10 = vpop.f32.mrf.mxu1 }
 0x5af   :  { %v21101_v41 = vpop.f32.mrf.mxu0  ;;  %v12141_v56 = vpack.c.bf16 %v12035_v30, %v12034_v12  ;;  %v11908_v3 = vadd.f32 %v11530_v15, %v21888_v2  ;;  %v21890_v30 = vld [vmem:[#allocation46_spill] sm:$0xff] }
 0x5b0   :  { %v10987_v54 = vpop.f32.mrf.mxu1 }
 0x5b1   :  { %v21105_v20 = vpop.f32.mrf.mxu0  ;;  %17279 = vmatmul.mubr.bf16.gmra.mxu0 %v12139_v29  ;;  %v11533_v50 = vadd.f32 %v21025_v58, %v10987_v54  ;;  %v12036_v44 = vmax.f32 %v11908_v3, 0.0  ;;  %v18245_v54 = vld [vmem:[#allocation2 + $0x540] ss:$12 sps:$4 sm:$0xff]  }
 0x5b2   :  { %17282 = vmatprep.mubr.bf16.mxu0 %v12140_v8  ;;  %v10989_v52 = vpop.f32.mrf.mxu1 }
 0x5b3   :  { %v21109_v16 = vpop.f32.mrf.mxu0  ;;  %v11909_v22 = vadd.f32 %v11533_v50, %v21889_v59  ;;  %v21891_v50 = vld [vmem:[#allocation49_spill] sm:$0xff] }
 0x5b4   :  { %v10992_v37 = vpop.f32.mrf.mxu1  ;;  %11183 = vmatmul.mubr.bf16.gmra.mxu1 %v21103_v7  ;;  %v18250_v52 = vld [vmem:[#allocation2 + $0x55c] ss:$12 sps:$4 sm:$0xff]  }
 0x5b5   :  { %v21113_v1 = vpop.f32.mrf.mxu0  ;;  %v12037_v35 = vmax.f32 %v11909_v22, 0.0  ;;  %v11538_v29 = vadd.f32 %v21014_v9, %v10992_v37  ;;  %11190 = vmatprep.mubr.bf16.mxu1 %v18247_v11 }
 0x5b6   :  { %v10994_v39 = vpop.f32.mrf.mxu1 }
 0x5b7   :  { %v21116_v61 = vpop.f32.mrf.mxu0  ;;  %v12142_v58 = vpack.c.bf16 %v12037_v35, %v12036_v44  ;;  %v11910_v15 = vadd.f32 %v11538_v29, %v21890_v30 }
 0x5b8   :  { %v10995_v8 = vpop.f32.mrf.mxu1 }
 0x5b9   :  { %v21118_v12 = vpop.f32.mrf.mxu0  ;;  %17283 = vmatmul.mubr.bf16.gmra.mxu0 %v12141_v56  ;;  %v11541_v10 = vadd.f32 %v21022_v49, %v10995_v8  ;;  %v12038_v11 = vmax.f32 %v11910_v15, 0.0 }
 0x5ba   :  { %17286 = vmatprep.mubr.bf16.mxu0 %v12142_v58  ;;  %v10997_v2 = vpop.f32.mrf.mxu1  ;;  %v21892_v58 = vld [vmem:[#allocation117_spill] sm:$0xff] }
 0x5bb   :  { %v21122_v3 = vpop.f32.mrf.mxu0  ;;  %v11911_v9 = vadd.f32 %v11541_v10, %v21891_v50  ;;  %v18248_v10 = vld [vmem:[#allocation2 + $0x558] ss:$12 sps:$4 sm:$0xff]  }
 0x5bc   :  { %v11000_v59 = vpop.f32.mrf.mxu1  ;;  %11191 = vmatmul.mubr.bf16.gmra.mxu1 %v18245_v54 }
 0x5bd   :  { %v21125_v22 = vpop.f32.mrf.mxu0  ;;  %v12039_v37 = vmax.f32 %v11911_v9, 0.0  ;;  %v11546_v56 = vadd.f32 %v21035_v26, %v11000_v59  ;;  %11198 = vmatprep.mubr.bf16.mxu1 %v18250_v52  ;;  %v18253_v26 = vld [vmem:[#allocation2 + $0x574] ss:$12 sps:$4 sm:$0xff]  }
 0x5be   :  { %v11002_v44 = vpop.f32.mrf.mxu1 }
 0x5bf   :  { %v21128_v35 = vpop.f32.mrf.mxu0  ;;  %v12143_v49 = vpack.c.bf16 %v12039_v37, %v12038_v11  ;;  %v11912_v8 = vadd.f32 %v11546_v56, %v21892_v58 }
 0x5c0   :  { %v11003_v29 = vpop.f32.mrf.mxu1 }
 0x5c1   :  { %v21130_v39 = vpop.f32.mrf.mxu0  ;;  %v11549_v30 = vadd.f32 %v21041_v13, %v11003_v29  ;;  %17287 = vmatmul.mubr.bf16.gmra.mxu0 %v12143_v49  ;;  %v12040_v52 = vmax.f32 %v11912_v8, 0.0  ;;  %v21893_v29 = vld [vmem:[#allocation52_spill] sm:$0xff]  ;;  %v21894_v8 = vld [vmem:[#allocation54_spill] sm:$0xff] }
 0x5c2   :  { %v11005_v54 = vpop.f32.mrf.mxu1 }
 0x5c3   :  { %v21134_v2 = vpop.f32.mrf.mxu0  ;;  %v11913_v15 = vadd.f32 %v11549_v30, %v20507_v25  ;;  %v18251_v30 = vld [vmem:[#allocation2 + $0x570] ss:$12 sps:$4 sm:$0xff]  }
 0x5c4   :  { %v11008_v50 = vpop.f32.mrf.mxu1  ;;  %11199 = vmatmul.mubr.bf16.gmra.mxu1 %v18248_v10 }
 0x5c5   :  { %v21137_v9 = vpop.f32.mrf.mxu0  ;;  %v12041_v59 = vmax.f32 %v11913_v15, 0.0  ;;  %v11554_v11 = vadd.f32 %v21029_v6, %v11008_v50  ;;  %11206 = vmatprep.mubr.bf16.mxu1 %v18253_v26  ;;  %v18256_v6 = vld [vmem:[#allocation2 + $0x58c] ss:$12 sps:$4 sm:$0xff]  }
 0x5c6   :  { %v11010_v37 = vpop.f32.mrf.mxu1 }
 0x5c7   :  { %v21140_v56 = vpop.f32.mrf.mxu0  ;;  %v12144_v13 = vpack.c.bf16 %v12041_v59, %v12040_v52  ;;  %v11914_v58 = vadd.f32 %v11554_v11, %v21893_v29 }
 0x5c8   :  { %v11011_v44 = vpop.f32.mrf.mxu1 }
 0x5c9   :  { %v21142_v49 = vpop.f32.mrf.mxu0  ;;  %v11557_v25 = vadd.f32 %v21038_v17, %v11011_v44  ;;  %17290 = vmatprep.mubr.bf16.mxu0 %v12144_v13  ;;  %v12042_v52 = vmax.f32 %v11914_v58, 0.0 }
 0x5ca   :  { %v11013_v10 = vpop.f32.mrf.mxu1 }
 0x5cb   :  { %v21146_v54 = vpop.f32.mrf.mxu0  ;;  %v11915_v15 = vadd.f32 %v11557_v25, %v21894_v8 }
 0x5cc   :  { %v11016_v26 = vpop.f32.mrf.mxu1  ;;  %11207 = vmatmul.mubr.bf16.gmra.mxu1 %v18251_v30  ;;  %v18254_v30 = vld [vmem:[#allocation2 + $0x588] ss:$12 sps:$4 sm:$0xff]  }
 0x5cd   :  { %v21149_v50 = vpop.f32.mrf.mxu0  ;;  %v12043_v59 = vmax.f32 %v11915_v15, 0.0  ;;  %v11562_v37 = vadd.f32 %v21051_v63, %v11016_v26  ;;  %11214 = vmatprep.mubr.bf16.mxu1 %v18256_v6  ;;  %v18259_v63 = vld [vmem:[#allocation2 + $0x5a4] ss:$12 sps:$4 sm:$0xff]  }
 0x5ce   :  { %v11018_v11 = vpop.f32.mrf.mxu1 }
 0x5cf   :  { %v21152_v29 = vpop.f32.mrf.mxu0  ;;  %v12145_v17 = vpack.c.bf16 %v12043_v59, %v12042_v52  ;;  %v11916_v10 = vadd.f32 %v11562_v37, %v20517_v33 }
 0x5d0   :  { %v11019_v13 = vpop.f32.mrf.mxu1 }
 0x5d1   :  { %v21154_v44 = vpop.f32.mrf.mxu0  ;;  %v11565_v25 = vadd.f32 %v21057_v24, %v11019_v13  ;;  %17291 = vmatmul.mubr.bf16.gmra.mxu0 %v12145_v17  ;;  %v12044_v26 = vmax.f32 %v11916_v10, 0.0  ;;  %v21895_v13 = vld [vmem:[#allocation120_spill] sm:$0xff]  ;;  %v21896_v10 = vld [vmem:[#allocation51_spill] sm:$0xff] }
 0x5d2   :  { %v11021_v8 = vpop.f32.mrf.mxu1 }
 0x5d3   :  { %v21158_v42 = vpop.f32.mrf.mxu0  ;;  %v11917_v58 = vadd.f32 %v11565_v25, %v20527_v46  ;;  %v18257_v25 = vld [vmem:[#allocation2 + $0x5a0] ss:$12 sps:$4 sm:$0xff]  }
 0x5d4   :  { %v11024_v15 = vpop.f32.mrf.mxu1  ;;  %11215 = vmatmul.mubr.bf16.gmra.mxu1 %v18254_v30 }
 0x5d5   :  { %v21161_v6 = vpop.f32.mrf.mxu0  ;;  %v12045_v52 = vmax.f32 %v11917_v58, 0.0  ;;  %v11570_v59 = vadd.f32 %v21045_v51, %v11024_v15  ;;  %11222 = vmatprep.mubr.bf16.mxu1 %v18259_v63  ;;  %v18262_v51 = vld [vmem:[#allocation2 + $0x5bc] ss:$12 sps:$4 sm:$0xff]  }
 0x5d6   :  { %v11026_v33 = vpop.f32.mrf.mxu1 }
 0x5d7   :  { %v21164_v37 = vpop.f32.mrf.mxu0  ;;  %v12146_v24 = vpack.c.bf16 %v12045_v52, %v12044_v26  ;;  %v11918_v8 = vadd.f32 %v11570_v59, %v21895_v13 }
 0x5d8   :  { %v11027_v11 = vpop.f32.mrf.mxu1 }
 0x5d9   :  { %v21166_v17 = vpop.f32.mrf.mxu0  ;;  %v11573_v46 = vadd.f32 %v21054_v14, %v11027_v11  ;;  %17294 = vmatprep.mubr.bf16.mxu0 %v12146_v24  ;;  %v12046_v26 = vmax.f32 %v11918_v8, 0.0 }
 0x5da   :  { %v11029_v30 = vpop.f32.mrf.mxu1 }
 0x5db   :  { %v21170_v40 = vpop.f32.mrf.mxu0  ;;  %v11919_v58 = vadd.f32 %v11573_v46, %v21896_v10 }
 0x5dc   :  { %v11032_v63 = vpop.f32.mrf.mxu1  ;;  %11223 = vmatmul.mubr.bf16.gmra.mxu1 %v18257_v25  ;;  %v18260_v25 = vld [vmem:[#allocation2 + $0x5b8] ss:$12 sps:$4 sm:$0xff]  }
 0x5dd   :  { %v21173_v15 = vpop.f32.mrf.mxu0  ;;  %v12047_v52 = vmax.f32 %v11919_v58, 0.0  ;;  %v11578_v33 = vadd.f32 %v21065_v34, %v11032_v63  ;;  %11230 = vmatprep.mubr.bf16.mxu1 %v18262_v51  ;;  %v18265_v34 = vld [vmem:[#allocation2 + $0x5d4] ss:$12 sps:$4 sm:$0xff]  }
 0x5de   :  { %v11034_v59 = vpop.f32.mrf.mxu1 }
 0x5df   :  { %v21176_v13 = vpop.f32.mrf.mxu0  ;;  %v12147_v14 = vpack.c.bf16 %v12047_v52, %v12046_v26  ;;  %v11920_v24 = vadd.f32 %v11578_v33, %v20537_v53 }
 0x5e0   :  { %v11035_v11 = vpop.f32.mrf.mxu1 }
 0x5e1   :  { %v21179_v30 = vpop.f32.mrf.mxu0  ;;  %v11581_v46 = vadd.f32 %v21071_v62, %v11035_v11  ;;  %17295 = vmatmul.mubr.bf16.gmra.mxu0 %v12147_v14  ;;  %v12048_v63 = vmax.f32 %v11920_v24, 0.0  ;;  %v21897_v11 = vld [vmem:[#allocation123_spill] sm:$0xff]  ;;  %v21898_v24 = vld [vmem:[#allocation53_spill] sm:$0xff] }
 0x5e2   :  { %v11037_v10 = vpop.f32.mrf.mxu1 }
 0x5e3   :  { %v21182_v38 = vpop.f32.mrf.mxu0  ;;  %v11921_v8 = vadd.f32 %v11581_v46, %v20547_v28  ;;  %v18263_v46 = vld [vmem:[#allocation2 + $0x5d0] ss:$12 sps:$4 sm:$0xff]  }
 0x5e4   :  { %v11040_v58 = vpop.f32.mrf.mxu1  ;;  %11231 = vmatmul.mubr.bf16.gmra.mxu1 %v18260_v25 }
 0x5e5   :  { %v21185_v51 = vpop.f32.mrf.mxu0  ;;  %v12049_v26 = vmax.f32 %v11921_v8, 0.0  ;;  %v11586_v53 = vadd.f32 %v21059_v55, %v11040_v58  ;;  %11238 = vmatprep.mubr.bf16.mxu1 %v18265_v34  ;;  %v18268_v55 = vld [vmem:[#allocation2 + $0x5ec] ss:$12 sps:$4 sm:$0xff]  }
 0x5e6   :  { %v11042_v52 = vpop.f32.mrf.mxu1 }
 0x5e7   :  { %v21188_v33 = vpop.f32.mrf.mxu0  ;;  %v12148_v62 = vpack.c.bf16 %v12049_v26, %v12048_v63  ;;  %v11922_v10 = vadd.f32 %v11586_v53, %v21897_v11 }
 0x5e8   :  { %v11043_v59 = vpop.f32.mrf.mxu1 }
 0x5e9   :  { %v21190_v14 = vpop.f32.mrf.mxu0  ;;  %v11589_v28 = vadd.f32 %v21068_v23, %v11043_v59  ;;  %17298 = vmatprep.mubr.bf16.mxu0 %v12148_v62  ;;  %v12050_v63 = vmax.f32 %v11922_v10, 0.0 }
 0x5ea   :  { %v11045_v25 = vpop.f32.mrf.mxu1 }
 0x5eb   :  { %v21194_v36 = vpop.f32.mrf.mxu0  ;;  %v11923_v8 = vadd.f32 %v11589_v28, %v21898_v24 }
 0x5ec   :  { %v11048_v34 = vpop.f32.mrf.mxu1  ;;  %11239 = vmatmul.mubr.bf16.gmra.mxu1 %v18263_v46  ;;  %v18266_v46 = vld [vmem:[#allocation2 + $0x5e8] ss:$12 sps:$4 sm:$0xff]  }
 0x5ed   :  { %v21197_v58 = vpop.f32.mrf.mxu0  ;;  %v12051_v26 = vmax.f32 %v11923_v8, 0.0  ;;  %v11594_v52 = vadd.f32 %v21079_v27, %v11048_v34  ;;  %11246 = vmatprep.mubr.bf16.mxu1 %v18268_v55  ;;  %v18271_v27 = vld [vmem:[#allocation2 + $0x604] ss:$12 sps:$4 sm:$0xff]  }
 0x5ee   :  { %21899 = vst [vmem:[#allocation88_spill] sm:$0xff] %v21197_v58  ;;  %v11050_v53 = vpop.f32.mrf.mxu1 }
 0x5ef   :  { %v21200_v11 = vpop.f32.mrf.mxu0  ;;  %v12149_v23 = vpack.c.bf16 %v12051_v26, %v12050_v63  ;;  %v11924_v25 = vadd.f32 %v11594_v52, %v20557_v21 }
 0x5f0   :  { %v11051_v62 = vpop.f32.mrf.mxu1 }
 0x5f1   :  { %v21202_v59 = vpop.f32.mrf.mxu0  ;;  %v11597_v28 = vadd.f32 %v21085_v45, %v11051_v62  ;;  %17299 = vmatmul.mubr.bf16.gmra.mxu0 %v12149_v23  ;;  %v12052_v34 = vmax.f32 %v11924_v25, 0.0  ;;  %v21901_v62 = vld [vmem:[#allocation17_spill] sm:$0xff]  ;;  %v21902_v25 = vld [vmem:[#allocation32_spill] sm:$0xff] }
 0x5f2   :  { %v11053_v24 = vpop.f32.mrf.mxu1 }
 0x5f3   :  { %v21206_v58 = vpop.f32.mrf.mxu0  ;;  %v11925_v10 = vadd.f32 %v11597_v28, %v20567_v19  ;;  %v18269_v28 = vld [vmem:[#allocation2 + $0x600] ss:$12 sps:$4 sm:$0xff]  }
 0x5f4   :  { %v11056_v8 = vpop.f32.mrf.mxu1  ;;  %11247 = vmatmul.mubr.bf16.gmra.mxu1 %v18266_v46 }
 0x5f5   :  { %v21209_v55 = vpop.f32.mrf.mxu0  ;;  %v12053_v63 = vmax.f32 %v11925_v10, 0.0  ;;  %v11602_v26 = vadd.f32 %v21073_v32, %v11056_v8  ;;  %11254 = vmatprep.mubr.bf16.mxu1 %v18271_v27  ;;  %v18274_v32 = vld [vmem:[#allocation2 + $0x61c] ss:$12 sps:$4 sm:$0xff]  }
 0x5f6   :  { %21900 = vst [vmem:[#allocation159_spill] sm:$0xff] %v21209_v55  ;;  %v11058_v21 = vpop.f32.mrf.mxu1 }
 0x5f7   :  { %v21212_v52 = vpop.f32.mrf.mxu0  ;;  %v12150_v45 = vpack.c.bf16 %v12053_v63, %v12052_v34  ;;  %v11926_v24 = vadd.f32 %v11602_v26, %v21901_v62 }
 0x5f8   :  { %v11059_v53 = vpop.f32.mrf.mxu1 }
 0x5f9   :  { %v21214_v23 = vpop.f32.mrf.mxu0  ;;  %v11605_v19 = vadd.f32 %v21082_v0, %v11059_v53  ;;  %17302 = vmatprep.mubr.bf16.mxu0 %v12150_v45  ;;  %v12054_v34 = vmax.f32 %v11926_v24, 0.0 }
 0x5fa   :  { %v11061_v46 = vpop.f32.mrf.mxu1 }
 0x5fb   :  { %v21218_v55 = vpop.f32.mrf.mxu0  ;;  %v11927_v10 = vadd.f32 %v11605_v19, %v21902_v25 }
 0x5fc   :  { %v11064_v27 = vpop.f32.mrf.mxu1  ;;  %11255 = vmatmul.mubr.bf16.gmra.mxu1 %v18269_v28  ;;  %v18272_v28 = vld [vmem:[#allocation2 + $0x618] ss:$12 sps:$4 sm:$0xff]  }
 0x5fd   :  { %v21221_v8 = vpop.f32.mrf.mxu0  ;;  %v12055_v63 = vmax.f32 %v11927_v10, 0.0  ;;  %v11610_v21 = vadd.f32 %v21094_v60, %v11064_v27  ;;  %11262 = vmatprep.mubr.bf16.mxu1 %v18274_v32  ;;  %v18277_v60 = vld [vmem:[#allocation2 + $0x634] ss:$12 sps:$4 sm:$0xff]  }
 0x5fe   :  { %21903 = vst [vmem:[#allocation91_spill] sm:$0xff] %v21221_v8  ;;  %v11066_v26 = vpop.f32.mrf.mxu1 }
 0x5ff   :  { %v21224_v62 = vpop.f32.mrf.mxu0  ;;  %v12151_v0 = vpack.c.bf16 %v12055_v63, %v12054_v34  ;;  %v11928_v46 = vadd.f32 %v11610_v21, %v20577_v18 }
 0x600   :  { %v11067_v45 = vpop.f32.mrf.mxu1 }
 0x601   :  { %v21226_v53 = vpop.f32.mrf.mxu0  ;;  %v11613_v19 = vadd.f32 %v21101_v41, %v11067_v45  ;;  %17303 = vmatmul.mubr.bf16.gmra.mxu0 %v12151_v0  ;;  %v12056_v27 = vmax.f32 %v11928_v46, 0.0  ;;  %v21905_v45 = vld [vmem:[#allocation126_spill] sm:$0xff]  ;;  %v21906_v46 = vld [vmem:[#allocation57_spill] sm:$0xff] }
 0x602   :  { %v11069_v25 = vpop.f32.mrf.mxu1 }
 0x603   :  { %v21230_v8 = vpop.f32.mrf.mxu0  ;;  %v11929_v24 = vadd.f32 %v11613_v19, %v20587_v43  ;;  %v18275_v19 = vld [vmem:[#allocation2 + $0x630] ss:$12 sps:$4 sm:$0xff]  }
 0x604   :  { %v11072_v10 = vpop.f32.mrf.mxu1  ;;  %11263 = vmatmul.mubr.bf16.gmra.mxu1 %v18272_v28 }
 0x605   :  { %v21233_v32 = vpop.f32.mrf.mxu0  ;;  %v12057_v34 = vmax.f32 %v11929_v24, 0.0  ;;  %v11618_v63 = vadd.f32 %v21087_v47, %v11072_v10  ;;  %11270 = vmatprep.mubr.bf16.mxu1 %v18277_v60  ;;  %v18280_v47 = vld [vmem:[#allocation2 + $0x64c] ss:$12 sps:$4 sm:$0xff]  }
 0x606   :  { %21904 = vst [vmem:[#allocation160_spill] sm:$0xff] %v21233_v32  ;;  %v11074_v18 = vpop.f32.mrf.mxu1 }
 0x607   :  { %v21236_v21 = vpop.f32.mrf.mxu0  ;;  %v12152_v41 = vpack.c.bf16 %v12057_v34, %v12056_v27  ;;  %v11930_v25 = vadd.f32 %v11618_v63, %v21905_v45 }
 0x608   :  { %v11075_v26 = vpop.f32.mrf.mxu1 }
 0x609   :  { %v21238_v0 = vpop.f32.mrf.mxu0  ;;  %v11621_v43 = vadd.f32 %v21097_v4, %v11075_v26  ;;  %17306 = vmatprep.mubr.bf16.mxu0 %v12152_v41  ;;  %v12058_v27 = vmax.f32 %v11930_v25, 0.0 }
 0x60a   :  { %v11077_v28 = vpop.f32.mrf.mxu1 }
 0x60b   :  { %v21242_v32 = vpop.f32.mrf.mxu0  ;;  %v11931_v24 = vadd.f32 %v11621_v43, %v21906_v46 }
 0x60c   :  { %v11080_v60 = vpop.f32.mrf.mxu1  ;;  %11271 = vmatmul.mubr.bf16.gmra.mxu1 %v18275_v19  ;;  %v18278_v19 = vld [vmem:[#allocation2 + $0x648] ss:$12 sps:$4 sm:$0xff]  }
 0x60d   :  { %v21245_v10 = vpop.f32.mrf.mxu0  ;;  %v12059_v34 = vmax.f32 %v11931_v24, 0.0  ;;  %v11626_v18 = vadd.f32 %v21109_v16, %v11080_v60  ;;  %11278 = vmatprep.mubr.bf16.mxu1 %v18280_v47  ;;  %v18283_v16 = vld [vmem:[#allocation2 + $0x664] ss:$12 sps:$4 sm:$0xff]  }
 0x60e   :  { %21907 = vst [vmem:[#allocation95_spill] sm:$0xff] %v21245_v10  ;;  %v11082_v63 = vpop.f32.mrf.mxu1 }
 0x60f   :  { %v21248_v45 = vpop.f32.mrf.mxu0  ;;  %v12153_v4 = vpack.c.bf16 %v12059_v34, %v12058_v27  ;;  %v11932_v28 = vadd.f32 %v11626_v18, %v20597_v31 }
 0x610   :  { %v11083_v41 = vpop.f32.mrf.mxu1 }
 0x611   :  { %v21250_v26 = vpop.f32.mrf.mxu0  ;;  %v11629_v43 = vadd.f32 %v21116_v61, %v11083_v41  ;;  %17307 = vmatmul.mubr.bf16.gmra.mxu0 %v12153_v4  ;;  %v12060_v60 = vmax.f32 %v11932_v28, 0.0  ;;  %v21913_v41 = vld [vmem:[#allocation34_spill] sm:$0xff]  ;;  %v21915_v28 = vld [vmem:[#allocation129_spill] sm:$0xff] }
 0x612   :  { %21908 = vst [vmem:[#allocation161_spill] sm:$0xff] %v21250_v26  ;;  %v11085_v46 = vpop.f32.mrf.mxu1 }
 0x613   :  { %v21254_v10 = vpop.f32.mrf.mxu0  ;;  %v11933_v25 = vadd.f32 %v11629_v43, %v20607_v48  ;;  %v18281_v43 = vld [vmem:[#allocation2 + $0x660] ss:$12 sps:$4 sm:$0xff]  }
 0x614   :  { %21909 = vst [vmem:[#allocation98_spill] sm:$0xff] %v21254_v10  ;;  %v11088_v24 = vpop.f32.mrf.mxu1  ;;  %11279 = vmatmul.mubr.bf16.gmra.mxu1 %v18278_v19  ;;  %v21925_v10 = vld [vmem:[#allocation171_spill] sm:$0xff] }
 0x615   :  { %v21257_v47 = vpop.f32.mrf.mxu0  ;;  %v12061_v27 = vmax.f32 %v11933_v25, 0.0  ;;  %v11634_v34 = vadd.f32 %v21105_v20, %v11088_v24  ;;  %11286 = vmatprep.mubr.bf16.mxu1 %v18283_v16  ;;  %v18286_v20 = vld [vmem:[#allocation2 + $0x67c] ss:$12 sps:$4 sm:$0xff]  }
 0x616   :  { %21910 = vst [vmem:[#allocation162_spill] sm:$0xff] %v21257_v47  ;;  %v11090_v31 = vpop.f32.mrf.mxu1 }
 0x617   :  { %v21260_v18 = vpop.f32.mrf.mxu0  ;;  %v12154_v61 = vpack.c.bf16 %v12061_v27, %v12060_v60  ;;  %v11934_v46 = vadd.f32 %v11634_v34, %v21913_v41 }
 0x618   :  { %21911 = vst [vmem:[#allocation94_spill] sm:$0xff] %v21260_v18  ;;  %v11091_v63 = vpop.f32.mrf.mxu1 }
 0x619   :  { %v21262_v4 = vpop.f32.mrf.mxu0  ;;  %v11637_v48 = vadd.f32 %v21113_v1, %v11091_v63  ;;  %17310 = vmatprep.mubr.bf16.mxu0 %v12154_v61  ;;  %v12062_v60 = vmax.f32 %v11934_v46, 0.0  ;;  %v21920_v46 = vld [vmem:[#allocation132_spill] sm:$0xff] }
 0x61a   :  { %21912 = vst [vmem:[#allocation163_spill] sm:$0xff] %v21262_v4  ;;  %v11093_v19 = vpop.f32.mrf.mxu1 }
 0x61b   :  { %v21266_v47 = vpop.f32.mrf.mxu0  ;;  %v11935_v25 = vadd.f32 %v11637_v48, %v21915_v28 }
 0x61c   :  { %21914 = vst [vmem:[#allocation97_spill] sm:$0xff] %v21266_v47  ;;  %v11096_v16 = vpop.f32.mrf.mxu1  ;;  %11287 = vmatmul.mubr.bf16.gmra.mxu1 %v18281_v43  ;;  %v18284_v43 = vld [vmem:[#allocation2 + $0x678] ss:$12 sps:$4 sm:$0xff]  }
 0x61d   :  { %v21269_v24 = vpop.f32.mrf.mxu0  ;;  %v12063_v27 = vmax.f32 %v11935_v25, 0.0  ;;  %v11642_v31 = vadd.f32 %v21122_v3, %v11096_v16  ;;  %11294 = vmatprep.mubr.bf16.mxu1 %v18286_v20  ;;  %v18289_v3 = vld [vmem:[#allocation2 + $0x694] ss:$12 sps:$4 sm:$0xff]  }
 0x61e   :  { %21916 = vst [vmem:[#allocation164_spill] sm:$0xff] %v21269_v24  ;;  %v11098_v34 = vpop.f32.mrf.mxu1 }
 0x61f   :  { %v21272_v41 = vpop.f32.mrf.mxu0  ;;  %v12155_v1 = vpack.c.bf16 %v12063_v27, %v12062_v60  ;;  %v11936_v19 = vadd.f32 %v11642_v31, %v20617_v5  ;;  %v16164_v60 = vld [vmem:[#allocation3 + $0x8] sm:$0xff]   ;;  %v15589_v31 = vld [vmem:[#allocation3] sm:$0xff]  }
 0x620   :  { %21917 = vst [vmem:[#allocation101_spill] sm:$0xff] %v21272_v41  ;;  %v11099_v61 = vpop.f32.mrf.mxu1  ;;  %v15595_v4 = vunpack.c.h.bf16 %v16164_v60 }
 0x621   :  { %v21274_v63 = vpop.f32.mrf.mxu0  ;;  %v11645_v48 = vadd.f32 %v21128_v35, %v11099_v61  ;;  %17311 = vmatmul.mubr.bf16.gmra.mxu0 %v12155_v1  ;;  %v12064_v27 = vmax.f32 %v11936_v19, 0.0  ;;  %v15594_v61 = vunpack.c.l.bf16 %v16164_v60  ;;  %v18287_v19 = vld [vmem:[#allocation2 + $0x690] ss:$12 sps:$4 sm:$0xff]  }
 0x622   :  { %21918 = vst [vmem:[#allocation165_spill] sm:$0xff] %v21274_v63  ;;  %v11101_v28 = vpop.f32.mrf.mxu1  ;;  %v16165_v60 = vld [vmem:[#allocation3 + $0x10] sm:$0xff]  }
 0x623   :  { %v21278_v24 = vpop.f32.mrf.mxu0  ;;  %v11937_v25 = vadd.f32 %v11645_v48, %v21920_v46  ;;  %v21923_v48 = vld [vmem:[#allocation60_spill] sm:$0xff] }
 0x624   :  { %21919 = vst [vmem:[#allocation104_spill] sm:$0xff] %v21278_v24  ;;  %v11104_v20 = vpop.f32.mrf.mxu1  ;;  %11295 = vmatmul.mubr.bf16.gmra.mxu1 %v18284_v43 }
 0x625   :  { %v21281_v16 = vpop.f32.mrf.mxu0  ;;  %v12065_v34 = vmax.f32 %v11937_v25, 0.0  ;;  %v11650_v63 = vadd.f32 %v21118_v12, %v11104_v20  ;;  %11302 = vmatprep.mubr.bf16.mxu1 %v18289_v3  ;;  %v21924_v12 = vld [vmem:[#allocation39_spill] sm:$0xff] }
 0x626   :  { %21921 = vst [vmem:[#allocation166_spill] sm:$0xff] %v21281_v16  ;;  %v11106_v5 = vpop.f32.mrf.mxu1  ;;  %v15590_v16 = vunpack.c.l.bf16 %v15589_v31 }
 0x627   :  { %v21284_v35 = vpop.f32.mrf.mxu0  ;;  %v12156_v1 = vpack.c.bf16 %v12065_v34, %v12064_v27  ;;  %v11938_v46 = vadd.f32 %v11650_v63, %v21923_v48  ;;  %v15591_v5 = vunpack.c.h.bf16 %v15589_v31  ;;  %v16166_v34 = vld [vmem:[#allocation3 + $0x18] sm:$0xff]  }
 0x628   :  { %21922 = vst [vmem:[#allocation100_spill] sm:$0xff] %v21284_v35  ;;  %v11107_v28 = vpop.f32.mrf.mxu1  ;;  %v15602_v31 = vunpack.c.l.bf16 %v16166_v34 }
 0x629   :  { %v17244_v24 = vpop.f32.mrf.mxu0  ;;  %v11653_v43 = vadd.f32 %v21125_v22, %v11107_v28  ;;  %17314 = vmatprep.mubr.bf16.mxu0 %v12156_v1  ;;  %v12066_v47 = vmax.f32 %v11938_v46, 0.0 }
 0x62a   :  { %v11109_v25 = vpop.f32.mrf.mxu1  ;;  %v12547_v20 = vadd.f32 %v17244_v24, %v15594_v61 }
 0x62b   :  { %v12538_v41 = vpop.f32.mrf.mxu0  ;;  %v11939_v3 = vadd.f32 %v11653_v43, %v21924_v12  ;;  %v15598_v12 = vunpack.c.l.bf16 %v16165_v60 }
 0x62c   :  { %v11112_v35 = vpop.f32.mrf.mxu1  ;;  %11303 = vmatmul.mubr.bf16.gmra.mxu1 %v18287_v19  ;;  %v12539_v22 = vadd.f32 %v15590_v16, %v12538_v41  ;;  %v13051_v18 = vmax.f32 %v12547_v20, 0.0 }
 0x62d   :  { %v17245_v27 = vpop.f32.mrf.mxu0  ;;  %v12067_v26 = vmax.f32 %v11939_v3, 0.0  ;;  %v11658_v63 = vadd.f32 %v21134_v2, %v11112_v35  ;;  %11310 = vmatprep.mubr.bf16.mxu1 %v21092_v57 }
 0x62e   :  { %v12550_v1 = vadd.f32 %v17245_v27, %v15595_v4  ;;  %v11114_v28 = vpop.f32.mrf.mxu1  ;;  %v13049_v2 = vmax.f32 %v12539_v22, 0.0  ;;  %v15603_v4 = vunpack.c.h.bf16 %v16166_v34  ;;  %v21926_v27 = vld [vmem:[#allocation59_spill] sm:$0xff] }
 0x62f   :  { %v12541_v48 = vpop.f32.mrf.mxu0  ;;  %v12157_v25 = vpack.c.bf16 %v12067_v26, %v12066_v47  ;;  %v11940_v46 = vadd.f32 %v11658_v63, %v21925_v10  ;;  %v16168_v10 = vld [vmem:[#allocation3 + $0x28] sm:$0xff]  }
 0x630   :  { %v13052_v43 = vmax.f32 %v12550_v1, 0.0  ;;  %v12542_v24 = vadd.f32 %v15591_v5, %v12541_v48  ;;  %v11115_v61 = vpop.f32.mrf.mxu1  ;;  %v15599_v5 = vunpack.c.h.bf16 %v16165_v60  ;;  %v16167_v48 = vld [vmem:[#allocation3 + $0x20] sm:$0xff]   ;;  %v15610_v60 = vunpack.c.l.bf16 %v16168_v10 }
 0x631   :  { %v17248_v19 = vpop.f32.mrf.mxu0  ;;  %v11661_v3 = vadd.f32 %v21140_v56, %v11115_v61  ;;  %17315 = vmatmul.mubr.bf16.gmra.mxu0 %v12157_v25  ;;  %v12068_v63 = vmax.f32 %v11940_v46, 0.0 }
 0x632   :  { %v15852_v57 = vpack.c.bf16 %v13052_v43, %v13051_v18  ;;  %v13050_v41 = vmax.f32 %v12542_v24, 0.0  ;;  %v11117_v16 = vpop.f32.mrf.mxu1  ;;  %v12563_v20 = vadd.f32 %v17248_v19, %v15602_v31 }
 0x633   :  { %v12554_v35 = vpop.f32.mrf.mxu0  ;;  %v11941_v26 = vadd.f32 %v11661_v3, %v21926_v27 }
 0x634   :  { %16227 = vst [vmem:[#allocation11 + $0x8] sm:$0xff] %v15852_v57   ;;  %v15847_v47 = vpack.c.bf16 %v13050_v41, %v13049_v2  ;;  %v11120_v1 = vpop.f32.mrf.mxu1  ;;  %11311 = vmatmul.mubr.bf16.gmra.mxu1 %v21103_v7  ;;  %v12555_v18 = vadd.f32 %v15598_v12, %v12554_v35  ;;  %v13055_v61 = vmax.f32 %v12563_v20, 0.0  ;;  %v15606_v7 = vunpack.c.l.bf16 %v16167_v48  ;;  %v21927_v57 = vld [vmem:[#allocation56_spill] sm:$0xff] }
 0x635   :  { %v17249_v28 = vpop.f32.mrf.mxu0  ;;  %v12069_v56 = vmax.f32 %v11941_v26, 0.0  ;;  %v11666_v22 = vadd.f32 %v21130_v39, %v11120_v1  ;;  %v21928_v26 = vld [vmem:[#allocation135_spill] sm:$0xff]  ;;  %v15607_v1 = vunpack.c.h.bf16 %v16167_v48 }
 0x636   :  { %15848 = vst [vmem:[#allocation11] sm:$0xff] %v15847_v47   ;;  %v12566_v34 = vadd.f32 %v17249_v28, %v15603_v4  ;;  %v11122_v25 = vpop.f32.mrf.mxu1  ;;  %v13053_v39 = vmax.f32 %v12555_v18, 0.0  ;;  %v15611_v4 = vunpack.c.h.bf16 %v16168_v10 }
 0x637   :  { %v12557_v43 = vpop.f32.mrf.mxu0  ;;  %v12158_v24 = vpack.c.bf16 %v12069_v56, %v12068_v63  ;;  %v11942_v41 = vadd.f32 %v11666_v22, %v21927_v57  ;;  %v16170_v56 = vld [vmem:[#allocation3 + $0x38] sm:$0xff]  }
 0x638   :  { %v13056_v3 = vmax.f32 %v12566_v34, 0.0  ;;  %v12558_v31 = vadd.f32 %v15599_v5, %v12557_v43  ;;  %v11123_v19 = vpop.f32.mrf.mxu1  ;;  %v16169_v43 = vld [vmem:[#allocation3 + $0x30] sm:$0xff]   ;;  %v15618_v57 = vunpack.c.l.bf16 %v16170_v56 }
 0x639   :  { %v17252_v2 = vpop.f32.mrf.mxu0  ;;  %v11669_v46 = vadd.f32 %v21137_v9, %v11123_v19  ;;  %17318 = vmatprep.mubr.bf16.mxu0 %v12158_v24  ;;  %v12070_v34 = vmax.f32 %v11942_v41, 0.0 }
 0x63a   :  { %v15862_v16 = vpack.c.bf16 %v13056_v3, %v13055_v61  ;;  %v13054_v12 = vmax.f32 %v12558_v31, 0.0  ;;  %v11125_v35 = vpop.f32.mrf.mxu1  ;;  %v12579_v5 = vadd.f32 %v17252_v2, %v15610_v60  ;;  %v15614_v2 = vunpack.c.l.bf16 %v16169_v43 }
 0x63b   :  { %v12570_v27 = vpop.f32.mrf.mxu0  ;;  %v11943_v47 = vadd.f32 %v11669_v46, %v21928_v26  ;;  %v21929_v46 = vld [vmem:[#allocation62_spill] sm:$0xff] }
 0x63c   :  { %16229 = vst [vmem:[#allocation11 + $0x18] sm:$0xff] %v15862_v16   ;;  %v15857_v20 = vpack.c.bf16 %v13054_v12, %v13053_v39  ;;  %v11128_v28 = vpop.f32.mrf.mxu1  ;;  %v12571_v18 = vadd.f32 %v15606_v7, %v12570_v27  ;;  %v13059_v3 = vmax.f32 %v12579_v5, 0.0  ;;  %v15619_v12 = vunpack.c.h.bf16 %v16170_v56  ;;  %v21930_v27 = vld [vmem:[#allocation65_spill] sm:$0xff] }
 0x63d   :  { %v17253_v63 = vpop.f32.mrf.mxu0  ;;  %v12071_v22 = vmax.f32 %v11943_v47, 0.0  ;;  %v11674_v9 = vadd.f32 %v21146_v54, %v11128_v28  ;;  %v15615_v5 = vunpack.c.h.bf16 %v16169_v43 }
 0x63e   :  { %16228 = vst [vmem:[#allocation11 + $0x10] sm:$0xff] %v15857_v20   ;;  %v12582_v25 = vadd.f32 %v17253_v63, %v15611_v4  ;;  %v11130_v10 = vpop.f32.mrf.mxu1  ;;  %v13057_v54 = vmax.f32 %v12571_v18, 0.0  ;;  %v16172_v63 = vld [vmem:[#allocation3 + $0x48] sm:$0xff]  }
 0x63f   :  { %v12573_v24 = vpop.f32.mrf.mxu0  ;;  %v12159_v61 = vpack.c.bf16 %v12071_v22, %v12070_v34  ;;  %v11944_v39 = vadd.f32 %v11674_v9, %v21929_v46 }
 0x640   :  { %v13060_v31 = vmax.f32 %v12582_v25, 0.0  ;;  %v12574_v19 = vadd.f32 %v15607_v1, %v12573_v24  ;;  %v11131_v60 = vpop.f32.mrf.mxu1  ;;  %v16171_v25 = vld [vmem:[#allocation3 + $0x40] sm:$0xff]  }
 0x641   :  { %v17256_v48 = vpop.f32.mrf.mxu0  ;;  %v11677_v41 = vadd.f32 %v21152_v29, %v11131_v60  ;;  %17319 = vmatmul.mubr.bf16.gmra.mxu0 %v12159_v61  ;;  %v12072_v34 = vmax.f32 %v11944_v39, 0.0  ;;  %v15622_v60 = vunpack.c.l.bf16 %v16171_v25 }
 0x642   :  { %v15872_v16 = vpack.c.bf16 %v13060_v31, %v13059_v3  ;;  %v13058_v7 = vmax.f32 %v12574_v19, 0.0  ;;  %v11133_v4 = vpop.f32.mrf.mxu1  ;;  %v12595_v20 = vadd.f32 %v17256_v48, %v15618_v57  ;;  %v15626_v19 = vunpack.c.l.bf16 %v16172_v63  ;;  %v21931_v48 = vld [vmem:[#allocation136_spill] sm:$0xff] }
 0x643   :  { %v12586_v35 = vpop.f32.mrf.mxu0  ;;  %v11945_v26 = vadd.f32 %v11677_v41, %v21930_v27 }
 0x644   :  { %16231 = vst [vmem:[#allocation11 + $0x28] sm:$0xff] %v15872_v16   ;;  %v15867_v47 = vpack.c.bf16 %v13058_v7, %v13057_v54  ;;  %v11136_v1 = vpop.f32.mrf.mxu1  ;;  %v12587_v9 = vadd.f32 %v15614_v2, %v12586_v35  ;;  %v13063_v61 = vmax.f32 %v12595_v20, 0.0  ;;  %v15627_v54 = vunpack.c.h.bf16 %v16172_v63 }
 0x645   :  { %v17257_v28 = vpop.f32.mrf.mxu0  ;;  %v12073_v22 = vmax.f32 %v11945_v26, 0.0  ;;  %v11682_v29 = vadd.f32 %v21142_v49, %v11136_v1  ;;  %v15623_v26 = vunpack.c.h.bf16 %v16171_v25 }
 0x646   :  { %16230 = vst [vmem:[#allocation11 + $0x20] sm:$0xff] %v15867_v47   ;;  %v12598_v18 = vadd.f32 %v17257_v28, %v15619_v12  ;;  %v11138_v56 = vpop.f32.mrf.mxu1  ;;  %v13061_v49 = vmax.f32 %v12587_v9, 0.0  ;;  %v21932_v12 = vld [vmem:[#allocation137_spill] sm:$0xff] }
 0x647   :  { %v12589_v10 = vpop.f32.mrf.mxu0  ;;  %v12160_v24 = vpack.c.bf16 %v12073_v22, %v12072_v34  ;;  %v11946_v46 = vadd.f32 %v11682_v29, %v21931_v48  ;;  %v16173_v29 = vld [vmem:[#allocation3 + $0x50] sm:$0xff]  }
 0x648   :  { %v13064_v3 = vmax.f32 %v12598_v18, 0.0  ;;  %v12590_v31 = vadd.f32 %v15615_v5, %v12589_v10  ;;  %v11139_v57 = vpop.f32.mrf.mxu1  ;;  %v16174_v5 = vld [vmem:[#allocation3 + $0x58] sm:$0xff]  }
 0x649   :  { %v17260_v43 = vpop.f32.mrf.mxu0  ;;  %v11685_v39 = vadd.f32 %v21149_v50, %v11139_v57  ;;  %17322 = vmatprep.mubr.bf16.mxu0 %v12160_v24  ;;  %v12074_v1 = vmax.f32 %v11946_v46, 0.0  ;;  %v15635_v46 = vunpack.c.h.bf16 %v16174_v5 }
 0x64a   :  { %v15882_v41 = vpack.c.bf16 %v13064_v3, %v13063_v61  ;;  %v13062_v2 = vmax.f32 %v12590_v31, 0.0  ;;  %v11141_v16 = vpop.f32.mrf.mxu1  ;;  %v12611_v27 = vadd.f32 %v17260_v43, %v15626_v19  ;;  %v15634_v61 = vunpack.c.l.bf16 %v16174_v5  ;;  %v21933_v19 = vld [vmem:[#allocation55_spill] sm:$0xff] }
 0x64b   :  { %v12602_v7 = vpop.f32.mrf.mxu0  ;;  %v11947_v4 = vadd.f32 %v11685_v39, %v21932_v12  ;;  %v15630_v31 = vunpack.c.l.bf16 %v16173_v29 }
 0x64c   :  { %16233 = vst [vmem:[#allocation11 + $0x38] sm:$0xff] %v15882_v41   ;;  %v15877_v35 = vpack.c.bf16 %v13062_v2, %v13061_v49  ;;  %v11144_v47 = vpop.f32.mrf.mxu1  ;;  %v12603_v34 = vadd.f32 %v15622_v60, %v12602_v7  ;;  %v13067_v56 = vmax.f32 %v12611_v27, 0.0  ;;  %v21934_v41 = vld [vmem:[#allocation61_spill] sm:$0xff]  ;;  %v15631_v7 = vunpack.c.h.bf16 %v16173_v29 }
 0x64d   :  { %v17261_v20 = vpop.f32.mrf.mxu0  ;;  %v12075_v28 = vmax.f32 %v11947_v4, 0.0  ;;  %v11690_v50 = vadd.f32 %v21158_v42, %v11144_v47 }
 0x64e   :  { %16232 = vst [vmem:[#allocation11 + $0x30] sm:$0xff] %v15877_v35   ;;  %v12614_v22 = vadd.f32 %v17261_v20, %v15627_v54  ;;  %v11146_v63 = vpop.f32.mrf.mxu1  ;;  %v13065_v42 = vmax.f32 %v12603_v34, 0.0  ;;  %v16176_v35 = vld [vmem:[#allocation3 + $0x68] sm:$0xff]  }
 0x64f   :  { %v12605_v9 = vpop.f32.mrf.mxu0  ;;  %v12161_v18 = vpack.c.bf16 %v12075_v28, %v12074_v1  ;;  %v11948_v57 = vadd.f32 %v11690_v50, %v21933_v19  ;;  %v16175_v1 = vld [vmem:[#allocation3 + $0x60] sm:$0xff]  }
 0x650   :  { %v13068_v10 = vmax.f32 %v12614_v22, 0.0  ;;  %v12606_v24 = vadd.f32 %v15623_v26, %v12605_v9  ;;  %v11147_v3 = vpop.f32.mrf.mxu1  ;;  %v15642_v9 = vunpack.c.l.bf16 %v16176_v35 }
 0x651   :  { %v17264_v25 = vpop.f32.mrf.mxu0  ;;  %v11693_v43 = vadd.f32 %v21164_v37, %v11147_v3  ;;  %17323 = vmatmul.mubr.bf16.gmra.mxu0 %v12161_v18  ;;  %v12076_v27 = vmax.f32 %v11948_v57, 0.0 }
 0x652   :  { %v15892_v48 = vpack.c.bf16 %v13068_v10, %v13067_v56  ;;  %v13066_v60 = vmax.f32 %v12606_v24, 0.0  ;;  %v11149_v39 = vpop.f32.mrf.mxu1  ;;  %v12627_v16 = vadd.f32 %v17264_v25, %v15634_v61  ;;  %v15638_v56 = vunpack.c.l.bf16 %v16175_v1  ;;  %v21935_v10 = vld [vmem:[#allocation63_spill] sm:$0xff] }
 0x653   :  { %v12618_v49 = vpop.f32.mrf.mxu0  ;;  %v11949_v2 = vadd.f32 %v11693_v43, %v21934_v41  ;;  %v21936_v43 = vld [vmem:[#allocation138_spill] sm:$0xff]  ;;  %v16178_v41 = vld [vmem:[#allocation3 + $0x78] sm:$0xff]  }
 0x654   :  { %16235 = vst [vmem:[#allocation11 + $0x48] sm:$0xff] %v15892_v48   ;;  %v15887_v54 = vpack.c.bf16 %v13066_v60, %v13065_v42  ;;  %v11152_v12 = vpop.f32.mrf.mxu1  ;;  %v12619_v47 = vadd.f32 %v15630_v31, %v12618_v49  ;;  %v13071_v34 = vmax.f32 %v12627_v16, 0.0  ;;  %v15643_v31 = vunpack.c.h.bf16 %v16176_v35 }
 0x655   :  { %v17265_v4 = vpop.f32.mrf.mxu0  ;;  %v12077_v26 = vmax.f32 %v11949_v2, 0.0  ;;  %v11698_v37 = vadd.f32 %v21154_v44, %v11152_v12  ;;  %v16177_v12 = vld [vmem:[#allocation3 + $0x70] sm:$0xff]  }
 0x656   :  { %16234 = vst [vmem:[#allocation11 + $0x40] sm:$0xff] %v15887_v54   ;;  %v12630_v20 = vadd.f32 %v17265_v4, %v15635_v46  ;;  %v11154_v5 = vpop.f32.mrf.mxu1  ;;  %v13069_v44 = vmax.f32 %v12619_v47, 0.0  ;;  %v15639_v46 = vunpack.c.h.bf16 %v16175_v1 }
 0x657   :  { %v12621_v28 = vpop.f32.mrf.mxu0  ;;  %v12162_v50 = vpack.c.bf16 %v12077_v26, %v12076_v27  ;;  %v11950_v24 = vadd.f32 %v11698_v37, %v21935_v10  ;;  %v21938_v10 = vld [vmem:[#allocation140_spill] sm:$0xff] }
 0x658   :  { %v13072_v22 = vmax.f32 %v12630_v20, 0.0  ;;  %v12622_v63 = vadd.f32 %v15631_v7, %v12621_v28  ;;  %v11155_v18 = vpop.f32.mrf.mxu1  ;;  %v15650_v20 = vunpack.c.l.bf16 %v16178_v41  ;;  %v15646_v28 = vunpack.c.l.bf16 %v16177_v12 }
 0x659   :  { %v17268_v29 = vpop.f32.mrf.mxu0  ;;  %v11701_v61 = vadd.f32 %v21161_v6, %v11155_v18  ;;  %17326 = vmatprep.mubr.bf16.mxu0 %v12162_v50  ;;  %v12078_v2 = vmax.f32 %v11950_v24, 0.0  ;;  %v21937_v50 = vld [vmem:[#allocation139_spill] sm:$0xff]  ;;  %v15651_v18 = vunpack.c.h.bf16 %v16178_v41 }
 0x65a   :  { %v15902_v3 = vpack.c.bf16 %v13072_v22, %v13071_v34  ;;  %v13070_v25 = vmax.f32 %v12622_v63, 0.0  ;;  %v11157_v19 = vpop.f32.mrf.mxu1  ;;  %v12643_v60 = vadd.f32 %v17268_v29, %v15642_v9 }
 0x65b   :  { %v12634_v57 = vpop.f32.mrf.mxu0  ;;  %v11951_v42 = vadd.f32 %v11701_v61, %v21936_v43  ;;  %v16180_v19 = vld [vmem:[#allocation3 + $0x88] sm:$0xff]  }
 0x65c   :  { %16237 = vst [vmem:[#allocation11 + $0x58] sm:$0xff] %v15902_v3   ;;  %v15897_v48 = vpack.c.bf16 %v13070_v25, %v13069_v44  ;;  %v11160_v39 = vpop.f32.mrf.mxu1  ;;  %v12635_v16 = vadd.f32 %v15638_v56, %v12634_v57  ;;  %v13075_v26 = vmax.f32 %v12643_v60, 0.0  ;;  %v15647_v3 = vunpack.c.h.bf16 %v16177_v12  ;;  %v16179_v60 = vld [vmem:[#allocation3 + $0x80] sm:$0xff]  }
 0x65d   :  { %v17269_v49 = vpop.f32.mrf.mxu0  ;;  %v12079_v54 = vmax.f32 %v11951_v42, 0.0  ;;  %v11706_v6 = vadd.f32 %v21170_v40, %v11160_v39  ;;  %v15654_v12 = vunpack.c.l.bf16 %v16179_v60 }
 0x65e   :  { %16236 = vst [vmem:[#allocation11 + $0x50] sm:$0xff] %v15897_v48   ;;  %v12646_v7 = vadd.f32 %v17269_v49, %v15643_v31  ;;  %v11162_v4 = vpop.f32.mrf.mxu1  ;;  %v13073_v40 = vmax.f32 %v12635_v16, 0.0 }
 0x65f   :  { %v12637_v35 = vpop.f32.mrf.mxu0  ;;  %v12163_v27 = vpack.c.bf16 %v12079_v54, %v12078_v2  ;;  %v11952_v34 = vadd.f32 %v11706_v6, %v21937_v50  ;;  %v15658_v6 = vunpack.c.l.bf16 %v16180_v19  ;;  %v21939_v4 = vld [vmem:[#allocation58_spill] sm:$0xff] }
 0x660   :  { %v13076_v37 = vmax.f32 %v12646_v7, 0.0  ;;  %v12638_v47 = vadd.f32 %v15639_v46, %v12637_v35  ;;  %v11163_v5 = vpop.f32.mrf.mxu1 }
 0x661   :  { %v17272_v1 = vpop.f32.mrf.mxu0  ;;  %v11709_v22 = vadd.f32 %v21176_v13, %v11163_v5  ;;  %17327 = vmatmul.mubr.bf16.gmra.mxu0 %v12163_v27  ;;  %v12080_v57 = vmax.f32 %v11952_v34, 0.0 }
 0x662   :  { %v15912_v63 = vpack.c.bf16 %v13076_v37, %v13075_v26  ;;  %v13074_v9 = vmax.f32 %v12638_v47, 0.0  ;;  %v11165_v29 = vpop.f32.mrf.mxu1  ;;  %v12659_v44 = vadd.f32 %v17272_v1, %v15650_v20  ;;  %v15659_v47 = vunpack.c.h.bf16 %v16180_v19  ;;  %v21940_v1 = vld [vmem:[#allocation64_spill] sm:$0xff] }
 0x663   :  { %v12650_v56 = vpop.f32.mrf.mxu0  ;;  %v11953_v24 = vadd.f32 %v11709_v22, %v21938_v10  ;;  %v15655_v22 = vunpack.c.h.bf16 %v16179_v60 }
 0x664   :  { %16239 = vst [vmem:[#allocation11 + $0x68] sm:$0xff] %v15912_v63   ;;  %v15907_v61 = vpack.c.bf16 %v13074_v9, %v13073_v40  ;;  %v11168_v25 = vpop.f32.mrf.mxu1  ;;  %v12651_v42 = vadd.f32 %v15646_v28, %v12650_v56  ;;  %v13079_v41 = vmax.f32 %v12659_v44, 0.0  ;;  %v16182_v9 = vld [vmem:[#allocation3 + $0x98] sm:$0xff]  }
 0x665   :  { %v17273_v31 = vpop.f32.mrf.mxu0  ;;  %v12081_v43 = vmax.f32 %v11953_v24, 0.0  ;;  %v11714_v13 = vadd.f32 %v21166_v17, %v11168_v25  ;;  %v16181_v24 = vld [vmem:[#allocation3 + $0x90] sm:$0xff]  }
 0x666   :  { %16238 = vst [vmem:[#allocation11 + $0x60] sm:$0xff] %v15907_v61   ;;  %v12662_v48 = vadd.f32 %v17273_v31, %v15651_v18  ;;  %v11170_v46 = vpop.f32.mrf.mxu1  ;;  %v13077_v17 = vmax.f32 %v12651_v42, 0.0  ;;  %v15662_v42 = vunpack.c.l.bf16 %v16181_v24 }
 0x667   :  { %v12653_v39 = vpop.f32.mrf.mxu0  ;;  %v12164_v49 = vpack.c.bf16 %v12081_v43, %v12080_v57  ;;  %v11954_v35 = vadd.f32 %v11714_v13, %v21939_v4  ;;  %v15666_v57 = vunpack.c.l.bf16 %v16182_v9  ;;  %v15663_v4 = vunpack.c.h.bf16 %v16181_v24 }
 0x668   :  { %v13080_v2 = vmax.f32 %v12662_v48, 0.0  ;;  %v12654_v54 = vadd.f32 %v15647_v3, %v12653_v39  ;;  %v11171_v16 = vpop.f32.mrf.mxu1  ;;  %v21941_v48 = vld [vmem:[#allocation141_spill] sm:$0xff] }
 0x669   :  { %v17276_v7 = vpop.f32.mrf.mxu0  ;;  %v11717_v27 = vadd.f32 %v21173_v15, %v11171_v16  ;;  %17330 = vmatprep.mubr.bf16.mxu0 %v12164_v49  ;;  %v12082_v18 = vmax.f32 %v11954_v35, 0.0 }
 0x66a   :  { %v15922_v26 = vpack.c.bf16 %v13080_v2, %v13079_v41  ;;  %v13078_v37 = vmax.f32 %v12654_v54, 0.0  ;;  %v11173_v20 = vpop.f32.mrf.mxu1  ;;  %v12675_v34 = vadd.f32 %v17276_v7, %v15658_v6  ;;  %v15667_v41 = vunpack.c.h.bf16 %v16182_v9  ;;  %v21942_v6 = vld [vmem:[#allocation142_spill] sm:$0xff] }
 0x66b   :  { %v12666_v5 = vpop.f32.mrf.mxu0  ;;  %v11955_v28 = vadd.f32 %v11717_v27, %v21940_v1 }
 0x66c   :  { %16241 = vst [vmem:[#allocation11 + $0x78] sm:$0xff] %v15922_v26   ;;  %v15917_v50 = vpack.c.bf16 %v13078_v37, %v13077_v17  ;;  %v11176_v40 = vpop.f32.mrf.mxu1  ;;  %v12667_v56 = vadd.f32 %v15654_v12, %v12666_v5  ;;  %v13083_v25 = vmax.f32 %v12675_v34, 0.0  ;;  %v16184_v37 = vld [vmem:[#allocation3 + $0xa8] sm:$0xff]   ;;  %v16183_v5 = vld [vmem:[#allocation3 + $0xa0] sm:$0xff]  }
 0x66d   :  { %v17277_v63 = vpop.f32.mrf.mxu0  ;;  %v12083_v29 = vmax.f32 %v11955_v28, 0.0  ;;  %v11722_v15 = vadd.f32 %v21182_v38, %v11176_v40 }
 0x66e   :  { %16240 = vst [vmem:[#allocation11 + $0x70] sm:$0xff] %v15917_v50   ;;  %v12678_v10 = vadd.f32 %v17277_v63, %v15659_v47  ;;  %v11178_v61 = vpop.f32.mrf.mxu1  ;;  %v13081_v38 = vmax.f32 %v12667_v56, 0.0  ;;  %v15674_v63 = vunpack.c.l.bf16 %v16184_v37 }
 0x66f   :  { %v12669_v44 = vpop.f32.mrf.mxu0  ;;  %v12165_v3 = vpack.c.bf16 %v12083_v29, %v12082_v18  ;;  %v11956_v60 = vadd.f32 %v11722_v15, %v21941_v48  ;;  %v15670_v29 = vunpack.c.l.bf16 %v16183_v5  ;;  %v21943_v15 = vld [vmem:[#allocation68_spill] sm:$0xff] }
 0x670   :  { %v13084_v31 = vmax.f32 %v12678_v10, 0.0  ;;  %v12670_v19 = vadd.f32 %v15655_v22, %v12669_v44  ;;  %v11179_v43 = vpop.f32.mrf.mxu1  ;;  %v15675_v44 = vunpack.c.h.bf16 %v16184_v37 }
 0x671   :  { %v17280_v13 = vpop.f32.mrf.mxu0  ;;  %v11725_v46 = vadd.f32 %v21188_v33, %v11179_v43  ;;  %17331 = vmatmul.mubr.bf16.gmra.mxu0 %v12165_v3  ;;  %v12084_v17 = vmax.f32 %v11956_v60, 0.0 }
 0x672   :  { %v15932_v39 = vpack.c.bf16 %v13084_v31, %v13083_v25  ;;  %v13082_v49 = vmax.f32 %v12670_v19, 0.0  ;;  %v11181_v2 = vpop.f32.mrf.mxu1  ;;  %v12691_v12 = vadd.f32 %v17280_v13, %v15666_v57  ;;  %v21944_v31 = vld [vmem:[#allocation71_spill] sm:$0xff]  ;;  %v15671_v13 = vunpack.c.h.bf16 %v16183_v5 }
 0x673   :  { %v12682_v54 = vpop.f32.mrf.mxu0  ;;  %v11957_v16 = vadd.f32 %v11725_v46, %v21942_v6  ;;  %v16185_v2 = vld [vmem:[#allocation3 + $0xb0] sm:$0xff]  }
 0x674   :  { %16243 = vst [vmem:[#allocation11 + $0x88] sm:$0xff] %v15932_v39   ;;  %v15927_v7 = vpack.c.bf16 %v13082_v49, %v13081_v38  ;;  %v11184_v35 = vpop.f32.mrf.mxu1  ;;  %v12683_v47 = vadd.f32 %v15662_v42, %v12682_v54  ;;  %v13087_v34 = vmax.f32 %v12691_v12, 0.0 }
 0x675   :  { %v17281_v27 = vpop.f32.mrf.mxu0  ;;  %v12085_v26 = vmax.f32 %v11957_v16, 0.0  ;;  %v11730_v33 = vadd.f32 %v21179_v30, %v11184_v35 }
 0x676   :  { %16242 = vst [vmem:[#allocation11 + $0x80] sm:$0xff] %v15927_v7   ;;  %v12694_v20 = vadd.f32 %v17281_v27, %v15667_v41  ;;  %v11186_v1 = vpop.f32.mrf.mxu1  ;;  %v13085_v30 = vmax.f32 %v12683_v47, 0.0  ;;  %v21945_v27 = vld [vmem:[#allocation143_spill] sm:$0xff] }
 0x677   :  { %v12685_v28 = vpop.f32.mrf.mxu0  ;;  %v12166_v50 = vpack.c.bf16 %v12085_v26, %v12084_v17  ;;  %v11958_v56 = vadd.f32 %v11730_v33, %v21943_v15 }
 0x678   :  { %v13088_v22 = vmax.f32 %v12694_v20, 0.0  ;;  %v12686_v40 = vadd.f32 %v15663_v4, %v12685_v28  ;;  %v11187_v9 = vpop.f32.mrf.mxu1  ;;  %v21946_v28 = vld [vmem:[#allocation144_spill] sm:$0xff] }
 0x679   :  { %v17284_v18 = vpop.f32.mrf.mxu0  ;;  %v11733_v10 = vadd.f32 %v21185_v51, %v11187_v9  ;;  %17334 = vmatprep.mubr.bf16.mxu0 %v12166_v50  ;;  %v12086_v48 = vmax.f32 %v11958_v56, 0.0  ;;  %v16186_v51 = vld [vmem:[#allocation3 + $0xb8] sm:$0xff]   ;;  %v15679_v9 = vunpack.c.h.bf16 %v16185_v2 }
 0x67a   :  { %v15942_v24 = vpack.c.bf16 %v13088_v22, %v13087_v34  ;;  %v13086_v61 = vmax.f32 %v12686_v40, 0.0  ;;  %v11189_v3 = vpop.f32.mrf.mxu1  ;;  %v12707_v43 = vadd.f32 %v17284_v18, %v15674_v63  ;;  %v15682_v35 = vunpack.c.l.bf16 %v16186_v51 }
 0x67b   :  { %v12698_v25 = vpop.f32.mrf.mxu0  ;;  %v11959_v19 = vadd.f32 %v11733_v10, %v21944_v31  ;;  %v15683_v1 = vunpack.c.h.bf16 %v16186_v51 }
 0x67c   :  { %16245 = vst [vmem:[#allocation11 + $0x98] sm:$0xff] %v15942_v24   ;;  %v15937_v57 = vpack.c.bf16 %v13086_v61, %v13085_v30  ;;  %v11192_v42 = vpop.f32.mrf.mxu1  ;;  %v12699_v39 = vadd.f32 %v15670_v29, %v12698_v25  ;;  %v13091_v16 = vmax.f32 %v12707_v43, 0.0  ;;  %v21948_v43 = vld [vmem:[#allocation88_spill] sm:$0xff] }
 0x67d   :  { %v17285_v60 = vpop.f32.mrf.mxu0  ;;  %v12087_v46 = vmax.f32 %v11959_v19, 0.0  ;;  %v11738_v38 = vadd.f32 %v21194_v36, %v11192_v42  ;;  %v15678_v36 = vunpack.c.l.bf16 %v16185_v2  ;;  %v21947_v19 = vld [vmem:[#allocation67_spill] sm:$0xff] }
 0x67e   :  { %16244 = vst [vmem:[#allocation11 + $0x90] sm:$0xff] %v15937_v57   ;;  %v12710_v49 = vadd.f32 %v17285_v60, %v15675_v44  ;;  %v11194_v41 = vpop.f32.mrf.mxu1  ;;  %v13089_v33 = vmax.f32 %v12699_v39, 0.0 }
 0x67f   :  { %v12701_v54 = vpop.f32.mrf.mxu0  ;;  %v12167_v6 = vpack.c.bf16 %v12087_v46, %v12086_v48  ;;  %v11960_v17 = vadd.f32 %v11738_v38, %v21945_v27  ;;  %v21949_v46 = vld [vmem:[#allocation70_spill] sm:$0xff] }
 0x680   :  { %v13092_v7 = vmax.f32 %v12710_v49, 0.0  ;;  %v12702_v12 = vadd.f32 %v15671_v13, %v12701_v54  ;;  %v11195_v4 = vpop.f32.mrf.mxu1  ;;  %v16188_v54 = vld [vmem:[#allocation3 + $0xc8] sm:$0xff]  }
 0x681   :  { %v11741_v26 = vadd.f32 %v21200_v11, %v11195_v4  ;;  %v17288_v37 = vpop.f32.mrf.mxu0  ;;  %17335 = vmatmul.mubr.bf16.gmra.mxu0 %v12167_v6  ;;  %v12088_v18 = vmax.f32 %v11960_v17, 0.0  ;;  %v15690_v4 = vunpack.c.l.bf16 %v16188_v54 }
 0x682   :  { %v15952_v47 = vpack.c.bf16 %v13092_v7, %v13091_v16  ;;  %v13090_v20 = vmax.f32 %v12702_v12, 0.0  ;;  %v11197_v5 = vpop.f32.mrf.mxu1  ;;  %v12723_v40 = vadd.f32 %v17288_v37, %v15682_v35  ;;  %v16187_v7 = vld [vmem:[#allocation3 + $0xc0] sm:$0xff]   ;;  %v21950_v35 = vld [vmem:[#allocation145_spill] sm:$0xff] }
 0x683   :  { %v11961_v50 = vadd.f32 %v11741_v26, %v21946_v28  ;;  %v12714_v34 = vpop.f32.mrf.mxu0  ;;  %v15687_v28 = vunpack.c.h.bf16 %v16187_v7 }
 0x684   :  { %16247 = vst [vmem:[#allocation11 + $0xa8] sm:$0xff] %v15952_v47   ;;  %v15947_v22 = vpack.c.bf16 %v13090_v20, %v13089_v33  ;;  %v11200_v63 = vpop.f32.mrf.mxu1  ;;  %v12715_v56 = vadd.f32 %v15678_v36, %v12714_v34  ;;  %v13095_v44 = vmax.f32 %v12723_v40, 0.0  ;;  %v15686_v36 = vunpack.c.l.bf16 %v16187_v7  ;;  %v21951_v47 = vld [vmem:[#allocation146_spill] sm:$0xff] }
 0x685   :  { %v12089_v29 = vmax.f32 %v11961_v50, 0.0  ;;  %v11746_v11 = vadd.f32 %v21190_v14, %v11200_v63  ;;  %v17289_v15 = vpop.f32.mrf.mxu0  ;;  %v15691_v33 = vunpack.c.h.bf16 %v16188_v54 }
 0x686   :  { %16246 = vst [vmem:[#allocation11 + $0xa0] sm:$0xff] %v15947_v22   ;;  %v12726_v10 = vadd.f32 %v17289_v15, %v15683_v1  ;;  %v11202_v30 = vpop.f32.mrf.mxu1  ;;  %v13093_v42 = vmax.f32 %v12715_v56, 0.0 }
 0x687   :  { %v12717_v24 = vpop.f32.mrf.mxu0  ;;  %v12168_v61 = vpack.c.bf16 %v12089_v29, %v12088_v18  ;;  %v11962_v57 = vadd.f32 %v11746_v11, %v21947_v19  ;;  %v21952_v30 = vld [vmem:[#allocation73_spill] sm:$0xff] }
 0x688   :  { %v13096_v3 = vmax.f32 %v12726_v10, 0.0  ;;  %v12718_v25 = vadd.f32 %v15679_v9, %v12717_v24  ;;  %v11203_v31 = vpop.f32.mrf.mxu1 }
 0x689   :  { %v11749_v13 = vadd.f32 %v21948_v43, %v11203_v31  ;;  %17338 = vmatprep.mubr.bf16.mxu0 %v12168_v61  ;;  %v12090_v49 = vmax.f32 %v11962_v57, 0.0  ;;  %v21953_v61 = vld [vmem:[#allocation159_spill] sm:$0xff] }
 0x68a   :  { %v15962_v48 = vpack.c.bf16 %v13096_v3, %v13095_v44  ;;  %v13094_v60 = vmax.f32 %v12718_v25, 0.0  ;;  %v11205_v14 = vpop.f32.mrf.mxu1 }
 0x68b   :  { %v11963_v38 = vadd.f32 %v11749_v13, %v21949_v46  ;;  %v16190_v14 = vld [vmem:[#allocation3 + $0xd8] sm:$0xff]  }
 0x68c   :  { %16249 = vst [vmem:[#allocation11 + $0xb8] sm:$0xff] %v15962_v48   ;;  %v15957_v51 = vpack.c.bf16 %v13094_v60, %v13093_v42  ;;  %v11208_v39 = vpop.f32.mrf.mxu1 }
 0x68d   :  { %v12091_v41 = vmax.f32 %v11963_v38, 0.0  ;;  %v11754_v2 = vadd.f32 %v21206_v58, %v11208_v39 }
 0x68e   :  { %16248 = vst [vmem:[#allocation11 + $0xb0] sm:$0xff] %v15957_v51   ;;  %v11210_v6 = vpop.f32.mrf.mxu1  ;;  %v16189_v51 = vld [vmem:[#allocation3 + $0xd0] sm:$0xff]  }
 0x68f   :  { %v12169_v16 = vpack.c.bf16 %v12091_v41, %v12090_v49  ;;  %v11964_v27 = vadd.f32 %v11754_v2, %v21950_v35  ;;  %v15698_v49 = vunpack.c.l.bf16 %v16190_v14  ;;  %v21955_v41 = vld [vmem:[#allocation72_spill] sm:$0xff]  ;;  %v15694_v7 = vunpack.c.l.bf16 %v16189_v51 }
 0x690   :  { %v11211_v12 = vpop.f32.mrf.mxu1 }
 0x691   :  { %v11757_v17 = vadd.f32 %v21212_v52, %v11211_v12  ;;  %v17292_v26 = vpop.f32.mrf.mxu0  ;;  %17339 = vmatmul.mubr.bf16.gmra.mxu0 %v12169_v16  ;;  %v12092_v50 = vmax.f32 %v11964_v27, 0.0  ;;  %v15699_v12 = vunpack.c.h.bf16 %v16190_v14 }
 0x692   :  { %v11213_v37 = vpop.f32.mrf.mxu1  ;;  %v12739_v58 = vadd.f32 %v17292_v26, %v15690_v4  ;;  %v21956_v4 = vld [vmem:[#allocation147_spill] sm:$0xff]  ;;  %v15695_v26 = vunpack.c.h.bf16 %v16189_v51 }
 0x693   :  { %v11965_v20 = vadd.f32 %v11757_v17, %v21951_v47  ;;  %v12730_v5 = vpop.f32.mrf.mxu0 }
 0x694   :  { %v11216_v1 = vpop.f32.mrf.mxu1  ;;  %v12731_v63 = vadd.f32 %v15686_v36, %v12730_v5  ;;  %v13099_v11 = vmax.f32 %v12739_v58, 0.0 }
 0x695   :  { %v12093_v34 = vmax.f32 %v11965_v20, 0.0  ;;  %v11762_v22 = vadd.f32 %v21202_v59, %v11216_v1  ;;  %v17293_v40 = vpop.f32.mrf.mxu0  ;;  %v21954_v59 = vld [vmem:[#allocation76_spill] sm:$0xff] }
 0x696   :  { %v12742_v9 = vadd.f32 %v17293_v40, %v15691_v33  ;;  %v11218_v18 = vpop.f32.mrf.mxu1  ;;  %v13097_v3 = vmax.f32 %v12731_v63, 0.0  ;;  %v21957_v40 = vld [vmem:[#allocation75_spill] sm:$0xff] }
 0x697   :  { %v12733_v52 = vpop.f32.mrf.mxu0  ;;  %v12170_v29 = vpack.c.bf16 %v12093_v34, %v12092_v50  ;;  %v11966_v24 = vadd.f32 %v11762_v22, %v21952_v30 }
 0x698   :  { %v13100_v15 = vmax.f32 %v12742_v9, 0.0  ;;  %v12734_v56 = vadd.f32 %v15687_v28, %v12733_v52  ;;  %v11219_v10 = vpop.f32.mrf.mxu1  ;;  %v21958_v9 = vld [vmem:[#allocation91_spill] sm:$0xff] }
 0x699   :  { %v11765_v44 = vadd.f32 %v21953_v61, %v11219_v10  ;;  %17342 = vmatprep.mubr.bf16.mxu0 %v12170_v29  ;;  %v12094_v42 = vmax.f32 %v11966_v24, 0.0 }
 0x69a   :  { %v15972_v25 = vpack.c.bf16 %v13100_v15, %v13099_v11  ;;  %v13098_v31 = vmax.f32 %v12734_v56, 0.0  ;;  %v11221_v19 = vpop.f32.mrf.mxu1 }
 0x69b   :  { %v11967_v57 = vadd.f32 %v11765_v44, %v21954_v59  ;;  %v16191_v19 = vld [vmem:[#allocation3 + $0xe0] sm:$0xff]  }
 0x69c   :  { %16251 = vst [vmem:[#allocation11 + $0xc8] sm:$0xff] %v15972_v25   ;;  %v15967_v43 = vpack.c.bf16 %v13098_v31, %v13097_v3  ;;  %v11224_v13 = vpop.f32.mrf.mxu1  ;;  %v16192_v3 = vld [vmem:[#allocation3 + $0xe8] sm:$0xff]   ;;  %v15702_v14 = vunpack.c.l.bf16 %v16191_v19 }
 0x69d   :  { %v12095_v48 = vmax.f32 %v11967_v57, 0.0  ;;  %v11770_v60 = vadd.f32 %v21218_v55, %v11224_v13  ;;  %v15706_v57 = vunpack.c.l.bf16 %v16192_v3 }
 0x69e   :  { %16250 = vst [vmem:[#allocation11 + $0xc0] sm:$0xff] %v15967_v43   ;;  %v11226_v46 = vpop.f32.mrf.mxu1  ;;  %v21960_v43 = vld [vmem:[#allocation79_spill] sm:$0xff] }
 0x69f   :  { %v12171_v38 = vpack.c.bf16 %v12095_v48, %v12094_v42  ;;  %v11968_v2 = vadd.f32 %v11770_v60, %v21955_v41  ;;  %v15707_v46 = vunpack.c.h.bf16 %v16192_v3  ;;  %v15703_v41 = vunpack.c.h.bf16 %v16191_v19 }
 0x6a0   :  { %v11227_v39 = vpop.f32.mrf.mxu1 }
 0x6a1   :  { %v11773_v54 = vadd.f32 %v21224_v62, %v11227_v39  ;;  %v17296_v6 = vpop.f32.mrf.mxu0  ;;  %17343 = vmatmul.mubr.bf16.gmra.mxu0 %v12171_v38  ;;  %v12096_v37 = vmax.f32 %v11968_v2, 0.0  ;;  %v21961_v38 = vld [vmem:[#allocation149_spill] sm:$0xff] }
 0x6a2   :  { %v11229_v16 = vpop.f32.mrf.mxu1  ;;  %v12755_v55 = vadd.f32 %v17296_v6, %v15698_v49 }
 0x6a3   :  { %v11969_v35 = vadd.f32 %v11773_v54, %v21956_v4  ;;  %v12746_v27 = vpop.f32.mrf.mxu0 }
 0x6a4   :  { %v11232_v17 = vpop.f32.mrf.mxu1  ;;  %v12747_v20 = vadd.f32 %v15694_v7, %v12746_v27  ;;  %v13103_v28 = vmax.f32 %v12755_v55, 0.0 }
 0x6a5   :  { %v12097_v36 = vmax.f32 %v11969_v35, 0.0  ;;  %v11778_v33 = vadd.f32 %v21214_v23, %v11232_v17  ;;  %v17297_v47 = vpop.f32.mrf.mxu0  ;;  %v21959_v23 = vld [vmem:[#allocation148_spill] sm:$0xff] }
 0x6a6   :  { %v12758_v5 = vadd.f32 %v17297_v47, %v15699_v12  ;;  %v11234_v58 = vpop.f32.mrf.mxu1  ;;  %v13101_v52 = vmax.f32 %v12747_v20, 0.0 }
 0x6a7   :  { %v12749_v62 = vpop.f32.mrf.mxu0  ;;  %v12172_v1 = vpack.c.bf16 %v12097_v36, %v12096_v37  ;;  %v11970_v63 = vadd.f32 %v11778_v33, %v21957_v40  ;;  %v21962_v37 = vld [vmem:[#allocation81_spill] sm:$0xff]  ;;  %v21963_v33 = vld [vmem:[#allocation160_spill] sm:$0xff] }
 0x6a8   :  { %v13104_v50 = vmax.f32 %v12758_v5, 0.0  ;;  %v12750_v34 = vadd.f32 %v15695_v26, %v12749_v62  ;;  %v11235_v22 = vpop.f32.mrf.mxu1 }
 0x6a9   :  { %v11781_v18 = vadd.f32 %v21958_v9, %v11235_v22  ;;  %17346 = vmatprep.mubr.bf16.mxu0 %v12172_v1  ;;  %v12098_v24 = vmax.f32 %v11970_v63, 0.0  ;;  %v16194_v63 = vld [vmem:[#allocation3 + $0xf8] sm:$0xff]  }
 0x6aa   :  { %v15982_v29 = vpack.c.bf16 %v13104_v50, %v13103_v28  ;;  %v13102_v11 = vmax.f32 %v12750_v34, 0.0  ;;  %v11237_v15 = vpop.f32.mrf.mxu1 }
 0x6ab   :  { %v11971_v56 = vadd.f32 %v11781_v18, %v21959_v23  ;;  %v21965_v15 = vld [vmem:[#allocation78_spill] sm:$0xff] }
 0x6ac   :  { %16253 = vst [vmem:[#allocation11 + $0xd8] sm:$0xff] %v15982_v29   ;;  %v15977_v10 = vpack.c.bf16 %v13102_v11, %v13101_v52  ;;  %v11240_v30 = vpop.f32.mrf.mxu1  ;;  %v16193_v52 = vld [vmem:[#allocation3 + $0xf0] sm:$0xff]   ;;  %v15714_v11 = vunpack.c.l.bf16 %v16194_v63 }
 0x6ad   :  { %v12099_v61 = vmax.f32 %v11971_v56, 0.0  ;;  %v11786_v44 = vadd.f32 %v21230_v8, %v11240_v30  ;;  %v15711_v19 = vunpack.c.h.bf16 %v16193_v52 }
 0x6ae   :  { %16252 = vst [vmem:[#allocation11 + $0xd0] sm:$0xff] %v15977_v10   ;;  %v11242_v25 = vpop.f32.mrf.mxu1 }
 0x6af   :  { %v12173_v31 = vpack.c.bf16 %v12099_v61, %v12098_v24  ;;  %v11972_v13 = vadd.f32 %v11786_v44, %v21960_v43  ;;  %v15710_v24 = vunpack.c.l.bf16 %v16193_v52  ;;  %v15715_v61 = vunpack.c.h.bf16 %v16194_v63  ;;  %v21966_v44 = vld [vmem:[#allocation151_spill] sm:$0xff] }
 0x6b0   :  { %v11243_v59 = vpop.f32.mrf.mxu1 }
 0x6b1   :  { %v11789_v42 = vadd.f32 %v21236_v21, %v11243_v59  ;;  %v17300_v48 = vpop.f32.mrf.mxu0  ;;  %17347 = vmatmul.mubr.bf16.gmra.mxu0 %v12173_v31  ;;  %v12100_v2 = vmax.f32 %v11972_v13, 0.0 }
 0x6b2   :  { %v11245_v60 = vpop.f32.mrf.mxu1  ;;  %v12771_v8 = vadd.f32 %v17300_v48, %v15706_v57 }
 0x6b3   :  { %v11973_v51 = vadd.f32 %v11789_v42, %v21961_v38  ;;  %v12762_v39 = vpop.f32.mrf.mxu0 }
 0x6b4   :  { %v11248_v49 = vpop.f32.mrf.mxu1  ;;  %v12763_v7 = vadd.f32 %v15702_v14, %v12762_v39  ;;  %v13107_v27 = vmax.f32 %v12771_v8, 0.0  ;;  %v21967_v8 = vld [vmem:[#allocation80_spill] sm:$0xff] }
 0x6b5   :  { %v12101_v54 = vmax.f32 %v11973_v51, 0.0  ;;  %v11794_v6 = vadd.f32 %v21226_v53, %v11248_v49  ;;  %v17301_v16 = vpop.f32.mrf.mxu0  ;;  %v21964_v53 = vld [vmem:[#allocation150_spill] sm:$0xff] }
 0x6b6   :  { %v12774_v12 = vadd.f32 %v17301_v16, %v15707_v46  ;;  %v11250_v4 = vpop.f32.mrf.mxu1  ;;  %v13105_v20 = vmax.f32 %v12763_v7, 0.0 }
 0x6b7   :  { %v12765_v21 = vpop.f32.mrf.mxu0  ;;  %v12174_v35 = vpack.c.bf16 %v12101_v54, %v12100_v2  ;;  %v11974_v36 = vadd.f32 %v11794_v6, %v21962_v37 }
 0x6b8   :  { %v13108_v55 = vmax.f32 %v12774_v12, 0.0  ;;  %v12766_v17 = vadd.f32 %v15703_v41, %v12765_v21  ;;  %v11251_v26 = vpop.f32.mrf.mxu1  ;;  %v21968_v41 = vld [vmem:[#allocation95_spill] sm:$0xff] }
 0x6b9   :  { %v11797_v47 = vadd.f32 %v21963_v33, %v11251_v26  ;;  %17350 = vmatprep.mubr.bf16.mxu0 %v12174_v35  ;;  %v12102_v34 = vmax.f32 %v11974_v36, 0.0  ;;  %v16196_v26 = vld [vmem:[#allocation3 + $0x108] sm:$0xff]   ;;  %v16195_v33 = vld [vmem:[#allocation3 + $0x100] sm:$0xff]  }
 0x6ba   :  { %v15992_v5 = vpack.c.bf16 %v13108_v55, %v13107_v27  ;;  %v13106_v58 = vmax.f32 %v12766_v17, 0.0  ;;  %v11253_v62 = vpop.f32.mrf.mxu1  ;;  %v21970_v55 = vld [vmem:[#allocation98_spill] sm:$0xff]  ;;  %v15719_v52 = vunpack.c.h.bf16 %v16195_v33 }
 0x6bb   :  { %v11975_v1 = vadd.f32 %v11797_v47, %v21964_v53  ;;  %v21972_v62 = vld [vmem:[#allocation94_spill] sm:$0xff] }
 0x6bc   :  { %16255 = vst [vmem:[#allocation11 + $0xe8] sm:$0xff] %v15992_v5   ;;  %v15987_v28 = vpack.c.bf16 %v13106_v58, %v13105_v20  ;;  %v11256_v50 = vpop.f32.mrf.mxu1  ;;  %v15722_v20 = vunpack.c.l.bf16 %v16196_v26  ;;  %v21971_v5 = vld [vmem:[#allocation83_spill] sm:$0xff] }
 0x6bd   :  { %v12103_v22 = vmax.f32 %v11975_v1, 0.0  ;;  %v11802_v40 = vadd.f32 %v21242_v32, %v11256_v50  ;;  %v15718_v50 = vunpack.c.l.bf16 %v16195_v33 }
 0x6be   :  { %16254 = vst [vmem:[#allocation11 + $0xe0] sm:$0xff] %v15987_v28   ;;  %v11258_v9 = vpop.f32.mrf.mxu1 }
 0x6bf   :  { %v12175_v18 = vpack.c.bf16 %v12103_v22, %v12102_v34  ;;  %v11976_v23 = vadd.f32 %v11802_v40, %v21965_v15  ;;  %v15723_v34 = vunpack.c.h.bf16 %v16196_v26  ;;  %v21973_v22 = vld [vmem:[#allocation153_spill] sm:$0xff]  ;;  %v21981_v26 = vld [vmem:[#allocation155_spill] sm:$0xff] }
 0x6c0   :  { %v11259_v29 = vpop.f32.mrf.mxu1  ;;  %v21974_v15 = vld [vmem:[#allocation161_spill] sm:$0xff] }
 0x6c1   :  { %v11805_v56 = vadd.f32 %v21248_v45, %v11259_v29  ;;  %v17304_v10 = vpop.f32.mrf.mxu0  ;;  %17351 = vmatmul.mubr.bf16.gmra.mxu0 %v12175_v18  ;;  %v12104_v59 = vmax.f32 %v11976_v23, 0.0 }
 0x6c2   :  { %v11261_v30 = vpop.f32.mrf.mxu1  ;;  %v12787_v32 = vadd.f32 %v17304_v10, %v15714_v11 }
 0x6c3   :  { %v11977_v3 = vadd.f32 %v11805_v56, %v21966_v44  ;;  %v12778_v25 = vpop.f32.mrf.mxu0 }
 0x6c4   :  { %v11264_v31 = vpop.f32.mrf.mxu1  ;;  %v12779_v42 = vadd.f32 %v15710_v24, %v12778_v25  ;;  %v13111_v46 = vmax.f32 %v12787_v32, 0.0 }
 0x6c5   :  { %v12105_v57 = vmax.f32 %v11977_v3, 0.0  ;;  %v11810_v43 = vadd.f32 %v21238_v0, %v11264_v31  ;;  %v17305_v13 = vpop.f32.mrf.mxu0  ;;  %v21969_v0 = vld [vmem:[#allocation152_spill] sm:$0xff] }
 0x6c6   :  { %v12790_v48 = vadd.f32 %v17305_v13, %v15715_v61  ;;  %v11266_v60 = vpop.f32.mrf.mxu1  ;;  %v13109_v54 = vmax.f32 %v12779_v42, 0.0 }
 0x6c7   :  { %v12781_v45 = vpop.f32.mrf.mxu0  ;;  %v12176_v14 = vpack.c.bf16 %v12105_v57, %v12104_v59  ;;  %v11978_v49 = vadd.f32 %v11810_v43, %v21967_v8  ;;  %v21976_v57 = vld [vmem:[#allocation162_spill] sm:$0xff]  ;;  %v21978_v8 = vld [vmem:[#allocation97_spill] sm:$0xff] }
 0x6c8   :  { %v13112_v38 = vmax.f32 %v12790_v48, 0.0  ;;  %v12782_v51 = vadd.f32 %v15711_v19, %v12781_v45  ;;  %v11267_v39 = vpop.f32.mrf.mxu1  ;;  %v21975_v19 = vld [vmem:[#allocation86_spill] sm:$0xff] }
 0x6c9   :  { %v11813_v2 = vadd.f32 %v21968_v41, %v11267_v39  ;;  %17354 = vmatprep.mubr.bf16.mxu0 %v12176_v14  ;;  %v12106_v35 = vmax.f32 %v11978_v49, 0.0  ;;  %v21977_v45 = vld [vmem:[#allocation154_spill] sm:$0xff]  ;;  %v16198_v41 = vld [vmem:[#allocation3 + $0x118] sm:$0xff]  }
 0x6ca   :  { %v16002_v6 = vpack.c.bf16 %v13112_v38, %v13111_v46  ;;  %v13110_v16 = vmax.f32 %v12782_v51, 0.0  ;;  %v11269_v7 = vpop.f32.mrf.mxu1 }
 0x6cb   :  { %v11979_v12 = vadd.f32 %v11813_v2, %v21969_v0  ;;  %v15730_v7 = vunpack.c.l.bf16 %v16198_v41  ;;  %v21979_v0 = vld [vmem:[#allocation82_spill] sm:$0xff] }
 0x6cc   :  { %16257 = vst [vmem:[#allocation11 + $0xf8] sm:$0xff] %v16002_v6   ;;  %v15997_v4 = vpack.c.bf16 %v13110_v16, %v13109_v54  ;;  %v11272_v21 = vpop.f32.mrf.mxu1  ;;  %v16197_v6 = vld [vmem:[#allocation3 + $0x110] sm:$0xff]  }
 0x6cd   :  { %v12107_v27 = vmax.f32 %v11979_v12, 0.0  ;;  %v11818_v17 = vadd.f32 %v21970_v55, %v11272_v21  ;;  %v15726_v55 = vunpack.c.l.bf16 %v16197_v6 }
 0x6ce   :  { %16256 = vst [vmem:[#allocation11 + $0xf0] sm:$0xff] %v15997_v4   ;;  %v11274_v37 = vpop.f32.mrf.mxu1  ;;  %v21980_v4 = vld [vmem:[#allocation101_spill] sm:$0xff] }
 0x6cf   :  { %v12177_v36 = vpack.c.bf16 %v12107_v27, %v12106_v35  ;;  %v11980_v58 = vadd.f32 %v11818_v17, %v21971_v5  ;;  %v15731_v17 = vunpack.c.h.bf16 %v16198_v41  ;;  %v21989_v41 = vld [vmem:[#allocation157_spill] sm:$0xff] }
 0x6d0   :  { %v11275_v47 = vpop.f32.mrf.mxu1 }
 0x6d1   :  { %v11821_v53 = vadd.f32 %v21972_v62, %v11275_v47  ;;  %v17308_v1 = vpop.f32.mrf.mxu0  ;;  %17355 = vmatmul.mubr.bf16.gmra.mxu0 %v12177_v36  ;;  %v12108_v29 = vmax.f32 %v11980_v58, 0.0  ;;  %v21982_v62 = vld [vmem:[#allocation163_spill] sm:$0xff] }
 0x6d2   :  { %v11277_v28 = vpop.f32.mrf.mxu1  ;;  %v12803_v9 = vadd.f32 %v17308_v1, %v15722_v20  ;;  %v15727_v20 = vunpack.c.h.bf16 %v16197_v6 }
 0x6d3   :  { %v11981_v40 = vadd.f32 %v11821_v53, %v21973_v22  ;;  %v12794_v63 = vpop.f32.mrf.mxu0 }
 0x6d4   :  { %v11280_v18 = vpop.f32.mrf.mxu1  ;;  %v12795_v10 = vadd.f32 %v15718_v50, %v12794_v63  ;;  %v13115_v3 = vmax.f32 %v12803_v9, 0.0 }
 0x6d5   :  { %v12109_v11 = vmax.f32 %v11981_v40, 0.0  ;;  %v11826_v23 = vadd.f32 %v21974_v15, %v11280_v18  ;;  %v17309_v56 = vpop.f32.mrf.mxu0  ;;  %v21984_v15 = vld [vmem:[#allocation164_spill] sm:$0xff] }
 0x6d6   :  { %v12806_v30 = vadd.f32 %v17309_v56, %v15723_v34  ;;  %v11282_v24 = vpop.f32.mrf.mxu1  ;;  %v13113_v13 = vmax.f32 %v12795_v10, 0.0 }
 0x6d7   :  { %v12797_v61 = vpop.f32.mrf.mxu0  ;;  %v12178_v44 = vpack.c.bf16 %v12109_v11, %v12108_v29  ;;  %v11982_v59 = vadd.f32 %v11826_v23, %v21975_v19  ;;  %v21983_v29 = vld [vmem:[#allocation85_spill] sm:$0xff]  ;;  %v21986_v19 = vld [vmem:[#allocation104_spill] sm:$0xff] }
 0x6d8   :  { %v13116_v25 = vmax.f32 %v12806_v30, 0.0  ;;  %v12798_v32 = vadd.f32 %v15719_v52, %v12797_v61  ;;  %v11283_v31 = vpop.f32.mrf.mxu1  ;;  %v21985_v61 = vld [vmem:[#allocation156_spill] sm:$0xff] }
 0x6d9   :  { %v11829_v43 = vadd.f32 %v21976_v57, %v11283_v31  ;;  %17358 = vmatprep.mubr.bf16.mxu0 %v12178_v44  ;;  %v12110_v51 = vmax.f32 %v11982_v59, 0.0  ;;  %v16200_v57 = vld [vmem:[#allocation3 + $0x128] sm:$0xff]  }
 0x6da   :  { %v16012_v42 = vpack.c.bf16 %v13116_v25, %v13115_v3  ;;  %v13114_v48 = vmax.f32 %v12798_v32, 0.0  ;;  %v11285_v60 = vpop.f32.mrf.mxu1 }
 0x6db   :  { %v11983_v14 = vadd.f32 %v11829_v43, %v21977_v45  ;;  %v15738_v60 = vunpack.c.l.bf16 %v16200_v57  ;;  %v21987_v45 = vld [vmem:[#allocation89_spill] sm:$0xff] }
 0x6dc   :  { %16259 = vst [vmem:[#allocation11 + $0x108] sm:$0xff] %v16012_v42   ;;  %v16007_v46 = vpack.c.bf16 %v13114_v48, %v13113_v13  ;;  %v11288_v38 = vpop.f32.mrf.mxu1  ;;  %v16199_v42 = vld [vmem:[#allocation3 + $0x120] sm:$0xff]  }
 0x6dd   :  { %v12111_v39 = vmax.f32 %v11983_v14, 0.0  ;;  %v11834_v49 = vadd.f32 %v21978_v8, %v11288_v38  ;;  %v15734_v8 = vunpack.c.l.bf16 %v16199_v42 }
 0x6de   :  { %16258 = vst [vmem:[#allocation11 + $0x100] sm:$0xff] %v16007_v46   ;;  %v11290_v2 = vpop.f32.mrf.mxu1  ;;  %v21988_v46 = vld [vmem:[#allocation100_spill] sm:$0xff] }
 0x6df   :  { %v12179_v54 = vpack.c.bf16 %v12111_v39, %v12110_v51  ;;  %v11984_v12 = vadd.f32 %v11834_v49, %v21979_v0  ;;  %v15739_v49 = vunpack.c.h.bf16 %v16200_v57 }
 0x6e0   :  { %v11291_v16 = vpop.f32.mrf.mxu1 }
 0x6e1   :  { %v11837_v21 = vadd.f32 %v21980_v4, %v11291_v16  ;;  %v17312_v35 = vpop.f32.mrf.mxu0  ;;  %17359 = vmatmul.mubr.bf16.gmra.mxu0 %v12179_v54  ;;  %v12112_v5 = vmax.f32 %v11984_v12, 0.0  ;;  %v21990_v4 = vld [vmem:[#allocation165_spill] sm:$0xff] }
 0x6e2   :  { %v11293_v27 = vpop.f32.mrf.mxu1  ;;  %v12819_v33 = vadd.f32 %v17312_v35, %v15730_v7  ;;  %v15735_v7 = vunpack.c.h.bf16 %v16199_v42 }
 0x6e3   :  { %v11985_v37 = vadd.f32 %v11837_v21, %v21981_v26  ;;  %v12810_v36 = vpop.f32.mrf.mxu0 }
 0x6e4   :  { %v11296_v47 = vpop.f32.mrf.mxu1  ;;  %v12811_v28 = vadd.f32 %v15726_v55, %v12810_v36  ;;  %v13119_v63 = vmax.f32 %v12819_v33, 0.0 }
 0x6e5   :  { %v12113_v58 = vmax.f32 %v11985_v37, 0.0  ;;  %v11842_v53 = vadd.f32 %v21982_v62, %v11296_v47  ;;  %v17313_v1 = vpop.f32.mrf.mxu0  ;;  %v21992_v62 = vld [vmem:[#allocation166_spill] sm:$0xff] }
 0x6e6   :  { %v12822_v50 = vadd.f32 %v17313_v1, %v15731_v17  ;;  %v11298_v34 = vpop.f32.mrf.mxu1  ;;  %v13117_v56 = vmax.f32 %v12811_v28, 0.0 }
 0x6e7   :  { %v12813_v22 = vpop.f32.mrf.mxu0  ;;  %v12180_v40 = vpack.c.bf16 %v12113_v58, %v12112_v5  ;;  %v11986_v11 = vadd.f32 %v11842_v53, %v21983_v29  ;;  %v21991_v5 = vld [vmem:[#allocation92_spill] sm:$0xff] }
 0x6e8   :  { %v13120_v9 = vmax.f32 %v12822_v50, 0.0  ;;  %v12814_v18 = vadd.f32 %v15727_v20, %v12813_v22  ;;  %v11299_v52 = vpop.f32.mrf.mxu1  ;;  %v21993_v22 = vld [vmem:[#allocation158_spill] sm:$0xff] }
 0x6e9   :  { %v11845_v23 = vadd.f32 %v21984_v15, %v11299_v52  ;;  %17362 = vmatprep.mubr.bf16.mxu0 %v12180_v40  ;;  %v12114_v32 = vmax.f32 %v11986_v11, 0.0  ;;  %v16202_v52 = vld [vmem:[#allocation3 + $0x138] sm:$0xff]   ;;  %v16201_v11 = vld [vmem:[#allocation3 + $0x130] sm:$0xff]  }
 0x6ea   :  { %v16022_v10 = vpack.c.bf16 %v13120_v9, %v13119_v63  ;;  %v13118_v30 = vmax.f32 %v12814_v18, 0.0  ;;  %v11301_v24 = vpop.f32.mrf.mxu1  ;;  %v15746_v15 = vunpack.c.l.bf16 %v16202_v52 }
 0x6eb   :  { %v11987_v44 = vadd.f32 %v11845_v23, %v21985_v61  ;;  %v15743_v61 = vunpack.c.h.bf16 %v16201_v11 }
 0x6ec   :  { %16261 = vst [vmem:[#allocation11 + $0x118] sm:$0xff] %v16022_v10   ;;  %v16017_v3 = vpack.c.bf16 %v13118_v30, %v13117_v56  ;;  %v11304_v25 = vpop.f32.mrf.mxu1  ;;  %v15742_v56 = vunpack.c.l.bf16 %v16201_v11  ;;  %v15747_v10 = vunpack.c.h.bf16 %v16202_v52 }
 0x6ed   :  { %v12115_v31 = vmax.f32 %v11987_v44, 0.0  ;;  %v11850_v59 = vadd.f32 %v21986_v19, %v11304_v25 }
 0x6ee   :  { %16260 = vst [vmem:[#allocation11 + $0x110] sm:$0xff] %v16017_v3   ;;  %v11306_v43 = vpop.f32.mrf.mxu1 }
 0x6ef   :  { %v12181_v13 = vpack.c.bf16 %v12115_v31, %v12114_v32  ;;  %v11988_v14 = vadd.f32 %v11850_v59, %v21987_v45 }
 0x6f0   :  { %v11307_v48 = vpop.f32.mrf.mxu1 }
 0x6f1   :  { %v11853_v38 = vadd.f32 %v21988_v46, %v11307_v48  ;;  %v17316_v51 = vpop.f32.mrf.mxu0  ;;  %17363 = vmatmul.mubr.bf16.gmra.mxu0 %v12181_v13  ;;  %v12116_v0 = vmax.f32 %v11988_v14, 0.0  ;;  %v16204_v48 = vld [vmem:[#allocation3 + $0x148] sm:$0xff]  }
 0x6f2   :  { %v11309_v39 = vpop.f32.mrf.mxu1  ;;  %v12835_v6 = vadd.f32 %v17316_v51, %v15738_v60  ;;  %v16203_v60 = vld [vmem:[#allocation3 + $0x140] sm:$0xff]   ;;  %v15754_v45 = vunpack.c.l.bf16 %v16204_v48 }
 0x6f3   :  { %v11989_v2 = vadd.f32 %v11853_v38, %v21989_v41  ;;  %v12826_v54 = vpop.f32.mrf.mxu0  ;;  %v15750_v46 = vunpack.c.l.bf16 %v16203_v60  ;;  %v15755_v38 = vunpack.c.h.bf16 %v16204_v48 }
 0x6f4   :  { %v11312_v16 = vpop.f32.mrf.mxu1  ;;  %v12827_v27 = vadd.f32 %v15734_v8, %v12826_v54  ;;  %v13123_v36 = vmax.f32 %v12835_v6, 0.0  ;;  %v15751_v8 = vunpack.c.h.bf16 %v16203_v60 }
 0x6f5   :  { %v12117_v12 = vmax.f32 %v11989_v2, 0.0  ;;  %v11858_v21 = vadd.f32 %v21990_v4, %v11312_v16  ;;  %v17317_v35 = vpop.f32.mrf.mxu0 }
 0x6f6   :  { %v12838_v55 = vadd.f32 %v17317_v35, %v15739_v49  ;;  %v11314_v17 = vpop.f32.mrf.mxu1  ;;  %v13121_v1 = vmax.f32 %v12827_v27, 0.0  ;;  %v16206_v35 = vld [vmem:[#allocation3 + $0x158] sm:$0xff]   ;;  %v16205_v27 = vld [vmem:[#allocation3 + $0x150] sm:$0xff]  }
 0x6f7   :  { %v12829_v26 = vpop.f32.mrf.mxu0  ;;  %v12182_v37 = vpack.c.bf16 %v12117_v12, %v12116_v0  ;;  %v11990_v58 = vadd.f32 %v11858_v21, %v21991_v5 }
 0x6f8   :  { %v13124_v33 = vmax.f32 %v12838_v55, 0.0  ;;  %v12830_v47 = vadd.f32 %v15735_v7, %v12829_v26  ;;  %v11315_v20 = vpop.f32.mrf.mxu1  ;;  %v15762_v55 = vunpack.c.l.bf16 %v16206_v35  ;;  %v15758_v26 = vunpack.c.l.bf16 %v16205_v27 }
 0x6f9   :  { %v11861_v53 = vadd.f32 %v21992_v62, %v11315_v20  ;;  %17366 = vmatprep.mubr.bf16.mxu0 %v12182_v37  ;;  %v12118_v9 = vmax.f32 %v11990_v58, 0.0  ;;  %v15763_v37 = vunpack.c.h.bf16 %v16206_v35 }
 0x6fa   :  { %v16032_v28 = vpack.c.bf16 %v13124_v33, %v13123_v36  ;;  %v13122_v50 = vmax.f32 %v12830_v47, 0.0  ;;  %v11317_v34 = vpop.f32.mrf.mxu1  ;;  %v15759_v47 = vunpack.c.h.bf16 %v16205_v27 }
 0x6fb   :  { %v11991_v40 = vadd.f32 %v11861_v53, %v21993_v22 }
 0x6fc   :  { %16263 = vst [vmem:[#allocation11 + $0x128] sm:$0xff] %v16032_v28   ;;  %v16027_v63 = vpack.c.bf16 %v13122_v50, %v13121_v1 }
 0x6fd   :  { %v12119_v18 = vmax.f32 %v11991_v40, 0.0 }
 0x6fe   :  { %16262 = vst [vmem:[#allocation11 + $0x120] sm:$0xff] %v16027_v63   ;;  %v16208_v63 = vld [vmem:[#allocation3 + $0x168] sm:$0xff]  }
 0x6ff   :  { %v12183_v29 = vpack.c.bf16 %v12119_v18, %v12118_v9  ;;  %v16207_v9 = vld [vmem:[#allocation3 + $0x160] sm:$0xff]   ;;  %v15770_v18 = vunpack.c.l.bf16 %v16208_v63  ;;  %v15771_v11 = vunpack.c.h.bf16 %v16208_v63 }
 0x701   :  { %v17320_v23 = vpop.f32.mrf.mxu0  ;;  %17367 = vmatmul.mubr.bf16.gmra.mxu0 %v12183_v29  ;;  %v15766_v29 = vunpack.c.l.bf16 %v16207_v9 }
 0x702   :  { %v12851_v24 = vadd.f32 %v17320_v23, %v15746_v15 }
 0x703   :  { %v12842_v30 = vpop.f32.mrf.mxu0 }
 0x704   :  { %v12843_v3 = vadd.f32 %v15742_v56, %v12842_v30  ;;  %v13127_v31 = vmax.f32 %v12851_v24, 0.0  ;;  %v15767_v56 = vunpack.c.h.bf16 %v16207_v9 }
 0x705   :  { %v17321_v44 = vpop.f32.mrf.mxu0 }
 0x706   :  { %v12854_v25 = vadd.f32 %v17321_v44, %v15747_v10  ;;  %v13125_v57 = vmax.f32 %v12843_v3, 0.0 }
 0x707   :  { %v12845_v32 = vpop.f32.mrf.mxu0 }
 0x708   :  { %v13128_v19 = vmax.f32 %v12854_v25, 0.0  ;;  %v12846_v59 = vadd.f32 %v15743_v61, %v12845_v32 }
 0x70a   :  { %v16042_v43 = vpack.c.bf16 %v13128_v19, %v13127_v31  ;;  %v13126_v13 = vmax.f32 %v12846_v59, 0.0 }
 0x70c   :  { %16265 = vst [vmem:[#allocation11 + $0x138] sm:$0xff] %v16042_v43   ;;  %v16037_v42 = vpack.c.bf16 %v13126_v13, %v13125_v57  ;;  %v16210_v57 = vld [vmem:[#allocation3 + $0x178] sm:$0xff]   ;;  %v16209_v43 = vld [vmem:[#allocation3 + $0x170] sm:$0xff]  }
 0x70d   :  { %v15778_v13 = vunpack.c.l.bf16 %v16210_v57  ;;  %v15774_v48 = vunpack.c.l.bf16 %v16209_v43  ;;  %v15779_v60 = vunpack.c.h.bf16 %v16210_v57 }
 0x70e   :  { %16264 = vst [vmem:[#allocation11 + $0x130] sm:$0xff] %v16037_v42  }
 0x711   :  { %v17324_v14 = vpop.f32.mrf.mxu0 }
 0x712   :  { %v12867_v39 = vadd.f32 %v17324_v14, %v15754_v45 }
 0x713   :  { %v12858_v51 = vpop.f32.mrf.mxu0 }
 0x714   :  { %v12859_v41 = vadd.f32 %v15750_v46, %v12858_v51  ;;  %v13131_v6 = vmax.f32 %v12867_v39, 0.0  ;;  %v15775_v46 = vunpack.c.h.bf16 %v16209_v43 }
 0x715   :  { %v17325_v49 = vpop.f32.mrf.mxu0 }
 0x716   :  { %v12870_v2 = vadd.f32 %v17325_v49, %v15755_v38  ;;  %v13129_v0 = vmax.f32 %v12859_v41, 0.0 }
 0x717   :  { %v12861_v54 = vpop.f32.mrf.mxu0 }
 0x718   :  { %v13132_v16 = vmax.f32 %v12870_v2, 0.0  ;;  %v12862_v7 = vadd.f32 %v15751_v8, %v12861_v54 }
 0x71a   :  { %v16052_v12 = vpack.c.bf16 %v13132_v16, %v13131_v6  ;;  %v13130_v4 = vmax.f32 %v12862_v7, 0.0 }
 0x71c   :  { %16267 = vst [vmem:[#allocation11 + $0x148] sm:$0xff] %v16052_v12   ;;  %v16047_v21 = vpack.c.bf16 %v13130_v4, %v13129_v0  ;;  %v16212_v0 = vld [vmem:[#allocation3 + $0x188] sm:$0xff]   ;;  %v16211_v12 = vld [vmem:[#allocation3 + $0x180] sm:$0xff]  }
 0x71d   :  { %v15786_v4 = vunpack.c.l.bf16 %v16212_v0  ;;  %v15782_v35 = vunpack.c.l.bf16 %v16211_v12  ;;  %v15787_v27 = vunpack.c.h.bf16 %v16212_v0 }
 0x71e   :  { %16266 = vst [vmem:[#allocation11 + $0x140] sm:$0xff] %v16047_v21  }
 0x721   :  { %v17328_v17 = vpop.f32.mrf.mxu0 }
 0x722   :  { %v12883_v33 = vadd.f32 %v17328_v17, %v15762_v55 }
 0x723   :  { %v12874_v36 = vpop.f32.mrf.mxu0 }
 0x724   :  { %v12875_v5 = vadd.f32 %v15758_v26, %v12874_v36  ;;  %v13135_v53 = vmax.f32 %v12883_v33, 0.0  ;;  %v15783_v26 = vunpack.c.h.bf16 %v16211_v12 }
 0x725   :  { %v17329_v20 = vpop.f32.mrf.mxu0 }
 0x726   :  { %v12886_v58 = vadd.f32 %v17329_v20, %v15763_v37  ;;  %v13133_v50 = vmax.f32 %v12875_v5, 0.0 }
 0x727   :  { %v12877_v62 = vpop.f32.mrf.mxu0 }
 0x728   :  { %v13136_v1 = vmax.f32 %v12886_v58, 0.0  ;;  %v12878_v28 = vadd.f32 %v15759_v47, %v12877_v62 }
 0x72a   :  { %v16062_v34 = vpack.c.bf16 %v13136_v1, %v13135_v53  ;;  %v13134_v22 = vmax.f32 %v12878_v28, 0.0 }
 0x72c   :  { %16269 = vst [vmem:[#allocation11 + $0x158] sm:$0xff] %v16062_v34   ;;  %v16057_v40 = vpack.c.bf16 %v13134_v22, %v13133_v50  ;;  %v16214_v50 = vld [vmem:[#allocation3 + $0x198] sm:$0xff]   ;;  %v16213_v34 = vld [vmem:[#allocation3 + $0x190] sm:$0xff]  }
 0x72d   :  { %v15794_v22 = vunpack.c.l.bf16 %v16214_v50  ;;  %v15790_v63 = vunpack.c.l.bf16 %v16213_v34  ;;  %v15795_v9 = vunpack.c.h.bf16 %v16214_v50 }
 0x72e   :  { %16268 = vst [vmem:[#allocation11 + $0x150] sm:$0xff] %v16057_v40  }
 0x731   :  { %v17332_v52 = vpop.f32.mrf.mxu0 }
 0x732   :  { %v12899_v23 = vadd.f32 %v17332_v52, %v15770_v18 }
 0x733   :  { %v12890_v15 = vpop.f32.mrf.mxu0 }
 0x734   :  { %v12891_v30 = vadd.f32 %v15766_v29, %v12890_v15  ;;  %v13139_v44 = vmax.f32 %v12899_v23, 0.0  ;;  %v15791_v29 = vunpack.c.h.bf16 %v16213_v34 }
 0x735   :  { %v17333_v10 = vpop.f32.mrf.mxu0 }
 0x736   :  { %v12902_v24 = vadd.f32 %v17333_v10, %v15771_v11  ;;  %v13137_v32 = vmax.f32 %v12891_v30, 0.0 }
 0x737   :  { %v12893_v61 = vpop.f32.mrf.mxu0 }
 0x738   :  { %v13140_v3 = vmax.f32 %v12902_v24, 0.0  ;;  %v12894_v25 = vadd.f32 %v15767_v56, %v12893_v61 }
 0x73a   :  { %v16072_v31 = vpack.c.bf16 %v13140_v3, %v13139_v44  ;;  %v13138_v19 = vmax.f32 %v12894_v25, 0.0 }
 0x73c   :  { %16271 = vst [vmem:[#allocation11 + $0x168] sm:$0xff] %v16072_v31   ;;  %v16067_v59 = vpack.c.bf16 %v13138_v19, %v13137_v32  ;;  %v16216_v32 = vld [vmem:[#allocation3 + $0x1a8] sm:$0xff]   ;;  %v16215_v31 = vld [vmem:[#allocation3 + $0x1a0] sm:$0xff]  }
 0x73d   :  { %v15802_v19 = vunpack.c.l.bf16 %v16216_v32  ;;  %v15798_v57 = vunpack.c.l.bf16 %v16215_v31  ;;  %v15803_v43 = vunpack.c.h.bf16 %v16216_v32 }
 0x73e   :  { %16270 = vst [vmem:[#allocation11 + $0x160] sm:$0xff] %v16067_v59  }
 0x741   :  { %v17336_v42 = vpop.f32.mrf.mxu0 }
 0x742   :  { %v12915_v14 = vadd.f32 %v17336_v42, %v15778_v13 }
 0x743   :  { %v12906_v45 = vpop.f32.mrf.mxu0 }
 0x744   :  { %v12907_v51 = vadd.f32 %v15774_v48, %v12906_v45  ;;  %v13143_v49 = vmax.f32 %v12915_v14, 0.0  ;;  %v15799_v48 = vunpack.c.h.bf16 %v16215_v31 }
 0x745   :  { %v17337_v38 = vpop.f32.mrf.mxu0 }
 0x746   :  { %v12918_v39 = vadd.f32 %v17337_v38, %v15779_v60  ;;  %v13141_v54 = vmax.f32 %v12907_v51, 0.0 }
 0x747   :  { %v12909_v8 = vpop.f32.mrf.mxu0 }
 0x748   :  { %v13144_v41 = vmax.f32 %v12918_v39, 0.0  ;;  %v12910_v2 = vadd.f32 %v15775_v46, %v12909_v8 }
 0x74a   :  { %v16082_v6 = vpack.c.bf16 %v13144_v41, %v13143_v49  ;;  %v13142_v16 = vmax.f32 %v12910_v2, 0.0 }
 0x74c   :  { %16273 = vst [vmem:[#allocation11 + $0x178] sm:$0xff] %v16082_v6   ;;  %v16077_v7 = vpack.c.bf16 %v13142_v16, %v13141_v54  ;;  %v16218_v54 = vld [vmem:[#allocation3 + $0x1b8] sm:$0xff]   ;;  %v16217_v6 = vld [vmem:[#allocation3 + $0x1b0] sm:$0xff]  }
 0x74d   :  { %v15810_v16 = vunpack.c.l.bf16 %v16218_v54  ;;  %v15806_v0 = vunpack.c.l.bf16 %v16217_v6  ;;  %v15811_v12 = vunpack.c.h.bf16 %v16218_v54 }
 0x74e   :  { %16272 = vst [vmem:[#allocation11 + $0x170] sm:$0xff] %v16077_v7  }
 0x751   :  { %v17340_v21 = vpop.f32.mrf.mxu0 }
 0x752   :  { %v12931_v17 = vadd.f32 %v17340_v21, %v15786_v4 }
 0x753   :  { %v12922_v55 = vpop.f32.mrf.mxu0 }
 0x754   :  { %v12923_v36 = vadd.f32 %v15782_v35, %v12922_v55  ;;  %v13147_v20 = vmax.f32 %v12931_v17, 0.0  ;;  %v15807_v35 = vunpack.c.h.bf16 %v16217_v6 }
 0x755   :  { %v17341_v37 = vpop.f32.mrf.mxu0 }
 0x756   :  { %v12934_v33 = vadd.f32 %v17341_v37, %v15787_v27  ;;  %v13145_v62 = vmax.f32 %v12923_v36, 0.0 }
 0x757   :  { %v12925_v47 = vpop.f32.mrf.mxu0 }
 0x758   :  { %v13148_v5 = vmax.f32 %v12934_v33, 0.0  ;;  %v12926_v58 = vadd.f32 %v15783_v26, %v12925_v47 }
 0x75a   :  { %v16092_v53 = vpack.c.bf16 %v13148_v5, %v13147_v20  ;;  %v13146_v1 = vmax.f32 %v12926_v58, 0.0 }
 0x75c   :  { %16275 = vst [vmem:[#allocation11 + $0x188] sm:$0xff] %v16092_v53   ;;  %v16087_v28 = vpack.c.bf16 %v13146_v1, %v13145_v62  ;;  %v16220_v62 = vld [vmem:[#allocation3 + $0x1c8] sm:$0xff]   ;;  %v16219_v53 = vld [vmem:[#allocation3 + $0x1c0] sm:$0xff]  }
 0x75d   :  { %v15818_v1 = vunpack.c.l.bf16 %v16220_v62  ;;  %v15814_v50 = vunpack.c.l.bf16 %v16219_v53  ;;  %v15819_v34 = vunpack.c.h.bf16 %v16220_v62 }
 0x75e   :  { %16274 = vst [vmem:[#allocation11 + $0x180] sm:$0xff] %v16087_v28  }
 0x761   :  { %v17344_v40 = vpop.f32.mrf.mxu0 }
 0x762   :  { %v12947_v52 = vadd.f32 %v17344_v40, %v15794_v22 }
 0x763   :  { %v12938_v18 = vpop.f32.mrf.mxu0 }
 0x764   :  { %v12939_v15 = vadd.f32 %v15790_v63, %v12938_v18  ;;  %v13151_v10 = vmax.f32 %v12947_v52, 0.0  ;;  %v15815_v63 = vunpack.c.h.bf16 %v16219_v53 }
 0x765   :  { %v17345_v11 = vpop.f32.mrf.mxu0 }
 0x766   :  { %v12950_v23 = vadd.f32 %v17345_v11, %v15795_v9  ;;  %v13149_v61 = vmax.f32 %v12939_v15, 0.0 }
 0x767   :  { %v12941_v56 = vpop.f32.mrf.mxu0 }
 0x768   :  { %v13152_v30 = vmax.f32 %v12950_v23, 0.0  ;;  %v12942_v24 = vadd.f32 %v15791_v29, %v12941_v56 }
 0x76a   :  { %v16102_v44 = vpack.c.bf16 %v13152_v30, %v13151_v10  ;;  %v13150_v3 = vmax.f32 %v12942_v24, 0.0 }
 0x76c   :  { %16277 = vst [vmem:[#allocation11 + $0x198] sm:$0xff] %v16102_v44   ;;  %v16097_v25 = vpack.c.bf16 %v13150_v3, %v13149_v61  ;;  %v16222_v61 = vld [vmem:[#allocation3 + $0x1d8] sm:$0xff]   ;;  %v16221_v44 = vld [vmem:[#allocation3 + $0x1d0] sm:$0xff]  }
 0x76d   :  { %v15826_v3 = vunpack.c.l.bf16 %v16222_v61  ;;  %v15822_v32 = vunpack.c.l.bf16 %v16221_v44  ;;  %v15827_v31 = vunpack.c.h.bf16 %v16222_v61 }
 0x76e   :  { %16276 = vst [vmem:[#allocation11 + $0x190] sm:$0xff] %v16097_v25  }
 0x771   :  { %v17348_v59 = vpop.f32.mrf.mxu0 }
 0x772   :  { %v12963_v42 = vadd.f32 %v17348_v59, %v15802_v19 }
 0x773   :  { %v12954_v13 = vpop.f32.mrf.mxu0 }
 0x774   :  { %v12955_v45 = vadd.f32 %v15798_v57, %v12954_v13  ;;  %v13155_v38 = vmax.f32 %v12963_v42, 0.0  ;;  %v15823_v57 = vunpack.c.h.bf16 %v16221_v44 }
 0x775   :  { %v17349_v60 = vpop.f32.mrf.mxu0 }
 0x776   :  { %v12966_v14 = vadd.f32 %v17349_v60, %v15803_v43  ;;  %v13153_v8 = vmax.f32 %v12955_v45, 0.0 }
 0x777   :  { %v12957_v46 = vpop.f32.mrf.mxu0 }
 0x778   :  { %v13156_v51 = vmax.f32 %v12966_v14, 0.0  ;;  %v12958_v39 = vadd.f32 %v15799_v48, %v12957_v46 }
 0x77a   :  { %v16112_v49 = vpack.c.bf16 %v13156_v51, %v13155_v38  ;;  %v13154_v41 = vmax.f32 %v12958_v39, 0.0 }
 0x77c   :  { %16279 = vst [vmem:[#allocation11 + $0x1a8] sm:$0xff] %v16112_v49   ;;  %v16107_v2 = vpack.c.bf16 %v13154_v41, %v13153_v8  ;;  %v16224_v8 = vld [vmem:[#allocation3 + $0x1e8] sm:$0xff]   ;;  %v16223_v49 = vld [vmem:[#allocation3 + $0x1e0] sm:$0xff]  }
 0x77d   :  { %v15834_v41 = vunpack.c.l.bf16 %v16224_v8  ;;  %v15830_v54 = vunpack.c.l.bf16 %v16223_v49  ;;  %v15835_v6 = vunpack.c.h.bf16 %v16224_v8 }
 0x77e   :  { %16278 = vst [vmem:[#allocation11 + $0x1a0] sm:$0xff] %v16107_v2  }
 0x781   :  { %v17352_v7 = vpop.f32.mrf.mxu0 }
 0x782   :  { %v12979_v21 = vadd.f32 %v17352_v7, %v15810_v16 }
 0x783   :  { %v12970_v4 = vpop.f32.mrf.mxu0 }
 0x784   :  { %v12971_v55 = vadd.f32 %v15806_v0, %v12970_v4  ;;  %v13159_v37 = vmax.f32 %v12979_v21, 0.0  ;;  %v15831_v0 = vunpack.c.h.bf16 %v16223_v49 }
 0x785   :  { %v17353_v27 = vpop.f32.mrf.mxu0 }
 0x786   :  { %v12982_v17 = vadd.f32 %v17353_v27, %v15811_v12  ;;  %v13157_v47 = vmax.f32 %v12971_v55, 0.0 }
 0x787   :  { %v12973_v26 = vpop.f32.mrf.mxu0 }
 0x788   :  { %v13160_v36 = vmax.f32 %v12982_v17, 0.0  ;;  %v12974_v33 = vadd.f32 %v15807_v35, %v12973_v26 }
 0x78a   :  { %v16122_v20 = vpack.c.bf16 %v13160_v36, %v13159_v37  ;;  %v13158_v5 = vmax.f32 %v12974_v33, 0.0 }
 0x78c   :  { %16281 = vst [vmem:[#allocation11 + $0x1b8] sm:$0xff] %v16122_v20   ;;  %v16117_v58 = vpack.c.bf16 %v13158_v5, %v13157_v47  ;;  %v16226_v47 = vld [vmem:[#allocation3 + $0x1f8] sm:$0xff]   ;;  %v16225_v20 = vld [vmem:[#allocation3 + $0x1f0] sm:$0xff]  }
 0x78d   :  { %v15842_v5 = vunpack.c.l.bf16 %v16226_v47  ;;  %v15838_v62 = vunpack.c.l.bf16 %v16225_v20  ;;  %v15843_v53 = vunpack.c.h.bf16 %v16226_v47 }
 0x78e   :  { %16280 = vst [vmem:[#allocation11 + $0x1b0] sm:$0xff] %v16117_v58  }
 0x791   :  { %v17356_v28 = vpop.f32.mrf.mxu0 }
 0x792   :  { %v12995_v40 = vadd.f32 %v17356_v28, %v15818_v1 }
 0x793   :  { %v12986_v22 = vpop.f32.mrf.mxu0 }
 0x794   :  { %v12987_v18 = vadd.f32 %v15814_v50, %v12986_v22  ;;  %v13163_v11 = vmax.f32 %v12995_v40, 0.0  ;;  %v15839_v50 = vunpack.c.h.bf16 %v16225_v20 }
 0x795   :  { %v17357_v9 = vpop.f32.mrf.mxu0 }
 0x796   :  { %v12998_v52 = vadd.f32 %v17357_v9, %v15819_v34  ;;  %v13161_v56 = vmax.f32 %v12987_v18, 0.0 }
 0x797   :  { %v12989_v29 = vpop.f32.mrf.mxu0 }
 0x798   :  { %v13164_v15 = vmax.f32 %v12998_v52, 0.0  ;;  %v12990_v23 = vadd.f32 %v15815_v63, %v12989_v29 }
 0x79a   :  { %v16132_v10 = vpack.c.bf16 %v13164_v15, %v13163_v11  ;;  %v13162_v30 = vmax.f32 %v12990_v23, 0.0 }
 0x79c   :  { %16283 = vst [vmem:[#allocation11 + $0x1c8] sm:$0xff] %v16132_v10   ;;  %v16127_v24 = vpack.c.bf16 %v13162_v30, %v13161_v56 }
 0x79e   :  { %16282 = vst [vmem:[#allocation11 + $0x1c0] sm:$0xff] %v16127_v24  }
 0x7a1   :  { %v17360_v25 = vpop.f32.mrf.mxu0 }
 0x7a2   :  { %v13011_v59 = vadd.f32 %v17360_v25, %v15826_v3 }
 0x7a3   :  { %v13002_v19 = vpop.f32.mrf.mxu0 }
 0x7a4   :  { %v13003_v13 = vadd.f32 %v15822_v32, %v13002_v19  ;;  %v13167_v60 = vmax.f32 %v13011_v59, 0.0 }
 0x7a5   :  { %v17361_v43 = vpop.f32.mrf.mxu0 }
 0x7a6   :  { %v13014_v42 = vadd.f32 %v17361_v43, %v15827_v31  ;;  %v13165_v46 = vmax.f32 %v13003_v13, 0.0 }
 0x7a7   :  { %v13005_v48 = vpop.f32.mrf.mxu0 }
 0x7a8   :  { %v13168_v45 = vmax.f32 %v13014_v42, 0.0  ;;  %v13006_v14 = vadd.f32 %v15823_v57, %v13005_v48 }
 0x7aa   :  { %v16142_v38 = vpack.c.bf16 %v13168_v45, %v13167_v60  ;;  %v13166_v51 = vmax.f32 %v13006_v14, 0.0 }
 0x7ac   :  { %16285 = vst [vmem:[#allocation11 + $0x1d8] sm:$0xff] %v16142_v38   ;;  %v16137_v39 = vpack.c.bf16 %v13166_v51, %v13165_v46 }
 0x7ae   :  { %16284 = vst [vmem:[#allocation11 + $0x1d0] sm:$0xff] %v16137_v39  }
 0x7b1   :  { %v17364_v2 = vpop.f32.mrf.mxu0 }
 0x7b2   :  { %v13027_v7 = vadd.f32 %v17364_v2, %v15834_v41 }
 0x7b3   :  { %v13018_v16 = vpop.f32.mrf.mxu0 }
 0x7b4   :  { %v13019_v4 = vadd.f32 %v15830_v54, %v13018_v16  ;;  %v13171_v27 = vmax.f32 %v13027_v7, 0.0 }
 0x7b5   :  { %v17365_v12 = vpop.f32.mrf.mxu0 }
 0x7b6   :  { %v13030_v21 = vadd.f32 %v17365_v12, %v15835_v6  ;;  %v13169_v26 = vmax.f32 %v13019_v4, 0.0 }
 0x7b7   :  { %v13021_v35 = vpop.f32.mrf.mxu0 }
 0x7b8   :  { %v13172_v55 = vmax.f32 %v13030_v21, 0.0  ;;  %v13022_v17 = vadd.f32 %v15831_v0, %v13021_v35 }
 0x7ba   :  { %v16152_v37 = vpack.c.bf16 %v13172_v55, %v13171_v27  ;;  %v13170_v36 = vmax.f32 %v13022_v17, 0.0 }
 0x7bc   :  { %16287 = vst [vmem:[#allocation11 + $0x1e8] sm:$0xff] %v16152_v37   ;;  %v16147_v33 = vpack.c.bf16 %v13170_v36, %v13169_v26 }
 0x7be   :  { %16286 = vst [vmem:[#allocation11 + $0x1e0] sm:$0xff] %v16147_v33  }
 0x7c1   :  { %v17368_v58 = vpop.f32.mrf.mxu0 }
 0x7c2   :  { %v13043_v28 = vadd.f32 %v17368_v58, %v15842_v5 }
 0x7c3   :  { %v13034_v1 = vpop.f32.mrf.mxu0 }
 0x7c4   :  { %v13035_v22 = vadd.f32 %v15838_v62, %v13034_v1  ;;  %v13175_v9 = vmax.f32 %v13043_v28, 0.0 }
 0x7c5   :  { %v17369_v34 = vpop.f32.mrf.mxu0 }
 0x7c6   :  { %v13046_v40 = vadd.f32 %v17369_v34, %v15843_v53  ;;  %v13173_v29 = vmax.f32 %v13035_v22, 0.0 }
 0x7c7   :  { %v13037_v63 = vpop.f32.mrf.mxu0 }
 0x7c8   :  { %v13176_v18 = vmax.f32 %v13046_v40, 0.0  ;;  %v13038_v52 = vadd.f32 %v15839_v50, %v13037_v63 }
 0x7ca   :  { %v16162_v11 = vpack.c.bf16 %v13176_v18, %v13175_v9  ;;  %v13174_v15 = vmax.f32 %v13038_v52, 0.0 }
 0x7cc   :  { %16289 = vst [vmem:[#allocation11 + $0x1f8] sm:$0xff] %v16162_v11   ;;  %v16157_v23 = vpack.c.bf16 %v13174_v15, %v13173_v29 }
 0x7ce   :  { %16288 = vst [vmem:[#allocation11 + $0x1f0] sm:$0xff] %v16157_v23  }
 0x7cf   :  { %18387 = shalt.err (!%p18384_p10)
}
 0x7d0   :  { %13828 = dma.vmem_to_hbm [thread:$0]  %s13823_s3, 8192, %s21405_s4, [#allocation5], %s18406_s20, %s18406_s20, %s18407_s21  }
 0x7d1   :  { %18402 = dma.done.wait [#allocation5], 8192  }
 0x7d2   :  { %18403 = vsyncadd [#allocation5], 4294959104 }
 0x7d3   :  { %13832 = vsyncpa [#allocation4], 1 }
 0x7d4   :  { %13833 = vsyncpa [#allocation7], 1 }
 0x7d5   :  { %13834 = vsyncpa [#allocation10], 1 }
 0x7d6   :  { %13835 = vsyncpa [#allocation5], 1 }

</bundles_post_ra>
